<compile_context>
chip_gen: v6e
topology: v6e:2x2x1
jax: 0.10.0
libtpu: 0.0.40
codegen_flags: <defaults>
</compile_context>

<pallas_src>
import functools

import jax
import jax.numpy as jnp
import numpy as np
from jax.experimental import pallas as pl
from jax.experimental.pallas import tpu as pltpu

_BN_EPS = 1e-5


def _round_up(v, m):
    return (v + m - 1) // m * m


# ----------------------------------------------------------------------------
# Fused BasicBlock kernel (one batch element per grid step)
# ----------------------------------------------------------------------------
def _basic_block_kernel(x_ref, w1_ref, b1_ref, w2_ref, b2_ref, o_ref,
                        xpad, hpad, cols, *, H, W, C, Wp):
    """All intermediates stay resident in VMEM for one image.

    Layout trick: the zero-padded image is stored flat as ((H+4)*Wp, C) with
    image row r at flat rows [(r+2)*Wp, (r+2)*Wp + W) and columns [W, Wp)
    zero.  Because rows are Wp apart in flat index space, the single zero
    column serves as both the right halo of row r and the left halo of row
    r+1, and the 3x3 conv output at flat position j is
        sum_{kh,kw} P[j + (Wp-1) + kh*Wp + kw] @ Wt[kh,kw],
    i.e. three K=3*C matmuls over contiguous windows of the flat buffer.
    Flat output columns w in [W, Wp) are garbage and are masked / sliced away.

    x_ref  : (1, H, Wp, C) f32   input, W-padded to Wp with zeros on the host
    w1_ref : (9*C, C)     bf16   conv1 weights, BN1 scale folded, (kh,kw,cin)
    b1_ref : (1, C)       f32    BN1 shift
    w2_ref : (9*C, C)     bf16   conv2 weights, BN2 scale folded
    b2_ref : (1, C)       f32    BN2 shift
    o_ref  : (1, H, W, C) f32    output tile
    xpad   : VMEM ((H+4)*Wp, C)   bf16  flat padded input
    hpad   : VMEM ((H+4)*Wp, C)   bf16  flat padded conv1 activation
    cols   : VMEM ((H+2)*Wp, 3*C) bf16  staging slab (shared by both convs)
    """
    HWp = H * Wp
    Rcols = (H + 2) * Wp

    # ---- border zeroing only (interior rows fully overwritten below) -------
    top_zeros = jnp.zeros((2 * Wp, C), jnp.bfloat16)
    bot_zeros = jnp.zeros((Wp, C), jnp.bfloat16)
    xpad[pl.ds(0, 2 * Wp), :] = top_zeros              # slack row + top halo
    xpad[pl.ds((H + 2) * Wp, Wp), :] = bot_zeros       # bottom halo
    hpad[pl.ds(0, 2 * Wp), :] = top_zeros
    hpad[pl.ds((H + 2) * Wp, Wp), :] = bot_zeros

    # ---- image interior (already W-padded with zeros -> zero column free) --
    x_full = x_ref[0]                                   # (H, Wp, C) f32
    xpad[pl.ds(2 * Wp, HWp), :] = (
        x_full.astype(jnp.bfloat16).reshape(HWp, C))

    def conv3x3(pad, w_ref):
        # Stage 3 contiguous, kw-shifted overlapping flat windows
        # (3 copies instead of 9 strided im2col slices).
        for kw in range(3):
            cols[:, kw * C:(kw + 1) * C] = pad[pl.ds(Wp - 1 + kw, Rcols), :]
        # 3 MXU matmuls, K = 3*C, bf16 operands, f32 accumulation.
        y = None
        for kh in range(3):
            part = jnp.dot(cols[pl.ds(kh * Wp, HWp), :],
                           w_ref[pl.ds(kh * 3 * C, 3 * C), :],
                           preferred_element_type=jnp.float32)
            y = part if y is None else y + part
        return y                                        # (HWp, C) f32

    # conv1 + bn1 shift + relu.  Mask the garbage columns (w >= W) to zero so
    # the shared zero-column trick stays valid for conv2's halos.
    y1 = conv3x3(xpad, w1_ref).reshape(H, Wp, C)
    h1 = jnp.maximum(y1 + b1_ref[...], 0.0)
    wmask = jax.lax.broadcasted_iota(jnp.int32, (Wp, C), 0) < W
    h1 = jnp.where(wmask, h1, 0.0)
    hpad[pl.ds(2 * Wp, HWp), :] = h1.astype(jnp.bfloat16).reshape(HWp, C)

    # conv2 + bn2 shift + residual add + relu (identity read once, in f32).
    y2 = conv3x3(hpad, w2_ref).reshape(H, Wp, C)[:, :W, :]        # (H, W, C)
    out = jnp.maximum(y2 + b2_ref[...] + x_full[:, :W, :], 0.0)
    o_ref[0] = out.astype(o_ref.dtype)


# ----------------------------------------------------------------------------
# Wrapper
# ----------------------------------------------------------------------------
def _fold_bn(gamma, beta, mean, var, eps=_BN_EPS):
    scale = gamma / jnp.sqrt(var + eps)
    shift = beta - mean * scale
    return scale, shift


def basic_block_forward(x_nchw, params):
    """Equivalent of BasicBlock.forward (stride=1, downsample=None, eval BN)."""
    N, C, H, W = x_nchw.shape
    w1, w2 = params["w1"], params["w2"]
    # Scope guard: in_channels == out_channels, stride=1, no downsample.
    assert w1.shape == (3, 3, C, C) and w2.shape == (3, 3, C, C)

    # Fold BN scale into conv weights (host-side, once); keep the shift.
    s1, b1 = _fold_bn(*params["bn1"])
    s2, b2 = _fold_bn(*params["bn2"])
    w1f = (w1 * s1[None, None, None, :]).reshape(9 * C, C).astype(jnp.bfloat16)
    w2f = (w2 * s2[None, None, None, :]).reshape(9 * C, C).astype(jnp.bfloat16)
    b1f = b1.reshape(1, C).astype(jnp.float32)
    b2f = b2.reshape(1, C).astype(jnp.float32)

    # Row pitch of the flat padded buffers: W+1 rounded up to the sublane
    # tile so every big store in the kernel is sublane-aligned.
    Wp = _round_up(W + 1, 8)

    # NCHW -> NHWC (channels on the lane axis) and pad W -> Wp once on the
    # host so the in-kernel interior write is a single aligned flat store.
    x = jnp.transpose(x_nchw, (0, 2, 3, 1)).astype(jnp.float32)
    xw = jnp.pad(x, ((0, 0), (0, 0), (0, Wp - W), (0, 0)))           # (N,H,Wp,C)

    kernel = functools.partial(_basic_block_kernel, H=H, W=W, C=C, Wp=Wp)
    grid_spec = pltpu.PrefetchScalarGridSpec(
        num_scalar_prefetch=0,
        grid=(N,),
        in_specs=[
            pl.BlockSpec((1, H, Wp, C), lambda n: (n, 0, 0, 0)),   # x / identity
            pl.BlockSpec((9 * C, C), lambda n: (0, 0)),            # w1 (folded)
            pl.BlockSpec((1, C), lambda n: (0, 0)),                # bn1 shift
            pl.BlockSpec((9 * C, C), lambda n: (0, 0)),            # w2 (folded)
            pl.BlockSpec((1, C), lambda n: (0, 0)),                # bn2 shift
        ],
        out_specs=pl.BlockSpec((1, H, W, C), lambda n: (n, 0, 0, 0)),
        scratch_shapes=[
            pltpu.VMEM(((H + 4) * Wp, C), jnp.bfloat16),       # xpad (flat)
            pltpu.VMEM(((H + 4) * Wp, C), jnp.bfloat16),       # hpad (flat)
            pltpu.VMEM(((H + 2) * Wp, 3 * C), jnp.bfloat16),   # staging slab
        ],
    )
    out = pl.pallas_call(
        kernel,
        out_shape=jax.ShapeDtypeStruct((N, H, W, C), jnp.float32),
        grid_spec=grid_spec,
        compiler_params=pltpu.CompilerParams(
            dimension_semantics=("parallel",),
            vmem_limit_bytes=32 * 1024 * 1024),
    )(xw, w1f, b1f, w2f, b2f)

    return jnp.transpose(out, (0, 3, 1, 2))                # NHWC -> NCHW


# ----------------------------------------------------------------------------
# Pure-JAX reference (module-faithful, f32) for the correctness check
# ----------------------------------------------------------------------------
def _ref_forward(x_nchw, params):
    def conv(x, w):
        return jax.lax.conv_general_dilated(
            x, w, window_strides=(1, 1), padding=((1, 1), (1, 1)),
            dimension_numbers=("NHWC", "HWIO", "NHWC"))

    x = jnp.transpose(x_nchw, (0, 2, 3, 1))
    identity = x
    s1, b1 = _fold_bn(*params["bn1"])
    s2, b2 = _fold_bn(*params["bn2"])
    out = jax.nn.relu(conv(x, params["w1"]) * s1 + b1)
    out = jax.nn.relu(conv(out, params["w2"]) * s2 + b2 + identity)
    return jnp.transpose(out, (0, 3, 1, 2))


# ----------------------------------------------------------------------------
# Main (small correctness config; benchmark at C>=64 real ResNet shapes)
# ----------------------------------------------------------------------------
if __name__ == "__main__":
    key = jax.random.PRNGKey(0)
    N, C, H, W = 2, 8, 16, 16          # in_channels == out_channels, stride=1
    (k_x, k_w1, k_w2, k_g1, k_b1, k_m1, k_v1,
     k_g2, k_b2, k_m2, k_v2) = jax.random.split(key, 11)

    x = jax.random.normal(k_x, (N, C, H, W), jnp.float32)

    params = {
        # conv weights in HWIO layout (3, 3, Cin, Cout); PyTorch OIHW weights
        # would be transposed with (2, 3, 1, 0) at load time. bias=False.
        "w1": 0.1 * jax.random.normal(k_w1, (3, 3, C, C), jnp.float32),
        "w2": 0.1 * jax.random.normal(k_w2, (3, 3, C, C), jnp.float32),
        # BatchNorm2d params: (gamma, beta, running_mean, running_var)
        "bn1": (
            jax.random.uniform(k_g1, (C,), jnp.float32, 0.5, 1.5),
            0.1 * jax.random.normal(k_b1, (C,), jnp.float32),
            0.1 * jax.random.normal(k_m1, (C,), jnp.float32),
            jax.random.uniform(k_v1, (C,), jnp.float32, 0.5, 1.5),
        ),
        "bn2": (
            jax.random.uniform(k_g2, (C,), jnp.float32, 0.5, 1.5),
            0.1 * jax.random.normal(k_b2, (C,), jnp.float32),
            0.1 * jax.random.normal(k_m2, (C,), jnp.float32),
            jax.random.uniform(k_v2, (C,), jnp.float32, 0.5, 1.5),
        ),
    }

    out = jax.block_until_ready(basic_block_forward(x, params))
    ref = jax.block_until_ready(_ref_forward(x, params))

    # Tolerance reflects bf16 MXU operands (f32 accumulation): ~1e-2 level
    # deviation vs. the f32 reference; structural bugs would be O(0.1-1).
    np.testing.assert_allclose(np.asarray(out), np.asarray(ref),
                               rtol=4e-2, atol=4e-2)

    assert out.shape == (N, C, H, W)
    print("KERNEL_OK")
</pallas_src>

<mosaic_0001>
module attributes {stable_mosaic.version = 11 : i64} {
  func.func @_basic_block_kernel(%arg0: i32, %arg1: memref<1x16x24x8xf32, #tpu.memory_space<vmem>>, %arg2: memref<72x8xbf16, #tpu.memory_space<vmem>>, %arg3: memref<1x8xf32, #tpu.memory_space<vmem>>, %arg4: memref<72x8xbf16, #tpu.memory_space<vmem>>, %arg5: memref<1x8xf32, #tpu.memory_space<vmem>>, %arg6: memref<1x16x16x8xf32, #tpu.memory_space<vmem>>, %arg7: memref<480x8xbf16, #tpu.memory_space<vmem>>, %arg8: memref<480x8xbf16, #tpu.memory_space<vmem>>, %arg9: memref<432x24xbf16, #tpu.memory_space<vmem>>) attributes {dimension_semantics = [#tpu.dimension_semantics<parallel>], iteration_bounds = array<i64: 2>, scalar_prefetch = 0 : i64, scratch_operands = 3 : i64, tpu.core_type = #tpu.core_type<tc>, window_params = [{transform_indices = @transform_0, window_bounds = array<i64: 1, 16, 24, 8>}, {pipeline_mode = #tpu.pipeline_mode<synchronous>, transform_indices = @transform_1, window_bounds = array<i64: 72, 8>}, {pipeline_mode = #tpu.pipeline_mode<synchronous>, transform_indices = @transform_2, window_bounds = array<i64: 1, 8>}, {pipeline_mode = #tpu.pipeline_mode<synchronous>, transform_indices = @transform_3, window_bounds = array<i64: 72, 8>}, {pipeline_mode = #tpu.pipeline_mode<synchronous>, transform_indices = @transform_4, window_bounds = array<i64: 1, 8>}, {transform_indices = @transform_5, window_bounds = array<i64: 1, 16, 16, 8>}]} {
    %cst = arith.constant 0.000000e+00 : bf16
    %0 = vector.broadcast %cst : bf16 to vector<48x8xbf16>
    %cst_0 = arith.constant 0.000000e+00 : bf16
    %1 = vector.broadcast %cst_0 : bf16 to vector<24x8xbf16>
    %c0 = arith.constant 0 : index
    %c0_1 = arith.constant 0 : index
    %2 = vector.load %arg7[%c0, %c0_1] : memref<480x8xbf16, #tpu.memory_space<vmem>>, vector<48x8xbf16>
    tpu.vector_store %arg7[%c0, %c0_1], %0 {strides = array<i32>} : memref<480x8xbf16, #tpu.memory_space<vmem>>, vector<48x8xbf16>,
    %c432 = arith.constant 432 : index
    %c0_2 = arith.constant 0 : index
    %3 = vector.load %arg7[%c432, %c0_2] : memref<480x8xbf16, #tpu.memory_space<vmem>>, vector<24x8xbf16>
    tpu.vector_store %arg7[%c432, %c0_2], %1 {strides = array<i32>} : memref<480x8xbf16, #tpu.memory_space<vmem>>, vector<24x8xbf16>,
    %c0_3 = arith.constant 0 : index
    %c0_4 = arith.constant 0 : index
    %4 = vector.load %arg8[%c0_3, %c0_4] : memref<480x8xbf16, #tpu.memory_space<vmem>>, vector<48x8xbf16>
    tpu.vector_store %arg8[%c0_3, %c0_4], %0 {strides = array<i32>} : memref<480x8xbf16, #tpu.memory_space<vmem>>, vector<48x8xbf16>,
    %c432_5 = arith.constant 432 : index
    %c0_6 = arith.constant 0 : index
    %5 = vector.load %arg8[%c432_5, %c0_6] : memref<480x8xbf16, #tpu.memory_space<vmem>>, vector<24x8xbf16>
    tpu.vector_store %arg8[%c432_5, %c0_6], %1 {strides = array<i32>} : memref<480x8xbf16, #tpu.memory_space<vmem>>, vector<24x8xbf16>,
    %c0_7 = arith.constant 0 : index
    %c0_8 = arith.constant 0 : index
    %c0_9 = arith.constant 0 : index
    %c0_10 = arith.constant 0 : index
    %6 = vector.load %arg1[%c0_7, %c0_8, %c0_9, %c0_10] : memref<1x16x24x8xf32, #tpu.memory_space<vmem>>, vector<1x16x24x8xf32>
    %7 = vector.shape_cast %6 : vector<1x16x24x8xf32> to vector<16x24x8xf32>
    %8 = arith.truncf %7 : vector<16x24x8xf32> to vector<16x24x8xbf16>
    %9 = vector.shape_cast %8 : vector<16x24x8xbf16> to vector<384x8xbf16>
    %c48 = arith.constant 48 : index
    %c0_11 = arith.constant 0 : index
    %10 = vector.load %arg7[%c48, %c0_11] : memref<480x8xbf16, #tpu.memory_space<vmem>>, vector<384x8xbf16>
    tpu.vector_store %arg7[%c48, %c0_11], %9 {strides = array<i32>} : memref<480x8xbf16, #tpu.memory_space<vmem>>, vector<384x8xbf16>,
    %c23 = arith.constant 23 : index
    %c0_12 = arith.constant 0 : index
    %11 = vector.load %arg7[%c23, %c0_12] : memref<480x8xbf16, #tpu.memory_space<vmem>>, vector<432x8xbf16>
    %c0_13 = arith.constant 0 : index
    %c0_14 = arith.constant 0 : index
    %12 = vector.load %arg9[%c0_13, %c0_14] : memref<432x24xbf16, #tpu.memory_space<vmem>>, vector<432x8xbf16>
    tpu.vector_store %arg9[%c0_13, %c0_14], %11 {strides = array<i32>} : memref<432x24xbf16, #tpu.memory_space<vmem>>, vector<432x8xbf16>,
    %c24 = arith.constant 24 : index
    %c0_15 = arith.constant 0 : index
    %13 = vector.load %arg7[%c24, %c0_15] : memref<480x8xbf16, #tpu.memory_space<vmem>>, vector<432x8xbf16>
    %c0_16 = arith.constant 0 : index
    %c8 = arith.constant 8 : index
    %14 = vector.load %arg9[%c0_16, %c8] : memref<432x24xbf16, #tpu.memory_space<vmem>>, vector<432x8xbf16>
    tpu.vector_store %arg9[%c0_16, %c8], %13 {strides = array<i32>} : memref<432x24xbf16, #tpu.memory_space<vmem>>, vector<432x8xbf16>,
    %c25 = arith.constant 25 : index
    %c0_17 = arith.constant 0 : index
    %15 = vector.load %arg7[%c25, %c0_17] : memref<480x8xbf16, #tpu.memory_space<vmem>>, vector<432x8xbf16>
    %c0_18 = arith.constant 0 : index
    %c16 = arith.constant 16 : index
    %16 = vector.load %arg9[%c0_18, %c16] : memref<432x24xbf16, #tpu.memory_space<vmem>>, vector<432x8xbf16>
    tpu.vector_store %arg9[%c0_18, %c16], %15 {strides = array<i32>} : memref<432x24xbf16, #tpu.memory_space<vmem>>, vector<432x8xbf16>,
    %c0_19 = arith.constant 0 : index
    %c0_20 = arith.constant 0 : index
    %17 = vector.load %arg9[%c0_19, %c0_20] : memref<432x24xbf16, #tpu.memory_space<vmem>>, vector<384x24xbf16>
    %c0_21 = arith.constant 0 : index
    %c0_22 = arith.constant 0 : index
    %18 = vector.load %arg2[%c0_21, %c0_22] : memref<72x8xbf16, #tpu.memory_space<vmem>>, vector<24x8xbf16>
    %cst_23 = arith.constant dense<0.000000e+00> : vector<384x8xf32>
    %19 = tpu.matmul %17, %18, %cst_23 {dimension_numbers = #tpu.dot_dimension_numbers<[1], [0], [0], [1], [0, 0, 1, 1], [], []>} : vector<384x24xbf16>, vector<24x8xbf16>, vector<384x8xf32> -> vector<384x8xf32>
    %c24_24 = arith.constant 24 : index
    %c0_25 = arith.constant 0 : index
    %20 = vector.load %arg9[%c24_24, %c0_25] : memref<432x24xbf16, #tpu.memory_space<vmem>>, vector<384x24xbf16>
    %c24_26 = arith.constant 24 : index
    %c0_27 = arith.constant 0 : index
    %21 = vector.load %arg2[%c24_26, %c0_27] : memref<72x8xbf16, #tpu.memory_space<vmem>>, vector<24x8xbf16>
    %cst_28 = arith.constant dense<0.000000e+00> : vector<384x8xf32>
    %22 = tpu.matmul %20, %21, %cst_28 {dimension_numbers = #tpu.dot_dimension_numbers<[1], [0], [0], [1], [0, 0, 1, 1], [], []>} : vector<384x24xbf16>, vector<24x8xbf16>, vector<384x8xf32> -> vector<384x8xf32>
    %23 = arith.addf %19, %22 : vector<384x8xf32>
    %c48_29 = arith.constant 48 : index
    %c0_30 = arith.constant 0 : index
    %24 = vector.load %arg9[%c48_29, %c0_30] : memref<432x24xbf16, #tpu.memory_space<vmem>>, vector<384x24xbf16>
    %c48_31 = arith.constant 48 : index
    %c0_32 = arith.constant 0 : index
    %25 = vector.load %arg2[%c48_31, %c0_32] : memref<72x8xbf16, #tpu.memory_space<vmem>>, vector<24x8xbf16>
    %cst_33 = arith.constant dense<0.000000e+00> : vector<384x8xf32>
    %26 = tpu.matmul %24, %25, %cst_33 {dimension_numbers = #tpu.dot_dimension_numbers<[1], [0], [0], [1], [0, 0, 1, 1], [], []>} : vector<384x24xbf16>, vector<24x8xbf16>, vector<384x8xf32> -> vector<384x8xf32>
    %27 = arith.addf %23, %26 : vector<384x8xf32>
    %28 = vector.shape_cast %27 : vector<384x8xf32> to vector<16x24x8xf32>
    %c0_34 = arith.constant 0 : index
    %c0_35 = arith.constant 0 : index
    %29 = vector.load %arg3[%c0_34, %c0_35] : memref<1x8xf32, #tpu.memory_space<vmem>>, vector<1x8xf32>
    %30 = vector.shape_cast %29 : vector<1x8xf32> to vector<1x1x8xf32>
    %31 = vector.broadcast %30 : vector<1x1x8xf32> to vector<16x24x8xf32>
    %32 = arith.addf %28, %31 : vector<16x24x8xf32>
    %cst_36 = arith.constant 0.000000e+00 : f32
    %33 = vector.broadcast %cst_36 : f32 to vector<16x24x8xf32>
    %34 = arith.maximumf %32, %33 : vector<16x24x8xf32>
    %35 = tpu.iota {dimensions = array<i32: 0>} : vector<24x8xi32>
    %c16_i32 = arith.constant 16 : i32
    %36 = vector.broadcast %c16_i32 : i32 to vector<24x8xi32>
    %37 = arith.cmpi slt, %35, %36 : vector<24x8xi32>
    %cst_37 = arith.constant 0.000000e+00 : f32
    %38 = vector.shape_cast %37 : vector<24x8xi1> to vector<1x24x8xi1>
    %39 = vector.broadcast %38 : vector<1x24x8xi1> to vector<16x24x8xi1>
    %40 = vector.broadcast %cst_37 : f32 to vector<16x24x8xf32>
    %41 = arith.select %39, %34, %40 : vector<16x24x8xi1>, vector<16x24x8xf32>
    %42 = arith.truncf %41 : vector<16x24x8xf32> to vector<16x24x8xbf16>
    %43 = vector.shape_cast %42 : vector<16x24x8xbf16> to vector<384x8xbf16>
    %c48_38 = arith.constant 48 : index
    %c0_39 = arith.constant 0 : index
    %44 = vector.load %arg8[%c48_38, %c0_39] : memref<480x8xbf16, #tpu.memory_space<vmem>>, vector<384x8xbf16>
    tpu.vector_store %arg8[%c48_38, %c0_39], %43 {strides = array<i32>} : memref<480x8xbf16, #tpu.memory_space<vmem>>, vector<384x8xbf16>,
    %c23_40 = arith.constant 23 : index
    %c0_41 = arith.constant 0 : index
    %45 = vector.load %arg8[%c23_40, %c0_41] : memref<480x8xbf16, #tpu.memory_space<vmem>>, vector<432x8xbf16>
    %c0_42 = arith.constant 0 : index
    %c0_43 = arith.constant 0 : index
    %46 = vector.load %arg9[%c0_42, %c0_43] : memref<432x24xbf16, #tpu.memory_space<vmem>>, vector<432x8xbf16>
    tpu.vector_store %arg9[%c0_42, %c0_43], %45 {strides = array<i32>} : memref<432x24xbf16, #tpu.memory_space<vmem>>, vector<432x8xbf16>,
    %c24_44 = arith.constant 24 : index
    %c0_45 = arith.constant 0 : index
    %47 = vector.load %arg8[%c24_44, %c0_45] : memref<480x8xbf16, #tpu.memory_space<vmem>>, vector<432x8xbf16>
    %c0_46 = arith.constant 0 : index
    %c8_47 = arith.constant 8 : index
    %48 = vector.load %arg9[%c0_46, %c8_47] : memref<432x24xbf16, #tpu.memory_space<vmem>>, vector<432x8xbf16>
    tpu.vector_store %arg9[%c0_46, %c8_47], %47 {strides = array<i32>} : memref<432x24xbf16, #tpu.memory_space<vmem>>, vector<432x8xbf16>,
    %c25_48 = arith.constant 25 : index
    %c0_49 = arith.constant 0 : index
    %49 = vector.load %arg8[%c25_48, %c0_49] : memref<480x8xbf16, #tpu.memory_space<vmem>>, vector<432x8xbf16>
    %c0_50 = arith.constant 0 : index
    %c16_51 = arith.constant 16 : index
    %50 = vector.load %arg9[%c0_50, %c16_51] : memref<432x24xbf16, #tpu.memory_space<vmem>>, vector<432x8xbf16>
    tpu.vector_store %arg9[%c0_50, %c16_51], %49 {strides = array<i32>} : memref<432x24xbf16, #tpu.memory_space<vmem>>, vector<432x8xbf16>,
    %c0_52 = arith.constant 0 : index
    %c0_53 = arith.constant 0 : index
    %51 = vector.load %arg9[%c0_52, %c0_53] : memref<432x24xbf16, #tpu.memory_space<vmem>>, vector<384x24xbf16>
    %c0_54 = arith.constant 0 : index
    %c0_55 = arith.constant 0 : index
    %52 = vector.load %arg4[%c0_54, %c0_55] : memref<72x8xbf16, #tpu.memory_space<vmem>>, vector<24x8xbf16>
    %cst_56 = arith.constant dense<0.000000e+00> : vector<384x8xf32>
    %53 = tpu.matmul %51, %52, %cst_56 {dimension_numbers = #tpu.dot_dimension_numbers<[1], [0], [0], [1], [0, 0, 1, 1], [], []>} : vector<384x24xbf16>, vector<24x8xbf16>, vector<384x8xf32> -> vector<384x8xf32>
    %c24_57 = arith.constant 24 : index
    %c0_58 = arith.constant 0 : index
    %54 = vector.load %arg9[%c24_57, %c0_58] : memref<432x24xbf16, #tpu.memory_space<vmem>>, vector<384x24xbf16>
    %c24_59 = arith.constant 24 : index
    %c0_60 = arith.constant 0 : index
    %55 = vector.load %arg4[%c24_59, %c0_60] : memref<72x8xbf16, #tpu.memory_space<vmem>>, vector<24x8xbf16>
    %cst_61 = arith.constant dense<0.000000e+00> : vector<384x8xf32>
    %56 = tpu.matmul %54, %55, %cst_61 {dimension_numbers = #tpu.dot_dimension_numbers<[1], [0], [0], [1], [0, 0, 1, 1], [], []>} : vector<384x24xbf16>, vector<24x8xbf16>, vector<384x8xf32> -> vector<384x8xf32>
    %57 = arith.addf %53, %56 : vector<384x8xf32>
    %c48_62 = arith.constant 48 : index
    %c0_63 = arith.constant 0 : index
    %58 = vector.load %arg9[%c48_62, %c0_63] : memref<432x24xbf16, #tpu.memory_space<vmem>>, vector<384x24xbf16>
    %c48_64 = arith.constant 48 : index
    %c0_65 = arith.constant 0 : index
    %59 = vector.load %arg4[%c48_64, %c0_65] : memref<72x8xbf16, #tpu.memory_space<vmem>>, vector<24x8xbf16>
    %cst_66 = arith.constant dense<0.000000e+00> : vector<384x8xf32>
    %60 = tpu.matmul %58, %59, %cst_66 {dimension_numbers = #tpu.dot_dimension_numbers<[1], [0], [0], [1], [0, 0, 1, 1], [], []>} : vector<384x24xbf16>, vector<24x8xbf16>, vector<384x8xf32> -> vector<384x8xf32>
    %61 = arith.addf %57, %60 : vector<384x8xf32>
    %62 = vector.shape_cast %61 : vector<384x8xf32> to vector<16x24x8xf32>
    %63 = vector.extract_strided_slice %62 {offsets = [0, 0, 0], sizes = [16, 16, 8], strides = [1, 1, 1]} : vector<16x24x8xf32> to vector<16x16x8xf32>
    %c0_67 = arith.constant 0 : index
    %c0_68 = arith.constant 0 : index
    %64 = vector.load %arg5[%c0_67, %c0_68] : memref<1x8xf32, #tpu.memory_space<vmem>>, vector<1x8xf32>
    %65 = vector.shape_cast %64 : vector<1x8xf32> to vector<1x1x8xf32>
    %66 = vector.broadcast %65 : vector<1x1x8xf32> to vector<16x16x8xf32>
    %67 = arith.addf %63, %66 : vector<16x16x8xf32>
    %68 = vector.extract_strided_slice %7 {offsets = [0, 0, 0], sizes = [16, 16, 8], strides = [1, 1, 1]} : vector<16x24x8xf32> to vector<16x16x8xf32>
    %69 = arith.addf %67, %68 : vector<16x16x8xf32>
    %cst_69 = arith.constant 0.000000e+00 : f32
    %70 = vector.broadcast %cst_69 : f32 to vector<16x16x8xf32>
    %71 = arith.maximumf %69, %70 : vector<16x16x8xf32>
    %c0_70 = arith.constant 0 : index
    %c0_71 = arith.constant 0 : index
    %c0_72 = arith.constant 0 : index
    %c0_73 = arith.constant 0 : index
    %72 = vector.load %arg6[%c0_70, %c0_71, %c0_72, %c0_73] : memref<1x16x16x8xf32, #tpu.memory_space<vmem>>, vector<1x16x16x8xf32>
    %73 = vector.shape_cast %72 : vector<1x16x16x8xf32> to vector<16x16x8xf32>
    %74 = vector.shape_cast %71 : vector<16x16x8xf32> to vector<1x16x16x8xf32>
    tpu.vector_store %arg6[%c0_70, %c0_71, %c0_72, %c0_73], %74 {strides = array<i32>} : memref<1x16x16x8xf32, #tpu.memory_space<vmem>>, vector<1x16x16x8xf32>,
    return
  }
  func.func @transform_0(%arg0: i32) -> (i32, i32, i32, i32) {
    %c0_i32 = arith.constant 0 : i32
    %c0_i32_0 = arith.constant 0 : i32
    %c0_i32_1 = arith.constant 0 : i32
    %c0_i32_2 = arith.constant 0 : i32
    return %arg0, %c0_i32, %c0_i32_0, %c0_i32_1 : i32, i32, i32, i32
  }
  func.func @transform_1(%arg0: i32) -> (i32, i32) {
    %c0_i32 = arith.constant 0 : i32
    %c0_i32_0 = arith.constant 0 : i32
    %c0_i32_1 = arith.constant 0 : i32
    return %c0_i32, %c0_i32_0 : i32, i32
  }
  func.func @transform_2(%arg0: i32) -> (i32, i32) {
    %c0_i32 = arith.constant 0 : i32
    %c0_i32_0 = arith.constant 0 : i32
    %c0_i32_1 = arith.constant 0 : i32
    return %c0_i32, %c0_i32_0 : i32, i32
  }
  func.func @transform_3(%arg0: i32) -> (i32, i32) {
    %c0_i32 = arith.constant 0 : i32
    %c0_i32_0 = arith.constant 0 : i32
    %c0_i32_1 = arith.constant 0 : i32
    return %c0_i32, %c0_i32_0 : i32, i32
  }
  func.func @transform_4(%arg0: i32) -> (i32, i32) {
    %c0_i32 = arith.constant 0 : i32
    %c0_i32_0 = arith.constant 0 : i32
    %c0_i32_1 = arith.constant 0 : i32
    return %c0_i32, %c0_i32_0 : i32, i32
  }
  func.func @transform_5(%arg0: i32) -> (i32, i32, i32, i32) {
    %c0_i32 = arith.constant 0 : i32
    %c0_i32_0 = arith.constant 0 : i32
    %c0_i32_1 = arith.constant 0 : i32
    %c0_i32_2 = arith.constant 0 : i32
    return %arg0, %c0_i32, %c0_i32_0, %c0_i32_1 : i32, i32, i32, i32
  }
}

</mosaic_0001>

<bundles_post_ra>
// kernel: tpu_custom_call.1
= control target key start
LH: loop header
LB: loop body
LE: loop exit
PB: predicated region body
PF: predicated region fallthrough
CT: control target
= control target key end

     0   :  { %s8572_s18 = smov 0   ;;  %s12193_s0 = inlined_call_operand.vmem [shape: f32[2,16,24,8], index: 0, kind: input, shape index: {}]   ;;  %s12194_s1 = inlined_call_operand.vmem [shape: bf16[72,8], index: 1, kind: input, shape index: {}]   ;;  %s12195_s2 = inlined_call_operand.vmem [shape: f32[1,8], index: 2, kind: input, shape index: {}]   ;;  %s12196_s3 = inlined_call_operand.vmem [shape: bf16[72,8], index: 3, kind: input, shape index: {}]   ;;  %s12197_s4 = inlined_call_operand.vmem [shape: f32[1,8], index: 4, kind: input, shape index: {}]   ;;  %s12198_s5 = inlined_call_operand.vmem [shape: f32[2,16,16,8], index: 5, kind: output, shape index: {}]  }
   0x1 LB: > { %s7396_s19 = sadd.s32 4294967295, %s8536_s18   ;;  %p7400_p0 = scmp.ge.s32.totalorder %s8536_s18, 1  ;;  %s8536_s18 = sphi %s8572_s18, %s15_s18  }
   0x2   : > { %p187_p1 = scmp.lt.s32.totalorder %s8536_s18, 3 }
   0x4   : > { %p188_p2 = pnand %p7400_p0, %p187_p1 }
   0x6   : > { %191 = sbr.rel (%p188_p2) target bundleno = 1178 (0x49a), region = 40 }
   0xb   : > { %p8580_p3 = scmp.lt.s32.totalorder %s7396_s19, 1  ;;  %vm226_vm0 = vcmask 60416   ;;  %v8538_v0 = vmov 0   ;;  %s8539_s25 = smov 8   ;;  %vm1585_vm1 = vsmask.f32 3328 }
   0xc   : > { %232 = vst.msk [vmem:[#allocation2 + $0x14] sm:$0xf] %vm226_vm0, %v8538_v0  ;;  %229 = vst.msk [vmem:[#allocation2 + $0x8] sm:$0xf] %vm226_vm0, %v8538_v0  ;;  %vm1586_vm2 = vsmask.f32 7440 }
   0xd   : > { %230 = vst.msk [vmem:[#allocation2 + $0xc] sm:$0xf] %vm226_vm0, %v8538_v0  ;;  %231 = vst.msk [vmem:[#allocation2 + $0x10] sm:$0xf] %vm226_vm0, %v8538_v0  ;;  %s12425_s19 = smov (!%p8580_p3, %s7396_s19), 1  ;;  %s8540_s26 = smov 16  }
   0xe   : > { %233 = vst.msk [vmem:[#allocation2 + $0xd8] sm:$0xf] %vm226_vm0, %v8538_v0  ;;  %234 = vst.msk [vmem:[#allocation2 + $0xdc] sm:$0xf] %vm226_vm0, %v8538_v0  ;;  %s8361_s21 = smul.u32 384, %s12425_s19  ;;  %vm2608_vm7 = vcmask 1043456  }
   0xf   : > { %235 = vst.msk [vmem:[#allocation2 + $0xe0] sm:$0xf] %vm226_vm0, %v8538_v0  ;;  %238 = vst.msk [vmem:[#allocation3 + $0x8] sm:$0xf] %vm226_vm0, %v8538_v0  ;;  %vm604_vm4 = vsmask.f32 256 }
  0x10   : > { %239 = vst.msk [vmem:[#allocation3 + $0xc] sm:$0xf] %vm226_vm0, %v8538_v0  ;;  %240 = vst.msk [vmem:[#allocation3 + $0x10] sm:$0xf] %vm226_vm0, %v8538_v0  ;;  %s8606_s24 = scalar_lea.vmem %s12193_s0, %s8361_s21  ;;  %vm605_vm5 = vsmask.f32 4368 }
  0x11   : > { %241 = vst.msk [vmem:[#allocation3 + $0x14] sm:$0xf] %vm226_vm0, %v8538_v0  ;;  %242 = vst.msk [vmem:[#allocation3 + $0xd8] sm:$0xf] %vm226_vm0, %v8538_v0  ;;  %v247_v1 = vld [vmem:[%s8606_s24 + $0x10] sm:$0xff]  ;;  %v245_v2 = vld [vmem:[%s8606_s24] sm:$0xff] }
  0x12   : > { %243 = vst.msk [vmem:[#allocation3 + $0xdc] sm:$0xf] %vm226_vm0, %v8538_v0  ;;  %244 = vst.msk [vmem:[#allocation3 + $0xe0] sm:$0xf] %vm226_vm0, %v8538_v0  ;;  %v248_v3 = vld [vmem:[%s8606_s24 + $0x18] sm:$0xff]  ;;  %v7809_v4 = vpack.c.bf16 %v247_v1, %v247_v1  ;;  %v7807_v5 = vpack.c.bf16 %v245_v2, %v245_v2  ;;  %v246_v7 = vld [vmem:[%s8606_s24 + $0x8] sm:$0xff] }
  0x13   : > { %v7810_v6 = vpack.c.bf16 %v248_v3, %v248_v3  ;;  %v250_v8 = vld [vmem:[%s8606_s24 + $0x28] sm:$0xff]  ;;  %v249_v9 = vld [vmem:[%s8606_s24 + $0x20] sm:$0xff]  ;;  %v7808_v10 = vpack.c.bf16 %v246_v7, %v246_v7  ;;  %v252_v13 = vld [vmem:[%s8606_s24 + $0x38] sm:$0xff]  ;;  %vm1475_vm8 = vcmask 126016   ;;  %vm2294_vm9 = vcmask 191616   ;;  %s7806_s10 = sshll.u32 %s12425_s19, 8 }
  0x14   : > { %v7812_v11 = vpack.c.bf16 %v250_v8, %v250_v8  ;;  %v7811_v12 = vpack.c.bf16 %v249_v9, %v249_v9  ;;  %v251_v14 = vld [vmem:[%s8606_s24 + $0x30] sm:$0xff]  ;;  %v253_v15 = vld [vmem:[%s8606_s24 + $0x40] sm:$0xff]  ;;  %503 = vst.msk [vmem:[#allocation2 + $0x20] sm:$0xf] %vm226_vm0, %v7809_v4  ;;  %501 = vst.msk [vmem:[#allocation2 + $0x18] sm:$0xf] %vm226_vm0, %v7807_v5  ;;  %v7814_v16 = vpack.c.bf16 %v252_v13, %v252_v13  ;;  %s12035_s19 = scalar_lea.vmem %s12198_s5, %s7806_s10 }
  0x15   : > { %504 = vst.msk [vmem:[#allocation2 + $0x24] sm:$0xf] %vm226_vm0, %v7810_v6  ;;  %v7813_v17 = vpack.c.bf16 %v251_v14, %v251_v14  ;;  %v7815_v18 = vpack.c.bf16 %v253_v15, %v253_v15  ;;  %v254_v19 = vld [vmem:[%s8606_s24 + $0x48] sm:$0xff]  ;;  %v256_v20 = vld [vmem:[%s8606_s24 + $0x58] sm:$0xff]  ;;  %v255_v21 = vld [vmem:[%s8606_s24 + $0x50] sm:$0xff]  ;;  %vm2535_vm10 = vcmask 195584  }
  0x16   : > { %502 = vst.msk [vmem:[#allocation2 + $0x1c] sm:$0xf] %vm226_vm0, %v7808_v10  ;;  %506 = vst.msk [vmem:[#allocation2 + $0x2c] sm:$0xf] %vm226_vm0, %v7812_v11  ;;  %v7816_v22 = vpack.c.bf16 %v254_v19, %v254_v19  ;;  %v7818_v23 = vpack.c.bf16 %v256_v20, %v256_v20  ;;  %v7817_v24 = vpack.c.bf16 %v255_v21, %v255_v21  ;;  %v257_v25 = vld [vmem:[%s8606_s24 + $0x60] sm:$0xff]  ;;  %v258_v26 = vld [vmem:[%s8606_s24 + $0x68] sm:$0xff] }
  0x17   : > { %505 = vst.msk [vmem:[#allocation2 + $0x28] sm:$0xf] %vm226_vm0, %v7811_v12  ;;  %v260_v27 = vld [vmem:[%s8606_s24 + $0x78] sm:$0xff]  ;;  %508 = vst.msk [vmem:[#allocation2 + $0x34] sm:$0xf] %vm226_vm0, %v7814_v16  ;;  %v7819_v28 = vpack.c.bf16 %v257_v25, %v257_v25  ;;  %v7820_v29 = vpack.c.bf16 %v258_v26, %v258_v26  ;;  %v259_v31 = vld [vmem:[%s8606_s24 + $0x70] sm:$0xff] }
  0x18   : > { %507 = vst.msk [vmem:[#allocation2 + $0x30] sm:$0xf] %vm226_vm0, %v7813_v17  ;;  %509 = vst.msk [vmem:[#allocation2 + $0x38] sm:$0xf] %vm226_vm0, %v7815_v18  ;;  %v7822_v30 = vpack.c.bf16 %v260_v27, %v260_v27  ;;  %v261_v32 = vld [vmem:[%s8606_s24 + $0x80] sm:$0xff]  ;;  %v262_v33 = vld [vmem:[%s8606_s24 + $0x88] sm:$0xff]  ;;  %v7821_v34 = vpack.c.bf16 %v259_v31, %v259_v31 }
  0x19   : > { %510 = vst.msk [vmem:[#allocation2 + $0x3c] sm:$0xf] %vm226_vm0, %v7816_v22  ;;  %512 = vst.msk [vmem:[#allocation2 + $0x44] sm:$0xf] %vm226_vm0, %v7818_v23  ;;  %v7823_v35 = vpack.c.bf16 %v261_v32, %v261_v32  ;;  %v7824_v36 = vpack.c.bf16 %v262_v33, %v262_v33  ;;  %v264_v37 = vld [vmem:[%s8606_s24 + $0x98] sm:$0xff]  ;;  %v263_v38 = vld [vmem:[%s8606_s24 + $0x90] sm:$0xff] }
  0x1a   : > { %511 = vst.msk [vmem:[#allocation2 + $0x40] sm:$0xf] %vm226_vm0, %v7817_v24  ;;  %v265_v39 = vld [vmem:[%s8606_s24 + $0xa0] sm:$0xff]  ;;  %513 = vst.msk [vmem:[#allocation2 + $0x48] sm:$0xf] %vm226_vm0, %v7819_v28  ;;  %v7826_v40 = vpack.c.bf16 %v264_v37, %v264_v37  ;;  %v7825_v41 = vpack.c.bf16 %v263_v38, %v263_v38  ;;  %v266_v43 = vld [vmem:[%s8606_s24 + $0xa8] sm:$0xff] }
  0x1b   : > { %514 = vst.msk [vmem:[#allocation2 + $0x4c] sm:$0xf] %vm226_vm0, %v7820_v29  ;;  %516 = vst.msk [vmem:[#allocation2 + $0x54] sm:$0xf] %vm226_vm0, %v7822_v30  ;;  %v7827_v42 = vpack.c.bf16 %v265_v39, %v265_v39  ;;  %v268_v44 = vld [vmem:[%s8606_s24 + $0xb8] sm:$0xff]  ;;  %v267_v45 = vld [vmem:[%s8606_s24 + $0xb0] sm:$0xff]  ;;  %v7828_v46 = vpack.c.bf16 %v266_v43, %v266_v43 }
  0x1c   : > { %515 = vst.msk [vmem:[#allocation2 + $0x50] sm:$0xf] %vm226_vm0, %v7821_v34  ;;  %517 = vst.msk [vmem:[#allocation2 + $0x58] sm:$0xf] %vm226_vm0, %v7823_v35  ;;  %v7830_v47 = vpack.c.bf16 %v268_v44, %v268_v44  ;;  %v7829_v48 = vpack.c.bf16 %v267_v45, %v267_v45  ;;  %v269_v49 = vld [vmem:[%s8606_s24 + $0xc0] sm:$0xff]  ;;  %v270_v50 = vld [vmem:[%s8606_s24 + $0xc8] sm:$0xff] }
  0x1d   : > { %518 = vst.msk [vmem:[#allocation2 + $0x5c] sm:$0xf] %vm226_vm0, %v7824_v36  ;;  %v272_v51 = vld [vmem:[%s8606_s24 + $0xd8] sm:$0xff]  ;;  %520 = vst.msk [vmem:[#allocation2 + $0x64] sm:$0xf] %vm226_vm0, %v7826_v40  ;;  %v7831_v52 = vpack.c.bf16 %v269_v49, %v269_v49  ;;  %v7832_v53 = vpack.c.bf16 %v270_v50, %v270_v50  ;;  %v271_v55 = vld [vmem:[%s8606_s24 + $0xd0] sm:$0xff] }
  0x1e   : > { %519 = vst.msk [vmem:[#allocation2 + $0x60] sm:$0xf] %vm226_vm0, %v7825_v41  ;;  %521 = vst.msk [vmem:[#allocation2 + $0x68] sm:$0xf] %vm226_vm0, %v7827_v42  ;;  %v7834_v54 = vpack.c.bf16 %v272_v51, %v272_v51  ;;  %v273_v56 = vld [vmem:[%s8606_s24 + $0xe0] sm:$0xff]  ;;  %v274_v57 = vld [vmem:[%s8606_s24 + $0xe8] sm:$0xff]  ;;  %v7833_v60 = vpack.c.bf16 %v271_v55, %v271_v55 }
  0x1f   : > { %v1210_v58 = vld [vmem:[#allocation2 + $0x20] sm:$0xf]  ;;  %v1208_v59 = vld [vmem:[#allocation2 + $0x18] sm:$0xf]  ;;  %522 = vst.msk [vmem:[#allocation2 + $0x6c] sm:$0xf] %vm226_vm0, %v7828_v46  ;;  %v7835_v61 = vpack.c.bf16 %v273_v56, %v273_v56  ;;  %v7836_v62 = vpack.c.bf16 %v274_v57, %v274_v57  ;;  %vm8679_vm3 = vmor %vm1585_vm1, %vm1586_vm2 }
  0x20   : > { %524 = vst.msk [vmem:[#allocation2 + $0x74] sm:$0xf] %vm226_vm0, %v7830_v47  ;;  %523 = vst.msk [vmem:[#allocation2 + $0x70] sm:$0xf] %vm226_vm0, %v7829_v48  ;;  %1323 = vrot.lane.b32.xlu1 %v1210_v58, %s8539_s25  ;;  %1319 = vrot.lane.b32.xlu0 %v1208_v59, %s8539_s25  ;;  %v1211_v63 = vld [vmem:[#allocation2 + $0x24] sm:$0xf] }
  0x21   : > { %525 = vst.msk [vmem:[#allocation2 + $0x78] sm:$0xf] %vm226_vm0, %v7831_v52  ;;  %526 = vst.msk [vmem:[#allocation2 + $0x7c] sm:$0xf] %vm226_vm0, %v7832_v53  ;;  %v1209_v0 = vld [vmem:[#allocation2 + $0x1c] sm:$0xf] }
  0x22   : > { %528 = vst.msk [vmem:[#allocation2 + $0x84] sm:$0xf] %vm226_vm0, %v7834_v54  ;;  %v1534_v1 = vld [vmem:[#allocation2 + $0x1c] sm:$0xf]  ;;  %527 = vst.msk [vmem:[#allocation2 + $0x80] sm:$0xf] %vm226_vm0, %v7833_v60 }
  0x23   : > { %529 = vst.msk [vmem:[#allocation2 + $0x88] sm:$0xf] %vm226_vm0, %v7835_v61  ;;  %530 = vst.msk [vmem:[#allocation2 + $0x8c] sm:$0xf] %vm226_vm0, %v7836_v62  ;;  %v1535_v2 = vld [vmem:[#allocation2 + $0x20] sm:$0xf] }
  0x24   : > { %v1628_v3 = vshll.u32 %v1534_v1, 16  ;;  %v1632_v4 = vshrl.u32 %v1534_v1, 16  ;;  %v1533_v5 = vld [vmem:[#allocation2 + $0x18] sm:$0xf]  ;;  %v1213_v6 = vld [vmem:[#allocation2 + $0x2c] sm:$0xf]  ;;  %1325 = vrot.lane.b32.xlu1 %v1211_v63, %s8539_s25  ;;  %1321 = vrot.lane.b32.xlu0 %v1209_v0, %s8539_s25  ;;  %vm8821_vm6 = vmor %vm604_vm4, %vm605_vm5 }
  0x25   : > { %v1212_v7 = vld [vmem:[#allocation2 + $0x28] sm:$0xf]  ;;  %v1638_v8 = vshll.u32 %v1535_v2, 16  ;;  %v1642_v9 = vshrl.u32 %v1535_v2, 16  ;;  %v1618_v10 = vshll.u32 %v1533_v5, 16  ;;  %v1622_v11 = vshrl.u32 %v1533_v5, 16 }
  0x26   : > { %v1536_v12 = vld [vmem:[#allocation2 + $0x24] sm:$0xf]  ;;  %v1630_v13 = vrot.slane %v1628_v3, 5  ;;  %v1634_v14 = vrot.slane %v1632_v4, 4  ;;  %v1537_v15 = vld [vmem:[#allocation2 + $0x28] sm:$0xf] }
  0x27   : > { %v1648_v16 = vshll.u32 %v1536_v12, 16  ;;  %v1652_v17 = vshrl.u32 %v1536_v12, 16  ;;  %v1640_v18 = vrot.slane %v1638_v8, 5  ;;  %v8672_v19 = vrot.slane %v1618_v10, 5  ;;  %v1538_v22 = vld [vmem:[#allocation2 + $0x2c] sm:$0xf] }
  0x28   : > { %v1624_v20 = vrot.slane %v1622_v11, 4  ;;  %v1658_v21 = vshll.u32 %v1537_v15, 16  ;;  %v1635_v23 = vor.u32 %v1634_v14, %v1630_v13  ;;  %v1539_v26 = vld [vmem:[#allocation2 + $0x30] sm:$0xf]  ;;  %v1215_v27 = vld [vmem:[#allocation2 + $0x34] sm:$0xf]  ;;  %1329 = vrot.lane.b32.xlu1 %v1213_v6, %s8539_s25  ;;  %1327 = vrot.lane.b32.xlu0 %v1212_v7, %s8539_s25 }
  0x29   : > { %v1650_v24 = vrot.slane %v1648_v16, 5  ;;  %v1654_v25 = vrot.slane %v1652_v17, 4  ;;  %v1662_v29 = vshrl.u32 %v1537_v15, 16  ;;  %v1644_v30 = vrot.slane %v1642_v9, 4  ;;  %v1540_v37 = vld [vmem:[#allocation2 + $0x34] sm:$0xf] }
  0x2a   : > { %v1625_v28 = vor.u32 %v1624_v20, %v8672_v19  ;;  %v1668_v31 = vshll.u32 %v1538_v22, 16  ;;  %v1636_v33 = vrot.slane %v1635_v23, 4  ;;  %v1672_v35 = vshrl.u32 %v1538_v22, 16  ;;  %v1214_v38 = vld [vmem:[#allocation2 + $0x30] sm:$0xf] }
  0x2b   : > { %v1655_v34 = vor.u32 %v1654_v25, %v1650_v24  ;;  %v1678_v36 = vshll.u32 %v1539_v26, 16  ;;  %v1660_v40 = vrot.slane %v1658_v21, 5  ;;  %v1645_v41 = vor.u32 %v1644_v30, %v1640_v18  ;;  %v1541_v55 = vld [vmem:[#allocation2 + $0x38] sm:$0xf]  ;;  %v1542_v2 = vld [vmem:[#allocation2 + $0x3c] sm:$0xf] }
  0x2c   : > { %v1626_v39 = vrot.slane %v1625_v28, 4  ;;  %v1670_v42 = vrot.slane %v1668_v31, 5  ;;  %v1674_v43 = vrot.slane %v1672_v35, 4  ;;  %v1682_v44 = vshrl.u32 %v1539_v26, 16  ;;  %1333 = vrot.lane.b32.xlu1 %v1215_v27, %s8539_s25  ;;  %1331 = vrot.lane.b32.xlu0 %v1214_v38, %s8539_s25  ;;  %v1544_v3 = vld [vmem:[#allocation2 + $0x44] sm:$0xf] }
  0x2d   : > { %v1641_v45 = vsel %vm8679_vm3, %v1636_v33, %v1640_v18  ;;  %v1664_v46 = vrot.slane %v1662_v29, 4  ;;  %v1688_v47 = vshll.u32 %v1540_v37, 16  ;;  %v1656_v48 = vrot.slane %v1655_v34, 4  ;;  %v1543_v12 = vld [vmem:[#allocation2 + $0x40] sm:$0xf] }
  0x2e   : > { %v1646_v49 = vrot.slane %v1645_v41, 4  ;;  %v1680_v50 = vrot.slane %v1678_v36, 5  ;;  %v1692_v51 = vshrl.u32 %v1540_v37, 16  ;;  %v1631_v52 = vsel %vm8679_vm3, %v1626_v39, %v1630_v13  ;;  %v1545_v23 = vld [vmem:[#allocation2 + $0x48] sm:$0xf] }
  0x2f   : > { %v1675_v53 = vor.u32 %v1674_v43, %v1670_v42  ;;  %v1665_v54 = vor.u32 %v1664_v46, %v1660_v40  ;;  %v1690_v56 = vrot.slane %v1688_v47, 5  ;;  %v1684_v58 = vrot.slane %v1682_v44, 4  ;;  %v1546_v26 = vld [vmem:[#allocation2 + $0x4c] sm:$0xf]  ;;  %v1547_v27 = vld [vmem:[#allocation2 + $0x50] sm:$0xf] }
  0x30   : > { %v1694_v57 = vrot.slane %v1692_v51, 4  ;;  %2140 = vrot.lane.b32.xlu1 %v1641_v45, %s8540_s26  ;;  %2138 = vrot.lane.b32.xlu0 %v1631_v52, %s8540_s26  ;;  %v1661_v59 = vsel %vm8679_vm3, %v1656_v48, %v1660_v40  ;;  %v1651_v60 = vsel %vm8679_vm3, %v1646_v49, %v1650_v24  ;;  %v1698_v61 = vshll.u32 %v1541_v55, 16  ;;  %v1217_v28 = vld [vmem:[#allocation2 + $0x3c] sm:$0xf]  ;;  %v1548_v31 = vld [vmem:[#allocation2 + $0x54] sm:$0xf] }
  0x31   : > { %v1676_v62 = vrot.slane %v1675_v53, 4  ;;  %v1666_v63 = vrot.slane %v1665_v54, 4  ;;  %v1685_v1 = vor.u32 %v1684_v58, %v1680_v50  ;;  %v1702_v5 = vshrl.u32 %v1541_v55, 16  ;;  %v1216_v33 = vld [vmem:[#allocation2 + $0x38] sm:$0xf] }
  0x32   : > { %v1695_v0 = vor.u32 %v1694_v57, %v1690_v56  ;;  %v1700_v4 = vrot.slane %v1698_v61, 5  ;;  %v1708_v6 = vshll.u32 %v1542_v2, 16  ;;  %v1712_v7 = vshrl.u32 %v1542_v2, 16  ;;  %v1550_v37 = vld [vmem:[#allocation2 + $0x5c] sm:$0xf] }
  0x33   : > { %v1681_v8 = vsel %vm8679_vm3, %v1676_v62, %v1680_v50  ;;  %v1671_v9 = vsel %vm8679_vm3, %v1666_v63, %v1670_v42  ;;  %v1686_v11 = vrot.slane %v1685_v1, 4  ;;  %v1728_v13 = vshll.u32 %v1544_v3, 16  ;;  %v1219_v46 = vld [vmem:[#allocation2 + $0x44] sm:$0xf]  ;;  %v1218_v47 = vld [vmem:[#allocation2 + $0x40] sm:$0xf] }
  0x34   : > { %2144 = vrot.lane.b32.xlu1 %v1661_v59, %s8540_s26  ;;  %2142 = vrot.lane.b32.xlu0 %v1651_v60, %s8540_s26  ;;  %v1696_v10 = vrot.slane %v1695_v0, 4  ;;  %v1732_v14 = vshrl.u32 %v1544_v3, 16  ;;  %v8703_v15 = vrot.slane %v1708_v6, 5  ;;  %v1718_v16 = vshll.u32 %v1543_v12, 16  ;;  %v1549_v54 = vld [vmem:[#allocation2 + $0x58] sm:$0xf] }
  0x35   : > { %v1722_v17 = vshrl.u32 %v1543_v12, 16  ;;  %v1691_v20 = vsel %vm8679_vm3, %v1686_v11, %v1690_v56  ;;  %v1714_v21 = vrot.slane %v1712_v7, 4  ;;  %v1704_v22 = vrot.slane %v1702_v5, 4  ;;  %v1552_v59 = vld [vmem:[#allocation2 + $0x64] sm:$0xf] }
  0x36   : > { %v1701_v18 = vsel %vm8679_vm3, %v1696_v10, %v1700_v4  ;;  %v8709_v24 = vrot.slane %v1728_v13, 5  ;;  %v1734_v25 = vrot.slane %v1732_v14, 4  ;;  %v1720_v29 = vrot.slane %v1718_v16, 5  ;;  %v1551_v0 = vld [vmem:[#allocation2 + $0x60] sm:$0xf] }
  0x37   : > { %v1724_v30 = vrot.slane %v1722_v17, 4  ;;  %v1715_v34 = vor.u32 %v1714_v21, %v8703_v15  ;;  %v1705_v35 = vor.u32 %v1704_v22, %v1700_v4  ;;  %v1738_v36 = vshll.u32 %v1545_v23, 16  ;;  %v1554_v13 = vld [vmem:[#allocation2 + $0x6c] sm:$0xf]  ;;  %v1553_v22 = vld [vmem:[#allocation2 + $0x68] sm:$0xf] }
  0x38   : > { %2148 = vrot.lane.b32.xlu1 %v1681_v8, %s8540_s26  ;;  %2146 = vrot.lane.b32.xlu0 %v1671_v9, %s8540_s26  ;;  %v1735_v38 = vor.u32 %v1734_v25, %v8709_v24  ;;  %v1748_v39 = vshll.u32 %v1546_v26, 16  ;;  %v1752_v40 = vshrl.u32 %v1546_v26, 16  ;;  %v1758_v41 = vshll.u32 %v1547_v27, 16 }
  0x39   : > { %v1742_v42 = vshrl.u32 %v1545_v23, 16  ;;  %v1762_v43 = vshrl.u32 %v1547_v27, 16  ;;  %v1768_v44 = vshll.u32 %v1548_v31, 16  ;;  %v1772_v45 = vshrl.u32 %v1548_v31, 16 }
  0x3a   : > { %v1725_v48 = vor.u32 %v1724_v30, %v1720_v29  ;;  %v1788_v49 = vshll.u32 %v1550_v37, 16  ;;  %v1792_v50 = vshrl.u32 %v1550_v37, 16  ;;  %v1716_v51 = vrot.slane %v1715_v34, 4  ;;  %v1221_v37 = vld [vmem:[#allocation2 + $0x4c] sm:$0xf] }
  0x3b   : > { %v1706_v52 = vrot.slane %v1705_v35, 4  ;;  %v1740_v53 = vrot.slane %v1738_v36, 5  ;;  %v1736_v55 = vrot.slane %v1735_v38, 4  ;;  %v8717_v56 = vrot.slane %v1748_v39, 5 }
  0x3c   : > { %2152 = vrot.lane.b32.xlu1 %v1701_v18, %s8540_s26  ;;  %2150 = vrot.lane.b32.xlu0 %v1691_v20, %s8540_s26  ;;  %v1754_v57 = vrot.slane %v1752_v40, 4  ;;  %v8719_v58 = vrot.slane %v1758_v41, 5  ;;  %v1744_v60 = vrot.slane %v1742_v42, 4  ;;  %v8721_v61 = vrot.slane %v1768_v44, 5  ;;  %v1220_v41 = vld [vmem:[#allocation2 + $0x48] sm:$0xf] }
  0x3d   : > { %v1774_v62 = vrot.slane %v1772_v45, 4  ;;  %v1764_v63 = vrot.slane %v1762_v43, 4  ;;  %v1726_v1 = vrot.slane %v1725_v48, 4  ;;  %v1782_v2 = vshrl.u32 %v1549_v54, 16  ;;  %v1556_v48 = vld [vmem:[#allocation2 + $0x74] sm:$0xf] }
  0x3e   : > { %v8725_v3 = vrot.slane %v1788_v49, 5  ;;  %v1794_v4 = vrot.slane %v1792_v50, 4  ;;  %v1721_v5 = vsel %vm8679_vm3, %v1716_v51, %v1720_v29  ;;  %v1711_v6 = vsel %vm8679_vm3, %v1706_v52, %v8703_v15  ;;  %v8773_v49 = vld [vmem:[#allocation2 + $0x78] sm:$0xf]  ;;  %v1223_v50 = vld [vmem:[#allocation2 + $0x54] sm:$0xf] }
  0x3f   : > { %v1808_v7 = vshll.u32 %v1552_v59, 16  ;;  %v1812_v8 = vshrl.u32 %v1552_v59, 16  ;;  %v1755_v9 = vor.u32 %v1754_v57, %v8717_v56  ;;  %v1778_v10 = vshll.u32 %v1549_v54, 16  ;;  %v1222_v51 = vld [vmem:[#allocation2 + $0x50] sm:$0xf] }
  0x40   : > { %1337 = vrot.lane.b32.xlu1 %v1217_v28, %s8539_s25  ;;  %1335 = vrot.lane.b32.xlu0 %v1216_v33, %s8539_s25  ;;  %v1798_v11 = vshll.u32 %v1551_v0, 16  ;;  %v1802_v12 = vshrl.u32 %v1551_v0, 16  ;;  %v1745_v14 = vor.u32 %v1744_v60, %v1740_v53  ;;  %v1775_v16 = vor.u32 %v1774_v62, %v8721_v61  ;;  %v8751_v33 = vld [vmem:[#allocation2 + $0x70] sm:$0xf]  ;;  %v8789_v57 = vld [vmem:[#allocation2 + $0x1c] sm:$0xf] }
  0x41   : > { %v1765_v17 = vor.u32 %v1764_v63, %v8719_v58  ;;  %v1741_v15 = vsel %vm8679_vm3, %v1736_v55, %v1740_v53  ;;  %v1731_v18 = vsel %vm8679_vm3, %v1726_v1, %v8709_v24  ;;  %v1795_v20 = vor.u32 %v1794_v4, %v8725_v3  ;;  %v552_v63 = vld [vmem:[#allocation2 + $0x14] sm:$0xf] }
  0x42   : > { %v1784_v21 = vrot.slane %v1782_v2, 4  ;;  %v8743_v23 = vrot.slane %v1808_v7, 5  ;;  %v1814_v25 = vrot.slane %v1812_v8, 4  ;;  %v1828_v26 = vshll.u32 %v1554_v13, 16 }
  0x43   : > { %v1832_v27 = vshrl.u32 %v1554_v13, 16  ;;  %v8745_v28 = vrot.slane %v1755_v9, 4  ;;  %v8747_v29 = vrot.slane %v1778_v10, 5  ;;  %v8749_v30 = vrot.slane %v1798_v11, 5 }
  0x44   : > { %1341 = vrot.lane.b32.xlu1 %v1219_v46, %s8539_s25  ;;  %1339 = vrot.lane.b32.xlu0 %v1218_v47, %s8539_s25  ;;  %v1804_v31 = vrot.slane %v1802_v12, 4  ;;  %v8753_v34 = vrot.slane %v1745_v14, 4  ;;  %v8755_v24 = vrot.slane %v1775_v16, 4  ;;  %v8757_v35 = vrot.slane %v1765_v17, 4  ;;  %v276_v14 = vld [vmem:[%s8606_s24 + $0xf8] sm:$0xff] }
  0x45   : > { %v1818_v36 = vshll.u32 %v1553_v22, 16  ;;  %v8761_v38 = vrot.slane %v1795_v20, 4  ;;  %v1785_v39 = vor.u32 %v1784_v21, %v8747_v29  ;;  %v1822_v40 = vshrl.u32 %v1553_v22, 16  ;;  %v275_v20 = vld [vmem:[%s8606_s24 + $0xf0] sm:$0xff] }
  0x46   : > { %v1815_v42 = vor.u32 %v1814_v25, %v8743_v23  ;;  %v8765_v43 = vrot.slane %v1828_v26, 5  ;;  %v1834_v44 = vrot.slane %v1832_v27, 4  ;;  %v1838_v45 = vshll.u32 %v8751_v33, 16 }
  0x47   : > { %v1761_v46 = vsel %vm8679_vm3, %v8745_v28, %v8719_v58  ;;  %v1805_v47 = vor.u32 %v1804_v31, %v8749_v30  ;;  %v1751_v52 = vsel %vm8679_vm3, %v8753_v34, %v8717_v56  ;;  %v1781_v53 = vsel %vm8679_vm3, %v8755_v24, %v8747_v29  ;;  %v555_v58 = vld [vmem:[#allocation2 + $0x20] sm:$0xf]  ;;  %v556_v28 = vld [vmem:[#allocation2 + $0x24] sm:$0xf] }
  0x48   : > { %2156 = vrot.lane.b32.xlu1 %v1721_v5, %s8540_s26  ;;  %2154 = vrot.lane.b32.xlu0 %v1711_v6, %s8540_s26  ;;  %v1771_v54 = vsel %vm8679_vm3, %v8757_v35, %v8721_v61  ;;  %v8787_v55 = vrot.slane %v1818_v36, 5  ;;  %v1801_v56 = vsel %vm8679_vm3, %v8761_v38, %v8749_v30  ;;  %v8797_v59 = vrot.slane %v1785_v39, 4  ;;  %v553_v5 = vld [vmem:[#allocation2 + $0x18] sm:$0xf] }
  0x49   : > { %v1842_v60 = vshrl.u32 %v8751_v33, 16  ;;  %v1824_v62 = vrot.slane %v1822_v40, 4  ;;  %v8800_v0 = vrot.slane %v1815_v42, 4  ;;  %v1835_v1 = vor.u32 %v1834_v44, %v8765_v43  ;;  %v1558_v40 = vld [vmem:[#allocation2 + $0x7c] sm:$0xf] }
  0x4a   : > { %v8803_v2 = vrot.slane %v1838_v45, 5  ;;  %v1848_v4 = vshll.u32 %v1556_v48, 16  ;;  %v8805_v6 = vrot.slane %v1805_v47, 4  ;;  %v649_v7 = vshrl.u32 %v8789_v57, 16 }
  0x4b   : > { %v658_v8 = vshrl.u32 %v555_v58, 16  ;;  %v661_v9 = vshll.u32 %v555_v58, 16  ;;  %v1852_v10 = vshrl.u32 %v1556_v48, 16  ;;  %v1858_v11 = vshll.u32 %v8773_v49, 16 }
  0x4c   : > { %2160 = vrot.lane.b32.xlu1 %v1741_v15, %s8540_s26  ;;  %2158 = vrot.lane.b32.xlu0 %v1731_v18, %s8540_s26  ;;  %v1862_v12 = vshrl.u32 %v8773_v49, 16  ;;  %v631_v13 = vshrl.u32 %v552_v63, 16  ;;  %v1825_v16 = vor.u32 %v1824_v62, %v8787_v55  ;;  %v651_v17 = vrot.slane %v649_v7, 7  ;;  %v8839_v63 = vld [vmem:[#allocation2 + $0x80] sm:$0xf]  ;;  %v280_v49 = vld [vmem:[%s8606_s24 + $0x118] sm:$0xff] }
  0x4d   : > { %v660_v15 = vrot.slane %v658_v8, 7  ;;  %v640_v18 = vshrl.u32 %v553_v5, 16  ;;  %v8815_v21 = vrot.slane %v1835_v1, 4  ;;  %v8817_v22 = vrot.slane %v1848_v4, 5 }
  0x4e   : > { %v8825_v26 = vrot.slane %v631_v13, 7  ;;  %v643_v27 = vshll.u32 %v553_v5, 16  ;;  %v656_v31 = vrot.slane %v651_v17, 4  ;;  %v7838_v36 = vpack.c.bf16 %v276_v14, %v276_v14 }
  0x4f   : > { %v663_v33 = vor.u32 %v661_v9, %v660_v15  ;;  %v642_v34 = vrot.slane %v640_v18, 7  ;;  %v8829_v39 = vrot.slane %v1858_v11, 5  ;;  %v7837_v42 = vpack.c.bf16 %v275_v20, %v275_v20  ;;  %v277_v11 = vld [vmem:[%s8606_s24 + $0x100] sm:$0xff]  ;;  %v1224_v18 = vld [vmem:[#allocation2 + $0x58] sm:$0xf] }
  0x50   : > { %1345 = vrot.lane.b32.xlu1 %v1221_v37, %s8539_s25  ;;  %1343 = vrot.lane.b32.xlu0 %v1220_v41, %s8539_s25  ;;  %v8827_v37 = vrot.slane %v1852_v10, 4  ;;  %v638_v41 = vrot.slane %v8825_v26, 4  ;;  %532 = vst.msk [vmem:[#allocation2 + $0x94] sm:$0xf] %vm226_vm0, %v7838_v36  ;;  %v667_v47 = vshrl.u32 %v556_v28, 16  ;;  %v670_v48 = vshll.u32 %v556_v28, 16 }
  0x51   : > { %v664_v44 = vsel %vm8821_vm6, %v656_v31, %v663_v33  ;;  %v645_v45 = vor.u32 %v643_v27, %v642_v34  ;;  %v8837_v58 = vrot.slane %v1825_v16, 4  ;;  %v1844_v62 = vrot.slane %v1842_v60, 4  ;;  %531 = vst.msk [vmem:[#allocation2 + $0x90] sm:$0xf] %vm226_vm0, %v7837_v42  ;;  %v1227_v28 = vld [vmem:[#allocation2 + $0x64] sm:$0xf] }
  0x52   : > { %1156 = vst.msk [vmem:[#allocation4 + $0x14] sm:$0xf] %vm226_vm0, %v664_v44  ;;  %v1868_v1 = vshll.u32 %v1558_v40, 16  ;;  %v669_v5 = vrot.slane %v667_v47, 7  ;;  %v665_v7 = vrot.slane %v660_v15, 4  ;;  %v1872_v8 = vshrl.u32 %v1558_v40, 16 }
  0x53   : > { %v646_v4 = vsel %vm8821_vm6, %v638_v41, %v645_v45  ;;  %v1855_v13 = vor.u32 %v8827_v37, %v8817_v22  ;;  %v1878_v14 = vshll.u32 %v8839_v63, 16  ;;  %v8863_v15 = vld [vmem:[#allocation2 + $0x30] sm:$0xf]  ;;  %v1845_v29 = vor.u32 %v1844_v62, %v8803_v2  ;;  %v8874_v31 = vld [vmem:[#allocation2 + $0x84] sm:$0xf] }
  0x54   : > { %1349 = vrot.lane.b32.xlu1 %v1223_v50, %s8539_s25  ;;  %1347 = vrot.lane.b32.xlu0 %v1222_v51, %s8539_s25  ;;  %v557_v50 = vld [vmem:[#allocation2 + $0x28] sm:$0xf]  ;;  %v558_v51 = vld [vmem:[#allocation2 + $0x2c] sm:$0xf]  ;;  %1154 = vst.msk [vmem:[#allocation4 + $0xc] sm:$0xf] %vm226_vm0, %v646_v4  ;;  %v672_v16 = vor.u32 %v670_v48, %v669_v5  ;;  %v7839_v36 = vpack.c.bf16 %v277_v11, %v277_v11 }
  0x55   : > { %v676_v60 = vshrl.u32 %v557_v50, 16  ;;  %v685_v10 = vshrl.u32 %v558_v51, 16  ;;  %v1882_v61 = vshrl.u32 %v8839_v63, 16  ;;  %v679_v27 = vshll.u32 %v557_v50, 16  ;;  %v560_v37 = vld [vmem:[#allocation2 + $0x34] sm:$0xf] }
  0x56   : > { %v673_v35 = vsel %vm8821_vm6, %v665_v7, %v672_v16  ;;  %v694_v40 = vshrl.u32 %v8863_v15, 16  ;;  %v8881_v41 = vrot.slane %v1868_v1, 5  ;;  %v8883_v42 = vrot.slane %v1872_v8, 4  ;;  %v8887_v45 = vld [vmem:[#allocation2 + $0x88] sm:$0xf]  ;;  %v281_v11 = vld [vmem:[%s8606_s24 + $0x120] sm:$0xff] }
  0x57   : > { %v8868_v20 = vrot.slane %v685_v10, 7  ;;  %1157 = vst.msk [vmem:[#allocation4 + $0x18] sm:$0xf] %vm226_vm0, %v673_v35  ;;  %v8885_v44 = vrot.slane %v1878_v14, 5  ;;  %v1226_v48 = vld [vmem:[#allocation2 + $0x60] sm:$0xf] }
  0x58   : > { %2164 = vrot.lane.b32.xlu1 %v1761_v46, %s8540_s26  ;;  %2162 = vrot.lane.b32.xlu0 %v1751_v52, %s8540_s26  ;;  %v652_v46 = vshll.u32 %v8789_v57, 16  ;;  %v647_v52 = vrot.slane %v642_v34, 4  ;;  %v1225_v57 = vld [vmem:[#allocation2 + $0x5c] sm:$0xf]  ;;  %v8889_v50 = vrot.slane %v1855_v13, 4  ;;  %v8895_v62 = vrot.slane %v1862_v12, 4 }
  0x59   : > { %533 = vst.msk [vmem:[#allocation2 + $0x98] sm:$0xf] %vm226_vm0, %v7839_v36  ;;  %v696_v4 = vrot.slane %v694_v40, 7  ;;  %v278_v7 = vld [vmem:[%s8606_s24 + $0x108] sm:$0xff]  ;;  %v1892_v12 = vshrl.u32 %v8874_v31, 16  ;;  %v1898_v8 = vshll.u32 %v8887_v45, 16 }
  0x5a   : > { %v654_v9 = vor.u32 %v652_v46, %v651_v17  ;;  %v688_v17 = vshll.u32 %v558_v51, 16  ;;  %v8891_v51 = vrot.slane %v1845_v29, 4  ;;  %v279_v10 = vld [vmem:[%s8606_s24 + $0x110] sm:$0xff]  ;;  %v692_v16 = vrot.slane %v8868_v20, 4 }
  0x5b   : > { %v701_v13 = vrot.slane %v696_v4, 4  ;;  %v1791_v29 = vsel %vm8679_vm3, %v8797_v59, %v8725_v3  ;;  %v8375_v35 = vld [vmem:[%s12194_s1 + $0xc] sm:$0xff]   ;;  %v1841_v3 = vsel %vm8679_vm3, %v8815_v21, %v8803_v2  ;;  %vm7308_vm11 = vcmask 64512  }
  0x5c   : > { %2168 = vrot.lane.b32.xlu1 %v1781_v53, %s8540_s26  ;;  %2166 = vrot.lane.b32.xlu0 %v1771_v54, %s8540_s26  ;;  %v655_v24 = vsel %vm8821_vm6, %v647_v52, %v654_v9  ;;  %v678_v53 = vrot.slane %v676_v60, 7  ;;  %v674_v54 = vrot.slane %v669_v5, 4  ;;  %v690_v34 = vor.u32 %v688_v17, %v8868_v20 }
  0x5d   : > { %1155 = vst.msk [vmem:[#allocation4 + $0x10] sm:$0xf] %vm226_vm0, %v655_v24  ;;  %v1888_v52 = vshll.u32 %v8874_v31, 16  ;;  %v703_v5 = vshrl.u32 %v560_v37, 16  ;;  %v1902_v9 = vshrl.u32 %v8887_v45, 16  ;;  %v706_v60 = vshll.u32 %v560_v37, 16 }
  0x5e   : > { %v683_v33 = vrot.slane %v678_v53, 4  ;;  %v681_v47 = vor.u32 %v679_v27, %v678_v53  ;;  %v697_v17 = vshll.u32 %v8863_v15, 16  ;;  %v1821_v24 = vsel %vm8679_vm3, %v8800_v0, %v8787_v55  ;;  %v8935_v15 = vld [vmem:[#allocation2 + $0x94] sm:$0xf]  ;;  %v561_v27 = vld [vmem:[#allocation2 + $0x38] sm:$0xf] }
  0x5f   : > { %v8916_v14 = vrot.slane %v703_v5, 7  ;;  %v1811_v53 = vsel %vm8679_vm3, %v8805_v6, %v8743_v23  ;;  %v7840_v20 = vpack.c.bf16 %v278_v7, %v278_v7  ;;  %v8945_v55 = vld [vmem:[#allocation2 + $0x90] sm:$0xf]  ;;  %v7842_v0 = vpack.c.bf16 %v280_v49, %v280_v49  ;;  %v8979_v49 = vld [vmem:[#allocation2 + $0x40] sm:$0xf] }
  0x60   : > { %1353 = vrot.lane.b32.xlu1 %v1225_v57, %s8539_s25  ;;  %1351 = vrot.lane.b32.xlu0 %v1224_v18, %s8539_s25  ;;  %v691_v46 = vsel %vm8821_vm6, %v683_v33, %v690_v34  ;;  %v682_v1 = vsel %vm8821_vm6, %v674_v54, %v681_v47  ;;  %v8914_v57 = vld [vmem:[#allocation2 + $0x8c] sm:$0xf]  ;;  %v8374_v18 = vld [vmem:[%s12194_s1 + $0x14] ss:$0 sps:$4 sm:$0xff]   ;;  %v699_v23 = vor.u32 %v697_v17, %v696_v4  ;;  %v562_v34 = vld [vmem:[#allocation2 + $0x3c] sm:$0xf] }
  0x61   : > { %1159 = vst.msk [vmem:[#allocation4 + $0x20] sm:$0xf] %vm226_vm0, %v691_v46  ;;  %1158 = vst.msk [vmem:[#allocation4 + $0x1c] sm:$0xf] %vm226_vm0, %v682_v1  ;;  %v282_v54 = vld [vmem:[%s8606_s24 + $0x128] sm:$0xff]  ;;  %v708_v59 = vor.u32 %v706_v60, %v8916_v14  ;;  %v1831_v6 = vsel %vm8679_vm3, %v8837_v58, %v8765_v43  ;;  %v7841_v33 = vpack.c.bf16 %v279_v10, %v279_v10  ;;  %v2610_v40 = vsel %vm2608_vm7, %v8374_v18, 0 }
  0x62   : > { %534 = vst.msk [vmem:[#allocation2 + $0x9c] sm:$0xf] %vm226_vm0, %v7840_v20  ;;  %v700_v37 = vsel %vm8821_vm6, %v692_v16, %v699_v23  ;;  %536 = vst.msk [vmem:[#allocation2 + $0xa4] sm:$0xf] %vm226_vm0, %v7842_v0  ;;  %v7843_v47 = vpack.c.bf16 %v281_v11, %v281_v11  ;;  %v283_v46 = vld [vmem:[%s8606_s24 + $0x130] sm:$0xff]  ;;  %v1912_v30 = vshrl.u32 %v8914_v57, 16  ;;  %8355 = vmatprep.subr.msk.bf16.mxu0 %vm2608_vm7, %v8374_v18 }
  0x63   : > { %v709_v36 = vsel %vm8821_vm6, %v701_v13, %v708_v59  ;;  %v1918_v38 = vshll.u32 %v8945_v55, 16  ;;  %1160 = vst.msk [vmem:[#allocation4 + $0x24] sm:$0xf] %vm226_vm0, %v700_v37  ;;  %535 = vst.msk [vmem:[#allocation2 + $0xa0] sm:$0xf] %vm226_vm0, %v7841_v33  ;;  %8044 = vmatpush3.bf16.msra.mxu0 %v2610_v40  ;;  %v7844_v1 = vpack.c.bf16 %v282_v54, %v282_v54  ;;  %v712_v4 = vshrl.u32 %v561_v27, 16 }
  0x64   : > { %1357 = vrot.lane.b32.xlu1 %v1227_v28, %s8539_s25  ;;  %1355 = vrot.lane.b32.xlu0 %v1226_v48, %s8539_s25  ;;  %v8952_v28 = vrot.slane %v1888_v52, 5  ;;  %v284_v48 = vld [vmem:[%s8606_s24 + $0x138] sm:$0xff]  ;;  %v1908_v52 = vshll.u32 %v8914_v57, 16  ;;  %1161 = vst.msk [vmem:[#allocation4 + $0x28] sm:$0xf] %vm226_vm0, %v709_v36  ;;  %v721_v5 = vshrl.u32 %v562_v34, 16  ;;  %v1865_v45 = vor.u32 %v8895_v62, %v8829_v39 }
  0x65   : > { %537 = vst.msk [vmem:[#allocation2 + $0xa8] sm:$0xf] %vm226_vm0, %v7843_v47  ;;  %v724_v7 = vshll.u32 %v562_v34, 16  ;;  %v1922_v60 = vshrl.u32 %v8945_v55, 16  ;;  %v1932_v10 = vshrl.u32 %v8935_v15, 16  ;;  %8045 = vmatprep.subr.bf16.mxu0 %v8375_v35  ;;  %v710_v11 = vrot.slane %v8916_v14, 4 }
  0x66   : > { %v715_v57 = vshll.u32 %v561_v27, 16  ;;  %v1229_v13 = vld [vmem:[#allocation2 + $0x6c] sm:$0xf]  ;;  %538 = vst.msk [vmem:[#allocation2 + $0xac] sm:$0xf] %vm226_vm0, %v7844_v1  ;;  %v714_v16 = vrot.slane %v712_v4, 7  ;;  %v7846_v18 = vpack.c.bf16 %v284_v48, %v284_v48 }
  0x67   : > { %v8987_v17 = vrot.slane %v721_v5, 7  ;;  %v285_v20 = vld [vmem:[%s8606_s24 + $0x140] sm:$0xff]  ;;  %v1228_v54 = vld [vmem:[#allocation2 + $0x68] sm:$0xf]  ;;  %v1884_v14 = vrot.slane %v1882_v61, 4  ;;  %v8997_v27 = vrot.slane %v1908_v52, 5  ;;  %8046 = vmatpush3.bf16.msra.mxu0 %v8375_v35 }
  0x68   : > { %2172 = vrot.lane.b32.xlu1 %v1801_v56, %s8540_s26  ;;  %2170 = vrot.lane.b32.xlu0 %v1791_v29, %s8540_s26  ;;  %v1928_v56 = vshll.u32 %v8935_v15, 16  ;;  %v7845_v29 = vpack.c.bf16 %v283_v46, %v283_v46  ;;  %v1894_v15 = vrot.slane %v1892_v12, 4  ;;  %v719_v55 = vrot.slane %v714_v16, 4  ;;  %540 = vst.msk [vmem:[#allocation2 + $0xb4] sm:$0xf] %vm226_vm0, %v7846_v18 }
  0x69   : > { %v726_v59 = vor.u32 %v724_v7, %v8987_v17  ;;  %v717_v23 = vor.u32 %v715_v57, %v714_v16  ;;  %v564_v31 = vld [vmem:[#allocation2 + $0x44] sm:$0xf]  ;;  %v1914_v12 = vrot.slane %v1912_v30, 4  ;;  %v9002_v63 = vrot.slane %v1918_v38, 5  ;;  %v1231_v35 = vld [vmem:[#allocation2 + $0x74] sm:$0xf] }
  0x6a   : > { %539 = vst.msk [vmem:[#allocation2 + $0xb0] sm:$0xf] %vm226_vm0, %v7845_v29  ;;  %v9004_v61 = vrot.slane %v1928_v56, 5  ;;  %v1565_v0 = vld [vmem:[#allocation2 + $0x98] sm:$0xf]  ;;  %v1924_v33 = vrot.slane %v1922_v60, 4  ;;  %v7847_v37 = vpack.c.bf16 %v285_v20, %v285_v20  ;;  %v1861_v30 = vsel %vm8679_vm3, %v8889_v50, %v8829_v39 }
  0x6b   : > { %v727_v34 = vsel %vm8821_vm6, %v719_v55, %v726_v59  ;;  %v718_v36 = vsel %vm8821_vm6, %v710_v11, %v717_v23  ;;  %v1230_v40 = vld [vmem:[#allocation2 + $0x70] sm:$0xf]  ;;  %v9014_v47 = vrot.slane %v1898_v8, 5  ;;  %v1942_v48 = vshrl.u32 %v1565_v0, 16  ;;  %v286_v56 = vld [vmem:[%s8606_s24 + $0x148] sm:$0xff] }
  0x6c   : > { %2176 = vrot.lane.b32.xlu1 %v1821_v24, %s8540_s26  ;;  %2174 = vrot.lane.b32.xlu0 %v1811_v53, %s8540_s26  ;;  %v1904_v24 = vrot.slane %v1902_v9, 4  ;;  %v730_v53 = vshrl.u32 %v8979_v49, 16  ;;  %v1934_v9 = vrot.slane %v1932_v10, 4  ;;  %1163 = vst.msk [vmem:[#allocation4 + $0x30] sm:$0xf] %vm226_vm0, %v727_v34  ;;  %v739_v52 = vshrl.u32 %v564_v31, 16 }
  0x6d   : > { %1162 = vst.msk [vmem:[#allocation4 + $0x2c] sm:$0xf] %vm226_vm0, %v718_v36  ;;  %v1875_v38 = vor.u32 %v8883_v42, %v8881_v41  ;;  %v1895_v8 = vor.u32 %v1894_v15, %v8952_v28  ;;  %541 = vst.msk [vmem:[#allocation2 + $0xb8] sm:$0xf] %vm226_vm0, %v7847_v37  ;;  %v1885_v1 = vor.u32 %v1884_v14, %v8885_v44  ;;  %v1938_v5 = vshll.u32 %v1565_v0, 16  ;;  %v288_v36 = vld [vmem:[%s8606_s24 + $0x158] sm:$0xff] }
  0x6e   : > { %v732_v46 = vrot.slane %v730_v53, 7  ;;  %v1905_v4 = vor.u32 %v1904_v24, %v9014_v47  ;;  %v742_v7 = vshll.u32 %v564_v31, 16  ;;  %v1915_v42 = vor.u32 %v1914_v12, %v8997_v27  ;;  %v1566_v15 = vld [vmem:[#allocation2 + $0x9c] sm:$0xf]  ;;  %v566_v31 = vld [vmem:[#allocation2 + $0x4c] sm:$0xf] }
  0x6f   : > { %v1935_v50 = vor.u32 %v1934_v9, %v9004_v61  ;;  %v1925_v39 = vor.u32 %v1924_v33, %v9002_v63  ;;  %v1944_v62 = vrot.slane %v1942_v48, 4  ;;  %v9036_v10 = vrot.slane %v739_v52, 7  ;;  %v1567_v0 = vld [vmem:[#allocation2 + $0xa0] sm:$0xf]  ;;  %v1568_v33 = vld [vmem:[#allocation2 + $0xa4] sm:$0xf] }
  0x70   : > { %1361 = vrot.lane.b32.xlu1 %v1229_v13, %s8539_s25  ;;  %1359 = vrot.lane.b32.xlu0 %v1228_v54, %s8539_s25  ;;  %v737_v60 = vrot.slane %v732_v46, 4  ;;  %v7848_v11 = vpack.c.bf16 %v286_v56, %v286_v56  ;;  %v1851_v57 = vsel %vm8679_vm3, %v8891_v51, %v8817_v22  ;;  %v9042_v13 = vrot.slane %v1875_v38, 4  ;;  %v1232_v37 = vld [vmem:[#allocation2 + $0x78] sm:$0xf]  ;;  %v287_v38 = vld [vmem:[%s8606_s24 + $0x150] sm:$0xff] }
  0x71   : > { %v728_v16 = vrot.slane %v8987_v17, 4  ;;  %v733_v18 = vshll.u32 %v8979_v49, 16  ;;  %v9046_v29 = vrot.slane %v1865_v45, 4  ;;  %v9048_v20 = vrot.slane %v1895_v8, 4 }
  0x72   : > { %v9050_v54 = vrot.slane %v1938_v5, 5  ;;  %v744_v14 = vor.u32 %v742_v7, %v9036_v10  ;;  %542 = vst.msk [vmem:[#allocation2 + $0xbc] sm:$0xf] %vm226_vm0, %v7848_v11  ;;  %v9066_v22 = vrot.slane %v1885_v1, 4  ;;  %v9068_v51 = vrot.slane %v1915_v42, 4 }
  0x73   : > { %v9070_v49 = vrot.slane %v1905_v4, 4  ;;  %v735_v17 = vor.u32 %v733_v18, %v732_v46  ;;  %v9072_v24 = vrot.slane %v1935_v50, 4  ;;  %v9074_v53 = vrot.slane %v1925_v39, 4  ;;  %v567_v4 = vld [vmem:[#allocation2 + $0x50] sm:$0xf] }
  0x74   : > { %1365 = vrot.lane.b32.xlu1 %v1231_v35, %s8539_s25  ;;  %1363 = vrot.lane.b32.xlu0 %v1230_v40, %s8539_s25  ;;  %v1945_v2 = vor.u32 %v1944_v62, %v9050_v54  ;;  %v745_v21 = vsel %vm8821_vm6, %v737_v60, %v744_v14  ;;  %v1948_v55 = vshll.u32 %v1566_v15, 16  ;;  %v1952_v43 = vshrl.u32 %v1566_v15, 16  ;;  %v568_v39 = vld [vmem:[#allocation2 + $0x54] sm:$0xf]  ;;  %v1234_v18 = vld [vmem:[#allocation2 + $0x80] sm:$0xf] }
  0x75   : > { %1165 = vst.msk [vmem:[#allocation4 + $0x38] sm:$0xf] %vm226_vm0, %v745_v21  ;;  %v736_v58 = vsel %vm8821_vm6, %v728_v16, %v735_v17  ;;  %v1881_v59 = vsel %vm8679_vm3, %v9042_v13, %v8885_v44  ;;  %v1871_v23 = vsel %vm8679_vm3, %v9046_v29, %v8881_v41  ;;  %v1901_v12 = vsel %vm8679_vm3, %v9048_v20, %v9014_v47  ;;  %v1235_v16 = vld [vmem:[#allocation2 + $0x84] sm:$0xf] }
  0x76   : > { %1164 = vst.msk [vmem:[#allocation4 + $0x34] sm:$0xf] %vm226_vm0, %v736_v58  ;;  %v1891_v9 = vsel %vm8679_vm3, %v9066_v22, %v8952_v28  ;;  %v1911_v35 = vsel %vm8679_vm3, %v9070_v49, %v8997_v27  ;;  %v1921_v40 = vsel %vm8679_vm3, %v9068_v51, %v9002_v63  ;;  %v1941_v48 = vsel %vm8679_vm3, %v9072_v24, %v9050_v54 }
  0x77   : > { %v1931_v46 = vsel %vm8679_vm3, %v9074_v53, %v9004_v61  ;;  %v9118_v52 = vrot.slane %v1945_v2, 4  ;;  %v9123_v45 = vrot.slane %v1948_v55, 5  ;;  %v9125_v8 = vrot.slane %v1952_v43, 4 }
  0x78   : > { %2180 = vrot.lane.b32.xlu1 %v1841_v3, %s8540_s26  ;;  %2178 = vrot.lane.b32.xlu0 %v1831_v6, %s8540_s26  ;;  %v565_v3 = vld [vmem:[#allocation2 + $0x48] sm:$0xf]  ;;  %v1233_v6 = vld [vmem:[#allocation2 + $0x7c] sm:$0xf]  ;;  %v757_v1 = vshrl.u32 %v566_v31, 16  ;;  %v1958_v5 = vshll.u32 %v1567_v0, 16  ;;  %v7850_v17 = vpack.c.bf16 %v288_v36, %v288_v36  ;;  %v7849_v2 = vpack.c.bf16 %v287_v38, %v287_v38 }
  0x79   : > { %v748_v34 = vshrl.u32 %v565_v3, 16  ;;  %v1962_v7 = vshrl.u32 %v1567_v0, 16  ;;  %v1968_v42 = vshll.u32 %v1568_v33, 16  ;;  %v760_v50 = vshll.u32 %v566_v31, 16 }
  0x7a   : > { %v1972_v62 = vshrl.u32 %v1568_v33, 16  ;;  %v746_v15 = vrot.slane %v9036_v10, 4  ;;  %v751_v14 = vshll.u32 %v565_v3, 16  ;;  %v1955_v21 = vor.u32 %v9125_v8, %v9123_v45  ;;  %544 = vst.msk [vmem:[#allocation2 + $0xc4] sm:$0xf] %vm226_vm0, %v7850_v17  ;;  %v289_v10 = vld [vmem:[%s8606_s24 + $0x160] sm:$0xff] }
  0x7b   : > { %v750_v56 = vrot.slane %v748_v34, 7  ;;  %v766_v43 = vshrl.u32 %v567_v4, 16  ;;  %v775_v58 = vshrl.u32 %v568_v39, 16  ;;  %543 = vst.msk [vmem:[#allocation2 + $0xc0] sm:$0xf] %vm226_vm0, %v7849_v2  ;;  %v778_v0 = vshll.u32 %v568_v39, 16 }
  0x7c   : > { %2184 = vrot.lane.b32.xlu1 %v1861_v30, %s8540_s26  ;;  %2182 = vrot.lane.b32.xlu0 %v1851_v57, %s8540_s26  ;;  %v9120_v30 = vld [vmem:[#allocation2 + $0xa8] sm:$0xf]  ;;  %v759_v57 = vrot.slane %v757_v1, 7  ;;  %v9138_v3 = vld [vmem:[#allocation2 + $0x58] sm:$0xf]  ;;  %v769_v8 = vshll.u32 %v567_v4, 16  ;;  %v7851_v4 = vpack.c.bf16 %v289_v10, %v289_v10  ;;  %v1951_v41 = vsel %vm8679_vm3, %v9118_v52, %v9123_v45 }
  0x7d   : > { %v1978_v60 = vshll.u32 %v9120_v30, 16  ;;  %v755_v11 = vrot.slane %v750_v56, 4  ;;  %v753_v31 = vor.u32 %v751_v14, %v750_v56  ;;  %v1570_v34 = vld [vmem:[#allocation2 + $0xac] sm:$0xf]  ;;  %v9144_v38 = vrot.slane %v775_v58, 7  ;;  %v292_v14 = vld [vmem:[%s8606_s24 + $0x178] sm:$0xff] }
  0x7e   : > { %v762_v55 = vor.u32 %v760_v50, %v759_v57  ;;  %v764_v33 = vrot.slane %v759_v57, 4  ;;  %v290_v56 = vld [vmem:[%s8606_s24 + $0x168] sm:$0xff]  ;;  %v9147_v1 = vrot.slane %v1968_v42, 5  ;;  %v1964_v50 = vrot.slane %v1962_v7, 4  ;;  %v570_v57 = vld [vmem:[#allocation2 + $0x5c] sm:$0xf] }
  0x7f   : > { %v754_v39 = vsel %vm8821_vm6, %v746_v15, %v753_v31  ;;  %v1982_v42 = vshrl.u32 %v9120_v30, 16  ;;  %v1988_v17 = vshll.u32 %v1570_v34, 16  ;;  %v7852_v2 = vpack.c.bf16 %v290_v56, %v290_v56  ;;  %v291_v7 = vld [vmem:[%s8606_s24 + $0x170] sm:$0xff]  ;;  %545 = vst.msk [vmem:[#allocation2 + $0xc8] sm:$0xf] %vm226_vm0, %v7851_v4 }
  0x80   : > { %1369 = vrot.lane.b32.xlu1 %v1233_v6, %s8539_s25  ;;  %1367 = vrot.lane.b32.xlu0 %v1232_v37, %s8539_s25  ;;  %v9133_v6 = vrot.slane %v1958_v5, 5  ;;  %v763_v36 = vsel %vm8821_vm6, %v755_v11, %v762_v55  ;;  %v768_v37 = vrot.slane %v766_v43, 7  ;;  %v9149_v5 = vrot.slane %v1972_v62, 4  ;;  %1166 = vst.msk [vmem:[#allocation4 + $0x3c] sm:$0xf] %vm226_vm0, %v754_v39 }
  0x81   : > { %1167 = vst.msk [vmem:[#allocation4 + $0x40] sm:$0xf] %vm226_vm0, %v763_v36  ;;  %v1992_v62 = vshrl.u32 %v1570_v34, 16  ;;  %v9162_v55 = vld [vmem:[%s12194_s1 + $0x20] ss:$0 sps:$4 sm:$0xff]   ;;  %v784_v44 = vshrl.u32 %v9138_v3, 16 }
  0x82   : > { %v773_v11 = vrot.slane %v768_v37, 4  ;;  %v1571_v30 = vld [vmem:[#allocation2 + $0xb0] sm:$0xf]  ;;  %v793_v13 = vshrl.u32 %v570_v57, 16  ;;  %v9188_v29 = vrot.slane %v1978_v60, 5  ;;  %8357 = vmatprep.subr.msk.bf16.mxu0 %vm2608_vm7, %v9162_v55  ;;  %v796_v31 = vshll.u32 %v570_v57, 16 }
  0x83   : > { %v1572_v58 = vld [vmem:[#allocation2 + $0xb4] sm:$0xf]  ;;  %546 = vst.msk [vmem:[#allocation2 + $0xcc] sm:$0xf] %vm226_vm0, %v7852_v2  ;;  %v9198_v60 = vld [vmem:[#allocation2 + $0x60] sm:$0xf] }
  0x84   : > { %1373 = vrot.lane.b32.xlu1 %v1235_v16, %s8539_s25  ;;  %1371 = vrot.lane.b32.xlu0 %v1234_v18, %s8539_s25  ;;  %v780_v16 = vor.u32 %v778_v0, %v9144_v38  ;;  %v771_v18 = vor.u32 %v769_v8, %v768_v37  ;;  %v7854_v0 = vpack.c.bf16 %v292_v14, %v292_v14  ;;  %v9200_v10 = vrot.slane %v1988_v17, 5  ;;  %v1237_v8 = vld [vmem:[#allocation2 + $0x8c] sm:$0xf]  ;;  %v1236_v57 = vld [vmem:[#allocation2 + $0x88] sm:$0xf] }
  0x85   : > { %v1994_v34 = vrot.slane %v1992_v62, 4  ;;  %v1998_v36 = vshll.u32 %v1571_v30, 16  ;;  %v2002_v37 = vshrl.u32 %v1571_v30, 16  ;;  %v1984_v56 = vrot.slane %v1982_v42, 4  ;;  %v1239_v17 = vld [vmem:[#allocation2 + $0x94] sm:$0xf] }
  0x86   : > { %v781_v15 = vsel %vm8821_vm6, %v773_v11, %v780_v16  ;;  %v772_v43 = vsel %vm8821_vm6, %v764_v33, %v771_v18  ;;  %v7853_v33 = vpack.c.bf16 %v291_v7, %v291_v7  ;;  %v9214_v39 = vrot.slane %v793_v13, 7  ;;  %548 = vst.msk [vmem:[#allocation2 + $0xd4] sm:$0xf] %vm226_vm0, %v7854_v0  ;;  %v572_v18 = vld [vmem:[#allocation2 + $0x64] sm:$0xf] }
  0x87   : > { %1169 = vst.msk [vmem:[#allocation4 + $0x48] sm:$0xf] %vm226_vm0, %v781_v15  ;;  %1168 = vst.msk [vmem:[#allocation4 + $0x44] sm:$0xf] %vm226_vm0, %v772_v43  ;;  %v2012_v47 = vshrl.u32 %v1572_v58, 16  ;;  %v782_v20 = vrot.slane %v9144_v38, 4  ;;  %v1995_v2 = vor.u32 %v1994_v34, %v9200_v10  ;;  %v1985_v7 = vor.u32 %v1984_v56, %v9188_v29 }
  0x88   : > { %2188 = vrot.lane.b32.xlu1 %v1881_v59, %s8540_s26  ;;  %2186 = vrot.lane.b32.xlu0 %v1871_v23, %s8540_s26  ;;  %v9182_v59 = vrot.slane %v1955_v21, 4  ;;  %v1965_v23 = vor.u32 %v1964_v50, %v9133_v6  ;;  %v1975_v21 = vor.u32 %v9149_v5, %v9147_v1  ;;  %v2008_v5 = vshll.u32 %v1572_v58, 16  ;;  %547 = vst.msk [vmem:[#allocation2 + $0xd0] sm:$0xf] %vm226_vm0, %v7853_v33  ;;  %v1574_v38 = vld [vmem:[#allocation2 + $0xbc] sm:$0xf] }
  0x89   : > { %v786_v50 = vrot.slane %v784_v44, 7  ;;  %v802_v11 = vshrl.u32 %v9198_v60, 16  ;;  %v798_v16 = vor.u32 %v796_v31, %v9214_v39  ;;  %v9230_v14 = vrot.slane %v1998_v36, 5  ;;  %v1238_v62 = vld [vmem:[#allocation2 + $0x90] sm:$0xf] }
  0x8a   : > { %v1961_v28 = vsel %vm8679_vm3, %v9182_v59, %v9133_v6  ;;  %v9225_v22 = vrot.slane %v1965_v23, 4  ;;  %v9228_v4 = vrot.slane %v1975_v21, 4  ;;  %v2004_v30 = vrot.slane %v2002_v37, 4  ;;  %v1573_v43 = vld [vmem:[#allocation2 + $0xb8] sm:$0xf] }
  0x8b   : > { %v9238_v44 = vrot.slane %v2008_v5, 5  ;;  %v2014_v13 = vrot.slane %v2012_v47, 4  ;;  %v811_v58 = vshrl.u32 %v572_v18, 16  ;;  %v2022_v0 = vshrl.u32 %v1573_v43, 16  ;;  %v1575_v37 = vld [vmem:[#allocation2 + $0xc0] sm:$0xf] }
  0x8c   : > { %2192 = vrot.lane.b32.xlu1 %v1901_v12, %s8540_s26  ;;  %2190 = vrot.lane.b32.xlu0 %v1891_v9, %s8540_s26  ;;  %v787_v12 = vshll.u32 %v9138_v3, 16  ;;  %v791_v9 = vrot.slane %v786_v50, 4  ;;  %v804_v3 = vrot.slane %v802_v11, 7  ;;  %v2028_v33 = vshll.u32 %v1574_v38, 16  ;;  %v1576_v11 = vld [vmem:[#allocation2 + $0xc4] sm:$0xf] }
  0x8d   : > { %v2032_v34 = vshrl.u32 %v1574_v38, 16  ;;  %v814_v36 = vshll.u32 %v572_v18, 16  ;;  %v9246_v56 = vrot.slane %v811_v58, 7  ;;  %v800_v5 = vrot.slane %v9214_v39, 4  ;;  %v579_v6 = vld [vmem:[#allocation2 + $0x80] sm:$0xf] }
  0x8e   : > { %v789_v42 = vor.u32 %v787_v12, %v786_v50  ;;  %v799_v15 = vsel %vm8821_vm6, %v791_v9, %v798_v16  ;;  %v805_v50 = vshll.u32 %v9198_v60, 16  ;;  %v9256_v47 = vrot.slane %v1995_v2, 4  ;;  %v9265_v2 = vld [vmem:[#allocation2 + $0x68] sm:$0xf] }
  0x8f   : > { %1171 = vst.msk [vmem:[#allocation4 + $0x50] sm:$0xf] %vm226_vm0, %v799_v15  ;;  %v2018_v12 = vshll.u32 %v1573_v43, 16  ;;  %v2015_v9 = vor.u32 %v2014_v13, %v9238_v44  ;;  %v2005_v39 = vor.u32 %v2004_v30, %v9230_v14  ;;  %v816_v60 = vor.u32 %v814_v36, %v9246_v56  ;;  %v574_v13 = vld [vmem:[#allocation2 + $0x6c] sm:$0xf] }
  0x90   : > { %1377 = vrot.lane.b32.xlu1 %v1237_v8, %s8539_s25  ;;  %1375 = vrot.lane.b32.xlu0 %v1236_v57, %s8539_s25  ;;  %v790_v23 = vsel %vm8821_vm6, %v782_v20, %v789_v42  ;;  %v809_v8 = vrot.slane %v804_v3, 4  ;;  %v1971_v57 = vsel %vm8679_vm3, %v9225_v22, %v9147_v1  ;;  %v9258_v20 = vrot.slane %v1985_v7, 4 }
  0x91   : > { %1170 = vst.msk [vmem:[#allocation4 + $0x4c] sm:$0xf] %vm226_vm0, %v790_v23  ;;  %v807_v16 = vor.u32 %v805_v50, %v804_v3  ;;  %v9263_v42 = vrot.slane %v2028_v33, 5  ;;  %v2024_v15 = vrot.slane %v2022_v0, 4  ;;  %v2042_v7 = vshrl.u32 %v1575_v37, 16 }
  0x92   : > { %v1324_v21 = vpop.permute.xlu1 %1323  ;;  %v1320_v31 = vpop.permute.xlu0 %1319  ;;  %v2048_v43 = vshll.u32 %v1576_v11, 16  ;;  %v817_v30 = vsel %vm8821_vm6, %v809_v8, %v816_v60  ;;  %v1981_v23 = vsel %vm8679_vm3, %v9228_v4, %v9188_v29  ;;  %v2001_v58 = vsel %vm8679_vm3, %v9256_v47, %v9230_v14 }
  0x93   : > { %1481 = vst.msk [vmem:[#allocation4 + $0x14] sm:$0xf] %vm1475_vm8, %v1324_v21  ;;  %1479 = vst.msk [vmem:[#allocation4 + $0xc] sm:$0xf] %vm1475_vm8, %v1320_v31  ;;  %v808_v3 = vsel %vm8821_vm6, %v800_v5, %v807_v16  ;;  %v9293_v63 = vrot.slane %v2018_v12, 5  ;;  %v2052_v51 = vshrl.u32 %v1576_v11, 16  ;;  %v1991_v27 = vsel %vm8679_vm3, %v9258_v20, %v9200_v10 }
  0x94   : > { %1381 = vrot.lane.b32.xlu1 %v1239_v17, %s8539_s25  ;;  %1379 = vrot.lane.b32.xlu0 %v1238_v62, %s8539_s25  ;;  %v2034_v17 = vrot.slane %v2032_v34, 4  ;;  %v2038_v62 = vshll.u32 %v1575_v37, 16  ;;  %1173 = vst.msk [vmem:[#allocation4 + $0x58] sm:$0xf] %vm226_vm0, %v817_v30  ;;  %1172 = vst.msk [vmem:[#allocation4 + $0x54] sm:$0xf] %vm226_vm0, %v808_v3 }
  0x95   : > { %v9301_v49 = vrot.slane %v2015_v9, 4  ;;  %v820_v21 = vshrl.u32 %v9265_v2, 16  ;;  %v2025_v36 = vor.u32 %v2024_v15, %v9293_v63  ;;  %v1578_v37 = vld [vmem:[#allocation2 + $0xcc] sm:$0xf]  ;;  %v829_v8 = vshrl.u32 %v574_v13, 16 }
  0x96   : > { %v1326_v18 = vpop.permute.xlu1 %1325  ;;  %v1322_v38 = vpop.permute.xlu0 %1321  ;;  %v2035_v33 = vor.u32 %v2034_v17, %v9263_v42  ;;  %v9307_v34 = vrot.slane %v2038_v62, 5  ;;  %v9312_v5 = vrot.slane %v2048_v43, 5  ;;  %v9314_v12 = vrot.slane %v2042_v7, 4  ;;  %v1241_v17 = vld [vmem:[#allocation2 + $0x9c] sm:$0xf] }
  0x97   : > { %1482 = vst.msk [vmem:[#allocation4 + $0x18] sm:$0xf] %vm1475_vm8, %v1326_v18  ;;  %1480 = vst.msk [vmem:[#allocation4 + $0x10] sm:$0xf] %vm1475_vm8, %v1322_v38  ;;  %v822_v11 = vrot.slane %v820_v21, 7  ;;  %v9328_v9 = vrot.slane %v2052_v51, 4  ;;  %v2021_v54 = vsel %vm8679_vm3, %v9301_v49, %v9293_v63 }
  0x98   : > { %2196 = vrot.lane.b32.xlu1 %v1921_v40, %s8540_s26  ;;  %2194 = vrot.lane.b32.xlu0 %v1911_v35, %s8540_s26  ;;  %v9303_v35 = vrot.slane %v2005_v39, 4  ;;  %v1577_v40 = vld [vmem:[#allocation2 + $0xc8] sm:$0xf]  ;;  %v9330_v60 = vrot.slane %v829_v8, 7  ;;  %v832_v16 = vshll.u32 %v574_v13, 16  ;;  %v2068_v24 = vshll.u32 %v1578_v37, 16 }
  0x99   : > { %v2062_v50 = vshrl.u32 %v1577_v40, 16  ;;  %v2058_v39 = vshll.u32 %v1577_v40, 16  ;;  %v575_v18 = vld [vmem:[#allocation2 + $0x70] sm:$0xf]  ;;  %v576_v38 = vld [vmem:[#allocation2 + $0x74] sm:$0xf]  ;;  %v2045_v40 = vor.u32 %v9314_v12, %v9307_v34 }
  0x9a   : > { %v1330_v31 = vpop.permute.xlu1 %1329  ;;  %v1328_v0 = vpop.permute.xlu0 %1327  ;;  %v1240_v62 = vld [vmem:[#allocation2 + $0x98] sm:$0xf]  ;;  %v2011_v61 = vsel %vm8679_vm3, %v9303_v35, %v9238_v44  ;;  %v827_v53 = vrot.slane %v822_v11, 4  ;;  %v9340_v15 = vld [vmem:[#allocation2 + $0xd0] sm:$0xf]  ;;  %v2072_v7 = vshrl.u32 %v1578_v37, 16  ;;  %v834_v43 = vor.u32 %v832_v16, %v9330_v60 }
  0x9b   : > { %1484 = vst.msk [vmem:[#allocation4 + $0x20] sm:$0xf] %vm1475_vm8, %v1330_v31  ;;  %1483 = vst.msk [vmem:[#allocation4 + $0x1c] sm:$0xf] %vm1475_vm8, %v1328_v0  ;;  %v818_v30 = vrot.slane %v9246_v56, 4  ;;  %v823_v3 = vshll.u32 %v9265_v2, 16  ;;  %v2055_v2 = vor.u32 %v9328_v9, %v9312_v5 }
  0x9c   : > { %2200 = vrot.lane.b32.xlu1 %v1941_v48, %s8540_s26  ;;  %2198 = vrot.lane.b32.xlu0 %v1931_v46, %s8540_s26  ;;  %v9347_v13 = vrot.slane %v2035_v33, 4  ;;  %v9349_v51 = vrot.slane %v2025_v36, 4  ;;  %v2064_v21 = vrot.slane %v2062_v50, 4  ;;  %v1243_v31 = vld [vmem:[#allocation2 + $0xa4] sm:$0xf]  ;;  %v9357_v0 = vrot.slane %v2058_v39, 5 }
  0x9d   : > { %v1242_v56 = vld [vmem:[#allocation2 + $0xa0] sm:$0xf]  ;;  %v835_v33 = vsel %vm8821_vm6, %v827_v53, %v834_v43  ;;  %v825_v36 = vor.u32 %v823_v3, %v822_v11  ;;  %v2078_v37 = vshll.u32 %v9340_v15, 16  ;;  %v1580_v8 = vld [vmem:[#allocation2 + $0xd4] sm:$0xf]  ;;  %v838_v50 = vshrl.u32 %v575_v18, 16 }
  0x9e   : > { %v1334_v48 = vpop.permute.xlu1 %1333  ;;  %v1332_v46 = vpop.permute.xlu0 %1331  ;;  %1175 = vst.msk [vmem:[#allocation4 + $0x60] sm:$0xf] %vm226_vm0, %v835_v33  ;;  %v847_v12 = vshrl.u32 %v576_v38, 16  ;;  %v850_v16 = vshll.u32 %v576_v38, 16  ;;  %v9365_v9 = vrot.slane %v2072_v7, 4  ;;  %v841_v53 = vshll.u32 %v575_v18, 16 }
  0x9f   : > { %1486 = vst.msk [vmem:[#allocation4 + $0x28] sm:$0xf] %vm1475_vm8, %v1334_v48  ;;  %1485 = vst.msk [vmem:[#allocation4 + $0x24] sm:$0xf] %vm1475_vm8, %v1332_v46  ;;  %v9363_v48 = vrot.slane %v2068_v24, 5  ;;  %v826_v39 = vsel %vm8821_vm6, %v818_v30, %v825_v36  ;;  %v2065_v11 = vor.u32 %v2064_v21, %v9357_v0  ;;  %v840_v38 = vrot.slane %v838_v50, 7 }
  0xa0   : > { %1385 = vrot.lane.b32.xlu1 %v1241_v17, %s8539_s25  ;;  %1383 = vrot.lane.b32.xlu0 %v1240_v62, %s8539_s25  ;;  %1174 = vst.msk [vmem:[#allocation4 + $0x5c] sm:$0xf] %vm226_vm0, %v826_v39  ;;  %v9373_v46 = vrot.slane %v847_v12, 7  ;;  %v836_v24 = vrot.slane %v9330_v60, 4  ;;  %v2041_v18 = vsel %vm8679_vm3, %v9347_v13, %v9307_v34  ;;  %v2031_v7 = vsel %vm8679_vm3, %v9349_v51, %v9263_v42  ;;  %v577_v3 = vld [vmem:[#allocation2 + $0x78] sm:$0xf] }
  0xa1   : > { %v2088_v43 = vshll.u32 %v1580_v8, 16  ;;  %v2092_v30 = vshrl.u32 %v1580_v8, 16  ;;  %v9386_v21 = vrot.slane %v2045_v40, 4  ;;  %v9388_v60 = vld [vmem:[#allocation2 + $0xd8] sm:$0xf]  ;;  %v843_v33 = vor.u32 %v841_v53, %v840_v38 }
  0xa2   : > { %v2141_v17 = vpop.permute.xlu1 %2140  ;;  %v2139_v62 = vpop.permute.xlu0 %2138  ;;  %v578_v36 = vld [vmem:[#allocation2 + $0x7c] sm:$0xf]  ;;  %v9395_v39 = vrot.slane %v2078_v37, 5  ;;  %v2082_v8 = vshrl.u32 %v9340_v15, 16  ;;  %v9400_v40 = vrot.slane %v2065_v11, 4  ;;  %v856_v53 = vshrl.u32 %v577_v3, 16 }
  0xa3   : > { %2299 = vst.msk [vmem:[#allocation4 + $0x10] sm:$0xf] %vm2294_vm9, %v2141_v17  ;;  %2298 = vst.msk [vmem:[#allocation4 + $0xc] sm:$0xf] %vm2294_vm9, %v2139_v62  ;;  %v9391_v17 = vrot.slane %v2055_v2, 4  ;;  %v2075_v62 = vor.u32 %v9365_v9, %v9363_v48  ;;  %v844_v2 = vsel %vm8821_vm6, %v836_v24, %v843_v33  ;;  %v9418_v15 = vrot.slane %v2088_v43, 5 }
  0xa4   : > { %1389 = vrot.lane.b32.xlu1 %v1243_v31, %s8539_s25  ;;  %1387 = vrot.lane.b32.xlu0 %v1242_v56, %s8539_s25  ;;  %v845_v31 = vrot.slane %v840_v38, 4  ;;  %v852_v56 = vor.u32 %v850_v16, %v9373_v46  ;;  %v9420_v37 = vrot.slane %v2092_v30, 4  ;;  %1176 = vst.msk [vmem:[#allocation4 + $0x64] sm:$0xf] %vm226_vm0, %v844_v2  ;;  %v865_v11 = vshrl.u32 %v578_v36, 16 }
  0xa5   : > { %v858_v59 = vrot.slane %v856_v53, 7  ;;  %v854_v38 = vrot.slane %v9373_v46, 4  ;;  %v859_v24 = vshll.u32 %v577_v3, 16  ;;  %v2061_v30 = vsel %vm8679_vm3, %v9391_v17, %v9357_v0  ;;  %v1245_v3 = vld [vmem:[#allocation2 + $0xac] sm:$0xf] }
  0xa6   : > { %v2145_v50 = vpop.permute.xlu1 %2144  ;;  %v2143_v12 = vpop.permute.xlu0 %2142  ;;  %v853_v16 = vsel %vm8821_vm6, %v845_v31, %v852_v56  ;;  %v580_v31 = vld [vmem:[#allocation2 + $0x84] sm:$0xf]  ;;  %v2051_v56 = vsel %vm8679_vm3, %v9386_v21, %v9312_v5  ;;  %v9434_v33 = vrot.slane %v2082_v8, 4  ;;  %v874_v2 = vshrl.u32 %v579_v6, 16  ;;  %v581_v53 = vld [vmem:[#allocation2 + $0x88] sm:$0xf] }
  0xa7   : > { %2301 = vst.msk [vmem:[#allocation4 + $0x18] sm:$0xf] %vm2294_vm9, %v2145_v50  ;;  %2300 = vst.msk [vmem:[#allocation4 + $0x14] sm:$0xf] %vm2294_vm9, %v2143_v12  ;;  %v1244_v50 = vld [vmem:[#allocation2 + $0xa8] sm:$0xf] }
  0xa8   : > { %2204 = vrot.lane.b32.xlu1 %v1961_v28, %s8540_s26  ;;  %2202 = vrot.lane.b32.xlu0 %v1951_v41, %s8540_s26  ;;  %1177 = vst.msk [vmem:[#allocation4 + $0x68] sm:$0xf] %vm226_vm0, %v853_v16  ;;  %v868_v28 = vshll.u32 %v578_v36, 16  ;;  %v867_v36 = vrot.slane %v865_v11, 7  ;;  %v863_v12 = vrot.slane %v858_v59, 4  ;;  %v861_v16 = vor.u32 %v859_v24, %v858_v59 }
  0xa9   : > { %v9450_v8 = vrot.slane %v2075_v62, 4  ;;  %v883_v59 = vshrl.u32 %v580_v31, 16  ;;  %v886_v24 = vshll.u32 %v580_v31, 16  ;;  %v876_v29 = vrot.slane %v874_v2, 7 }
  0xaa   : > { %v2149_v52 = vpop.permute.xlu1 %2148  ;;  %v2147_v45 = vpop.permute.xlu0 %2146  ;;  %v2352_v41 = vld [vmem:[#allocation4 + $0xc] sm:$0xf]  ;;  %v2353_v43 = vld [vmem:[#allocation4 + $0x10] sm:$0xf]  ;;  %v870_v11 = vor.u32 %v868_v28, %v867_v36  ;;  %v872_v4 = vrot.slane %v867_v36, 4  ;;  %v892_v31 = vshrl.u32 %v581_v53, 16  ;;  %v12244_v5 = vor.u32 %v9434_v33, %v9395_v39 }
  0xab   : > { %2303 = vst.msk [vmem:[#allocation4 + $0x20] sm:$0xf] %vm2294_vm9, %v2149_v52  ;;  %2302 = vst.msk [vmem:[#allocation4 + $0x1c] sm:$0xf] %vm2294_vm9, %v2147_v45  ;;  %v7453_v46 = vcombine.low %v2352_v41, %v2353_v43  ;;  %v582_v52 = vld [vmem:[#allocation2 + $0x8c] sm:$0xf]  ;;  %v862_v45 = vsel %vm8821_vm6, %v854_v38, %v861_v16 }
  0xac   : > { %2208 = vrot.lane.b32.xlu1 %v1981_v23, %s8540_s26  ;;  %2206 = vrot.lane.b32.xlu0 %v1971_v57, %s8540_s26  ;;  %v877_v23 = vshll.u32 %v579_v6, 16  ;;  %v9455_v41 = vld [vmem:[#allocation2 + $0x90] sm:$0xf]  ;;  %v871_v62 = vsel %vm8821_vm6, %v863_v12, %v870_v11  ;;  %1178 = vst.msk [vmem:[#allocation4 + $0x6c] sm:$0xf] %vm226_vm0, %v862_v45  ;;  %v885_v28 = vrot.slane %v883_v59, 7 }
  0xad   : > { %8047 = vmatprep.mubr.msk.bf16.mxu0 %vm2535_vm10, %v7453_v46  ;;  %v1247_v38 = vld [vmem:[#allocation2 + $0xb4] sm:$0xf]  ;;  %v1246_v36 = vld [vmem:[#allocation2 + $0xb0] sm:$0xf]  ;;  %1179 = vst.msk [vmem:[#allocation4 + $0x70] sm:$0xf] %vm226_vm0, %v871_v62 }
  0xae   : > { %v2153_v43 = vpop.permute.xlu1 %2152  ;;  %v2151_v9 = vpop.permute.xlu0 %2150  ;;  %v2354_v1 = vld [vmem:[#allocation4 + $0x14] sm:$0xf]  ;;  %v2355_v22 = vld [vmem:[#allocation4 + $0x18] sm:$0xf]  ;;  %v881_v46 = vrot.slane %v876_v29, 4  ;;  %v879_v16 = vor.u32 %v877_v23, %v876_v29  ;;  %v901_v2 = vshrl.u32 %v582_v52, 16  ;;  %v888_v12 = vor.u32 %v886_v24, %v885_v28 }
  0xaf   : > { %2305 = vst.msk [vmem:[#allocation4 + $0x28] sm:$0xf] %vm2294_vm9, %v2153_v43  ;;  %2304 = vst.msk [vmem:[#allocation4 + $0x24] sm:$0xf] %vm2294_vm9, %v2151_v9  ;;  %v7454_v6 = vcombine.low %v2354_v1, %v2355_v22  ;;  %v584_v57 = vld [vmem:[#allocation2 + $0x94] sm:$0xf] }
  0xb0   : > { %1393 = vrot.lane.b32.xlu1 %v1245_v3, %s8539_s25  ;;  %1391 = vrot.lane.b32.xlu0 %v1244_v50, %s8539_s25  ;;  %v894_v11 = vrot.slane %v892_v31, 7  ;;  %v904_v59 = vshll.u32 %v582_v52, 16  ;;  %v890_v45 = vrot.slane %v885_v28, 4  ;;  %v880_v9 = vsel %vm8821_vm6, %v872_v4, %v879_v16  ;;  %v9471_v29 = vld [vmem:[#allocation2 + $0x98] sm:$0xf] }
  0xb1   : > { %8048 = vmatmul.mubr.msk.bf16.vlgmr.msra.gmra.mxu0 %vm2535_vm10, %v7454_v6  ;;  %v903_v43 = vrot.slane %v901_v2, 7  ;;  %v895_v1 = vshll.u32 %v581_v53, 16  ;;  %v910_v22 = vshrl.u32 %v9455_v41, 16  ;;  %v9473_v23 = vld [vmem:[#allocation2 + $0x9c] sm:$0xf]  ;;  %v889_v28 = vsel %vm8821_vm6, %v881_v46, %v888_v12 }
  0xb2   : > { %v1338_v3 = vpop.permute.xlu1 %1337  ;;  %v1336_v62 = vpop.permute.xlu0 %1335  ;;  %v2356_v50 = vld [vmem:[#allocation4 + $0x1c] sm:$0xf]  ;;  %v2357_v24 = vld [vmem:[#allocation4 + $0x20] sm:$0xf]  ;;  %1180 = vst.msk [vmem:[#allocation4 + $0x74] sm:$0xf] %vm226_vm0, %v880_v9 }
  0xb3   : > { %v899_v4 = vrot.slane %v894_v11, 4  ;;  %v919_v53 = vshrl.u32 %v584_v57, 16  ;;  %1488 = vst.msk [vmem:[#allocation4 + $0x30] sm:$0xf] %vm1475_vm8, %v1338_v3  ;;  %1487 = vst.msk [vmem:[#allocation4 + $0x2c] sm:$0xf] %vm1475_vm8, %v1336_v62  ;;  %v7455_v31 = vcombine.low %v2356_v50, %v2357_v24  ;;  %v906_v6 = vor.u32 %v904_v59, %v903_v43 }
  0xb4   : > { %1181 = vst.msk [vmem:[#allocation4 + $0x78] sm:$0xf] %vm226_vm0, %v889_v28  ;;  %v897_v16 = vor.u32 %v895_v1, %v894_v11  ;;  %v912_v2 = vrot.slane %v910_v22, 7  ;;  %1397 = vrot.lane.b32.xlu1 %v1247_v38, %s8539_s25  ;;  %1395 = vrot.lane.b32.xlu0 %v1246_v36, %s8539_s25  ;;  %v922_v46 = vshll.u32 %v584_v57, 16  ;;  %v908_v12 = vrot.slane %v903_v43, 4 }
  0xb5   : > { %v9485_v52 = vrot.slane %v919_v53, 7  ;;  %v913_v9 = vshll.u32 %v9455_v41, 16  ;;  %8051 = vmatprep.mubr.msk.bf16.mxu0 %vm2535_vm10, %v7455_v31  ;;  %v907_v3 = vsel %vm8821_vm6, %v899_v4, %v906_v6  ;;  %v3429_v38 = vsel %vm2608_vm7, %v9162_v55, 0  ;;  %v9495_v1 = vld [vmem:[#allocation2 + $0xa0] sm:$0xf]  ;;  %v8396_v31 = vld [vmem:[%s12194_s1 + $0x18] sm:$0xff]  }
  0xb6   : > { %v898_v59 = vsel %vm8821_vm6, %v890_v45, %v897_v16  ;;  %v917_v11 = vrot.slane %v912_v2, 4  ;;  %v588_v36 = vld [vmem:[#allocation2 + $0xa4] sm:$0xf]  ;;  %v1342_v22 = vpop.permute.xlu1 %1341  ;;  %v1340_v57 = vpop.permute.xlu0 %1339  ;;  %v2359_v62 = vld [vmem:[#allocation4 + $0x28] sm:$0xf]  ;;  %8148 = vmatpush3.bf16.msra.mxu0 %v3429_v38  ;;  %v928_v45 = vshrl.u32 %v9471_v29, 16 }
  0xb7   : > { %v2358_v43 = vld [vmem:[#allocation4 + $0x24] sm:$0xf]  ;;  %1183 = vst.msk [vmem:[#allocation4 + $0x80] sm:$0xf] %vm226_vm0, %v907_v3  ;;  %1182 = vst.msk [vmem:[#allocation4 + $0x7c] sm:$0xf] %vm226_vm0, %v898_v59  ;;  %v924_v41 = vor.u32 %v922_v46, %v9485_v52  ;;  %v915_v50 = vor.u32 %v913_v9, %v912_v2  ;;  %8149 = vmatprep.subr.bf16.mxu0 %v8396_v31 }
  0xb8   : > { %v937_v24 = vshrl.u32 %v9473_v23, 16  ;;  %1490 = vst.msk [vmem:[#allocation4 + $0x38] sm:$0xf] %vm1475_vm8, %v1342_v22  ;;  %1489 = vst.msk [vmem:[#allocation4 + $0x34] sm:$0xf] %vm1475_vm8, %v1340_v57  ;;  %v7456_v55 = vcombine.low %v2358_v43, %v2359_v62  ;;  %v940_v28 = vshll.u32 %v9473_v23, 16  ;;  %2212 = vrot.lane.b32.xlu1 %v2001_v58, %s8540_s26  ;;  %2210 = vrot.lane.b32.xlu0 %v1991_v27, %s8540_s26 }
  0xb9   : > { %v926_v4 = vrot.slane %v9485_v52, 4  ;;  %v931_v53 = vshll.u32 %v9471_v29, 16  ;;  %v925_v29 = vsel %vm8821_vm6, %v917_v11, %v924_v41  ;;  %v916_v23 = vsel %vm8821_vm6, %v908_v12, %v915_v50  ;;  %v589_v16 = vld [vmem:[#allocation2 + $0xa8] sm:$0xf]  ;;  %v590_v2 = vld [vmem:[#allocation2 + $0xac] sm:$0xf] }
  0xba   : > { %v930_v52 = vrot.slane %v928_v45, 7  ;;  %v939_v6 = vrot.slane %v937_v24, 7  ;;  %8052 = vmatmul.mubr.msk.bf16.gmra.mxu0 %vm2535_vm10, %v7456_v55  ;;  %1185 = vst.msk [vmem:[#allocation4 + $0x88] sm:$0xf] %vm226_vm0, %v925_v29  ;;  %1184 = vst.msk [vmem:[#allocation4 + $0x84] sm:$0xf] %vm226_vm0, %v916_v23  ;;  %v2157_v58 = vpop.permute.xlu1 %2156  ;;  %v2155_v27 = vpop.permute.xlu0 %2154 }
  0xbb   : > { %v946_v14 = vshrl.u32 %v9495_v1, 16  ;;  %v955_v10 = vshrl.u32 %v588_v36, 16  ;;  %v958_v47 = vshll.u32 %v588_v36, 16  ;;  %v949_v20 = vshll.u32 %v9495_v1, 16  ;;  %v9531_v59 = vld [vmem:[#allocation2 + $0xb0] sm:$0xf]  ;;  %8150 = vmatpush3.bf16.msra.mxu0 %v8396_v31 }
  0xbc   : > { %v935_v46 = vrot.slane %v930_v52, 4  ;;  %v942_v12 = vor.u32 %v940_v28, %v939_v6  ;;  %v933_v9 = vor.u32 %v931_v53, %v930_v52  ;;  %v944_v3 = vrot.slane %v939_v6, 4  ;;  %2307 = vst.msk [vmem:[#allocation4 + $0x30] sm:$0xf] %vm2294_vm9, %v2157_v58  ;;  %2306 = vst.msk [vmem:[#allocation4 + $0x2c] sm:$0xf] %vm2294_vm9, %v2155_v27  ;;  %2216 = vrot.lane.b32.xlu1 %v2021_v54, %s8540_s26 }
  0xbd   : > { %v948_v11 = vrot.slane %v946_v14, 7  ;;  %v957_v38 = vrot.slane %v955_v10, 7  ;;  %v964_v22 = vshrl.u32 %v589_v16, 16  ;;  %v973_v36 = vshrl.u32 %v590_v2, 16  ;;  %v592_v57 = vld [vmem:[#allocation2 + $0xb4] sm:$0xf]  ;;  %2214 = vrot.lane.b32.xlu0 %v2011_v61, %s8540_s26 }
  0xbe   : > { %v943_v1 = vsel %vm8821_vm6, %v935_v46, %v942_v12  ;;  %v934_v43 = vsel %vm8821_vm6, %v926_v4, %v933_v9  ;;  %v976_v62 = vshll.u32 %v590_v2, 16  ;;  %v967_v41 = vshll.u32 %v589_v16, 16  ;;  %v1249_v50 = vld [vmem:[#allocation2 + $0xbc] sm:$0xf]  ;;  %v1248_v45 = vld [vmem:[#allocation2 + $0xb8] sm:$0xf]  ;;  %v2161_v44 = vpop.permute.xlu1 %2160  ;;  %v2159_v35 = vpop.permute.xlu0 %2158 }
  0xbf   : > { %1187 = vst.msk [vmem:[#allocation4 + $0x90] sm:$0xf] %vm226_vm0, %v943_v1  ;;  %1186 = vst.msk [vmem:[#allocation4 + $0x8c] sm:$0xf] %vm226_vm0, %v934_v43  ;;  %v953_v63 = vrot.slane %v948_v11, 4  ;;  %v960_v49 = vor.u32 %v958_v47, %v957_v38  ;;  %v951_v54 = vor.u32 %v949_v20, %v948_v11  ;;  %v966_v24 = vrot.slane %v964_v22, 7 }
  0xc0   : > { %v975_v61 = vrot.slane %v973_v36, 7  ;;  %v962_v55 = vrot.slane %v957_v38, 4  ;;  %v982_v28 = vshrl.u32 %v9531_v59, 16  ;;  %v991_v53 = vshrl.u32 %v592_v57, 16  ;;  %v593_v4 = vld [vmem:[#allocation2 + $0xb8] sm:$0xf]  ;;  %1401 = vrot.lane.b32.xlu1 %v1249_v50, %s8539_s25 }
  0xc1   : > { %2309 = vst.msk [vmem:[#allocation4 + $0x38] sm:$0xf] %vm2294_vm9, %v2161_v44  ;;  %2308 = vst.msk [vmem:[#allocation4 + $0x34] sm:$0xf] %vm2294_vm9, %v2159_v35  ;;  %v1251_v31 = vld [vmem:[#allocation2 + $0xc4] sm:$0xf]  ;;  %v961_v23 = vsel %vm8821_vm6, %v953_v63, %v960_v49  ;;  %v952_v52 = vsel %vm8821_vm6, %v944_v3, %v951_v54  ;;  %v969_v16 = vor.u32 %v967_v41, %v966_v24  ;;  %1399 = vrot.lane.b32.xlu0 %v1248_v45, %s8539_s25 }
  0xc2   : > { %v1250_v29 = vld [vmem:[#allocation2 + $0xc0] sm:$0xf]  ;;  %v971_v6 = vrot.slane %v966_v24, 4  ;;  %v594_v2 = vld [vmem:[#allocation2 + $0xbc] sm:$0xf]  ;;  %v978_v14 = vor.u32 %v976_v62, %v975_v61  ;;  %v984_v10 = vrot.slane %v982_v28, 7  ;;  %v1346_v11 = vpop.permute.xlu1 %1345  ;;  %v1344_v38 = vpop.permute.xlu0 %1343 }
  0xc3   : > { %1189 = vst.msk [vmem:[#allocation4 + $0x98] sm:$0xf] %vm226_vm0, %v961_v23  ;;  %1188 = vst.msk [vmem:[#allocation4 + $0x94] sm:$0xf] %vm226_vm0, %v952_v52  ;;  %v993_v47 = vrot.slane %v991_v53, 7  ;;  %v994_v20 = vshll.u32 %v592_v57, 16  ;;  %v970_v27 = vsel %vm8821_vm6, %v962_v55, %v969_v16 }
  0xc4   : > { %v9564_v58 = vld [vmem:[#allocation2 + $0xc0] sm:$0xf]  ;;  %v980_v46 = vrot.slane %v975_v61, 4  ;;  %v985_v12 = vshll.u32 %v9531_v59, 16  ;;  %v1000_v9 = vshrl.u32 %v593_v4, 16  ;;  %v979_v1 = vsel %vm8821_vm6, %v971_v6, %v978_v14  ;;  %1405 = vrot.lane.b32.xlu1 %v1251_v31, %s8539_s25 }
  0xc5   : > { %v596_v3 = vld [vmem:[#allocation2 + $0xc4] sm:$0xf]  ;;  %v2360_v22 = vld [vmem:[#allocation4 + $0x2c] sm:$0xf]  ;;  %v2361_v36 = vld [vmem:[#allocation4 + $0x30] sm:$0xf]  ;;  %v996_v43 = vor.u32 %v994_v20, %v993_v47  ;;  %1403 = vrot.lane.b32.xlu0 %v1250_v29, %s8539_s25 }
  0xc6   : > { %1190 = vst.msk [vmem:[#allocation4 + $0x9c] sm:$0xf] %vm226_vm0, %v970_v27  ;;  %v989_v57 = vrot.slane %v984_v10, 4  ;;  %v1009_v62 = vshrl.u32 %v594_v2, 16  ;;  %v7457_v41 = vcombine.low %v2360_v22, %v2361_v36  ;;  %1191 = vst.msk [vmem:[#allocation4 + $0xa0] sm:$0xf] %vm226_vm0, %v979_v1  ;;  %v987_v59 = vor.u32 %v985_v12, %v984_v10  ;;  %v1350_v31 = vpop.permute.xlu1 %1349  ;;  %v1348_v29 = vpop.permute.xlu0 %1347 }
  0xc7   : > { %1492 = vst.msk [vmem:[#allocation4 + $0x40] sm:$0xf] %vm1475_vm8, %v1346_v11  ;;  %1491 = vst.msk [vmem:[#allocation4 + $0x3c] sm:$0xf] %vm1475_vm8, %v1344_v38  ;;  %v1002_v50 = vrot.slane %v1000_v9, 7  ;;  %v1012_v45 = vshll.u32 %v594_v2, 16  ;;  %v2071_v1 = vsel %vm8679_vm3, %v9400_v40, %v9363_v48 }
  0xc8   : > { %v9575_v63 = vld [vmem:[#allocation2 + $0xc8] sm:$0xf]  ;;  %v997_v49 = vsel %vm8821_vm6, %v989_v57, %v996_v43  ;;  %v1011_v54 = vrot.slane %v1009_v62, 7  ;;  %v998_v24 = vrot.slane %v993_v47, 4  ;;  %v1003_v44 = vshll.u32 %v593_v4, 16  ;;  %8055 = vmatprep.mubr.msk.bf16.mxu0 %vm2535_vm10, %v7457_v41  ;;  %2220 = vrot.lane.b32.xlu1 %v2041_v18, %s8540_s26 }
  0xc9   : > { %1193 = vst.msk [vmem:[#allocation4 + $0xa8] sm:$0xf] %vm226_vm0, %v997_v49  ;;  %v988_v35 = vsel %vm8821_vm6, %v980_v46, %v987_v59  ;;  %v1007_v61 = vrot.slane %v1002_v50, 4  ;;  %v1018_v55 = vshrl.u32 %v9564_v58, 16  ;;  %v1027_v28 = vshrl.u32 %v596_v3, 16  ;;  %2218 = vrot.lane.b32.xlu0 %v2031_v7, %s8540_s26 }
  0xca   : > { %v598_v53 = vld [vmem:[#allocation2 + $0xcc] sm:$0xf]  ;;  %v2362_v23 = vld [vmem:[#allocation4 + $0x34] sm:$0xf]  ;;  %v2363_v52 = vld [vmem:[#allocation4 + $0x38] sm:$0xf]  ;;  %v1014_v6 = vor.u32 %v1012_v45, %v1011_v54  ;;  %v1005_v4 = vor.u32 %v1003_v44, %v1002_v50  ;;  %v2165_v18 = vpop.permute.xlu1 %2164  ;;  %v2163_v7 = vpop.permute.xlu0 %2162 }
  0xcb   : > { %1192 = vst.msk [vmem:[#allocation4 + $0xa4] sm:$0xf] %vm226_vm0, %v988_v35  ;;  %v1030_v16 = vshll.u32 %v596_v3, 16  ;;  %v1016_v2 = vrot.slane %v1011_v54, 4  ;;  %v7458_v14 = vcombine.low %v2362_v23, %v2363_v52  ;;  %v1020_v10 = vrot.slane %v1018_v55, 7 }
  0xcc   : > { %1494 = vst.msk [vmem:[#allocation4 + $0x48] sm:$0xf] %vm1475_vm8, %v1350_v31  ;;  %1493 = vst.msk [vmem:[#allocation4 + $0x44] sm:$0xf] %vm1475_vm8, %v1348_v29  ;;  %v1029_v47 = vrot.slane %v1027_v28, 7  ;;  %v1021_v20 = vshll.u32 %v9564_v58, 16  ;;  %v1015_v46 = vsel %vm8821_vm6, %v1007_v61, %v1014_v6  ;;  %v1006_v58 = vsel %vm8821_vm6, %v998_v24, %v1005_v4  ;;  %2224 = vrot.lane.b32.xlu1 %v2061_v30, %s8540_s26 }
  0xcd   : > { %v9602_v27 = vld [vmem:[#allocation2 + $0xc] sm:$0xf]  ;;  %v1036_v12 = vshrl.u32 %v9575_v63, 16  ;;  %v1045_v9 = vshrl.u32 %v598_v53, 16  ;;  %8056 = vmatmul.mubr.msk.bf16.gmra.mxu0 %vm2535_vm10, %v7458_v14  ;;  %1195 = vst.msk [vmem:[#allocation4 + $0xb0] sm:$0xf] %vm226_vm0, %v1015_v46  ;;  %2222 = vrot.lane.b32.xlu0 %v2051_v56, %s8540_s26  ;;  %v12243_v30 = vor.u32 %v9420_v37, %v9418_v15 }
  0xce   : > { %1194 = vst.msk [vmem:[#allocation4 + $0xac] sm:$0xf] %vm226_vm0, %v1006_v58  ;;  %v1025_v34 = vrot.slane %v1020_v10, 4  ;;  %v1032_v42 = vor.u32 %v1030_v16, %v1029_v47  ;;  %v1023_v13 = vor.u32 %v1021_v20, %v1020_v10  ;;  %v1048_v51 = vshll.u32 %v598_v53, 16  ;;  %v599_v36 = vld [vmem:[#allocation2 + $0xd0] sm:$0xf]  ;;  %v2169_v61 = vpop.permute.xlu1 %2168  ;;  %v2167_v55 = vpop.permute.xlu0 %2166 }
  0xcf   : > { %v1038_v3 = vrot.slane %v1036_v12, 7  ;;  %v9612_v11 = vrot.slane %v1045_v9, 7  ;;  %v1034_v38 = vrot.slane %v1029_v47, 4  ;;  %v1039_v22 = vshll.u32 %v9575_v63, 16  ;;  %2311 = vst.msk [vmem:[#allocation4 + $0x40] sm:$0xf] %vm2294_vm9, %v2165_v18 }
  0xd0   : > { %2310 = vst.msk [vmem:[#allocation4 + $0x3c] sm:$0xf] %vm2294_vm9, %v2163_v7  ;;  %v9621_v57 = vld [vmem:[#allocation2 + $0x10] sm:$0xf]  ;;  %v1589_v43 = vshrl.u32 %v9602_v27, 16  ;;  %v1033_v62 = vsel %vm8821_vm6, %v1025_v34, %v1032_v42  ;;  %v1024_v41 = vsel %vm8821_vm6, %v1016_v2, %v1023_v13  ;;  %v12242_v63 = vshll.u32 %v9388_v60, 16 }
  0xd1   : > { %v600_v59 = vld [vmem:[#allocation2 + $0xd4] sm:$0xf]  ;;  %v1253_v50 = vld [vmem:[#allocation2 + $0xcc] sm:$0xf]  ;;  %v1252_v45 = vld [vmem:[#allocation2 + $0xc8] sm:$0xf]  ;;  %v1050_v0 = vor.u32 %v1048_v51, %v9612_v11  ;;  %v1041_v17 = vor.u32 %v1039_v22, %v1038_v3  ;;  %v2081_v22 = vsel %vm8679_vm3, %v9450_v8, %v9395_v39 }
  0xd2   : > { %v9642_v49 = vrot.slane %v12242_v63, 5  ;;  %1197 = vst.msk [vmem:[#allocation4 + $0xb8] sm:$0xf] %vm226_vm0, %v1033_v62  ;;  %1196 = vst.msk [vmem:[#allocation4 + $0xb4] sm:$0xf] %vm226_vm0, %v1024_v41  ;;  %v1043_v54 = vrot.slane %v1038_v3, 4  ;;  %1409 = vrot.lane.b32.xlu1 %v1253_v50, %s8539_s25  ;;  %1407 = vrot.lane.b32.xlu0 %v1252_v45, %s8539_s25  ;;  %v1354_v34 = vpop.permute.xlu1 %1353  ;;  %v1352_v42 = vpop.permute.xlu0 %1351 }
  0xd3   : > { %v9650_v24 = vrot.slane %v12243_v30, 4  ;;  %v9655_v21 = vrot.slane %v12244_v5, 4  ;;  %v1592_v56 = vshll.u32 %v9602_v27, 16  ;;  %v1054_v44 = vshrl.u32 %v599_v36, 16  ;;  %v9658_v35 = vld [vmem:[#allocation2 + $0xc] sm:$0xf] }
  0xd4   : > { %v1598_v28 = vshll.u32 %v9621_v57, 16  ;;  %v9661_v53 = vld [vmem:[#allocation2 + $0x14] sm:$0xf]  ;;  %v1051_v37 = vsel %vm8821_vm6, %v1043_v54, %v1050_v0  ;;  %v1042_v31 = vsel %vm8821_vm6, %v1034_v38, %v1041_v17  ;;  %v1063_v33 = vshrl.u32 %v600_v59, 16  ;;  %v551_v29 = vld [vmem:[#allocation2 + $0x10] sm:$0xf] }
  0xd5   : > { %2313 = vst.msk [vmem:[#allocation4 + $0x48] sm:$0xf] %vm2294_vm9, %v2169_v61  ;;  %2312 = vst.msk [vmem:[#allocation4 + $0x44] sm:$0xf] %vm2294_vm9, %v2167_v55  ;;  %v1255_v23 = vld [vmem:[#allocation2 + $0xd4] sm:$0xf] }
  0xd6   : > { %v9669_v52 = vrot.slane %v1589_v43, 4  ;;  %v1602_v6 = vshrl.u32 %v9621_v57, 16  ;;  %1199 = vst.msk [vmem:[#allocation4 + $0xc0] sm:$0xf] %vm226_vm0, %v1051_v37  ;;  %1198 = vst.msk [vmem:[#allocation4 + $0xbc] sm:$0xf] %vm226_vm0, %v1042_v31  ;;  %1413 = vrot.lane.b32.xlu1 %v1255_v23, %s8539_s25  ;;  %v1358_v0 = vpop.permute.xlu1 %1357  ;;  %v1356_v17 = vpop.permute.xlu0 %1355 }
  0xd7   : > { %v1056_v4 = vrot.slane %v1054_v44, 7  ;;  %v1066_v16 = vshll.u32 %v600_v59, 16  ;;  %v1254_v2 = vld [vmem:[#allocation2 + $0xd0] sm:$0xf]  ;;  %v9676_v14 = vrot.slane %v1063_v33, 7  ;;  %v1052_v10 = vrot.slane %v9612_v11, 4 }
  0xd8   : > { %v1057_v47 = vshll.u32 %v599_v36, 16  ;;  %v613_v20 = vshrl.u32 %v9658_v35, 16  ;;  %v9680_v27 = vrot.slane %v1592_v56, 5  ;;  %v1608_v46 = vshll.u32 %v9661_v53, 16  ;;  %v549_v9 = vld [vmem:[#allocation2 + $0x8] sm:$0x8]  ;;  %1411 = vrot.lane.b32.xlu0 %v1254_v2, %s8539_s25 }
  0xd9   : > { %v1061_v58 = vrot.slane %v1056_v4, 4  ;;  %v622_v12 = vshrl.u32 %v551_v29, 16  ;;  %v9683_v13 = vld [vmem:[#allocation4 + $0x3c] sm:$0xf]  ;;  %v9685_v51 = vld [vmem:[#allocation4 + $0x40] sm:$0xf]  ;;  %v1068_v18 = vor.u32 %v1066_v16, %v9676_v14  ;;  %v2101_v56 = vsel %vm8679_vm3, %v9650_v24, %v9642_v49 }
  0xda   : > { %v1059_v7 = vor.u32 %v1057_v47, %v1056_v4  ;;  %v615_v3 = vrot.slane %v613_v20, 7  ;;  %v625_v11 = vshll.u32 %v551_v29, 16  ;;  %1496 = vst.msk [vmem:[#allocation4 + $0x50] sm:$0xf] %vm1475_vm8, %v1354_v34  ;;  %1495 = vst.msk [vmem:[#allocation4 + $0x4c] sm:$0xf] %vm1475_vm8, %v1352_v42  ;;  %v7459_v38 = vcombine.low %v9683_v13, %v9685_v51  ;;  %2228 = vrot.lane.b32.xlu1 %v2081_v22, %s8540_s26 }
  0xdb   : > { %v1612_v36 = vshrl.u32 %v9661_v53, 16  ;;  %v624_v43 = vrot.slane %v622_v12, 7  ;;  %v1069_v62 = vsel %vm8821_vm6, %v1061_v58, %v1068_v18  ;;  %v608_v50 = vshrl.u32 %v549_v9, 16  ;;  %v8483_v63 = vld [vmem:[#allocation2 + $0x14] sm:$0xf] }
  0xdc   : > { %v1060_v41 = vsel %vm8821_vm6, %v1052_v10, %v1059_v7  ;;  %v620_v59 = vrot.slane %v615_v3, 4  ;;  %8059 = vmatprep.mubr.msk.bf16.mxu0 %vm2535_vm10, %v7459_v38  ;;  %1201 = vst.msk [vmem:[#allocation4 + $0xc8] sm:$0xf] %vm226_vm0, %v1069_v62  ;;  %v616_v8 = vshll.u32 %v9658_v35, 16  ;;  %v634_v54 = vshll.u32 %v8483_v63, 16  ;;  %2226 = vrot.lane.b32.xlu0 %v2071_v1, %s8540_s26  ;;  %v2173_v1 = vpop.permute.xlu1 %2172 }
  0xdd   : > { %1200 = vst.msk [vmem:[#allocation4 + $0xc4] sm:$0xf] %vm226_vm0, %v1060_v41  ;;  %v627_v39 = vor.u32 %v625_v11, %v624_v43  ;;  %v629_v45 = vrot.slane %v624_v43, 4  ;;  %v9707_v30 = vld [vmem:[#allocation4 + $0x44] sm:$0xf]  ;;  %v7452_v44 = vrot.slane %v608_v50, 11  ;;  %v2091_v24 = vsel %vm8679_vm3, %v9655_v21, %v9418_v15  ;;  %v2171_v21 = vpop.permute.xlu0 %2170 }
  0xde   : > { %v9709_v5 = vld [vmem:[#allocation4 + $0x48] sm:$0xf]  ;;  %1498 = vst.msk [vmem:[#allocation4 + $0x58] sm:$0xf] %vm1475_vm8, %v1358_v0  ;;  %1497 = vst.msk [vmem:[#allocation4 + $0x54] sm:$0xf] %vm1475_vm8, %v1356_v17  ;;  %v618_v55 = vor.u32 %v616_v8, %v615_v3  ;;  %v636_v53 = vor.u32 %v634_v54, %v8825_v26  ;;  %v1595_v37 = vor.u32 %v9680_v27, %v9669_v52  ;;  %2232 = vrot.lane.b32.xlu1 %v2101_v56, %s8540_s26 }
  0xdf   : > { %v7460_v35 = vcombine.low %v9707_v30, %v9709_v5  ;;  %v628_v61 = vsel %vm8821_vm6, %v620_v59, %v627_v39  ;;  %v1600_v26 = vrot.slane %v1598_v28, 5  ;;  %v1604_v31 = vrot.slane %v1602_v6, 4  ;;  %2315 = vst.msk [vmem:[#allocation4 + $0x50] sm:$0xf] %vm2294_vm9, %v2173_v1  ;;  %2314 = vst.msk [vmem:[#allocation4 + $0x4c] sm:$0xf] %vm2294_vm9, %v2171_v21 }
  0xe0   : > { %1152 = vst.msk [vmem:[#allocation4 + $0x4] sm:$0xf] %vm226_vm0, %v628_v61  ;;  %v9739_v33 = vrot.slane %v1608_v46, 5  ;;  %v1614_v48 = vrot.slane %v1612_v36, 4  ;;  %v619_v40 = vsel %vm8821_vm6, %v7452_v44, %v618_v55  ;;  %v637_v15 = vsel %vm8821_vm6, %v629_v45, %v636_v53  ;;  %v601_v28 = vld [vmem:[#allocation2 + $0xd8] sm:$0xf]  ;;  %2230 = vrot.lane.b32.xlu0 %v2091_v24, %s8540_s26  ;;  %v2177_v10 = vpop.permute.xlu1 %2176 }
  0xe1   : > { %8060 = vmatmul.mubr.msk.bf16.gmra.mxu0 %vm2535_vm10, %v7460_v35  ;;  %1151 = vst.msk [vmem:[#allocation4] sm:$0xf] %vm226_vm0, %v619_v40  ;;  %1153 = vst.msk [vmem:[#allocation4 + $0x8] sm:$0xf] %vm226_vm0, %v637_v15  ;;  %v2102_v57 = vshrl.u32 %v9388_v60, 16  ;;  %v1596_v29 = vrot.slane %v1595_v37, 4  ;;  %v1605_v23 = vor.u32 %v1604_v31, %v1600_v26  ;;  %v2175_v47 = vpop.permute.xlu0 %2174 }
  0xe2   : > { %v1072_v52 = vshrl.u32 %v601_v28, 16  ;;  %v1206_v6 = vld [vmem:[#allocation2 + $0x10] sm:$0xf]  ;;  %v1205_v4 = vld [vmem:[#allocation2 + $0xc] sm:$0xf]  ;;  %v1615_v16 = vor.u32 %v1614_v48, %v9739_v33  ;;  %v1075_v27 = vshll.u32 %v601_v28, 16 }
  0xe3   : > { %v8403_v2 = vld [vmem:[%s12194_s1 + $0x8] ss:$0 sps:$4 sm:$0xff]   ;;  %v1583_v20 = vld [vmem:[#allocation2 + $0xe0] sm:$0xf]  ;;  %v9758_v46 = vrot.slane %v2102_v57, 4  ;;  %1315 = vrot.lane.b32.xlu1 %v1206_v6, %s8539_s25  ;;  %v1601_v12 = vsel %vm8679_vm3, %v1596_v29, %v1600_v26  ;;  %v9768_v34 = vrot.slane %v1605_v23, 4 }
  0xe4   : > { %v9756_v60 = vrot.slane %v1072_v52, 7  ;;  %2317 = vst.msk [vmem:[#allocation4 + $0x58] sm:$0xf] %vm2294_vm9, %v2177_v10  ;;  %2316 = vst.msk [vmem:[#allocation4 + $0x54] sm:$0xf] %vm2294_vm9, %v2175_v47  ;;  %8356 = vmatprep.subr.msk.bf16.mxu1 %vm2608_vm7, %v8403_v2  ;;  %v2949_v58 = vsel %vm2608_vm7, %v8403_v2, 0  ;;  %1313 = vrot.lane.b32.xlu0 %v1205_v4, %s8539_s25  ;;  %v1362_v43 = vpop.permute.xlu1 %1361 }
  0xe5   : > { %v1207_v9 = vld [vmem:[#allocation2 + $0x14] sm:$0xf]  ;;  %v1582_v42 = vld [vmem:[#allocation2 + $0xdc] sm:$0xf]  ;;  %v1070_v18 = vrot.slane %v9676_v14, 4  ;;  %v1616_v3 = vrot.slane %v1615_v16, 4  ;;  %8096 = vmatpush3.bf16.msra.mxu1 %v2949_v58  ;;  %v1360_v62 = vpop.permute.xlu0 %1359  ;;  %v2105_v50 = vor.u32 %v9758_v46, %v9642_v49  ;;  %v1611_v49 = vsel %vm8679_vm3, %v9768_v34, %v9739_v33 }
  0xe6   : > { %v1077_v7 = vor.u32 %v1075_v27, %v9756_v60  ;;  %v2112_v11 = vshrl.u32 %v1582_v42, 16  ;;  %v2118_v38 = vshll.u32 %v1583_v20, 16  ;;  %v2122_v22 = vshrl.u32 %v1583_v20, 16  ;;  %v8405_v36 = vld [vmem:[%s12194_s1] sm:$0xff]   ;;  %v9775_v41 = vld [vmem:[#allocation4 + $0x4c] sm:$0xf] }
  0xe7   : > { %v9777_v59 = vld [vmem:[#allocation4 + $0x50] sm:$0xf]  ;;  %1500 = vst.msk [vmem:[#allocation4 + $0x60] sm:$0xf] %vm1475_vm8, %v1362_v43  ;;  %1499 = vst.msk [vmem:[#allocation4 + $0x5c] sm:$0xf] %vm1475_vm8, %v1360_v62  ;;  %8097 = vmatprep.subr.bf16.mxu1 %v8405_v36  ;;  %2132 = vrot.lane.b32.xlu1 %v1601_v12, %s8540_s26  ;;  %v1621_v56 = vsel %vm8679_vm3, %v1616_v3, %v8672_v19 }
  0xe8   : > { %v1078_v14 = vsel %vm8821_vm6, %v1070_v18, %v1077_v7  ;;  %v7461_v39 = vcombine.low %v9775_v41, %v9777_v59  ;;  %v2108_v8 = vshll.u32 %v1582_v42, 16  ;;  %v602_v45 = vld [vmem:[#allocation2 + $0xdc] sm:$0xf]  ;;  %1317 = vrot.lane.b32.xlu0 %v1207_v9, %s8539_s25  ;;  %v8541_v0 = vmov 0.0|0.0   ;;  %v1584_v44 = vld [vmem:[#allocation2 + $0xe4] sm:$0x1]  ;;  %v1366_v53 = vpop.permute.xlu1 %1365 }
  0xe9   : > { %1202 = vst.msk [vmem:[#allocation4 + $0xcc] sm:$0xf] %vm226_vm0, %v1078_v14  ;;  %v1081_v63 = vshrl.u32 %v602_v45, 16  ;;  %v1084_v54 = vshll.u32 %v602_v45, 16  ;;  %v7606_v17 = vcombine.low %v8541_v0, %v8541_v0  ;;  %v9798_v35 = vrot.slane %v2118_v38, 5  ;;  %8098 = vmatpush3.bf16.msra.mxu1 %v8405_v36  ;;  %v1364_v24 = vpop.permute.xlu0 %1363 }
  0xea   : > { %8063 = vmatprep.mubr.msk.bf16.mxu0 %vm2535_vm10, %v7461_v39  ;;  %v2124_v61 = vrot.slane %v2122_v22, 4  ;;  %v2114_v55 = vrot.slane %v2112_v11, 4  ;;  %v1079_v31 = vrot.slane %v9756_v60, 4  ;;  %1502 = vst.msk [vmem:[#allocation4 + $0x68] sm:$0xf] %vm1475_vm8, %v1366_v53  ;;  %v2110_v48 = vrot.slane %v2108_v8, 5 }
  0xeb   : > { %v9800_v37 = vld [vmem:[#allocation4 + $0x54] sm:$0xf]  ;;  %v9802_v26 = vld [vmem:[#allocation4 + $0x58] sm:$0xf]  ;;  %v9805_v33 = vrot.slane %v1081_v63, 7  ;;  %2136 = vrot.lane.b32.xlu1 %v1621_v56, %s8540_s26  ;;  %v2106_v21 = vrot.slane %v2105_v50, 4 }
  0xec   : > { %4123 = vst.msk [vmem:[#allocation3 + $0xd4] sm:$0xf] %vm226_vm0, %v7606_v17  ;;  %4078 = vst.msk [vmem:[#allocation3 + $0x20] sm:$0xf] %vm226_vm0, %v7606_v17  ;;  %v7462_v19 = vcombine.low %v9800_v37, %v9802_v26  ;;  %2134 = vrot.lane.b32.xlu0 %v1611_v49, %s8540_s26  ;;  %v1257_v15 = vld [vmem:[#allocation2 + $0xdc] sm:$0xf]  ;;  %v2125_v57 = vor.u32 %v2124_v61, %v9798_v35  ;;  %v2115_v29 = vor.u32 %v2114_v55, %v2110_v48  ;;  %v2181_v23 = vpop.permute.xlu1 %2180 }
  0xed   : > { %4081 = vst.msk [vmem:[#allocation3 + $0x2c] sm:$0xf] %vm226_vm0, %v7606_v17  ;;  %4084 = vst.msk [vmem:[#allocation3 + $0x38] sm:$0xf] %vm226_vm0, %v7606_v17  ;;  %v1086_v40 = vor.u32 %v1084_v54, %v9805_v33  ;;  %v1256_v1 = vld [vmem:[#allocation2 + $0xd8] sm:$0xf]  ;;  %v2179_v52 = vpop.permute.xlu0 %2178  ;;  %v2111_v16 = vsel %vm8679_vm3, %v2106_v21, %v2110_v48 }
  0xee   : > { %4087 = vst.msk [vmem:[#allocation3 + $0x44] sm:$0xf] %vm226_vm0, %v7606_v17  ;;  %4090 = vst.msk [vmem:[#allocation3 + $0x50] sm:$0xf] %vm226_vm0, %v7606_v17  ;;  %8064 = vmatmul.mubr.msk.bf16.gmra.mxu0 %vm2535_vm10, %v7462_v19  ;;  %v2128_v28 = vshll.u32 %v1584_v44, 16  ;;  %v2126_v2 = vrot.slane %v2125_v57, 4 }
  0xef   : > { %4093 = vst.msk [vmem:[#allocation3 + $0x5c] sm:$0xf] %vm226_vm0, %v7606_v17  ;;  %4096 = vst.msk [vmem:[#allocation3 + $0x68] sm:$0xf] %vm226_vm0, %v7606_v17  ;;  %v1087_v6 = vsel %vm8821_vm6, %v1079_v31, %v1086_v40  ;;  %1417 = vrot.lane.b32.xlu1 %v1257_v15, %s8539_s25  ;;  %v1258_v4 = vld [vmem:[#allocation2 + $0xe0] sm:$0xf] }
  0xf0   : > { %4099 = vst.msk [vmem:[#allocation3 + $0x74] sm:$0xf] %vm226_vm0, %v7606_v17  ;;  %4102 = vst.msk [vmem:[#allocation3 + $0x80] sm:$0xf] %vm226_vm0, %v7606_v17  ;;  %1415 = vrot.lane.b32.xlu0 %v1256_v1, %s8539_s25  ;;  %v2130_v10 = vrot.slane %v2128_v28, 5  ;;  %v2116_v47 = vrot.slane %v2115_v29, 4  ;;  %v2185_v60 = vpop.permute.xlu1 %2184 }
  0xf1   : > { %4105 = vst.msk [vmem:[#allocation3 + $0x8c] sm:$0xf] %vm226_vm0, %v7606_v17  ;;  %4108 = vst.msk [vmem:[#allocation3 + $0x98] sm:$0xf] %vm226_vm0, %v7606_v17  ;;  %v2183_v27 = vpop.permute.xlu0 %2182 }
  0xf2   : > { %4111 = vst.msk [vmem:[#allocation3 + $0xa4] sm:$0xf] %vm226_vm0, %v7606_v17  ;;  %4114 = vst.msk [vmem:[#allocation3 + $0xb0] sm:$0xf] %vm226_vm0, %v7606_v17  ;;  %v2131_v9 = vsel %vm8679_vm3, %v2126_v2, %v2130_v10  ;;  %v2121_v34 = vsel %vm8679_vm3, %v2116_v47, %v9798_v35 }
  0xf3   : > { %4117 = vst.msk [vmem:[#allocation3 + $0xbc] sm:$0xf] %vm226_vm0, %v7606_v17  ;;  %4120 = vst.msk [vmem:[#allocation3 + $0xc8] sm:$0xf] %vm226_vm0, %v7606_v17  ;;  %v4175_v20 = vld [vmem:[#allocation3 + $0xd4] sm:$0xf]  ;;  %2234 = vrot.lane.b32.xlu1 %v2111_v16, %s8540_s26 }
  0xf4   : > { %1501 = vst.msk [vmem:[#allocation4 + $0x64] sm:$0xf] %vm1475_vm8, %v1364_v24  ;;  %v4635_v46 = vshrl.u32 %v4175_v20, 16  ;;  %v4638_v58 = vshll.u32 %v4175_v20, 16  ;;  %1419 = vrot.lane.b32.xlu0 %v1258_v4, %s8539_s25  ;;  %v1370_v42 = vpop.permute.xlu1 %1369 }
  0xf5   : > { %2319 = vst.msk [vmem:[#allocation4 + $0x60] sm:$0xf] %vm2294_vm9, %v2181_v23  ;;  %2318 = vst.msk [vmem:[#allocation4 + $0x5c] sm:$0xf] %vm2294_vm9, %v2179_v52  ;;  %v1368_v18 = vpop.permute.xlu0 %1367 }
  0xf6   : > { %1203 = vst.msk [vmem:[#allocation4 + $0xd0] sm:$0xf] %vm226_vm0, %v1087_v6  ;;  %v9845_v12 = vrot.slane %v4635_v46, 7 }
  0xf7   : > { %2321 = vst.msk [vmem:[#allocation4 + $0x68] sm:$0xf] %vm2294_vm9, %v2185_v60  ;;  %2320 = vst.msk [vmem:[#allocation4 + $0x64] sm:$0xf] %vm2294_vm9, %v2183_v27  ;;  %2238 = vrot.lane.b32.xlu1 %v2131_v9, %s8540_s26 }
  0xf8   : > { %v9857_v11 = vor.u32 %v4638_v58, %v9845_v12  ;;  %1504 = vst.msk [vmem:[#allocation4 + $0x70] sm:$0xf] %vm1475_vm8, %v1370_v42  ;;  %1503 = vst.msk [vmem:[#allocation4 + $0x6c] sm:$0xf] %vm1475_vm8, %v1368_v18  ;;  %2236 = vrot.lane.b32.xlu0 %v2121_v34, %s8540_s26  ;;  %v1374_v22 = vpop.permute.xlu1 %1373 }
  0xf9   : > { %v1372_v36 = vpop.permute.xlu0 %1371  ;;  %1506 = vst.msk [vmem:[#allocation4 + $0x78] sm:$0xf] %vm1475_vm8, %v1374_v22 }
  0xfa   : > { %12245 = vst [vmem:[#allocation5_spill] sm:$0xff] %v9857_v11  ;;  %1505 = vst.msk [vmem:[#allocation4 + $0x74] sm:$0xf] %vm1475_vm8, %v1372_v36 }
  0xfc   : > { %v9852_v7 = vld [vmem:[#allocation4 + $0x5c] sm:$0xf]  ;;  %v9854_v3 = vld [vmem:[#allocation4 + $0x60] sm:$0xf]  ;;  %v2189_v50 = vpop.permute.xlu1 %2188 }
  0xfd   : > { %v7463_v38 = vcombine.low %v9852_v7, %v9854_v3  ;;  %v2187_v39 = vpop.permute.xlu0 %2186  ;;  %2323 = vst.msk [vmem:[#allocation4 + $0x70] sm:$0xf] %vm2294_vm9, %v2189_v50 }
  0xfe   : > { %v9866_v43 = vld [vmem:[#allocation4 + $0x64] sm:$0xf]  ;;  %v9868_v62 = vld [vmem:[#allocation4 + $0x68] sm:$0xf]  ;;  %2322 = vst.msk [vmem:[#allocation4 + $0x6c] sm:$0xf] %vm2294_vm9, %v2187_v39 }
  0xff   : > { %8067 = vmatprep.mubr.msk.bf16.mxu0 %vm2535_vm10, %v7463_v38  ;;  %v7464_v14 = vcombine.low %v9866_v43, %v9868_v62 }
 0x100   : > { %v2193_v8 = vpop.permute.xlu1 %2192 }
 0x101   : > { %8068 = vmatmul.mubr.msk.bf16.gmra.mxu0 %vm2535_vm10, %v7464_v14  ;;  %v2191_v45 = vpop.permute.xlu0 %2190  ;;  %2325 = vst.msk [vmem:[#allocation4 + $0x78] sm:$0xf] %vm2294_vm9, %v2193_v8  ;;  %v603_v14 = vld [vmem:[#allocation2 + $0xe0] sm:$0xf] }
 0x102   : > { %2324 = vst.msk [vmem:[#allocation4 + $0x74] sm:$0xf] %vm2294_vm9, %v2191_v45  ;;  %v1090_v50 = vshrl.u32 %v603_v14, 16  ;;  %v1093_v39 = vshll.u32 %v603_v14, 16 }
 0x104   : > { %v1378_v49 = vpop.permute.xlu1 %1377  ;;  %v9881_v0 = vld [vmem:[#allocation4 + $0x70] sm:$0xf] }
 0x105   : > { %v1376_v63 = vpop.permute.xlu0 %1375  ;;  %v9879_v54 = vld [vmem:[#allocation4 + $0x6c] sm:$0xf]  ;;  %1508 = vst.msk [vmem:[#allocation4 + $0x80] sm:$0xf] %vm1475_vm8, %v1378_v49 }
 0x106   : > { %1507 = vst.msk [vmem:[#allocation4 + $0x7c] sm:$0xf] %vm1475_vm8, %v1376_v63  ;;  %v7465_v17 = vcombine.low %v9879_v54, %v9881_v0 }
 0x108   : > { %8071 = vmatprep.mubr.msk.bf16.mxu0 %vm2535_vm10, %v7465_v17  ;;  %v1382_v56 = vpop.permute.xlu1 %1381  ;;  %v9890_v61 = vld [vmem:[#allocation4 + $0x78] sm:$0xf] }
 0x109   : > { %v1380_v44 = vpop.permute.xlu0 %1379  ;;  %v9888_v35 = vld [vmem:[#allocation4 + $0x74] sm:$0xf]  ;;  %1510 = vst.msk [vmem:[#allocation4 + $0x88] sm:$0xf] %vm1475_vm8, %v1382_v56  ;;  %v1088_v56 = vrot.slane %v9805_v33, 4 }
 0x10a   : > { %1509 = vst.msk [vmem:[#allocation4 + $0x84] sm:$0xf] %vm1475_vm8, %v1380_v44  ;;  %v7466_v55 = vcombine.low %v9888_v35, %v9890_v61  ;;  %v1092_v44 = vrot.slane %v1090_v50, 7 }
 0x10c   : > { %8072 = vmatmul.mubr.msk.bf16.gmra.mxu0 %vm2535_vm10, %v7466_v55  ;;  %v2197_v53 = vpop.permute.xlu1 %2196  ;;  %v1095_v55 = vor.u32 %v1093_v39, %v1092_v44 }
 0x10d   : > { %v2195_v24 = vpop.permute.xlu0 %2194  ;;  %2327 = vst.msk [vmem:[#allocation4 + $0x80] sm:$0xf] %vm2294_vm9, %v2197_v53 }
 0x10e   : > { %2326 = vst.msk [vmem:[#allocation4 + $0x7c] sm:$0xf] %vm2294_vm9, %v2195_v24  ;;  %v1096_v33 = vsel %vm8821_vm6, %v1088_v56, %v1095_v55 }
 0x10f   : > { %1204 = vst.msk [vmem:[#allocation4 + $0xd4] sm:$0xf] %vm226_vm0, %v1096_v33 }
 0x110   : > { %v2201_v31 = vpop.permute.xlu1 %2200 }
 0x111   : > { %v2199_v19 = vpop.permute.xlu0 %2198  ;;  %2329 = vst.msk [vmem:[#allocation4 + $0x88] sm:$0xf] %vm2294_vm9, %v2201_v31 }
 0x112   : > { %2328 = vst.msk [vmem:[#allocation4 + $0x84] sm:$0xf] %vm2294_vm9, %v2199_v19 }
 0x114   : > { %v1386_v48 = vpop.permute.xlu1 %1385  ;;  %v9903_v1 = vld [vmem:[#allocation4 + $0x80] sm:$0xf] }
 0x115   : > { %v1384_v40 = vpop.permute.xlu0 %1383  ;;  %v9901_v15 = vld [vmem:[#allocation4 + $0x7c] sm:$0xf]  ;;  %1512 = vst.msk [vmem:[#allocation4 + $0x90] sm:$0xf] %vm1475_vm8, %v1386_v48 }
 0x116   : > { %1511 = vst.msk [vmem:[#allocation4 + $0x8c] sm:$0xf] %vm1475_vm8, %v1384_v40  ;;  %v7467_v21 = vcombine.low %v9901_v15, %v9903_v1 }
 0x118   : > { %8075 = vmatprep.mubr.msk.bf16.mxu0 %vm2535_vm10, %v7467_v21  ;;  %v1390_v57 = vpop.permute.xlu1 %1389  ;;  %v9912_v23 = vld [vmem:[#allocation4 + $0x88] sm:$0xf] }
 0x119   : > { %v1388_v28 = vpop.permute.xlu0 %1387  ;;  %v9910_v29 = vld [vmem:[#allocation4 + $0x84] sm:$0xf]  ;;  %1514 = vst.msk [vmem:[#allocation4 + $0x98] sm:$0xf] %vm1475_vm8, %v1390_v57 }
 0x11a   : > { %1513 = vst.msk [vmem:[#allocation4 + $0x94] sm:$0xf] %vm1475_vm8, %v1388_v28  ;;  %v7468_v52 = vcombine.low %v9910_v29, %v9912_v23 }
 0x11c   : > { %8076 = vmatmul.mubr.msk.bf16.gmra.mxu0 %vm2535_vm10, %v7468_v52  ;;  %v2205_v6 = vpop.permute.xlu1 %2204 }
 0x11d   : > { %v2203_v4 = vpop.permute.xlu0 %2202  ;;  %2331 = vst.msk [vmem:[#allocation4 + $0x90] sm:$0xf] %vm2294_vm9, %v2205_v6 }
 0x11e   : > { %2330 = vst.msk [vmem:[#allocation4 + $0x8c] sm:$0xf] %vm2294_vm9, %v2203_v4 }
 0x120   : > { %v2209_v16 = vpop.permute.xlu1 %2208 }
 0x121   : > { %v2207_v2 = vpop.permute.xlu0 %2206  ;;  %2333 = vst.msk [vmem:[#allocation4 + $0x98] sm:$0xf] %vm2294_vm9, %v2209_v16 }
 0x122   : > { %2332 = vst.msk [vmem:[#allocation4 + $0x94] sm:$0xf] %vm2294_vm9, %v2207_v2 }
 0x124   : > { %v1394_v10 = vpop.permute.xlu1 %1393  ;;  %v9925_v60 = vld [vmem:[#allocation4 + $0x90] sm:$0xf] }
 0x125   : > { %v1392_v47 = vpop.permute.xlu0 %1391  ;;  %v9923_v20 = vld [vmem:[#allocation4 + $0x8c] sm:$0xf]  ;;  %1516 = vst.msk [vmem:[#allocation4 + $0xa0] sm:$0xf] %vm1475_vm8, %v1394_v10 }
 0x126   : > { %1515 = vst.msk [vmem:[#allocation4 + $0x9c] sm:$0xf] %vm1475_vm8, %v1392_v47  ;;  %v7469_v27 = vcombine.low %v9923_v20, %v9925_v60 }
 0x128   : > { %8079 = vmatprep.mubr.msk.bf16.mxu0 %vm2535_vm10, %v7469_v27  ;;  %v1398_v46 = vpop.permute.xlu1 %1397  ;;  %v9934_v34 = vld [vmem:[#allocation4 + $0x98] sm:$0xf] }
 0x129   : > { %v1396_v58 = vpop.permute.xlu0 %1395  ;;  %v9932_v9 = vld [vmem:[#allocation4 + $0x94] sm:$0xf]  ;;  %1518 = vst.msk [vmem:[#allocation4 + $0xa8] sm:$0xf] %vm1475_vm8, %v1398_v46 }
 0x12a   : > { %1517 = vst.msk [vmem:[#allocation4 + $0xa4] sm:$0xf] %vm1475_vm8, %v1396_v58  ;;  %v7470_v42 = vcombine.low %v9932_v9, %v9934_v34 }
 0x12c   : > { %8080 = vmatmul.mubr.msk.bf16.gmra.mxu0 %vm2535_vm10, %v7470_v42  ;;  %v2213_v18 = vpop.permute.xlu1 %2212 }
 0x12d   : > { %v2211_v38 = vpop.permute.xlu0 %2210  ;;  %2335 = vst.msk [vmem:[#allocation4 + $0xa0] sm:$0xf] %vm2294_vm9, %v2213_v18 }
 0x12e   : > { %2334 = vst.msk [vmem:[#allocation4 + $0x9c] sm:$0xf] %vm2294_vm9, %v2211_v38 }
 0x130   : > { %v2217_v22 = vpop.permute.xlu1 %2216 }
 0x131   : > { %v2215_v36 = vpop.permute.xlu0 %2214  ;;  %2337 = vst.msk [vmem:[#allocation4 + $0xa8] sm:$0xf] %vm2294_vm9, %v2217_v22 }
 0x132   : > { %2336 = vst.msk [vmem:[#allocation4 + $0xa4] sm:$0xf] %vm2294_vm9, %v2215_v36  ;;  %v4126_v36 = vld [vmem:[#allocation3 + $0x10] sm:$0xf] }
 0x133   : > { %v4194_v56 = vshrl.u32 %v4126_v36, 16 }
 0x134   : > { %v1402_v8 = vpop.permute.xlu1 %1401  ;;  %v9947_v63 = vld [vmem:[#allocation4 + $0xa0] sm:$0xf] }
 0x135   : > { %v1400_v45 = vpop.permute.xlu0 %1399  ;;  %v9945_v49 = vld [vmem:[#allocation4 + $0x9c] sm:$0xf]  ;;  %1520 = vst.msk [vmem:[#allocation4 + $0xb0] sm:$0xf] %vm1475_vm8, %v1402_v8 }
 0x136   : > { %1519 = vst.msk [vmem:[#allocation4 + $0xac] sm:$0xf] %vm1475_vm8, %v1400_v45  ;;  %v7471_v17 = vcombine.low %v9945_v49, %v9947_v63 }
 0x138   : > { %8083 = vmatprep.mubr.msk.bf16.mxu0 %vm2535_vm10, %v7471_v17  ;;  %v1406_v53 = vpop.permute.xlu1 %1405  ;;  %v9957_v19 = vld [vmem:[#allocation4 + $0xa8] sm:$0xf]  ;;  %v4127_v17 = vld [vmem:[#allocation3 + $0x14] sm:$0xf] }
 0x139   : > { %v1404_v24 = vpop.permute.xlu0 %1403  ;;  %v9955_v31 = vld [vmem:[#allocation4 + $0xa4] sm:$0xf]  ;;  %1522 = vst.msk [vmem:[#allocation4 + $0xb8] sm:$0xf] %vm1475_vm8, %v1406_v53  ;;  %v4206_v33 = vshll.u32 %v4127_v17, 16 }
 0x13a   : > { %1521 = vst.msk [vmem:[#allocation4 + $0xb4] sm:$0xf] %vm1475_vm8, %v1404_v24  ;;  %v7472_v48 = vcombine.low %v9955_v31, %v9957_v19  ;;  %v4203_v24 = vshrl.u32 %v4127_v17, 16 }
 0x13c   : > { %8084 = vmatmul.mubr.msk.bf16.gmra.mxu0 %vm2535_vm10, %v7472_v48  ;;  %v2221_v40 = vpop.permute.xlu1 %2220  ;;  %v8402_v48 = vld [vmem:[#allocation4 + $0x18] sm:$0xff]  }
 0x13d   : > { %v2219_v21 = vpop.permute.xlu0 %2218  ;;  %2339 = vst.msk [vmem:[#allocation4 + $0xb0] sm:$0xf] %vm2294_vm9, %v2221_v40  ;;  %v4176_v40 = vld [vmem:[#allocation3 + $0xd8] sm:$0xf] }
 0x13e   : > { %2338 = vst.msk [vmem:[#allocation4 + $0xac] sm:$0xf] %vm2294_vm9, %v2219_v21  ;;  %v10003_v21 = vrot.slane %v4194_v56, 7  ;;  %v4647_v36 = vshll.u32 %v4176_v40, 16 }
 0x140   : > { %v2225_v57 = vpop.permute.xlu1 %2224  ;;  %12246 = vst [vmem:[#allocation6_spill] sm:$0xff] %v10003_v21 }
 0x141   : > { %v2223_v28 = vpop.permute.xlu0 %2222  ;;  %2341 = vst.msk [vmem:[#allocation4 + $0xb8] sm:$0xf] %vm2294_vm9, %v2225_v57  ;;  %v10005_v57 = vrot.slane %v4203_v24, 7 }
 0x142   : > { %2340 = vst.msk [vmem:[#allocation4 + $0xb4] sm:$0xf] %vm2294_vm9, %v2223_v28 }
 0x143   : > { %12247 = vst [vmem:[#allocation7_spill] sm:$0xff] %v10005_v57 }
 0x144   : > { %v1410_v52 = vpop.permute.xlu1 %1409  ;;  %v9973_v16 = vld [vmem:[#allocation4 + $0xb0] sm:$0xf] }
 0x145   : > { %v1408_v6 = vpop.permute.xlu0 %1407  ;;  %v9971_v4 = vld [vmem:[#allocation4 + $0xac] sm:$0xf]  ;;  %1524 = vst.msk [vmem:[#allocation4 + $0xc0] sm:$0xf] %vm1475_vm8, %v1410_v52 }
 0x146   : > { %1523 = vst.msk [vmem:[#allocation4 + $0xbc] sm:$0xf] %vm1475_vm8, %v1408_v6  ;;  %v7473_v2 = vcombine.low %v9971_v4, %v9973_v16  ;;  %v4644_v6 = vshrl.u32 %v4176_v40, 16  ;;  %v8485_v40 = vld [vmem:[#allocation4 + $0x10] sm:$0xf] }
 0x148   : > { %8087 = vmatprep.mubr.msk.bf16.mxu0 %vm2535_vm10, %v7473_v2  ;;  %v1414_v10 = vpop.permute.xlu1 %1413  ;;  %v9982_v46 = vld [vmem:[#allocation4 + $0xb8] sm:$0xf]  ;;  %v4201_v2 = vrot.slane %v10003_v21, 4 }
 0x149   : > { %v9980_v27 = vld [vmem:[#allocation4 + $0xb4] sm:$0xf]  ;;  %1526 = vst.msk [vmem:[#allocation4 + $0xc8] sm:$0xf] %vm1475_vm8, %v1414_v10  ;;  %v4208_v10 = vor.u32 %v4206_v33, %v10005_v57  ;;  %v5130_v57 = vld [vmem:[#allocation3 + $0x80] sm:$0xf] }
 0x14a   : > { %v1412_v47 = vpop.permute.xlu0 %1411  ;;  %v7474_v58 = vcombine.low %v9980_v27, %v9982_v46 }
 0x14b   : > { %1525 = vst.msk [vmem:[#allocation4 + $0xc4] sm:$0xf] %vm1475_vm8, %v1412_v47  ;;  %v4177_v47 = vld [vmem:[#allocation3 + $0xdc] sm:$0xf] }
 0x14c   : > { %8088 = vmatmul.mubr.msk.bf16.gmra.mxu0 %vm2535_vm10, %v7474_v58  ;;  %v2229_v42 = vpop.permute.xlu1 %2228  ;;  %v4178_v58 = vld [vmem:[#allocation3 + $0xe0] sm:$0xf] }
 0x14d   : > { %2343 = vst.msk [vmem:[#allocation4 + $0xc0] sm:$0xf] %vm2294_vm9, %v2229_v42 }
 0x14e   : > { %v2227_v18 = vpop.permute.xlu0 %2226 }
 0x14f   : > { %2342 = vst.msk [vmem:[#allocation4 + $0xbc] sm:$0xf] %vm2294_vm9, %v2227_v18 }
 0x150   : > { %v2233_v38 = vpop.permute.xlu1 %2232 }
 0x151   : > { %2345 = vst.msk [vmem:[#allocation4 + $0xc8] sm:$0xf] %vm2294_vm9, %v2233_v38  ;;  %v8404_v38 = vld [vmem:[#allocation4 + $0x20] sm:$0xff]  }
 0x152   : > { %v2231_v22 = vpop.permute.xlu0 %2230 }
 0x153   : > { %2344 = vst.msk [vmem:[#allocation4 + $0xc4] sm:$0xf] %vm2294_vm9, %v2231_v22  ;;  %v4646_v22 = vrot.slane %v4644_v6, 7 }
 0x154   : > { %v2400_v8 = vld [vmem:[#allocation4 + $0xc0] sm:$0xf] }
 0x155   : > { %v1316_v14 = vpop.permute.xlu1 %1315  ;;  %v4649_v24 = vor.u32 %v4647_v36, %v4646_v22 }
 0x156   : > { %v1314_v50 = vpop.permute.xlu0 %1313  ;;  %v9993_v39 = vld [vmem:[#allocation4 + $0xbc] sm:$0xf]  ;;  %1477 = vst.msk [vmem:[#allocation4 + $0x4] sm:$0xf] %vm1475_vm8, %v1316_v14  ;;  %v8406_v14 = vld [vmem:[#allocation4 + $0x28] sm:$0xff]  }
 0x157   : > { %1476 = vst.msk [vmem:[#allocation4] sm:$0xf] %vm1475_vm8, %v1314_v50  ;;  %v7475_v45 = vcombine.low %v9993_v39, %v2400_v8  ;;  %v4209_v50 = vsel %vm8821_vm6, %v4201_v2, %v4208_v10  ;;  %v4653_v8 = vshrl.u32 %v4177_v47, 16  ;;  %v4665_v10 = vshll.u32 %v4178_v58, 16 }
 0x159   : > { %8091 = vmatprep.mubr.msk.bf16.mxu0 %vm2535_vm10, %v7475_v45  ;;  %v2133_v44 = vpop.permute.xlu1 %2132  ;;  %v4662_v45 = vshrl.u32 %v4178_v58, 16  ;;  %v4655_v6 = vrot.slane %v4653_v8, 7 }
 0x15a   : > { %v1318_v55 = vpop.permute.xlu0 %1317  ;;  %v8401_v53 = vld [vmem:[#allocation4 + $0xc4] sm:$0xff]   ;;  %2295 = vst.msk [vmem:[#allocation4] sm:$0xf] %vm2294_vm9, %v2133_v44 }
 0x15b   : > { %1478 = vst.msk [vmem:[#allocation4 + $0x8] sm:$0xf] %vm1475_vm8, %v1318_v55  ;;  %8092 = vmatmul.mubr.msk.bf16.gmra.mxu0 %vm2535_vm10, %v8401_v53  ;;  %v4642_v53 = vrot.slane %v9845_v12, 4  ;;  %v4664_v2 = vrot.slane %v4662_v45, 7  ;;  %v8408_v12 = vld [vmem:[#allocation4 + $0x30] sm:$0xff]  }
 0x15c   : > { %8151 = vmatprep.mubr.msk.bf16.mxu0 %vm2535_vm10, %v8402_v48  ;;  %v8484_v48 = vld [vmem:[#allocation4 + $0xc] sm:$0xf] }
 0x15d   : > { %v2137_v28 = vpop.permute.xlu1 %2136  ;;  %v4650_v36 = vsel %vm8821_vm6, %v4642_v53, %v4649_v24  ;;  %v4667_v58 = vor.u32 %v4665_v10, %v4664_v2  ;;  %v8490_v53 = vld [vmem:[#allocation4 + $0x24] sm:$0xf]  ;;  %v8491_v10 = vld [vmem:[#allocation4 + $0x28] sm:$0xf] }
 0x15e   : > { %v2135_v52 = vpop.permute.xlu0 %2134  ;;  %2297 = vst.msk [vmem:[#allocation4 + $0x8] sm:$0xf] %vm2294_vm9, %v2137_v28  ;;  %v8486_v28 = vld [vmem:[#allocation4 + $0x14] sm:$0xf] }
 0x15f   : > { %2296 = vst.msk [vmem:[#allocation4 + $0x4] sm:$0xf] %vm2294_vm9, %v2135_v52  ;;  %v7505_v52 = vcombine.low %v8485_v40, %v8486_v28 }
 0x161   : > { %v1418_v42 = vpop.permute.xlu1 %1417 }
 0x162   : > { %v1416_v18 = vpop.permute.xlu0 %1415  ;;  %1528 = vst.msk [vmem:[#allocation4 + $0xd0] sm:$0xf] %vm1475_vm8, %v1418_v42  ;;  %v4656_v42 = vshll.u32 %v4177_v47, 16  ;;  %v4651_v47 = vrot.slane %v4646_v22, 4  ;;  %v8410_v22 = vld [vmem:[#allocation4 + $0x40] sm:$0xff]  }
 0x163   : > { %1527 = vst.msk [vmem:[#allocation4 + $0xcc] sm:$0xf] %vm1475_vm8, %v1416_v18  ;;  %8152 = vmatmul.mubr.msk.bf16.vlgmr.msra.gmra.mxu0 %vm2535_vm10, %v8404_v38 }
 0x164   : > { %8155 = vmatprep.mubr.msk.bf16.mxu0 %vm2535_vm10, %v8406_v14  ;;  %v8409_v14 = vld [vmem:[#allocation4 + $0x38] sm:$0xff]   ;;  %v4658_v8 = vor.u32 %v4656_v42, %v4655_v6  ;;  %v8492_v42 = vld [vmem:[#allocation4 + $0x2c] sm:$0xf] }
 0x165   : > { %v2351_v17 = vld [vmem:[#allocation4 + $0x8] sm:$0xf]  ;;  %v2235_v56 = vpop.permute.xlu1 %2234 }
 0x166   : > { %v8407_v44 = vld [vmem:[#allocation4] sm:$0xff]   ;;  %v1420_v55 = vpop.permute.xlu0 %1419  ;;  %4725 = vst.msk [vmem:[#allocation4 + $0x8] sm:$0xf] %vm226_vm0, %v4209_v50  ;;  %v7504_v33 = vcombine.low %v2351_v17, %v8484_v48  ;;  %v4660_v50 = vrot.slane %v4655_v6, 4  ;;  %v8487_v17 = vld [vmem:[#allocation4 + $0x18] sm:$0xf] }
 0x167   : > { %2346 = vst.msk [vmem:[#allocation4 + $0xcc] sm:$0xf] %vm2294_vm9, %v2235_v56  ;;  %8099 = vmatprep.mubr.msk.bf16.mxu1 %vm2535_vm10, %v8407_v44  ;;  %v8488_v56 = vld [vmem:[#allocation4 + $0x1c] sm:$0xf] }
 0x168   : > { %1529 = vst.msk [vmem:[#allocation4 + $0xd4] sm:$0xf] %vm1475_vm8, %v1420_v55  ;;  %8100 = vmatmul.mubr.msk.bf16.vlgmr.msra.gmra.mxu1 %vm2535_vm10, %v7504_v33  ;;  %v7506_v44 = vcombine.low %v8487_v17, %v8488_v56  ;;  %v8489_v55 = vld [vmem:[#allocation4 + $0x20] sm:$0xf]  ;;  %v4668_v48 = vsel %vm8821_vm6, %v4660_v50, %v4667_v58  ;;  %v4659_v33 = vsel %vm8821_vm6, %v4651_v47, %v4658_v8  ;;  %v8412_v50 = vld [vmem:[#allocation4 + $0x50] sm:$0xff]   ;;  %v8413_v47 = vld [vmem:[#allocation4 + $0x58] sm:$0xff]  }
 0x169   : > { %8103 = vmatprep.mubr.msk.bf16.mxu1 %vm2535_vm10, %v7505_v52  ;;  %v2239_v18 = vpop.permute.xlu1 %2238  ;;  %v7507_v24 = vcombine.low %v8489_v55, %v8490_v53  ;;  %v8411_v52 = vld [vmem:[#allocation4 + $0x48] sm:$0xff]   ;;  %v8495_v56 = vld [vmem:[#allocation4 + $0x38] sm:$0xf]  ;;  %v7511_v55 = vcombine.low %v9685_v51, %v9707_v30  ;;  %v8416_v51 = vld [vmem:[#allocation4 + $0x70] sm:$0xff]  }
 0x16a   : > { %v2237_v38 = vpop.permute.xlu0 %2236  ;;  %2348 = vst.msk [vmem:[#allocation4 + $0xd4] sm:$0xf] %vm2294_vm9, %v2239_v18  ;;  %v8493_v18 = vld [vmem:[#allocation4 + $0x30] sm:$0xf]  ;;  %v8417_v30 = vld [vmem:[#allocation4 + $0x78] sm:$0xff]  }
 0x16b   : > { %2347 = vst.msk [vmem:[#allocation4 + $0xd0] sm:$0xf] %vm2294_vm9, %v2237_v38  ;;  %8156 = vmatmul.mubr.msk.bf16.gmra.mxu0 %vm2535_vm10, %v8408_v12  ;;  %v7508_v12 = vcombine.low %v8491_v10, %v8492_v42  ;;  %v8494_v38 = vld [vmem:[#allocation4 + $0x34] sm:$0xf]  ;;  %v7514_v10 = vcombine.low %v9802_v26, %v9852_v7  ;;  %v4782_v42 = vld [vmem:[#allocation3 + $0x20] sm:$0xf]  ;;  %v7516_v26 = vcombine.low %v9868_v62, %v9879_v54 }
 0x16c   : > { %8159 = vmatprep.mubr.msk.bf16.mxu0 %vm2535_vm10, %v8409_v14  ;;  %4895 = vrot.lane.b32.xlu0 %v4782_v42, %s8539_s25  ;;  %v7517_v7 = vcombine.low %v9881_v0, %v9888_v35  ;;  %v4791_v62 = vld [vmem:[#allocation3 + $0x44] sm:$0xf]  ;;  %v7518_v54 = vcombine.low %v9890_v61, %v9901_v15  ;;  %v7519_v0 = vcombine.low %v9903_v1, %v9910_v29  ;;  %v4794_v35 = vld [vmem:[#allocation3 + $0x50] sm:$0xf]  ;;  %v4800_v61 = vld [vmem:[#allocation3 + $0x68] sm:$0xf] }
 0x16d   : > { %v4803_v15 = vld [vmem:[#allocation3 + $0x74] sm:$0xf]  ;;  %v7520_v29 = vcombine.low %v9912_v23, %v9923_v20  ;;  %v7522_v20 = vcombine.low %v9934_v34, %v9945_v49  ;;  %v7524_v34 = vcombine.low %v9957_v19, %v9971_v4  ;;  %v7525_v49 = vcombine.low %v9973_v16, %v9980_v27  ;;  %v4818_v19 = vld [vmem:[#allocation3 + $0xb0] sm:$0xf] }
 0x16e   : > { %v10030_v45 = vld [vmem:[#allocation4 + $0xc8] sm:$0xff]   ;;  %v7526_v27 = vcombine.low %v9982_v46, %v9993_v39 }
 0x16f   : > { %4774 = vst.msk [vmem:[#allocation4 + $0xcc] sm:$0xf] %vm226_vm0, %v4650_v36  ;;  %v7509_v36 = vcombine.low %v8493_v18, %v8494_v38  ;;  %v8421_v18 = vld [vmem:[#allocation4 + $0x98] sm:$0xff]   ;;  %v4788_v38 = vld [vmem:[#allocation3 + $0x38] sm:$0xf] }
 0x170   : > { %8104 = vmatmul.mubr.msk.bf16.gmra.mxu1 %vm2535_vm10, %v7506_v44  ;;  %v7510_v44 = vcombine.low %v8495_v56, %v9683_v13  ;;  %v7513_v13 = vcombine.low %v9777_v59, %v9800_v37  ;;  %v8418_v59 = vld [vmem:[#allocation4 + $0x80] sm:$0xff]   ;;  %v8419_v37 = vld [vmem:[#allocation4 + $0x88] sm:$0xff]   ;;  %4907 = vrot.lane.b32.xlu0 %v4788_v38, %s8539_s25 }
 0x171   : > { %8107 = vmatprep.mubr.msk.bf16.mxu1 %vm2535_vm10, %v7507_v24  ;;  %v10039_v40 = vld [vmem:[#allocation4 + $0xd4] sm:$0xf]  ;;  %v8049_v6 = vpop.f32.mrf.mxu0  ;;  %v8414_v24 = vld [vmem:[#allocation4 + $0x60] sm:$0xff]  }
 0x172   : > { %v10041_v28 = vld [vmem:[#allocation4 + $0xd0] sm:$0xf]  ;;  %4776 = vst.msk [vmem:[#allocation4 + $0xd4] sm:$0xf] %vm226_vm0, %v4668_v48 }
 0x173   : > { %4775 = vst.msk [vmem:[#allocation4 + $0xd0] sm:$0xf] %vm226_vm0, %v4659_v33  ;;  %8160 = vmatmul.mubr.msk.bf16.gmra.mxu0 %vm2535_vm10, %v8410_v22  ;;  %v10047_v2 = vpop.f32.mrf.mxu0  ;;  %v8415_v33 = vld [vmem:[#allocation4 + $0x68] sm:$0xff]   ;;  %v7512_v22 = vcombine.low %v9709_v5, %v9775_v41  ;;  %v7515_v5 = vcombine.low %v9854_v3, %v9866_v43  ;;  %v8420_v3 = vld [vmem:[#allocation4 + $0x90] sm:$0xff]  }
 0x174   : > { %8163 = vmatprep.mubr.msk.bf16.mxu0 %vm2535_vm10, %v8411_v52  ;;  %4919 = vrot.lane.b32.xlu0 %v4794_v35, %s8539_s25 }
 0x175   : > { %v10049_v14 = vpop.f32.mrf.mxu0 }
 0x177   : > { %v10053_v58 = vpop.f32.mrf.mxu0 }
 0x178   : > { %8108 = vmatmul.mubr.msk.bf16.gmra.mxu1 %vm2535_vm10, %v7508_v12  ;;  %v4785_v12 = vld [vmem:[#allocation3 + $0x2c] sm:$0xf]  ;;  %4931 = vrot.lane.b32.xlu0 %v4800_v61, %s8539_s25 }
 0x179   : > { %8111 = vmatprep.mubr.msk.bf16.mxu1 %vm2535_vm10, %v7509_v36  ;;  %4901 = vrot.lane.b32.xlu1 %v4785_v12, %s8539_s25 }
 0x17a   : > { %v10056_v8 = vpop.f32.mrf.mxu0 }
 0x17b   : > { %8164 = vmatmul.mubr.msk.bf16.gmra.mxu0 %vm2535_vm10, %v8412_v50  ;;  %v8422_v50 = vld [vmem:[#allocation4 + $0xa0] sm:$0xff]  }
 0x17c   : > { %8167 = vmatprep.mubr.msk.bf16.mxu0 %vm2535_vm10, %v8413_v47  ;;  %v10059_v17 = vpop.f32.mrf.mxu0  ;;  %v4797_v47 = vld [vmem:[#allocation3 + $0x5c] sm:$0xf] }
 0x17d   : > { %4913 = vrot.lane.b32.xlu1 %v4791_v62, %s8539_s25 }
 0x17e   : > { %v10064_v53 = vpop.f32.mrf.mxu0 }
 0x180   : > { %8112 = vmatmul.mubr.msk.bf16.gmra.mxu1 %vm2535_vm10, %v7510_v44  ;;  %v2665_v48 = vpop.f32.mrf.mxu0  ;;  %v8423_v44 = vld [vmem:[#allocation4 + $0xa8] sm:$0xff]  }
 0x181   : > { %8115 = vmatprep.mubr.msk.bf16.mxu1 %vm2535_vm10, %v7511_v55  ;;  %4925 = vrot.lane.b32.xlu1 %v4797_v47, %s8539_s25  ;;  %v7521_v55 = vcombine.low %v9925_v60, %v9932_v9  ;;  %v8424_v48 = vld [vmem:[#allocation4 + $0xb0] sm:$0xff]   ;;  %v7523_v60 = vcombine.low %v9947_v63, %v9955_v31  ;;  %v7576_v63 = vcombine.low %v10041_v28, %v10039_v40  ;;  %v4812_v31 = vld [vmem:[#allocation3 + $0x98] sm:$0xf]  ;;  %v4821_v40 = vld [vmem:[#allocation3 + $0xbc] sm:$0xf] }
 0x182   : > { %v4824_v28 = vld [vmem:[#allocation3 + $0xc8] sm:$0xf] }
 0x183   : > { %8168 = vmatmul.mubr.msk.bf16.gmra.mxu0 %vm2535_vm10, %v8414_v24  ;;  %v4806_v24 = vld [vmem:[#allocation3 + $0x80] sm:$0xf] }
 0x184   : > { %8171 = vmatprep.mubr.msk.bf16.mxu0 %vm2535_vm10, %v8415_v33  ;;  %4943 = vrot.lane.b32.xlu0 %v4806_v24, %s8539_s25 }
 0x185   : > { %4937 = vrot.lane.b32.xlu1 %v4803_v15, %s8539_s25 }
 0x188   : > { %8116 = vmatmul.mubr.msk.bf16.gmra.mxu1 %vm2535_vm10, %v7512_v22  ;;  %v8425_v22 = vld [vmem:[#allocation4 + $0xb8] sm:$0xff]   ;;  %4955 = vrot.lane.b32.xlu0 %v4812_v31, %s8539_s25 }
 0x189   : > { %8119 = vmatprep.mubr.msk.bf16.mxu1 %vm2535_vm10, %v7513_v13 }
 0x18b   : > { %8172 = vmatmul.mubr.msk.bf16.gmra.mxu0 %vm2535_vm10, %v8416_v51  ;;  %v8426_v51 = vld [vmem:[#allocation4 + $0xc0] sm:$0xff]  }
 0x18c   : > { %8175 = vmatprep.mubr.msk.bf16.mxu0 %vm2535_vm10, %v8417_v30  ;;  %4967 = vrot.lane.b32.xlu0 %v4818_v19, %s8539_s25  ;;  %v10206_v19 = vld [vmem:[#allocation3 + $0x20] sm:$0xf] }
 0x18d   : > { %v10077_v52 = vpop.f32.mrf.mxu0 }
 0x18f   : > { %v2678_v6 = vpop.f32.mrf.mxu0 }
 0x190   : > { %8120 = vmatmul.mubr.msk.bf16.gmra.mxu1 %vm2535_vm10, %v7514_v10  ;;  %v4809_v6 = vld [vmem:[#allocation3 + $0x8c] sm:$0xf]  ;;  %4979 = vrot.lane.b32.xlu0 %v4824_v28, %s8539_s25 }
 0x191   : > { %v8058_v41 = vpop.f32.mrf.mxu0  ;;  %8123 = vmatprep.mubr.msk.bf16.mxu1 %vm2535_vm10, %v7515_v5  ;;  %4949 = vrot.lane.b32.xlu1 %v4809_v6, %s8539_s25  ;;  %v4827_v5 = vld [vmem:[#allocation3 + $0xd4] sm:$0xf] }
 0x192   : > { %v4777_v41 = vld [vmem:[#allocation3 + $0xc] sm:$0xf] }
 0x193   : > { %8176 = vmatmul.mubr.msk.bf16.gmra.mxu0 %vm2535_vm10, %v8418_v59  ;;  %v10096_v43 = vpop.f32.mrf.mxu0  ;;  %v5151_v59 = vld [vmem:[#allocation3 + $0xd4] sm:$0xf] }
 0x194   : > { %8179 = vmatprep.mubr.msk.bf16.mxu0 %vm2535_vm10, %v8419_v37  ;;  %v10165_v37 = vld [vmem:[#allocation3 + $0xd8] sm:$0xf]  ;;  %4885 = vrot.lane.b32.xlu0 %v4777_v41, %s8539_s25  ;;  %v5656_v42 = vshll.u32 %v5151_v59, 16  ;;  %v5660_v46 = vshrl.u32 %v5151_v59, 16 }
 0x195   : > { %12248 = vst [vmem:[#allocation8_spill] sm:$0xff] %v10165_v37  ;;  %v5666_v39 = vshll.u32 %v10165_v37, 16 }
 0x196   : > { %v10169_v12 = vrot.slane %v5656_v42, 5 }
 0x198   : > { %8124 = vmatmul.mubr.msk.bf16.gmra.mxu1 %vm2535_vm10, %v7516_v26  ;;  %12249 = vst [vmem:[#allocation9_spill] sm:$0xff] %v10169_v12  ;;  %v5662_v26 = vrot.slane %v5660_v46, 4 }
 0x199   : > { %8127 = vmatprep.mubr.msk.bf16.mxu1 %vm2535_vm10, %v7517_v7 }
 0x19a   : > { %v5663_v7 = vor.u32 %v5662_v26, %v10169_v12  ;;  %v4230_v26 = vshrl.u32 %v10206_v19, 16 }
 0x19b   : > { %8180 = vmatmul.mubr.msk.bf16.gmra.mxu0 %vm2535_vm10, %v8420_v3  ;;  %v10172_v3 = vrot.slane %v5666_v39, 5 }
 0x19c   : > { %8183 = vmatprep.mubr.msk.bf16.mxu0 %vm2535_vm10, %v8421_v18  ;;  %v5664_v38 = vrot.slane %v5663_v7, 4 }
 0x19d   : > { %12250 = vst [vmem:[#allocation10_spill] sm:$0xff] %v10172_v3 }
 0x19e   : > { %v5669_v62 = vsel %vm8679_vm3, %v5664_v38, %v10172_v3  ;;  %v4139_v3 = vld [vmem:[#allocation3 + $0x44] sm:$0xf] }
 0x1a0   : > { %8128 = vmatmul.mubr.msk.bf16.gmra.mxu1 %vm2535_vm10, %v7518_v54 }
 0x1a1   : > { %v8061_v36 = vpop.f32.mrf.mxu0  ;;  %8131 = vmatprep.mubr.msk.bf16.mxu1 %vm2535_vm10, %v7519_v0 }
 0x1a3   : > { %v10109_v56 = vpop.f32.mrf.mxu0  ;;  %8184 = vmatmul.mubr.msk.bf16.gmra.mxu0 %vm2535_vm10, %v8422_v50 }
 0x1a4   : > { %8187 = vmatprep.mubr.msk.bf16.mxu0 %vm2535_vm10, %v8423_v44 }
 0x1a5   : > { %v10115_v1 = vpop.f32.mrf.mxu0 }
 0x1a7   : > { %v10125_v33 = vpop.f32.mrf.mxu0 }
 0x1a8   : > { %8132 = vmatmul.mubr.msk.bf16.gmra.mxu1 %vm2535_vm10, %v7520_v29 }
 0x1a9   : > { %8135 = vmatprep.mubr.msk.bf16.mxu1 %vm2535_vm10, %v7521_v55 }
 0x1ab   : > { %8188 = vmatmul.mubr.msk.bf16.gmra.mxu0 %vm2535_vm10, %v8424_v48 }
 0x1ac   : > { %8191 = vmatprep.mubr.msk.bf16.mxu0 %vm2535_vm10, %v8425_v22 }
 0x1ae   : > { %v10128_v13 = vpop.f32.mrf.mxu0 }
 0x1b0   : > { %v10131_v23 = vpop.f32.mrf.mxu0  ;;  %8136 = vmatmul.mubr.msk.bf16.gmra.mxu1 %vm2535_vm10, %v7522_v20 }
 0x1b1   : > { %8139 = vmatprep.mubr.msk.bf16.mxu1 %vm2535_vm10, %v7523_v60 }
 0x1b2   : > { %v10137_v9 = vpop.f32.mrf.mxu0 }
 0x1b3   : > { %8192 = vmatmul.mubr.msk.bf16.gmra.mxu0 %vm2535_vm10, %v8426_v51  ;;  %v5106_v51 = vld [vmem:[#allocation3 + $0x20] sm:$0xf] }
 0x1b4   : > { %v2713_v30 = vpop.f32.mrf.mxu0  ;;  %8195 = vmatprep.mubr.msk.bf16.mxu0 %vm2535_vm10, %v10030_v45  ;;  %v4815_v45 = vld [vmem:[#allocation3 + $0xa4] sm:$0xf] }
 0x1b5   : > { %4961 = vrot.lane.b32.xlu1 %v4815_v45, %s8539_s25  ;;  %v5109_v30 = vld [vmem:[#allocation3 + $0x2c] sm:$0xf] }
 0x1b6   : > { %v5236_v31 = vshll.u32 %v5109_v30, 16  ;;  %v5240_v45 = vshrl.u32 %v5109_v30, 16 }
 0x1b8   : > { %8140 = vmatmul.mubr.msk.bf16.gmra.mxu1 %vm2535_vm10, %v7524_v34  ;;  %v5206_v34 = vshll.u32 %v5106_v51, 16  ;;  %v10214_v46 = vrot.slane %v5236_v31, 5  ;;  %v5242_v39 = vrot.slane %v5240_v45, 4 }
 0x1b9   : > { %8143 = vmatprep.mubr.msk.bf16.mxu1 %vm2535_vm10, %v7525_v49  ;;  %4973 = vrot.lane.b32.xlu1 %v4821_v40, %s8539_s25  ;;  %v5115_v40 = vld [vmem:[#allocation3 + $0x44] sm:$0xf] }
 0x1ba   : > { %v10210_v28 = vrot.slane %v5206_v34, 5  ;;  %v5296_v38 = vshll.u32 %v5115_v40, 16  ;;  %v5243_v30 = vor.u32 %v5242_v39, %v10214_v46  ;;  %v10221_v34 = vrot.slane %v4230_v26, 7 }
 0x1bb   : > { %8196 = vmatmul.mubr.msk.bf16.gmra.mxu0 %vm2535_vm10, %v7576_v63  ;;  %v5210_v63 = vshrl.u32 %v5106_v51, 16 }
 0x1bc   : > { %12264 = vst [vmem:[#allocation24_spill] sm:$0xff] %v10221_v34  ;;  %v10225_v45 = vrot.slane %v5296_v38, 5  ;;  %v4233_v38 = vshll.u32 %v10206_v19, 16 }
 0x1bd   : > { %4985 = vrot.lane.b32.xlu1 %v4827_v5, %s8539_s25  ;;  %v5300_v5 = vshrl.u32 %v5115_v40, 16  ;;  %v5212_v42 = vrot.slane %v5210_v63, 4  ;;  %v4133_v63 = vld [vmem:[#allocation3 + $0x2c] sm:$0xf] }
 0x1be   : > { %v4257_v39 = vshrl.u32 %v4133_v63, 16 }
 0x1bf   : > { %v5213_v51 = vor.u32 %v5212_v42, %v10210_v28 }
 0x1c0   : > { %8144 = vmatmul.mubr.msk.bf16.gmra.mxu1 %vm2535_vm10, %v7526_v27  ;;  %v5112_v27 = vld [vmem:[#allocation3 + $0x38] sm:$0xf]  ;;  %v10250_v19 = vrot.slane %v4257_v39, 7 }
 0x1c1   : > { %v10156_v4 = vpop.f32.mrf.mxu0  ;;  %5800 = vrot.lane.b32.xlu1 %v5669_v62, %s8540_s26  ;;  %v5266_v7 = vshll.u32 %v5112_v27, 16  ;;  %v10232_v11 = vrot.slane %v5213_v51, 4 }
 0x1c2   : > { %12269 = vst [vmem:[#allocation29_spill] sm:$0xff] %v10250_v19 }
 0x1c3   : > { %v2726_v16 = vpop.f32.mrf.mxu0  ;;  %v10223_v31 = vrot.slane %v5266_v7, 5  ;;  %v10234_v7 = vrot.slane %v5243_v30, 4 }
 0x1c5   : > { %v8070_v10 = vpop.f32.mrf.mxu0 }
 0x1c6   : > { %v5270_v10 = vshrl.u32 %v5112_v27, 16 }
 0x1c7   : > { %v10174_v18 = vpop.f32.mrf.mxu0 }
 0x1c8   : > { %v5272_v62 = vrot.slane %v5270_v10, 4 }
 0x1ca   : > { %v5273_v12 = vor.u32 %v5272_v62, %v10223_v31  ;;  %v4311_v62 = vshrl.u32 %v4139_v3, 16 }
 0x1cc   : > { %v8073_v36 = vpop.f32.mrf.mxu0  ;;  %v10246_v30 = vrot.slane %v5273_v12, 4  ;;  %v4314_v12 = vshll.u32 %v4139_v3, 16 }
 0x1cd   : > { %v4136_v36 = vld [vmem:[#allocation3 + $0x38] sm:$0xf] }
 0x1ce   : > { %v10180_v54 = vpop.f32.mrf.mxu0  ;;  %v4284_v27 = vshrl.u32 %v4136_v36, 16  ;;  %v4287_v21 = vshll.u32 %v4136_v36, 16 }
 0x1d0   : > { %v10182_v0 = vpop.f32.mrf.mxu0 }
 0x1d2   : > { %v10184_v35 = vpop.f32.mrf.mxu0 }
 0x1dc   : > { %v10186_v50 = vpop.f32.mrf.mxu0 }
 0x1dd   : > { %12251 = vst [vmem:[#allocation11_spill] sm:$0xff] %v10186_v50 }
 0x1de   : > { %v10188_v47 = vpop.f32.mrf.mxu0  ;;  %v10212_v41 = vpop.permute.xlu0 %4895 }
 0x1df   : > { %12252 = vst [vmem:[#allocation12_spill] sm:$0xff] %v10188_v47  ;;  %12262 = vst [vmem:[#allocation22_spill] sm:$0xff] %v10212_v41  ;;  %v5450_v41 = vshrl.u32 %v5130_v57, 16 }
 0x1e0   : > { %v10190_v44 = vpop.f32.mrf.mxu0 }
 0x1e1   : > { %12253 = vst [vmem:[#allocation13_spill] sm:$0xff] %v10190_v44 }
 0x1e2   : > { %v2761_v61 = vpop.f32.mrf.mxu0 }
 0x1e3   : > { %v5302_v61 = vrot.slane %v5300_v5, 4 }
 0x1e5   : > { %v5303_v42 = vor.u32 %v5302_v61, %v10225_v45 }
 0x1ec   : > { %v10192_v15 = vpop.f32.mrf.mxu0 }
 0x1ed   : > { %12254 = vst [vmem:[#allocation14_spill] sm:$0xff] %v10192_v15 }
 0x1ee   : > { %v2774_v29 = vpop.f32.mrf.mxu0 }
 0x1ef   : > { %v5118_v29 = vld [vmem:[#allocation3 + $0x50] sm:$0xf] }
 0x1f0   : > { %v8082_v55 = vpop.f32.mrf.mxu0  ;;  %v5326_v40 = vshll.u32 %v5118_v29, 16 }
 0x1f1   : > { %v5121_v55 = vld [vmem:[#allocation3 + $0x5c] sm:$0xf] }
 0x1f2   : > { %v10194_v24 = vpop.f32.mrf.mxu0  ;;  %v5356_v10 = vshll.u32 %v5121_v55, 16  ;;  %v5360_v5 = vshrl.u32 %v5121_v55, 16  ;;  %v4260_v55 = vshll.u32 %v4133_v63, 16  ;;  %v10242_v37 = vrot.slane %v5326_v40, 5  ;;  %v5124_v63 = vld [vmem:[#allocation3 + $0x68] sm:$0xf] }
 0x1f3   : > { %12255 = vst [vmem:[#allocation15_spill] sm:$0xff] %v10194_v24  ;;  %v5386_v3 = vshll.u32 %v5124_v63, 16 }
 0x1f4   : > { %12267 = vst [vmem:[#allocation27_spill] sm:$0xff] %v10242_v37  ;;  %v5362_v51 = vrot.slane %v5360_v5, 4  ;;  %v4145_v5 = vld [vmem:[#allocation3 + $0x5c] sm:$0xf] }
 0x1f5   : > { %v4368_v24 = vshll.u32 %v4145_v5, 16 }
 0x1fc   : > { %v8085_v48 = vpop.f32.mrf.mxu0 }
 0x1fd   : > { %v10217_v48 = vpop.permute.xlu0 %4907 }
 0x1fe   : > { %v10196_v22 = vpop.f32.mrf.mxu0  ;;  %12263 = vst [vmem:[#allocation23_spill] sm:$0xff] %v10217_v48  ;;  %v10248_v48 = vrot.slane %v5303_v42, 4 }
 0x1ff   : > { %12256 = vst [vmem:[#allocation16_spill] sm:$0xff] %v10196_v22 }
 0x200   : > { %v10198_v20 = vpop.f32.mrf.mxu0 }
 0x201   : > { %12257 = vst [vmem:[#allocation17_spill] sm:$0xff] %v10198_v20  ;;  %v10230_v26 = vpop.permute.xlu0 %4919 }
 0x202   : > { %v10200_v60 = vpop.f32.mrf.mxu0  ;;  %12265 = vst [vmem:[#allocation25_spill] sm:$0xff] %v10230_v26 }
 0x203   : > { %12258 = vst [vmem:[#allocation18_spill] sm:$0xff] %v10200_v60  ;;  %v5127_v60 = vld [vmem:[#allocation3 + $0x74] sm:$0xf] }
 0x204   : > { %v5416_v20 = vshll.u32 %v5127_v60, 16 }
 0x205   : > { %v10253_v36 = vpop.permute.xlu0 %4931 }
 0x206   : > { %12270 = vst [vmem:[#allocation30_spill] sm:$0xff] %v10253_v36 }
 0x20c   : > { %v10202_v6 = vpop.f32.mrf.mxu0 }
 0x20d   : > { %12259 = vst [vmem:[#allocation19_spill] sm:$0xff] %v10202_v6  ;;  %v10244_v6 = vrot.slane %v5356_v10, 5  ;;  %v10258_v10 = vrot.slane %v4311_v62, 7 }
 0x20e   : > { %v10204_v49 = vpop.f32.mrf.mxu0 }
 0x20f   : > { %12260 = vst [vmem:[#allocation20_spill] sm:$0xff] %v10204_v49  ;;  %v10240_v49 = vrot.slane %v4284_v27, 7  ;;  %12268 = vst [vmem:[#allocation28_spill] sm:$0xff] %v10244_v6  ;;  %v4142_v27 = vld [vmem:[#allocation3 + $0x50] sm:$0xf]  ;;  %v5363_v39 = vor.u32 %v5362_v51, %v10244_v6  ;;  %v5420_v51 = vshrl.u32 %v5127_v60, 16  ;;  %v10282_v60 = vpop.permute.xlu0 %4943 }
 0x210   : > { %v10208_v16 = vpop.f32.mrf.mxu0  ;;  %v4338_v36 = vshrl.u32 %v4142_v27, 16  ;;  %v4365_v6 = vshrl.u32 %v4145_v5, 16  ;;  %12278 = vst [vmem:[#allocation38_spill] sm:$0xff] %v10282_v60  ;;  %v5452_v5 = vrot.slane %v5450_v41, 4 }
 0x211   : > { %12261 = vst [vmem:[#allocation21_spill] sm:$0xff] %v10208_v16 }
 0x212   : > { %v2809_v59 = vpop.f32.mrf.mxu0  ;;  %v10284_v44 = vrot.slane %v4338_v36, 7  ;;  %v5133_v36 = vld [vmem:[#allocation3 + $0x8c] sm:$0xf] }
 0x213   : > { %v5330_v59 = vshrl.u32 %v5118_v29, 16  ;;  %v10266_v29 = vor.u32 %v4287_v21, %v10240_v49 }
 0x215   : > { %v5332_v61 = vrot.slane %v5330_v59, 4  ;;  %v10256_v59 = vor.u32 %v4233_v38, %v10221_v34  ;;  %12273 = vst [vmem:[#allocation33_spill] sm:$0xff] %v10266_v29  ;;  %v8427_v38 = vld [vmem:[%s12196_s3 + $0x14] ss:$0 sps:$4 sm:$0xff]   ;;  %v5390_v34 = vshrl.u32 %v5124_v63, 16  ;;  %v10276_v29 = vor.u32 %v4314_v12, %v10258_v10 }
 0x216   : > { %8358 = vmatprep.subr.msk.bf16.mxu1 %vm2608_vm7, %v8427_v38  ;;  %v6175_v21 = vsel %vm2608_vm7, %v8427_v38, 0  ;;  %v10280_v63 = vrot.slane %v5363_v39, 4 }
 0x217   : > { %12271 = vst [vmem:[#allocation31_spill] sm:$0xff] %v10256_v59  ;;  %v5333_v42 = vor.u32 %v5332_v61, %v10242_v37  ;;  %12275 = vst [vmem:[#allocation35_spill] sm:$0xff] %v10276_v29  ;;  %8200 = vmatpush3.bf16.msra.mxu1 %v6175_v21  ;;  %v4341_v59 = vshll.u32 %v4142_v27, 16  ;;  %v5392_v15 = vrot.slane %v5390_v34, 4  ;;  %v10288_v29 = vrot.slane %v5386_v3, 5 }
 0x218   : > { %12277 = vst [vmem:[#allocation37_spill] sm:$0xff] %v10280_v63  ;;  %v10292_v21 = vrot.slane %v4365_v6, 7  ;;  %v4125_v3 = vld [vmem:[#allocation3 + $0xc] sm:$0xf] }
 0x219   : > { %12280 = vst [vmem:[#allocation40_spill] sm:$0xff] %v10288_v29 }
 0x21a   : > { %12282 = vst [vmem:[#allocation42_spill] sm:$0xff] %v10292_v21 }
 0x21b   : > { %v10238_v16 = vpop.f32.mrf.mxu0 }
 0x21c   : > { %12266 = vst [vmem:[#allocation26_spill] sm:$0xff] %v10238_v16  ;;  %v4148_v16 = vld [vmem:[#allocation3 + $0x68] sm:$0xf] }
 0x21d   : > { %v2822_v26 = vpop.f32.mrf.mxu0  ;;  %v4392_v61 = vshrl.u32 %v4148_v16, 16  ;;  %v4395_v12 = vshll.u32 %v4148_v16, 16  ;;  %v10302_v16 = vor.u32 %v4368_v24, %v10292_v21  ;;  %v5480_v24 = vshrl.u32 %v5133_v36, 16  ;;  %v10311_v21 = vpop.permute.xlu0 %4955 }
 0x21e   : > { %v10263_v26 = vor.u32 %v4260_v55, %v10250_v19  ;;  %12288 = vst [vmem:[#allocation48_spill] sm:$0xff] %v10311_v21 }
 0x21f   : > { %v8094_v40 = vpop.f32.mrf.mxu0  ;;  %v10286_v38 = vrot.slane %v4392_v61, 7  ;;  %v10299_v61 = vor.u32 %v4341_v59, %v10284_v44  ;;  %12286 = vst [vmem:[#allocation46_spill] sm:$0xff] %v10302_v16  ;;  %v4188_v16 = vshll.u32 %v4125_v3, 16 }
 0x220   : > { %12272 = vst [vmem:[#allocation32_spill] sm:$0xff] %v10263_v26  ;;  %v4151_v40 = vld [vmem:[#allocation3 + $0x74] sm:$0xf]  ;;  %v5446_v26 = vshll.u32 %v5130_v57, 16  ;;  %v10290_v57 = vrot.slane %v5416_v20, 5 }
 0x221   : > { %v10271_v62 = vpop.f32.mrf.mxu0  ;;  %v4419_v22 = vshrl.u32 %v4151_v40, 16  ;;  %12279 = vst [vmem:[#allocation39_spill] sm:$0xff] %v10286_v38  ;;  %v4422_v34 = vshll.u32 %v4151_v40, 16  ;;  %12285 = vst [vmem:[#allocation45_spill] sm:$0xff] %v10299_v61  ;;  %v4124_v20 = vld [vmem:[#allocation3 + $0x8] sm:$0x8]  ;;  %v10306_v41 = vor.u32 %v4395_v12, %v10286_v38 }
 0x222   : > { %12274 = vst [vmem:[#allocation34_spill] sm:$0xff] %v10271_v62  ;;  %v10278_v62 = vrot.slane %v5333_v42, 4  ;;  %12281 = vst [vmem:[#allocation41_spill] sm:$0xff] %v10290_v57  ;;  %v5422_v42 = vrot.slane %v5420_v51, 4  ;;  %v10294_v27 = vrot.slane %v5446_v26, 5  ;;  %v5393_v26 = vor.u32 %v5392_v15, %v10288_v29  ;;  %v10339_v29 = vpop.permute.xlu0 %4967 }
 0x223   : > { %v8153_v55 = vpop.f32.mrf.mxu0  ;;  %v10296_v60 = vrot.slane %v4419_v22, 7  ;;  %12287 = vst [vmem:[#allocation47_spill] sm:$0xff] %v10306_v41  ;;  %v10308_v22 = vld [vmem:[#allocation3 + $0x80] sm:$0xf]  ;;  %v4180_v40 = vshrl.u32 %v4124_v20, 16  ;;  %v5476_v61 = vshll.u32 %v5133_v36, 16 }
 0x224   : > { %12276 = vst [vmem:[#allocation36_spill] sm:$0xff] %v10278_v62  ;;  %v5103_v55 = vld [vmem:[#allocation3 + $0x14] sm:$0xf]  ;;  %12283 = vst [vmem:[#allocation43_spill] sm:$0xff] %v10294_v27  ;;  %v5423_v59 = vor.u32 %v5422_v42, %v10290_v57  ;;  %v10322_v20 = vld [vmem:[%s12195_s2] ss:$0 sm:$0xff]  ;;  %v5453_v36 = vor.u32 %v5452_v5, %v10294_v27 }
 0x225   : > { %v3465_v37 = vpop.f32.mrf.mxu0  ;;  %12284 = vst [vmem:[#allocation44_spill] sm:$0xff] %v10296_v60  ;;  %v5176_v51 = vshll.u32 %v5103_v55, 16  ;;  %v5180_v6 = vshrl.u32 %v5103_v55, 16  ;;  %v10315_v15 = vor.u32 %v4422_v34, %v10296_v60  ;;  %v7652_v12 = vrot.slane %v4180_v40, 11  ;;  %12293 = vst [vmem:[#allocation53_spill] sm:$0xff] %v10339_v29 }
 0x226   : > { %v4446_v21 = vshrl.u32 %v10308_v22, 16  ;;  %v10329_v40 = vrot.slane %v5393_v26, 4  ;;  %v10334_v57 = vrot.slane %v5423_v59, 4  ;;  %v10337_v27 = vrot.slane %v5476_v61, 5 }
 0x227   : > { %v8154_v39 = vpop.f32.mrf.mxu0  ;;  %12289 = vst [vmem:[#allocation49_spill] sm:$0xff] %v10315_v15 }
 0x228   : > { %v8101_v63 = vpop.f32.mrf.mxu1  ;;  %12292 = vst [vmem:[#allocation52_spill] sm:$0xff] %v10337_v27  ;;  %v10349_v5 = vrot.slane %v4446_v21, 7 }
 0x229   : > { %v3468_v62 = vpop.f32.mrf.mxu0  ;;  %v4185_v63 = vshrl.u32 %v4125_v3, 16  ;;  %v10326_v3 = vrot.slane %v5176_v51, 5  ;;  %v5482_v51 = vrot.slane %v5480_v24, 4 }
 0x22a   : > { %v2985_v47 = vpop.f32.mrf.mxu1  ;;  %12295 = vst [vmem:[#allocation55_spill] sm:$0xff] %v10349_v5 }
 0x22b   : > { %v2986_v55 = vadd.f32 %v2985_v47, %v10047_v2  ;;  %v8157_v50 = vpop.f32.mrf.mxu0  ;;  %v10317_v38 = vrot.slane %v4185_v63, 7  ;;  %12291 = vst [vmem:[#allocation51_spill] sm:$0xff] %v10326_v3  ;;  %v5182_v2 = vrot.slane %v5180_v6, 4  ;;  %v10331_v63 = vld [vmem:[#allocation3 + $0x8c] sm:$0xf] }
 0x22c   : > { %v8102_v42 = vpop.f32.mrf.mxu1  ;;  %v4473_v61 = vshrl.u32 %v10331_v63, 16 }
 0x22d   : > { %12290 = vst [vmem:[#allocation50_spill] sm:$0xff] %v10317_v38  ;;  %v3656_v47 = vadd.f32 %v3465_v37, %v2986_v55  ;;  %v2997_v34 = vadd.f32 %v8102_v42, %v10049_v14  ;;  %v3481_v60 = vpop.f32.mrf.mxu0  ;;  %v4190_v15 = vor.u32 %v4188_v16, %v10317_v38  ;;  %v10343_v55 = vld [vmem:[#allocation3 + $0x98] sm:$0xf]  ;;  %v10347_v42 = vrot.slane %v5453_v36, 4  ;;  %v10356_v38 = vld [vmem:[#allocation3 + $0xa4] sm:$0xf] }
 0x22e   : > { %v2988_v41 = vpop.f32.mrf.mxu1  ;;  %v5183_v24 = vor.u32 %v5182_v2, %v10326_v3  ;;  %v4500_v36 = vshrl.u32 %v10343_v55, 16  ;;  %v4527_v21 = vshrl.u32 %v10356_v38, 16 }
 0x22f   : > { %v3711_v37 = vadd.f32 %v10322_v20, %v3656_v47  ;;  %v3659_v14 = vadd.f32 %v8154_v39, %v2997_v34  ;;  %v2989_v6 = vadd.f32 %v2988_v41, %v10053_v58  ;;  %v8158_v26 = vpop.f32.mrf.mxu0  ;;  %v4191_v16 = vsel %vm8821_vm6, %v7652_v12, %v4190_v15  ;;  %12294 = vst [vmem:[#allocation54_spill] sm:$0xff] %v10347_v42  ;;  %v10362_v42 = vpop.permute.xlu0 %4979 }
 0x230   : > { %v8105_v59 = vpop.f32.mrf.mxu1  ;;  %4723 = vst.msk [vmem:[#allocation4] sm:$0xf] %vm226_vm0, %v4191_v16  ;;  %v5483_v12 = vor.u32 %v5482_v51, %v10337_v27  ;;  %12296 = vst [vmem:[#allocation56_spill] sm:$0xff] %v10362_v42  ;;  %v10368_v51 = vrot.slane %v4473_v61, 7  ;;  %v10371_v3 = vrot.slane %v5183_v24, 4  ;;  %v10380_v61 = vrot.slane %v4500_v36, 7 }
 0x231   : > { %v3759_v39 = vmax.f32 %v3711_v37, 0.0  ;;  %v3714_v58 = vadd.f32 %v10322_v20, %v3659_v14  ;;  %v3657_v41 = vadd.f32 %v3468_v62, %v2989_v6  ;;  %v3010_v47 = vadd.f32 %v8105_v59, %v10056_v8  ;;  %v3484_v34 = vpop.f32.mrf.mxu0  ;;  %v10365_v6 = vld [vmem:[#allocation3 + $0xb0] sm:$0xf] }
 0x232   : > { %v3001_v15 = vpop.f32.mrf.mxu1  ;;  %12297 = vst [vmem:[#allocation57_spill] sm:$0xff] %v10368_v51  ;;  %12298 = vst [vmem:[#allocation58_spill] sm:$0xff] %v10371_v3  ;;  %v4554_v24 = vshrl.u32 %v10365_v6, 16  ;;  %v4557_v36 = vshll.u32 %v10365_v6, 16 }
 0x233   : > { %v7855_v2 = vpack.c.bf16 %v3759_v39, %v3759_v39  ;;  %v3762_v37 = vmax.f32 %v3714_v58, 0.0  ;;  %v3712_v62 = vadd.f32 %v10322_v20, %v3657_v41  ;;  %v3662_v14 = vadd.f32 %v8157_v50, %v3010_v47  ;;  %v8161_v8 = vpop.f32.mrf.mxu0  ;;  %v10376_v47 = vld [vmem:[#allocation3 + $0xbc] sm:$0xf]  ;;  %12300 = vst [vmem:[#allocation60_spill] sm:$0xff] %v10380_v61  ;;  %v4886_v3 = vpop.permute.xlu0 %4885 }
 0x234   : > { %v3002_v59 = vadd.f32 %v3001_v15, %v10059_v17  ;;  %v8106_v34 = vpop.f32.mrf.mxu1  ;;  %v10378_v15 = vrot.slane %v5483_v12, 4  ;;  %5047 = vst.msk [vmem:[#allocation4] sm:$0xf] %vm1475_vm8, %v4886_v3 }
 0x235   : > { %4076 = vst.msk [vmem:[#allocation3 + $0x18] sm:$0xf] %vm226_vm0, %v7855_v2  ;;  %v7857_v16 = vpack.c.bf16 %v3762_v37, %v3762_v37  ;;  %v3760_v39 = vmax.f32 %v3712_v62, 0.0  ;;  %v3717_v58 = vadd.f32 %v10322_v20, %v3662_v14  ;;  %v3013_v50 = vadd.f32 %v8106_v34, %v10064_v53  ;;  %v3497_v41 = vpop.f32.mrf.mxu0  ;;  %v10385_v34 = vld [vmem:[#allocation3 + $0xc8] sm:$0xf] }
 0x236   : > { %v3660_v27 = vadd.f32 %v3481_v60, %v3002_v59  ;;  %v3004_v17 = vpop.f32.mrf.mxu1  ;;  %12299 = vst [vmem:[#allocation59_spill] sm:$0xff] %v10378_v15  ;;  %v4530_v53 = vshll.u32 %v10356_v38, 16  ;;  %v10387_v41 = vld [vmem:[#allocation3 + $0x98] sm:$0xf]  ;;  %v4581_v59 = vshrl.u32 %v10376_v47, 16  ;;  %v4608_v6 = vshrl.u32 %v10385_v34, 16 }
 0x237   : > { %4079 = vst.msk [vmem:[#allocation3 + $0x24] sm:$0xf] %vm226_vm0, %v7857_v16  ;;  %v7856_v2 = vpack.c.bf16 %v3760_v39, %v3760_v39  ;;  %v3765_v37 = vmax.f32 %v3717_v58, 0.0  ;;  %v3663_v62 = vadd.f32 %v8158_v26, %v3013_v50  ;;  %v8162_v14 = vpop.f32.mrf.mxu0  ;;  %v10397_v50 = vrot.slane %v4527_v21, 7 }
 0x238   : > { %v3715_v60 = vadd.f32 %v10322_v20, %v3660_v27  ;;  %v8109_v12 = vpop.f32.mrf.mxu1  ;;  %v10399_v27 = vrot.slane %v4554_v24, 7  ;;  %v5506_v14 = vshll.u32 %v10387_v41, 16  ;;  %v12303_v24 = vshll.u32 %v10308_v22, 16 }
 0x239   : > { %4077 = vst.msk [vmem:[#allocation3 + $0x1c] sm:$0xf] %vm226_vm0, %v7856_v2  ;;  %v7859_v26 = vpack.c.bf16 %v3765_v37, %v3765_v37  ;;  %v3718_v38 = vadd.f32 %v10322_v20, %v3663_v62  ;;  %v3026_v39 = vadd.f32 %v8109_v12, %v10077_v52  ;;  %v3500_v58 = vpop.f32.mrf.mxu0  ;;  %12301 = vst [vmem:[#allocation61_spill] sm:$0xff] %v10397_v50  ;;  %v4584_v62 = vshll.u32 %v10376_v47, 16 }
 0x23a   : > { %v3763_v3 = vmax.f32 %v3715_v60, 0.0  ;;  %v3017_v17 = vpop.f32.mrf.mxu1  ;;  %12302 = vst [vmem:[#allocation62_spill] sm:$0xff] %v10399_v27  ;;  %v10411_v42 = vrot.slane %v4581_v59, 7  ;;  %v12305_v22 = vshll.u32 %v10331_v63, 16 }
 0x23b   : > { %4082 = vst.msk [vmem:[#allocation3 + $0x30] sm:$0xf] %vm226_vm0, %v7859_v26  ;;  %v3766_v16 = vmax.f32 %v3718_v38, 0.0  ;;  %v3666_v2 = vadd.f32 %v8161_v8, %v3026_v39  ;;  %v8165_v37 = vpop.f32.mrf.mxu0  ;;  %v10409_v17 = vor.u32 %v12303_v24, %v10349_v5 }
 0x23c   : > { %v7858_v12 = vpack.c.bf16 %v3763_v3, %v3763_v3  ;;  %v8110_v21 = vpop.f32.mrf.mxu1  ;;  %v4780_v19 = vld [vmem:[#allocation3 + $0x18] sm:$0xf]  ;;  %12304 = vst [vmem:[#allocation63_spill] sm:$0xff] %v10411_v42  ;;  %v10420_v59 = vor.u32 %v12305_v22, %v10368_v51 }
 0x23d   : > { %v5104_v60 = vld [vmem:[#allocation3 + $0x18] sm:$0xf]  ;;  %v7860_v38 = vpack.c.bf16 %v3766_v16, %v3766_v16  ;;  %v3721_v8 = vadd.f32 %v10322_v20, %v3666_v2  ;;  %4891 = vrot.lane.b32.xlu0 %v4780_v19, %s8539_s25  ;;  %v3513_v47 = vpop.f32.mrf.mxu0  ;;  %v12306_v16 = vshll.u32 %v10343_v55, 16  ;;  %v10427_v2 = vrot.slane %v4608_v6, 7 }
 0x23e   : > { %v5186_v39 = vshll.u32 %v5104_v60, 16  ;;  %v5190_v3 = vshrl.u32 %v5104_v60, 16  ;;  %4080 = vst.msk [vmem:[#allocation3 + $0x28] sm:$0xf] %vm226_vm0, %v7858_v12  ;;  %v3020_v37 = vpop.f32.mrf.mxu1  ;;  %v4783_v21 = vld [vmem:[#allocation3 + $0x24] sm:$0xf]  ;;  %v10437_v6 = vor.u32 %v4530_v53, %v10397_v50  ;;  %v10448_v50 = vor.u32 %v4584_v62, %v10411_v42 }
 0x23f   : > { %v5107_v52 = vld [vmem:[#allocation3 + $0x24] sm:$0xf]  ;;  %v10425_v24 = vor.u32 %v12306_v16, %v10380_v61  ;;  %12307 = vst [vmem:[#allocation64_spill] sm:$0xff] %v10427_v2  ;;  %v10429_v19 = vrot.slane %v5506_v14, 5  ;;  %4083 = vst.msk [vmem:[#allocation3 + $0x34] sm:$0xf] %vm226_vm0, %v7860_v38  ;;  %v3021_v60 = vadd.f32 %v3020_v37, %v10096_v43  ;;  %4897 = vrot.lane.b32.xlu1 %v4783_v21, %s8539_s25  ;;  %v8166_v26 = vpop.f32.mrf.mxu0 }
 0x240   : > { %v3769_v12 = vmax.f32 %v3721_v8, 0.0  ;;  %v5216_v63 = vshll.u32 %v5107_v52, 16  ;;  %v5220_v22 = vshrl.u32 %v5107_v52, 16  ;;  %v8113_v51 = vpop.f32.mrf.mxu1  ;;  %v5105_v5 = vld [vmem:[#allocation3 + $0x1c] sm:$0xf]  ;;  %v10434_v15 = vrot.slane %v5186_v39, 5 }
 0x241   : > { %v5192_v55 = vrot.slane %v5190_v3, 4  ;;  %v10440_v14 = vor.u32 %v4557_v36, %v10399_v27  ;;  %v10442_v38 = vld [vmem:[#allocation3 + $0xa4] sm:$0xf]  ;;  %v3665_v43 = vadd.f32 %v3500_v58, %v3021_v60  ;;  %v3516_v37 = vpop.f32.mrf.mxu0  ;;  %v4781_v21 = vld [vmem:[#allocation3 + $0x1c] sm:$0xf]  ;;  %v5196_v61 = vshll.u32 %v5105_v5, 16 }
 0x242   : > { %12308 = vst [vmem:[#allocation65_spill] sm:$0xff] %v10434_v15  ;;  %v7862_v8 = vpack.c.bf16 %v3769_v12, %v3769_v12  ;;  %v5218_v16 = vrot.slane %v5216_v63, 5  ;;  %v3033_v52 = vpop.f32.mrf.mxu1  ;;  %v4786_v51 = vld [vmem:[#allocation3 + $0x30] sm:$0xf]  ;;  %v5200_v3 = vshrl.u32 %v5105_v5, 16  ;;  %v5222_v53 = vrot.slane %v5220_v22, 4 }
 0x243   : > { %12309 = vst [vmem:[#allocation66_spill] sm:$0xff] %v10440_v14  ;;  %v10444_v29 = vld [vmem:[#allocation3 + $0x30] sm:$0xf]  ;;  %v5193_v39 = vor.u32 %v5192_v55, %v10434_v15  ;;  %12310 = vst [vmem:[#allocation67_spill] sm:$0xff] %v10448_v50  ;;  %v3720_v36 = vadd.f32 %v10322_v20, %v3665_v43  ;;  %v3034_v58 = vadd.f32 %v3033_v52, %v10109_v56  ;;  %4893 = vrot.lane.b32.xlu1 %v4781_v21, %s8539_s25  ;;  %v8169_v12 = vpop.f32.mrf.mxu0 }
 0x244   : > { %4086 = vst.msk [vmem:[#allocation3 + $0x40] sm:$0xf] %vm226_vm0, %v7862_v8  ;;  %4903 = vrot.lane.b32.xlu0 %v4786_v51, %s8539_s25  ;;  %v5246_v60 = vshll.u32 %v10444_v29, 16  ;;  %v8114_v5 = vpop.f32.mrf.mxu1  ;;  %v5219_v62 = vsel %vm8679_vm3, %v10232_v11, %v5218_v16  ;;  %v10462_v55 = vrot.slane %v5196_v61, 5  ;;  %v5202_v8 = vrot.slane %v5200_v3, 4 }
 0x245   : > { %v10460_v22 = vrot.slane %v5193_v39, 4  ;;  %v3768_v56 = vmax.f32 %v3720_v36, 0.0  ;;  %v3668_v43 = vadd.f32 %v3513_v47, %v3034_v58  ;;  %v3045_v21 = vadd.f32 %v8114_v5, %v10115_v1  ;;  %v3529_v52 = vpop.f32.mrf.mxu0  ;;  %v5108_v15 = vld [vmem:[#allocation3 + $0x28] sm:$0xf] }
 0x246   : > { %v10465_v51 = vrot.slane %v5246_v60, 5  ;;  %v3036_v42 = vpop.f32.mrf.mxu1  ;;  %v4787_v63 = vld [vmem:[#allocation3 + $0x34] sm:$0xf]  ;;  %v5250_v27 = vshrl.u32 %v10444_v29, 16  ;;  %v5203_v50 = vor.u32 %v5202_v8, %v10462_v55  ;;  %v5223_v11 = vor.u32 %v5222_v53, %v5218_v16  ;;  %v4784_v8 = vld [vmem:[#allocation3 + $0x28] sm:$0xf] }
 0x247   : > { %v5226_v39 = vshll.u32 %v5108_v15, 16  ;;  %v7861_v14 = vpack.c.bf16 %v3768_v56, %v3768_v56  ;;  %v3723_v61 = vadd.f32 %v10322_v20, %v3668_v43  ;;  %v3671_v3 = vadd.f32 %v8166_v26, %v3045_v21  ;;  %v8170_v1 = vpop.f32.mrf.mxu0  ;;  %v5111_v36 = vld [vmem:[#allocation3 + $0x34] sm:$0xf]  ;;  %4905 = vrot.lane.b32.xlu1 %v4787_v63, %s8539_s25 }
 0x248   : > { %v3037_v47 = vadd.f32 %v3036_v42, %v10125_v33  ;;  %5710 = vrot.lane.b32.xlu0 %v5219_v62, %s8540_s26  ;;  %v8117_v58 = vpop.f32.mrf.mxu1  ;;  %v5249_v29 = vsel %vm8679_vm3, %v10234_v7, %v10465_v51  ;;  %v5199_v16 = vsel %vm8679_vm3, %v10460_v22, %v10462_v55  ;;  %v5204_v26 = vrot.slane %v5203_v50, 4 }
 0x249   : > { %v10481_v53 = vrot.slane %v5223_v11, 4  ;;  %4085 = vst.msk [vmem:[#allocation3 + $0x3c] sm:$0xf] %vm226_vm0, %v7861_v14  ;;  %v3771_v33 = vmax.f32 %v3723_v61, 0.0  ;;  %v3726_v42 = vadd.f32 %v10322_v20, %v3671_v3  ;;  %v3058_v63 = vadd.f32 %v8117_v58, %v10128_v13  ;;  %v3532_v5 = vpop.f32.mrf.mxu0 }
 0x24a   : > { %v3669_v60 = vadd.f32 %v3516_v37, %v3037_v47  ;;  %v3049_v62 = vpop.f32.mrf.mxu1  ;;  %v5209_v7 = vsel %vm8679_vm3, %v5204_v26, %v10210_v28  ;;  %v10489_v56 = vrot.slane %v5226_v39, 5  ;;  %v5230_v50 = vshrl.u32 %v5108_v15, 16  ;;  %v8428_v15 = vld [vmem:[%s12196_s3 + $0xc] sm:$0xff]  }
 0x24b   : > { %v5256_v22 = vshll.u32 %v5111_v36, 16  ;;  %v7863_v55 = vpack.c.bf16 %v3771_v33, %v3771_v33  ;;  %v3774_v43 = vmax.f32 %v3726_v42, 0.0  ;;  %v3674_v21 = vadd.f32 %v8169_v12, %v3058_v63  ;;  %v8173_v37 = vpop.f32.mrf.mxu0  ;;  %5716 = vrot.lane.b32.xlu1 %v5249_v29, %s8540_s26  ;;  %v5114_v3 = vld [vmem:[#allocation3 + $0x40] sm:$0xf]  ;;  %8201 = vmatprep.subr.bf16.mxu1 %v8428_v15 }
 0x24c   : > { %v3724_v14 = vadd.f32 %v10322_v20, %v3669_v60  ;;  %4899 = vrot.lane.b32.xlu0 %v4784_v8, %s8539_s25  ;;  %v3050_v13 = vadd.f32 %v3049_v62, %v10131_v23  ;;  %v8118_v11 = vpop.f32.mrf.mxu1  ;;  %v5260_v28 = vshrl.u32 %v5111_v36, 16  ;;  %v5252_v39 = vrot.slane %v5250_v27, 4  ;;  %8202 = vmatpush3.bf16.msra.mxu1 %v8428_v15 }
 0x24d   : > { %v10495_v61 = vrot.slane %v5256_v22, 5  ;;  %4088 = vst.msk [vmem:[#allocation3 + $0x48] sm:$0xf] %vm226_vm0, %v7863_v55  ;;  %v7865_v12 = vpack.c.bf16 %v3774_v43, %v3774_v43  ;;  %v3729_v58 = vadd.f32 %v10322_v20, %v3674_v21  ;;  %v3061_v23 = vadd.f32 %v8118_v11, %v10137_v9  ;;  %v3545_v26 = vpop.f32.mrf.mxu0 }
 0x24e   : > { %v3772_v47 = vmax.f32 %v3724_v14, 0.0  ;;  %v3672_v29 = vadd.f32 %v3529_v52, %v3050_v13  ;;  %v3052_v33 = vpop.f32.mrf.mxu1  ;;  %v5262_v42 = vrot.slane %v5260_v28, 4  ;;  %v5253_v36 = vor.u32 %v5252_v39, %v10465_v51  ;;  %v4790_v28 = vld [vmem:[#allocation3 + $0x40] sm:$0xf] }
 0x24f   : > { %v5232_v27 = vrot.slane %v5230_v50, 4  ;;  %4091 = vst.msk [vmem:[#allocation3 + $0x54] sm:$0xf] %vm226_vm0, %v7865_v12  ;;  %v3777_v63 = vmax.f32 %v3729_v58, 0.0  ;;  %v3675_v5 = vadd.f32 %v8170_v1, %v3061_v23  ;;  %v8174_v62 = vpop.f32.mrf.mxu0  ;;  %v5286_v8 = vshll.u32 %v5114_v3, 16  ;;  %5708 = vrot.lane.b32.xlu1 %v5209_v7, %s8540_s26 }
 0x250   : > { %v7864_v60 = vpack.c.bf16 %v3772_v47, %v3772_v47  ;;  %5706 = vrot.lane.b32.xlu0 %v5199_v16, %s8540_s26  ;;  %v3727_v9 = vadd.f32 %v10322_v20, %v3672_v29  ;;  %v8121_v52 = vpop.f32.mrf.mxu1  ;;  %v5229_v51 = vsel %vm8679_vm3, %v10481_v53, %v10489_v56  ;;  %v5263_v50 = vor.u32 %v5262_v42, %v10495_v61  ;;  %v5113_v22 = vld [vmem:[#allocation3 + $0x3c] sm:$0xf] }
 0x251   : > { %v12311_v1 = vshrl.u32 %v10387_v41, 16  ;;  %v7867_v16 = vpack.c.bf16 %v3777_v63, %v3777_v63  ;;  %v3730_v43 = vadd.f32 %v10322_v20, %v3675_v5  ;;  %v3074_v14 = vadd.f32 %v8121_v52, %v10156_v4  ;;  %v3548_v7 = vpop.f32.mrf.mxu0 }
 0x252   : > { %4089 = vst.msk [vmem:[#allocation3 + $0x4c] sm:$0xf] %vm226_vm0, %v7864_v60  ;;  %v5254_v21 = vrot.slane %v5253_v36, 4  ;;  %v3775_v13 = vmax.f32 %v3727_v9, 0.0  ;;  %v3065_v11 = vpop.f32.mrf.mxu1  ;;  %v5264_v39 = vrot.slane %v5263_v50, 4  ;;  %v5233_v53 = vor.u32 %v5232_v27, %v10489_v56 }
 0x253   : > { %v5512_v55 = vrot.slane %v12311_v1, 4  ;;  %v10519_v15 = vrot.slane %v5286_v8, 5  ;;  %4094 = vst.msk [vmem:[#allocation3 + $0x60] sm:$0xf] %vm226_vm0, %v7867_v16  ;;  %v3778_v41 = vmax.f32 %v3730_v43, 0.0  ;;  %v3678_v12 = vadd.f32 %v8173_v37, %v3074_v14  ;;  %v8177_v47 = vpop.f32.mrf.mxu0  ;;  %5712 = vrot.lane.b32.xlu1 %v5229_v51, %s8540_s26 }
 0x254   : > { %4911 = vrot.lane.b32.xlu0 %v4790_v28, %s8539_s25  ;;  %v5290_v58 = vshrl.u32 %v5114_v3, 16  ;;  %v5276_v23 = vshll.u32 %v5113_v22, 16  ;;  %v7866_v4 = vpack.c.bf16 %v3775_v13, %v3775_v13  ;;  %v8122_v26 = vpop.f32.mrf.mxu1  ;;  %v5280_v29 = vshrl.u32 %v5113_v22, 16  ;;  %v10530_v63 = vld [vmem:[#allocation3 + $0x48] sm:$0xf] }
 0x255   : > { %v12312_v33 = vshll.u32 %v10442_v38, 16  ;;  %v5540_v56 = vshrl.u32 %v10442_v38, 16  ;;  %v7868_v36 = vpack.c.bf16 %v3778_v41, %v3778_v41  ;;  %v3733_v27 = vadd.f32 %v10322_v20, %v3678_v12  ;;  %v3561_v37 = vpop.f32.mrf.mxu0  ;;  %v10555_v28 = vld [vmem:[#allocation3 + $0x1c] sm:$0xf] }
 0x256   : > { %v5292_v60 = vrot.slane %v5290_v58, 4  ;;  %v5513_v3 = vor.u32 %v5512_v55, %v10429_v19  ;;  %4092 = vst.msk [vmem:[#allocation3 + $0x58] sm:$0xf] %vm226_vm0, %v7866_v4  ;;  %v3068_v5 = vpop.f32.mrf.mxu1  ;;  %v5259_v62 = vsel %vm8679_vm3, %v5254_v21, %v10495_v61  ;;  %v5234_v8 = vrot.slane %v5233_v53, 4  ;;  %v10546_v55 = vld [vmem:[#allocation3 + $0x18] sm:$0xf] }
 0x257   : > { %v10526_v42 = vrot.slane %v12312_v33, 5  ;;  %v10537_v9 = vrot.slane %v5276_v23, 5  ;;  %v5282_v38 = vrot.slane %v5280_v29, 4  ;;  %4095 = vst.msk [vmem:[#allocation3 + $0x64] sm:$0xf] %vm226_vm0, %v7868_v36  ;;  %v3781_v52 = vmax.f32 %v3733_v27, 0.0  ;;  %v8178_v22 = vpop.f32.mrf.mxu0 }
 0x258   : > { %v3069_v51 = vadd.f32 %v3068_v5, %v10174_v18  ;;  %v5269_v50 = vsel %vm8679_vm3, %v5264_v39, %v10223_v31  ;;  %5718 = vrot.lane.b32.xlu0 %v5259_v62, %s8540_s26  ;;  %v5293_v1 = vor.u32 %v5292_v60, %v10519_v15  ;;  %v8125_v61 = vpop.f32.mrf.mxu1  ;;  %v5306_v16 = vshll.u32 %v10530_v63, 16  ;;  %v10553_v11 = vld [vmem:[#allocation3 + $0x54] sm:$0xf]  ;;  %v4789_v26 = vld [vmem:[#allocation3 + $0x3c] sm:$0xf] }
 0x259   : > { %5720 = vrot.lane.b32.xlu1 %v5269_v50, %s8540_s26  ;;  %v7870_v21 = vpack.c.bf16 %v3781_v52, %v3781_v52  ;;  %v3564_v13 = vpop.f32.mrf.mxu0  ;;  %v10557_v39 = vrot.slane %v5513_v3, 4  ;;  %v10559_v53 = vrot.slane %v5540_v56, 4  ;;  %v5239_v12 = vsel %vm8679_vm3, %v5234_v8, %v10214_v46  ;;  %v5117_v56 = vld [vmem:[#allocation3 + $0x4c] sm:$0xf] }
 0x25a   : > { %v3677_v31 = vadd.f32 %v3548_v7, %v3069_v51  ;;  %v3081_v41 = vpop.f32.mrf.mxu1  ;;  %v5294_v47 = vrot.slane %v5293_v1, 4  ;;  %v5283_v58 = vor.u32 %v5282_v38, %v10537_v9  ;;  %v5310_v33 = vshrl.u32 %v10530_v63, 16  ;;  %v12325_v46 = vld [vmem:[#allocation17_spill] sm:$0xff] }
 0x25b   : > { %4098 = vst.msk [vmem:[#allocation3 + $0x70] sm:$0xf] %vm226_vm0, %v7870_v21  ;;  %v3082_v4 = vadd.f32 %v3081_v41, %v10180_v54  ;;  %v8181_v29 = vpop.f32.mrf.mxu0  ;;  %v5279_v27 = vsel %vm8679_vm3, %v10246_v30, %v10537_v9  ;;  %v10577_v60 = vrot.slane %v5306_v16, 5  ;;  %v5336_v54 = vshll.u32 %v10553_v11, 16  ;;  %v12316_v30 = vld [vmem:[#allocation14_spill] sm:$0xff] }
 0x25c   : > { %v3732_v7 = vadd.f32 %v10322_v20, %v3677_v31  ;;  %5714 = vrot.lane.b32.xlu0 %v5239_v12, %s8540_s26  ;;  %v8126_v36 = vpop.f32.mrf.mxu1  ;;  %v4221_v3 = vshrl.u32 %v10555_v28, 16  ;;  %v5340_v38 = vshrl.u32 %v10553_v11, 16  ;;  %v5299_v51 = vsel %vm8679_vm3, %v5294_v47, %v10225_v45  ;;  %v10591_v11 = vld [vmem:[#allocation3 + $0x60] sm:$0xf] }
 0x25d   : > { %4909 = vrot.lane.b32.xlu1 %v4789_v26, %s8539_s25  ;;  %v3680_v62 = vadd.f32 %v3561_v37, %v3082_v4  ;;  %v3093_v63 = vadd.f32 %v8126_v36, %v10182_v0  ;;  %v3577_v8 = vpop.f32.mrf.mxu0  ;;  %v10586_v50 = vrot.slane %v5283_v58, 4  ;;  %v5316_v1 = vshll.u32 %v5117_v56, 16  ;;  %v4795_v0 = vld [vmem:[#allocation3 + $0x54] sm:$0xf]  ;;  %v12313_v26 = vld [vmem:[#allocation11_spill] sm:$0xff] }
 0x25e   : > { %v3780_v5 = vmax.f32 %v3732_v7, 0.0  ;;  %v3084_v52 = vpop.f32.mrf.mxu1  ;;  %v5320_v61 = vshrl.u32 %v5117_v56, 16  ;;  %v5309_v45 = vsel %vm8679_vm3, %v10248_v48, %v10577_v60  ;;  %v5312_v47 = vrot.slane %v5310_v33, 4 }
 0x25f   : > { %v3735_v21 = vadd.f32 %v10322_v20, %v3680_v62  ;;  %v3683_v31 = vadd.f32 %v8178_v22, %v3093_v63  ;;  %v3085_v37 = vadd.f32 %v3084_v52, %v10184_v35  ;;  %v8182_v41 = vpop.f32.mrf.mxu0  ;;  %v10598_v58 = vrot.slane %v5316_v1, 5  ;;  %v4793_v63 = vld [vmem:[#allocation3 + $0x4c] sm:$0xf] }
 0x260   : > { %v7869_v16 = vpack.c.bf16 %v3780_v5, %v3780_v5  ;;  %5726 = vrot.lane.b32.xlu0 %v5299_v51, %s8540_s26  ;;  %v8129_v12 = vpop.f32.mrf.mxu1  ;;  %v5322_v22 = vrot.slane %v5320_v61, 4  ;;  %v4792_v5 = vld [vmem:[#allocation3 + $0x48] sm:$0xf]  ;;  %v5289_v33 = vsel %vm8679_vm3, %v10586_v50, %v10519_v15  ;;  %v10607_v52 = vrot.slane %v5336_v54, 5 }
 0x261   : > { %4921 = vrot.lane.b32.xlu1 %v4795_v0, %s8539_s25  ;;  %v3783_v35 = vmax.f32 %v3735_v21, 0.0  ;;  %v3738_v7 = vadd.f32 %v10322_v20, %v3683_v31  ;;  %v3681_v4 = vadd.f32 %v3564_v13, %v3085_v37  ;;  %v3106_v56 = vadd.f32 %v8129_v12, %v12313_v26  ;;  %v3580_v36 = vpop.f32.mrf.mxu0  ;;  %v5120_v37 = vld [vmem:[#allocation3 + $0x58] sm:$0xf]  ;;  %v5123_v0 = vld [vmem:[#allocation3 + $0x64] sm:$0xf] }
 0x262   : > { %4097 = vst.msk [vmem:[#allocation3 + $0x6c] sm:$0xf] %vm226_vm0, %v7869_v16  ;;  %v3097_v62 = vpop.f32.mrf.mxu1  ;;  %v5366_v51 = vshll.u32 %v10591_v11, 16  ;;  %v5370_v1 = vshrl.u32 %v10591_v11, 16  ;;  %v12314_v12 = vld [vmem:[#allocation12_spill] sm:$0xff]  ;;  %v5313_v54 = vor.u32 %v5312_v47, %v10577_v60  ;;  %v5323_v50 = vor.u32 %v5322_v22, %v10598_v58 }
 0x263   : > { %v7871_v61 = vpack.c.bf16 %v3783_v35, %v3783_v35  ;;  %v3786_v16 = vmax.f32 %v3738_v7, 0.0  ;;  %v3736_v13 = vadd.f32 %v10322_v20, %v3681_v4  ;;  %v3686_v21 = vadd.f32 %v8181_v29, %v3106_v56  ;;  %v8185_v31 = vpop.f32.mrf.mxu0  ;;  %v12315_v4 = vld [vmem:[#allocation13_spill] sm:$0xff] }
 0x264   : > { %4915 = vrot.lane.b32.xlu0 %v4792_v5, %s8539_s25  ;;  %v3098_v26 = vadd.f32 %v3097_v62, %v12314_v12  ;;  %v8130_v15 = vpop.f32.mrf.mxu1  ;;  %v5342_v11 = vrot.slane %v5340_v38, 4  ;;  %v5346_v62 = vshll.u32 %v5120_v37, 16  ;;  %v5350_v12 = vshrl.u32 %v5120_v37, 16 }
 0x265   : > { %4917 = vrot.lane.b32.xlu1 %v4793_v63, %s8539_s25  ;;  %4100 = vst.msk [vmem:[#allocation3 + $0x78] sm:$0xf] %vm226_vm0, %v7871_v61  ;;  %v7873_v35 = vpack.c.bf16 %v3786_v16, %v3786_v16  ;;  %v3784_v7 = vmax.f32 %v3736_v13, 0.0  ;;  %v3741_v29 = vadd.f32 %v10322_v20, %v3686_v21  ;;  %v3109_v56 = vadd.f32 %v8130_v15, %v12315_v4  ;;  %v3593_v36 = vpop.f32.mrf.mxu0 }
 0x266   : > { %v3684_v5 = vadd.f32 %v3577_v8, %v3098_v26  ;;  %v3100_v14 = vpop.f32.mrf.mxu1  ;;  %v5376_v63 = vshll.u32 %v5123_v0, 16  ;;  %v5380_v61 = vshrl.u32 %v5123_v0, 16  ;;  %v10629_v16 = vrot.slane %v5366_v51, 5  ;;  %v10637_v26 = vpop.permute.xlu1 %4901 }
 0x267   : > { %4103 = vst.msk [vmem:[#allocation3 + $0x84] sm:$0xf] %vm226_vm0, %v7873_v35  ;;  %v7872_v47 = vpack.c.bf16 %v3784_v7, %v3784_v7  ;;  %v3789_v18 = vmax.f32 %v3741_v29, 0.0  ;;  %v3687_v22 = vadd.f32 %v8182_v41, %v3109_v56  ;;  %v8186_v38 = vpop.f32.mrf.mxu0  ;;  %v10631_v13 = vrot.slane %v5313_v54, 4  ;;  %v4798_v35 = vld [vmem:[#allocation3 + $0x60] sm:$0xf] }
 0x268   : > { %5722 = vrot.lane.b32.xlu0 %v5279_v27, %s8540_s26  ;;  %v3739_v8 = vadd.f32 %v10322_v20, %v3684_v5  ;;  %v8133_v14 = vpop.f32.mrf.mxu1  ;;  %v5343_v41 = vor.u32 %v5342_v11, %v10607_v52  ;;  %v5372_v0 = vrot.slane %v5370_v1, 4  ;;  %v10639_v51 = vrot.slane %v5323_v50, 4  ;;  %v10647_v56 = vld [vmem:[#allocation3 + $0x28] sm:$0xf]  ;;  %v12317_v5 = vld [vmem:[#allocation36_spill] sm:$0xff] }
 0x269   : > { %5724 = vrot.lane.b32.xlu1 %v5289_v33, %s8540_s26  ;;  %4101 = vst.msk [vmem:[#allocation3 + $0x7c] sm:$0xf] %vm226_vm0, %v7872_v47  ;;  %v7875_v21 = vpack.c.bf16 %v3789_v18, %v3789_v18  ;;  %v3742_v37 = vadd.f32 %v10322_v20, %v3687_v22  ;;  %v3122_v9 = vadd.f32 %v8133_v14, %v12316_v30  ;;  %v3596_v27 = vpop.f32.mrf.mxu0  ;;  %v10641_v54 = vrot.slane %v5346_v62, 5  ;;  %v12318_v62 = vld [vmem:[#allocation37_spill] sm:$0xff]  ;;  %v5126_v47 = vld [vmem:[#allocation3 + $0x70] sm:$0xf] }
 0x26a   : > { %v3787_v15 = vmax.f32 %v3739_v8, 0.0  ;;  %v3113_v33 = vpop.f32.mrf.mxu1  ;;  %v5352_v7 = vrot.slane %v5350_v12, 4  ;;  %v10645_v4 = vrot.slane %v5376_v63, 5  ;;  %v5382_v1 = vrot.slane %v5380_v61, 4  ;;  %v12319_v8 = vld [vmem:[#allocation27_spill] sm:$0xff] }
 0x26b   : > { %4106 = vst.msk [vmem:[#allocation3 + $0x90] sm:$0xf] %vm226_vm0, %v7875_v21  ;;  %v3790_v11 = vmax.f32 %v3742_v37, 0.0  ;;  %v3690_v18 = vadd.f32 %v8185_v31, %v3122_v9  ;;  %v8189_v29 = vpop.f32.mrf.mxu0  ;;  %v5339_v31 = vsel %vm8679_vm3, %v12317_v5, %v10607_v52  ;;  %v5369_v12 = vsel %vm8679_vm3, %v12318_v62, %v10629_v16  ;;  %v10671_v52 = vld [vmem:[#allocation3 + $0x34] sm:$0xf]  ;;  %v12320_v30 = vld [vmem:[#allocation15_spill] sm:$0xff] }
 0x26c   : > { %4927 = vrot.lane.b32.xlu0 %v4798_v35, %s8539_s25  ;;  %v7874_v36 = vpack.c.bf16 %v3787_v15, %v3787_v15  ;;  %v8134_v50 = vpop.f32.mrf.mxu1  ;;  %v5319_v63 = vsel %vm8679_vm3, %v10631_v13, %v10598_v58  ;;  %v5373_v38 = vor.u32 %v5372_v0, %v10629_v16  ;;  %v5353_v21 = vor.u32 %v5352_v7, %v10641_v54  ;;  %v4799_v0 = vld [vmem:[#allocation3 + $0x64] sm:$0xf] }
 0x26d   : > { %5728 = vrot.lane.b32.xlu1 %v5309_v45, %s8540_s26  ;;  %v7876_v22 = vpack.c.bf16 %v3790_v11, %v3790_v11  ;;  %v3745_v48 = vadd.f32 %v10322_v20, %v3690_v18  ;;  %v3609_v60 = vpop.f32.mrf.mxu0  ;;  %v10668_v45 = vrot.slane %v5343_v41, 4  ;;  %v10681_v37 = vrot.slane %v4221_v3, 7  ;;  %v10688_v11 = vpop.permute.xlu1 %4913 }
 0x26e   : > { %4104 = vst.msk [vmem:[#allocation3 + $0x88] sm:$0xf] %vm226_vm0, %v7874_v36  ;;  %v3116_v61 = vpop.f32.mrf.mxu1  ;;  %v4248_v41 = vshrl.u32 %v10647_v56, 16  ;;  %v5383_v33 = vor.u32 %v5382_v1, %v10645_v4  ;;  %v5406_v35 = vshll.u32 %v5126_v47, 16  ;;  %v5410_v7 = vshrl.u32 %v5126_v47, 16 }
 0x26f   : > { %4107 = vst.msk [vmem:[#allocation3 + $0x94] sm:$0xf] %vm226_vm0, %v7876_v22  ;;  %v3793_v16 = vmax.f32 %v3745_v48, 0.0  ;;  %v3117_v9 = vadd.f32 %v3116_v61, %v12320_v30  ;;  %v8190_v15 = vpop.f32.mrf.mxu0  ;;  %v4228_v18 = vrot.slane %v10681_v37, 4  ;;  %v4275_v36 = vshrl.u32 %v10671_v52, 16 }
 0x270   : > { %5734 = vrot.lane.b32.xlu0 %v5339_v31, %s8540_s26  ;;  %v8137_v3 = vpop.f32.mrf.mxu1  ;;  %v10692_v29 = vrot.slane %v4248_v41, 7  ;;  %v10699_v62 = vrot.slane %v5373_v38, 4  ;;  %v10701_v22 = vld [vmem:[#allocation3 + $0x40] sm:$0xf]  ;;  %v4796_v47 = vld [vmem:[#allocation3 + $0x58] sm:$0xf] }
 0x271   : > { %4929 = vrot.lane.b32.xlu1 %v4799_v0, %s8539_s25  ;;  %v7878_v50 = vpack.c.bf16 %v3793_v16, %v3793_v16  ;;  %v3689_v5 = vadd.f32 %v3596_v27, %v3117_v9  ;;  %v3612_v31 = vpop.f32.mrf.mxu0  ;;  %v10703_v61 = vrot.slane %v5353_v21, 4  ;;  %v12321_v41 = vld [vmem:[#allocation31_spill] sm:$0xff]  ;;  %v10709_v16 = vrot.slane %v4275_v36, 7  ;;  %v12322_v38 = vld [vmem:[#allocation16_spill] sm:$0xff] }
 0x272   : > { %v3129_v48 = vpop.f32.mrf.mxu1  ;;  %v4236_v30 = vsel %vm8821_vm6, %v4228_v18, %v12321_v41  ;;  %v4255_v27 = vrot.slane %v10692_v29, 4  ;;  %v10715_v43 = vrot.slane %v5383_v33, 4  ;;  %v10717_v21 = vrot.slane %v5406_v35, 5  ;;  %v5125_v18 = vld [vmem:[#allocation3 + $0x6c] sm:$0xf] }
 0x273   : > { %4110 = vst.msk [vmem:[#allocation3 + $0xa0] sm:$0xf] %vm226_vm0, %v7878_v50  ;;  %v3744_v9 = vadd.f32 %v10322_v20, %v3689_v5  ;;  %v3130_v0 = vadd.f32 %v3129_v48, %v12322_v38  ;;  %v8193_v3 = vpop.f32.mrf.mxu0  ;;  %4728 = vst.msk [vmem:[#allocation4 + $0x14] sm:$0xf] %vm226_vm0, %v4236_v30  ;;  %v10720_v41 = vld [vmem:[#allocation3 + $0x4c] sm:$0xf] }
 0x274   : > { %4923 = vrot.lane.b32.xlu0 %v4796_v47, %s8539_s25  ;;  %v8138_v36 = vpop.f32.mrf.mxu1  ;;  %v10723_v50 = vrot.slane %v5410_v7, 4  ;;  %v12323_v5 = vld [vmem:[#allocation22_spill] sm:$0xff]  ;;  %v12324_v48 = vld [vmem:[#allocation32_spill] sm:$0xff]  ;;  %v4282_v35 = vrot.slane %v10709_v16, 4  ;;  %v4302_v47 = vshrl.u32 %v10701_v22, 16  ;;  %v10738_v7 = vpop.permute.xlu1 %4925  ;;  %v5400_v58 = vshrl.u32 %v5125_v18, 16 }
 0x275   : > { %5740 = vrot.lane.b32.xlu1 %v5369_v12, %s8540_s26  ;;  %5052 = vst.msk [vmem:[#allocation4 + $0x14] sm:$0xf] %vm1475_vm8, %v12323_v5  ;;  %v4263_v33 = vsel %vm8821_vm6, %v4255_v27, %v12324_v48  ;;  %v3792_v30 = vmax.f32 %v3744_v9, 0.0  ;;  %v3692_v38 = vadd.f32 %v3609_v60, %v3130_v0  ;;  %v3141_v23 = vadd.f32 %v8138_v36, %v12325_v46  ;;  %v3625_v1 = vpop.f32.mrf.mxu0  ;;  %v12326_v27 = vld [vmem:[#allocation33_spill] sm:$0xff] }
 0x276   : > { %4731 = vst.msk [vmem:[#allocation4 + $0x20] sm:$0xf] %vm226_vm0, %v4263_v33  ;;  %v3132_v5 = vpop.f32.mrf.mxu1  ;;  %v4290_v60 = vsel %vm8821_vm6, %v4282_v35, %v12326_v27  ;;  %v5396_v9 = vshll.u32 %v5125_v18, 16  ;;  %v10745_v46 = vrot.slane %v4302_v47, 7  ;;  %v4329_v0 = vshrl.u32 %v10720_v41, 16  ;;  %v12327_v33 = vld [vmem:[#allocation18_spill] sm:$0xff] }
 0x277   : > { %5055 = vst.msk [vmem:[#allocation4 + $0x20] sm:$0xf] %vm1475_vm8, %v10637_v26  ;;  %v7877_v36 = vpack.c.bf16 %v3792_v30, %v3792_v30  ;;  %v3747_v48 = vadd.f32 %v10322_v20, %v3692_v38  ;;  %v3695_v12 = vadd.f32 %v8190_v15, %v3141_v23  ;;  %v3133_v14 = vadd.f32 %v3132_v5, %v12327_v33  ;;  %v8194_v26 = vpop.f32.mrf.mxu0  ;;  %v12329_v15 = vld [vmem:[#allocation28_spill] sm:$0xff]  ;;  %v12330_v30 = vld [vmem:[#allocation23_spill] sm:$0xff]  ;;  %v4802_v47 = vld [vmem:[#allocation3 + $0x70] sm:$0xf] }
 0x278   : > { %5730 = vrot.lane.b32.xlu0 %v5319_v63, %s8540_s26  ;;  %4734 = vst.msk [vmem:[#allocation4 + $0x2c] sm:$0xf] %vm226_vm0, %v4290_v60  ;;  %v12328_v35 = vsel %vm8679_vm3, %v10639_v51, %v12319_v8  ;;  %v8141_v23 = vpop.f32.mrf.mxu1  ;;  %v4309_v13 = vrot.slane %v10745_v46, 4  ;;  %v10770_v63 = vrot.slane %v4329_v0, 7  ;;  %v12331_v5 = vld [vmem:[#allocation19_spill] sm:$0xff]  ;;  %v5413_v18 = vor.u32 %v10723_v50, %v10717_v21 }
 0x279   : > { %5732 = vrot.lane.b32.xlu1 %v12328_v35, %s8540_s26  ;;  %5058 = vst.msk [vmem:[#allocation4 + $0x2c] sm:$0xf] %vm1475_vm8, %v12330_v30  ;;  %v3795_v38 = vmax.f32 %v3747_v48, 0.0  ;;  %v3750_v51 = vadd.f32 %v10322_v20, %v3695_v12  ;;  %v3693_v8 = vadd.f32 %v3612_v31, %v3133_v14  ;;  %v3154_v27 = vadd.f32 %v8141_v23, %v12331_v5  ;;  %v3628_v60 = vpop.f32.mrf.mxu0  ;;  %v10775_v33 = vld [vmem:[#allocation3 + $0x58] sm:$0xf]  ;;  %v12333_v5 = vld [vmem:[#allocation20_spill] sm:$0xff] }
 0x27a   : > { %4109 = vst.msk [vmem:[#allocation3 + $0x9c] sm:$0xf] %vm226_vm0, %v7877_v36  ;;  %v3145_v35 = vpop.f32.mrf.mxu1  ;;  %v10779_v30 = vrot.slane %v5396_v9, 5  ;;  %v12332_v0 = vld [vmem:[#allocation35_spill] sm:$0xff]  ;;  %v4336_v48 = vrot.slane %v10770_v63, 4  ;;  %v4356_v60 = vshrl.u32 %v10775_v33, 16 }
 0x27b   : > { %v4317_v36 = vsel %vm8821_vm6, %v4309_v13, %v12332_v0  ;;  %v7879_v20 = vpack.c.bf16 %v3795_v38, %v3795_v38  ;;  %v3798_v14 = vmax.f32 %v3750_v51, 0.0  ;;  %v10788_v31 = vld [vmem:[%s12195_s2] ss:$0 sm:$0xff]  ;;  %v3698_v23 = vadd.f32 %v8193_v3, %v3154_v27  ;;  %v8197_v50 = vpop.f32.mrf.mxu0  ;;  %v10793_v9 = vld [vmem:[#allocation3 + $0x64] sm:$0xf]  ;;  %v10795_v13 = vpop.permute.xlu1 %4937 }
 0x27c   : > { %v3748_v12 = vadd.f32 %v10788_v31, %v3693_v8  ;;  %4935 = vrot.lane.b32.xlu0 %v4802_v47, %s8539_s25  ;;  %4737 = vst.msk [vmem:[#allocation4 + $0x38] sm:$0xf] %vm226_vm0, %v4317_v36  ;;  %v3146_v38 = vadd.f32 %v3145_v35, %v12333_v5  ;;  %v12334_v51 = vsel %vm8679_vm3, %v10668_v45, %v10641_v54  ;;  %v8142_v8 = vpop.f32.mrf.mxu1  ;;  %v5402_v3 = vrot.slane %v5400_v58, 4  ;;  %v12335_v47 = vld [vmem:[#allocation45_spill] sm:$0xff] }
 0x27d   : > { %5736 = vrot.lane.b32.xlu1 %v12334_v51, %s8540_s26  ;;  %5061 = vst.msk [vmem:[#allocation4 + $0x38] sm:$0xf] %vm1475_vm8, %v10688_v11  ;;  %v4344_v27 = vsel %vm8821_vm6, %v4336_v48, %v12335_v47  ;;  %v7881_v35 = vpack.c.bf16 %v3798_v14, %v3798_v14  ;;  %v3753_v36 = vadd.f32 %v10788_v31, %v3698_v23  ;;  %v12336_v5 = vld [vmem:[#allocation21_spill] sm:$0xff]  ;;  %v3641_v45 = vpop.f32.mrf.mxu0  ;;  %v12337_v11 = vld [vmem:[#allocation40_spill] sm:$0xff]  ;;  %v4383_v14 = vshrl.u32 %v10793_v9, 16 }
 0x27e   : > { %4112 = vst.msk [vmem:[#allocation3 + $0xa8] sm:$0xf] %vm226_vm0, %v7879_v20  ;;  %v3796_v0 = vmax.f32 %v3748_v12, 0.0  ;;  %v3157_v54 = vadd.f32 %v8142_v8, %v12336_v5  ;;  %4740 = vst.msk [vmem:[#allocation4 + $0x44] sm:$0xf] %vm226_vm0, %v4344_v27  ;;  %v3696_v58 = vadd.f32 %v3625_v1, %v3146_v38  ;;  %v3148_v51 = vpop.f32.mrf.mxu1  ;;  %v5389_v48 = vsel %vm8679_vm3, %v10715_v43, %v12337_v11  ;;  %v12338_v47 = vld [vmem:[#allocation25_spill] sm:$0xff] }
 0x27f   : > { %5064 = vst.msk [vmem:[#allocation4 + $0x44] sm:$0xf] %vm1475_vm8, %v12338_v47  ;;  %v10820_v20 = vrot.slane %v4356_v60, 7  ;;  %v10823_v12 = vld [vmem:[#allocation3 + $0x70] sm:$0xf]  ;;  %v3801_v8 = vmax.f32 %v3753_v36, 0.0  ;;  %v12339_v43 = vsel %vm8679_vm3, %v10699_v62, %v10645_v4  ;;  %v8198_v38 = vpop.f32.mrf.mxu0  ;;  %v10846_v11 = vpop.permute.xlu1 %4949 }
 0x280   : > { %4115 = vst.msk [vmem:[#allocation3 + $0xb4] sm:$0xf] %vm226_vm0, %v7881_v35  ;;  %v7880_v23 = vpack.c.bf16 %v3796_v0, %v3796_v0  ;;  %v3699_v1 = vadd.f32 %v8194_v26, %v3157_v54  ;;  %5742 = vrot.lane.b32.xlu0 %v12339_v43, %s8540_s26  ;;  %v5414_v27 = vrot.slane %v5413_v18, 4  ;;  %v10832_v60 = vld [vmem:[#allocation3 + $0x78] sm:$0xf]  ;;  %v3751_v5 = vadd.f32 %v10788_v31, %v3696_v58  ;;  %v8145_v45 = vpop.f32.mrf.mxu1  ;;  %v12340_v18 = vld [vmem:[#allocation26_spill] sm:$0xff] }
 0x281   : > { %5744 = vrot.lane.b32.xlu1 %v5389_v48, %s8540_s26  ;;  %v5403_v35 = vor.u32 %v5402_v3, %v10779_v30  ;;  %v4363_v26 = vrot.slane %v10820_v20, 4  ;;  %v10838_v0 = vrot.slane %v4383_v14, 7  ;;  %v10840_v36 = vld [vmem:[#allocation3 + $0x7c] sm:$0xf]  ;;  %v7883_v4 = vpack.c.bf16 %v3801_v8, %v3801_v8  ;;  %v4801_v51 = vld [vmem:[#allocation3 + $0x6c] sm:$0xf] }
 0x282   : > { %4113 = vst.msk [vmem:[#allocation3 + $0xac] sm:$0xf] %vm226_vm0, %v7880_v23  ;;  %v3754_v62 = vadd.f32 %v10788_v31, %v3699_v1  ;;  %v3170_v54 = vadd.f32 %v8145_v45, %v12340_v18  ;;  %v4410_v58 = vshrl.u32 %v10823_v12, 16  ;;  %v10848_v48 = vld [vmem:[#allocation3 + $0x88] sm:$0xf]  ;;  %v3799_v47 = vmax.f32 %v3751_v5, 0.0  ;;  %v3161_v14 = vpop.f32.mrf.mxu1 }
 0x283   : > { %12341 = vst [vmem:[#allocation11_spill] sm:$0xff] %v10848_v48  ;;  %v10853_v3 = vld [vmem:[%s12196_s3 + $0x8] ss:$0 sps:$4 sm:$0xff]   ;;  %v5426_v23 = vshll.u32 %v10832_v60, 16  ;;  %v12343_v8 = vld [vmem:[#allocation46_spill] sm:$0xff]  ;;  %v4390_v43 = vrot.slane %v10838_v0, 4  ;;  %v12345_v5 = vsel %vm8679_vm3, %v10703_v61, %v12329_v15 }
 0x284   : > { %12342 = vst [vmem:[#allocation12_spill] sm:$0xff] %v10853_v3  ;;  %v4371_v1 = vsel %vm8821_vm6, %v4363_v26, %v12343_v8  ;;  %v10860_v38 = vld [vmem:[#allocation3 + $0x94] sm:$0xf]  ;;  %4118 = vst.msk [vmem:[#allocation3 + $0xc0] sm:$0xf] %vm226_vm0, %v7883_v4  ;;  %v3802_v45 = vmax.f32 %v3754_v62, 0.0  ;;  %v3702_v18 = vadd.f32 %v8197_v50, %v3170_v54  ;;  %5738 = vrot.lane.b32.xlu0 %v12345_v5, %s8540_s26  ;;  %8359 = vmatprep.subr.msk.bf16.mxu0 %vm2608_vm7, %v10853_v3  ;;  %v8146_v62 = vpop.f32.mrf.mxu1  ;;  %v10913_v3 = vpop.permute.xlu1 %4961 }
 0x285   : > { %12344 = vst [vmem:[#allocation13_spill] sm:$0xff] %v10860_v38  ;;  %4743 = vst.msk [vmem:[#allocation4 + $0x50] sm:$0xf] %vm226_vm0, %v4371_v1  ;;  %v10870_v14 = vrot.slane %v4410_v58, 7  ;;  %v4437_v26 = vshrl.u32 %v10840_v36, 16  ;;  %v7882_v4 = vpack.c.bf16 %v3799_v47, %v3799_v47  ;;  %4933 = vrot.lane.b32.xlu1 %v4801_v51, %s8539_s25  ;;  %v12347_v61 = vld [vmem:[#allocation41_spill] sm:$0xff] }
 0x286   : > { %v10878_v50 = vld [vmem:[%s12196_s3 + $0x20] ss:$0 sps:$4 sm:$0xff]   ;;  %v5419_v15 = vsel %vm8679_vm3, %v5414_v27, %v12347_v61  ;;  %v10884_v54 = vrot.slane %v5403_v35, 4  ;;  %5067 = vst.msk [vmem:[#allocation4 + $0x50] sm:$0xf] %vm1475_vm8, %v10738_v7  ;;  %v12348_v58 = vld [vmem:[#allocation47_spill] sm:$0xff]  ;;  %v7884_v1 = vpack.c.bf16 %v3802_v45, %v3802_v45  ;;  %v3757_v5 = vadd.f32 %v10788_v31, %v3702_v18  ;;  %v3164_v27 = vpop.f32.mrf.mxu1  ;;  %v3644_v7 = vpop.f32.mrf.mxu0 }
 0x287   : > { %12346 = vst [vmem:[#allocation14_spill] sm:$0xff] %v10878_v50  ;;  %v4398_v8 = vsel %vm8821_vm6, %v4390_v43, %v12348_v58  ;;  %v4417_v51 = vrot.slane %v10870_v14, 4  ;;  %v10894_v47 = vrot.slane %v4437_v26, 7  ;;  %8360 = vmatprep.subr.msk.bf16.mxu1 %vm2608_vm7, %v10878_v50  ;;  %4116 = vst.msk [vmem:[#allocation3 + $0xb8] sm:$0xf] %vm226_vm0, %v7882_v4  ;;  %v10899_v35 = vrot.slane %v5426_v23, 5 }
 0x288   : > { %4746 = vst.msk [vmem:[#allocation4 + $0x5c] sm:$0xf] %vm226_vm0, %v4398_v8  ;;  %v5430_v43 = vshrl.u32 %v10832_v60, 16  ;;  %v12349_v45 = vld [vmem:[#allocation30_spill] sm:$0xff]  ;;  %v4464_v18 = vshrl.u32 %v10848_v48, 16  ;;  %v4491_v62 = vshrl.u32 %v10860_v38, 16  ;;  %5750 = vrot.lane.b32.xlu0 %v5419_v15, %s8540_s26 }
 0x289   : > { %5070 = vst.msk [vmem:[#allocation4 + $0x5c] sm:$0xf] %vm1475_vm8, %v12349_v45  ;;  %v5129_v26 = vld [vmem:[#allocation3 + $0x7c] sm:$0xf]  ;;  %v3805_v61 = vmax.f32 %v3757_v5, 0.0  ;;  %v12350_v58 = vld [vmem:[#allocation34_spill] sm:$0xff] }
 0x28a   : > { %4119 = vst.msk [vmem:[#allocation3 + $0xc4] sm:$0xf] %vm226_vm0, %v7884_v1  ;;  %v3165_v8 = vadd.f32 %v3164_v27, %v12350_v58  ;;  %v4807_v4 = vld [vmem:[#allocation3 + $0x84] sm:$0xf]  ;;  %v12351_v50 = vld [vmem:[#allocation49_spill] sm:$0xff]  ;;  %v4444_v45 = vrot.slane %v10894_v47, 4 }
 0x28b   : > { %v5131_v23 = vld [vmem:[#allocation3 + $0x84] sm:$0xf]  ;;  %v4425_v60 = vsel %vm8821_vm6, %v4417_v51, %v12351_v50  ;;  %4945 = vrot.lane.b32.xlu1 %v4807_v4, %s8539_s25  ;;  %v10917_v1 = vrot.slane %v4464_v18, 7  ;;  %v10919_v5 = vrot.slane %v4491_v62, 7  ;;  %v10921_v27 = vld [vmem:[#allocation3 + $0xa0] sm:$0xf]  ;;  %v7886_v48 = vpack.c.bf16 %v3805_v61, %v3805_v61 }
 0x28c   : > { %4749 = vst.msk [vmem:[#allocation4 + $0x68] sm:$0xf] %vm226_vm0, %v4425_v60  ;;  %v10923_v15 = vld [vmem:[#allocation3 + $0xac] sm:$0xf]  ;;  %v12352_v58 = vshll.u32 %v10385_v34, 16  ;;  %v3701_v4 = vadd.f32 %v3644_v7, %v3165_v8  ;;  %v4452_v18 = vsel %vm8821_vm6, %v4444_v45, %v10409_v17  ;;  %v5436_v62 = vshll.u32 %v5129_v26, 16 }
 0x28d   : > { %v4804_v38 = vld [vmem:[#allocation3 + $0x78] sm:$0xf]  ;;  %5073 = vst.msk [vmem:[#allocation4 + $0x68] sm:$0xf] %vm1475_vm8, %v10795_v13  ;;  %v4805_v60 = vld [vmem:[#allocation3 + $0x7c] sm:$0xf] }
 0x28e   : > { %v10928_v50 = vor.u32 %v12352_v58, %v10427_v2  ;;  %4752 = vst.msk [vmem:[#allocation4 + $0x74] sm:$0xf] %vm226_vm0, %v4452_v18  ;;  %v4471_v34 = vrot.slane %v10917_v1, 4  ;;  %v4498_v58 = vrot.slane %v10919_v5, 4  ;;  %v5432_v2 = vrot.slane %v5430_v43, 4  ;;  %4939 = vrot.lane.b32.xlu0 %v4804_v38, %s8539_s25  ;;  %v12353_v61 = vld [vmem:[#allocation38_spill] sm:$0xff] }
 0x28f   : > { %v5440_v51 = vshrl.u32 %v5129_v26, 16  ;;  %4122 = vst.msk [vmem:[#allocation3 + $0xd0] sm:$0xf] %vm226_vm0, %v7886_v48  ;;  %v3756_v7 = vadd.f32 %v10788_v31, %v3701_v4  ;;  %v5456_v13 = vshll.u32 %v5131_v23, 16  ;;  %v10945_v17 = vld [vmem:[#allocation3 + $0x90] sm:$0xf]  ;;  %4941 = vrot.lane.b32.xlu1 %v4805_v60, %s8539_s25 }
 0x290   : > { %5076 = vst.msk [vmem:[#allocation4 + $0x74] sm:$0xf] %vm1475_vm8, %v12353_v61  ;;  %v4518_v8 = vshrl.u32 %v10921_v27, 16  ;;  %v4545_v45 = vshrl.u32 %v10923_v15, 16  ;;  %v5460_v43 = vshrl.u32 %v5131_v23, 16  ;;  %v4479_v48 = vsel %vm8821_vm6, %v4471_v34, %v10420_v59  ;;  %v4974_v23 = vpop.permute.xlu1 %4973 }
 0x291   : > { %v4506_v31 = vsel %vm8821_vm6, %v4498_v58, %v10425_v24  ;;  %v10956_v38 = vrot.slane %v5436_v62, 5  ;;  %v3804_v26 = vmax.f32 %v3756_v7, 0.0  ;;  %4755 = vst.msk [vmem:[#allocation4 + $0x80] sm:$0xf] %vm226_vm0, %v4479_v48  ;;  %v5442_v4 = vrot.slane %v5440_v51, 4  ;;  %v12355_v51 = vld [vmem:[#allocation48_spill] sm:$0xff] }
 0x292   : > { %4758 = vst.msk [vmem:[#allocation4 + $0x8c] sm:$0xf] %vm226_vm0, %v4506_v31  ;;  %v10960_v18 = vrot.slane %v4518_v8, 7  ;;  %v10962_v60 = vrot.slane %v4545_v45, 7  ;;  %v10964_v61 = vld [vmem:[#allocation3 + $0xb8] sm:$0xf]  ;;  %v5399_v59 = vsel %vm8679_vm3, %v10329_v40, %v10779_v30  ;;  %v5409_v24 = vsel %vm8679_vm3, %v10884_v54, %v10717_v21 }
 0x293   : > { %12354 = vst [vmem:[#allocation36_spill] sm:$0xff] %v10964_v61  ;;  %v5486_v62 = vshll.u32 %v10945_v17, 16  ;;  %5079 = vst.msk [vmem:[#allocation4 + $0x80] sm:$0xf] %vm1475_vm8, %v10846_v11  ;;  %v5433_v34 = vor.u32 %v5432_v2, %v10899_v35  ;;  %v10980_v58 = vld [vmem:[#allocation3 + $0xc4] sm:$0xf]  ;;  %v7885_v7 = vpack.c.bf16 %v3804_v26, %v3804_v26  ;;  %5746 = vrot.lane.b32.xlu0 %v5399_v59, %s8540_s26  ;;  %5748 = vrot.lane.b32.xlu1 %v5409_v24, %s8540_s26 }
 0x294   : > { %5082 = vst.msk [vmem:[#allocation4 + $0x8c] sm:$0xf] %vm1475_vm8, %v12355_v51  ;;  %v4525_v40 = vrot.slane %v10960_v18, 4  ;;  %v4552_v30 = vrot.slane %v10962_v60, 4  ;;  %v4572_v21 = vshrl.u32 %v10964_v61, 16  ;;  %v5429_v11 = vsel %vm8679_vm3, %v10334_v57, %v10899_v35  ;;  %v12356_v59 = vld [vmem:[#allocation66_spill] sm:$0xff] }
 0x295   : > { %v5458_v54 = vrot.slane %v5456_v13, 5  ;;  %v5462_v2 = vrot.slane %v5460_v43, 4  ;;  %v4599_v8 = vshrl.u32 %v10980_v58, 16  ;;  %v5135_v45 = vld [vmem:[#allocation3 + $0x94] sm:$0xf]  ;;  %v5443_v31 = vor.u32 %v5442_v4, %v10956_v38 }
 0x296   : > { %4121 = vst.msk [vmem:[#allocation3 + $0xcc] sm:$0xf] %vm226_vm0, %v7885_v7  ;;  %v4810_v48 = vld [vmem:[#allocation3 + $0x90] sm:$0xf]  ;;  %v4533_v26 = vsel %vm8821_vm6, %v4525_v40, %v10437_v6  ;;  %v4560_v24 = vsel %vm8821_vm6, %v4552_v30, %v12356_v59  ;;  %v5132_v51 = vld [vmem:[#allocation3 + $0x88] sm:$0xf]  ;;  %v4986_v40 = vpop.permute.xlu1 %4985 }
 0x297   : > { %v11000_v57 = vrot.slane %v4572_v21, 7  ;;  %v11002_v35 = vrot.slane %v5486_v62, 5  ;;  %v5490_v13 = vshrl.u32 %v10945_v17, 16  ;;  %v11005_v43 = vrot.slane %v5433_v34, 4  ;;  %4761 = vst.msk [vmem:[#allocation4 + $0x98] sm:$0xf] %vm226_vm0, %v4533_v26  ;;  %4951 = vrot.lane.b32.xlu0 %v4810_v48, %s8539_s25  ;;  %5752 = vrot.lane.b32.xlu1 %v5429_v11, %s8540_s26 }
 0x298   : > { %4764 = vst.msk [vmem:[#allocation4 + $0xa4] sm:$0xf] %vm226_vm0, %v4560_v24  ;;  %v11009_v4 = vrot.slane %v4599_v8, 7  ;;  %v11011_v6 = vld [vmem:[#allocation3 + $0xd0] sm:$0xf]  ;;  %v12360_v7 = vld [vmem:[#allocation53_spill] sm:$0xff]  ;;  %v5463_v21 = vor.u32 %v5462_v2, %v5458_v54 }
 0x299   : > { %12357 = vst [vmem:[#allocation37_spill] sm:$0xff] %v11000_v57  ;;  %12359 = vst [vmem:[#allocation15_spill] sm:$0xff] %v11011_v6  ;;  %v4579_v17 = vrot.slane %v11000_v57, 4  ;;  %v5496_v62 = vshll.u32 %v5135_v45, 16  ;;  %v5500_v34 = vshrl.u32 %v5135_v45, 16  ;;  %v4626_v30 = vshrl.u32 %v11011_v6, 16 }
 0x29a   : > { %12358 = vst [vmem:[#allocation27_spill] sm:$0xff] %v11009_v4  ;;  %5085 = vst.msk [vmem:[#allocation4 + $0x98] sm:$0xf] %vm1475_vm8, %v10913_v3  ;;  %v5466_v8 = vshll.u32 %v5132_v51, 16  ;;  %v4606_v26 = vrot.slane %v11009_v4, 4  ;;  %v12361_v48 = vshrl.u32 %v10546_v55, 16 }
 0x29b   : > { %5088 = vst.msk [vmem:[#allocation4 + $0xa4] sm:$0xf] %vm1475_vm8, %v12360_v7  ;;  %v11026_v3 = vrot.slane %v5443_v31, 4  ;;  %v5470_v24 = vshrl.u32 %v5132_v51, 16  ;;  %v12362_v7 = vld [vmem:[#allocation67_spill] sm:$0xff]  ;;  %v11031_v57 = vrot.slane %v4626_v30, 7 }
 0x29c   : > { %v11024_v59 = vrot.slane %v12361_v48, 7  ;;  %v4587_v45 = vsel %vm8821_vm6, %v4579_v17, %v12362_v7  ;;  %v4131_v6 = vld [vmem:[#allocation3 + $0x24] sm:$0xf]  ;;  %v12364_v61 = vld [vmem:[#allocation54_spill] sm:$0xff]  ;;  %v12365_v4 = vld [vmem:[#allocation59_spill] sm:$0xff]  ;;  %v4614_v31 = vsel %vm8821_vm6, %v4606_v26, %v10928_v50  ;;  %v12366_v51 = vshll.u32 %v10546_v55, 16 }
 0x29d   : > { %12363 = vst [vmem:[#allocation31_spill] sm:$0xff] %v11031_v57  ;;  %v5459_v11 = vsel %vm8679_vm3, %v12364_v61, %v5458_v54  ;;  %v4811_v2 = vld [vmem:[#allocation3 + $0x94] sm:$0xf]  ;;  %v5489_v48 = vsel %vm8679_vm3, %v12365_v4, %v11002_v35  ;;  %4767 = vst.msk [vmem:[#allocation4 + $0xb0] sm:$0xf] %vm226_vm0, %v4587_v45  ;;  %v11050_v61 = vrot.slane %v5496_v62, 5  ;;  %v5439_v55 = vsel %vm8679_vm3, %v11005_v43, %v10956_v38 }
 0x29e   : > { %v4217_v17 = vor.u32 %v12366_v51, %v11024_v59  ;;  %5758 = vrot.lane.b32.xlu0 %v5459_v11, %s8540_s26  ;;  %5091 = vst.msk [vmem:[#allocation4 + $0xb0] sm:$0xf] %vm1475_vm8, %v4974_v23  ;;  %v5502_v54 = vrot.slane %v5500_v34, 4  ;;  %v5492_v4 = vrot.slane %v5490_v13, 4  ;;  %v4633_v30 = vrot.slane %v11031_v57, 4  ;;  %4953 = vrot.lane.b32.xlu1 %v4811_v2, %s8539_s25  ;;  %v12367_v26 = vld [vmem:[#allocation56_spill] sm:$0xff]  ;;  %v5801_v51 = vpop.permute.xlu1 %5800 }
 0x29f   : > { %4770 = vst.msk [vmem:[#allocation4 + $0xbc] sm:$0xf] %vm226_vm0, %v4614_v31  ;;  %v5138_v7 = vld [vmem:[#allocation3 + $0xa0] sm:$0xf]  ;;  %v11058_v50 = vrot.slane %v5463_v21, 4  ;;  %v12368_v23 = vld [vmem:[#allocation7_spill] sm:$0xff] }
 0x2a0   : > { %5094 = vst.msk [vmem:[#allocation4 + $0xbc] sm:$0xf] %vm1475_vm8, %v12367_v26  ;;  %v12369_v62 = vrot.slane %v12368_v23, 4  ;;  %v4239_v34 = vshrl.u32 %v4131_v6, 16  ;;  %v4134_v45 = vld [vmem:[#allocation3 + $0x30] sm:$0xf] }
 0x2a1   : > { %v12370_v11 = vld [vmem:[#allocation43_spill] sm:$0xff]  ;;  %v11070_v31 = vrot.slane %v5466_v8, 5  ;;  %v12371_v38 = vld [vmem:[#allocation5_spill] sm:$0xff]  ;;  %v11075_v21 = vrot.slane %v5470_v24, 4  ;;  %v5526_v23 = vshll.u32 %v5138_v7, 16  ;;  %v5503_v8 = vor.u32 %v5502_v54, %v11050_v61 }
 0x2a2   : > { %v4218_v13 = vsel %vm8821_vm6, %v12369_v62, %v4217_v17  ;;  %v5449_v2 = vsel %vm8679_vm3, %v11026_v3, %v12370_v11  ;;  %v4641_v43 = vsel %vm8821_vm6, %v4633_v30, %v12371_v38  ;;  %v5137_v26 = vld [vmem:[#allocation3 + $0x9c] sm:$0xf]  ;;  %v4808_v17 = vld [vmem:[#allocation3 + $0x88] sm:$0xf]  ;;  %v5530_v62 = vshrl.u32 %v5138_v7, 16  ;;  %5764 = vrot.lane.b32.xlu1 %v5489_v48, %s8540_s26 }
 0x2a3   : > { %4726 = vst.msk [vmem:[#allocation4 + $0xc] sm:$0xf] %vm226_vm0, %v4218_v13  ;;  %4773 = vst.msk [vmem:[#allocation4 + $0xc8] sm:$0xf] %vm226_vm0, %v4641_v43  ;;  %v11079_v57 = vrot.slane %v4239_v34, 7  ;;  %v4242_v3 = vshll.u32 %v4131_v6, 16  ;;  %4947 = vrot.lane.b32.xlu0 %v4808_v17, %s8539_s25  ;;  %v5493_v30 = vor.u32 %v5492_v4, %v11002_v35 }
 0x2a4   : > { %5097 = vst.msk [vmem:[#allocation4 + $0xc8] sm:$0xf] %vm1475_vm8, %v4986_v40  ;;  %v4224_v24 = vshll.u32 %v10555_v28, 16  ;;  %v4266_v13 = vshrl.u32 %v4134_v45, 16  ;;  %v4219_v34 = vrot.slane %v11024_v59, 4  ;;  %v5516_v6 = vshll.u32 %v5137_v26, 16 }
 0x2a5   : > { %5912 = vst.msk [vmem:[#allocation4 + $0xc8] sm:$0xf] %vm2294_vm9, %v5801_v51  ;;  %v4244_v7 = vor.u32 %v4242_v3, %v11079_v57  ;;  %v4278_v11 = vshll.u32 %v10671_v52, 16  ;;  %v4269_v35 = vshll.u32 %v4134_v45, 16  ;;  %v5520_v4 = vshrl.u32 %v5137_v26, 16  ;;  %v12372_v43 = vld [vmem:[#allocation24_spill] sm:$0xff] }
 0x2a6   : > { %v4226_v54 = vor.u32 %v4224_v24, %v10681_v37  ;;  %v4268_v38 = vrot.slane %v4266_v13, 7  ;;  %v11092_v40 = vrot.slane %v5526_v23, 5  ;;  %v5532_v28 = vrot.slane %v5530_v62, 4  ;;  %v5140_v26 = vld [vmem:[#allocation3 + $0xa8] sm:$0xf]  ;;  %5756 = vrot.lane.b32.xlu1 %v5449_v2, %s8540_s26 }
 0x2a7   : > { %v12373_v17 = vrot.slane %v12372_v43, 4  ;;  %v4280_v51 = vor.u32 %v4278_v11, %v10709_v16  ;;  %5754 = vrot.lane.b32.xlu0 %v5439_v55, %s8540_s26  ;;  %v5469_v52 = vsel %vm8679_vm3, %v11058_v50, %v11070_v31  ;;  %v5142_v23 = vld [vmem:[#allocation3 + $0xb0] sm:$0xf]  ;;  %v5504_v62 = vrot.slane %v5503_v8, 4  ;;  %v5145_v50 = vld [vmem:[#allocation3 + $0xbc] sm:$0xf] }
 0x2a8   : > { %v4227_v37 = vsel %vm8821_vm6, %v4219_v34, %v4226_v54  ;;  %v4271_v59 = vor.u32 %v4269_v35, %v4268_v38  ;;  %v4273_v45 = vrot.slane %v4268_v38, 4  ;;  %v5494_v16 = vrot.slane %v5493_v30, 4  ;;  %v4814_v24 = vld [vmem:[#allocation3 + $0xa0] sm:$0xf]  ;;  %v12374_v13 = vld [vmem:[#allocation29_spill] sm:$0xff] }
 0x2a9   : > { %v4245_v48 = vsel %vm8821_vm6, %v12373_v17, %v4244_v7  ;;  %v5473_v55 = vor.u32 %v11075_v21, %v11070_v31  ;;  %4727 = vst.msk [vmem:[#allocation4 + $0x10] sm:$0xf] %vm226_vm0, %v4227_v37  ;;  %v11111_v3 = vrot.slane %v5516_v6, 5  ;;  %v12375_v7 = vrot.slane %v12374_v13, 4  ;;  %v11120_v30 = vld [vmem:[#allocation3 + $0x3c] sm:$0xf] }
 0x2aa   : > { %4729 = vst.msk [vmem:[#allocation4 + $0x18] sm:$0xf] %vm226_vm0, %v4245_v48  ;;  %v5522_v11 = vrot.slane %v5520_v4, 4  ;;  %v4281_v2 = vsel %vm8821_vm6, %v4273_v45, %v4280_v51  ;;  %v4251_v8 = vshll.u32 %v10647_v56, 16  ;;  %v5533_v31 = vor.u32 %v5532_v28, %v11092_v40  ;;  %v5143_v6 = vld [vmem:[#allocation3 + $0xb4] sm:$0xf]  ;;  %5760 = vrot.lane.b32.xlu1 %v5469_v52, %s8540_s26 }
 0x2ab   : > { %v4272_v34 = vsel %vm8821_vm6, %v12375_v7, %v4271_v59  ;;  %4733 = vst.msk [vmem:[#allocation4 + $0x28] sm:$0xf] %vm226_vm0, %v4281_v2  ;;  %v5546_v21 = vshll.u32 %v5140_v26, 16  ;;  %v5566_v54 = vshll.u32 %v5142_v23, 16  ;;  %v5570_v38 = vshrl.u32 %v5142_v23, 16  ;;  %4959 = vrot.lane.b32.xlu0 %v4814_v24, %s8539_s25 }
 0x2ac   : > { %4732 = vst.msk [vmem:[#allocation4 + $0x24] sm:$0xf] %vm226_vm0, %v4272_v34  ;;  %v5141_v35 = vld [vmem:[#allocation3 + $0xac] sm:$0xf]  ;;  %v5550_v4 = vshrl.u32 %v5140_v26, 16  ;;  %v4246_v43 = vrot.slane %v11079_v57, 4  ;;  %v4253_v56 = vor.u32 %v4251_v8, %v10692_v29  ;;  %v5499_v28 = vsel %vm8679_vm3, %v5494_v16, %v11050_v61 }
 0x2ad   : > { %v5596_v17 = vshll.u32 %v5145_v50, 16  ;;  %v5474_v48 = vrot.slane %v5473_v55, 4  ;;  %v11132_v51 = vrot.slane %v5566_v54, 5  ;;  %v5572_v37 = vrot.slane %v5570_v38, 4  ;;  %v11143_v61 = vld [vmem:[#allocation3 + $0xc0] sm:$0xf] }
 0x2ae   : > { %v5509_v59 = vsel %vm8679_vm3, %v5504_v62, %v10429_v19  ;;  %v5523_v45 = vor.u32 %v5522_v11, %v11111_v3  ;;  %v4254_v29 = vsel %vm8821_vm6, %v4246_v43, %v4253_v56  ;;  %v5600_v57 = vshrl.u32 %v5145_v50, 16  ;;  %v12376_v11 = vld [vmem:[#allocation52_spill] sm:$0xff]  ;;  %v4813_v54 = vld [vmem:[#allocation3 + $0x9c] sm:$0xf] }
 0x2af   : > { %v5534_v26 = vrot.slane %v5533_v31, 4  ;;  %v11140_v52 = vrot.slane %v5546_v21, 5  ;;  %4730 = vst.msk [vmem:[#allocation4 + $0x1c] sm:$0xf] %vm226_vm0, %v4254_v29  ;;  %v11145_v23 = vrot.slane %v5596_v17, 5  ;;  %v4293_v16 = vshrl.u32 %v11120_v30, 16  ;;  %5766 = vrot.lane.b32.xlu0 %v5499_v28, %s8540_s26  ;;  %5768 = vrot.lane.b32.xlu1 %v5509_v59, %s8540_s26 }
 0x2b0   : > { %v5576_v19 = vshll.u32 %v5143_v6, 16  ;;  %v5602_v62 = vrot.slane %v5600_v57, 4  ;;  %v5552_v55 = vrot.slane %v5550_v4, 4  ;;  %v5556_v24 = vshll.u32 %v5141_v35, 16  ;;  %v4143_v17 = vld [vmem:[#allocation3 + $0x54] sm:$0xf] }
 0x2b1   : > { %v5573_v50 = vor.u32 %v5572_v37, %v11132_v51  ;;  %v4295_v13 = vrot.slane %v4293_v16, 7  ;;  %v4305_v7 = vshll.u32 %v10701_v22, 16  ;;  %v5560_v34 = vshrl.u32 %v5141_v35, 16  ;;  %v5144_v37 = vld [vmem:[#allocation3 + $0xb8] sm:$0xf] }
 0x2b2   : > { %v5479_v2 = vsel %vm8679_vm3, %v5474_v48, %v12376_v11  ;;  %v11155_v8 = vrot.slane %v5523_v45, 4  ;;  %v5580_v31 = vshrl.u32 %v5143_v6, 16  ;;  %v5606_v21 = vshll.u32 %v11143_v61, 16  ;;  %v5147_v57 = vld [vmem:[#allocation3 + $0xc4] sm:$0xf] }
 0x2b3   : > { %v5603_v38 = vor.u32 %v5602_v62, %v11145_v23  ;;  %v4300_v4 = vrot.slane %v4295_v13, 4  ;;  %v4307_v43 = vor.u32 %v4305_v7, %v10745_v46  ;;  %v5553_v56 = vor.u32 %v5552_v55, %v11140_v52  ;;  %5762 = vrot.lane.b32.xlu0 %v5479_v2, %s8540_s26  ;;  %4957 = vrot.lane.b32.xlu1 %v4813_v54, %s8539_s25  ;;  %v4898_v54 = vpop.permute.xlu1 %4897 }
 0x2b4   : > { %v5539_v22 = vsel %vm8679_vm3, %v5534_v26, %v10526_v42  ;;  %v12377_v6 = vor.u32 %v10559_v53, %v10526_v42  ;;  %v11170_v28 = vrot.slane %v5556_v24, 5  ;;  %v5562_v48 = vrot.slane %v5560_v34, 4  ;;  %v4140_v24 = vld [vmem:[#allocation3 + $0x48] sm:$0xf]  ;;  %5053 = vst.msk [vmem:[#allocation4 + $0x18] sm:$0xf] %vm1475_vm8, %v4898_v54 }
 0x2b5   : > { %v11173_v46 = vrot.slane %v5573_v50, 4  ;;  %v11175_v59 = vrot.slane %v5576_v19, 5  ;;  %v4308_v45 = vsel %vm8821_vm6, %v4300_v4, %v4307_v43  ;;  %v4296_v29 = vshll.u32 %v11120_v30, 16  ;;  %v4892_v50 = vpop.permute.xlu0 %4891 }
 0x2b6   : > { %v11168_v35 = vrot.slane %v12377_v6, 4  ;;  %v5519_v42 = vsel %vm8679_vm3, %v10557_v39, %v11111_v3  ;;  %v5529_v53 = vsel %vm8679_vm3, %v11155_v8, %v11092_v40  ;;  %v11188_v26 = vrot.slane %v5606_v21, 5  ;;  %4736 = vst.msk [vmem:[#allocation4 + $0x34] sm:$0xf] %vm226_vm0, %v4308_v45  ;;  %v4819_v39 = vld [vmem:[#allocation3 + $0xb4] sm:$0xf] }
 0x2b7   : > { %v5582_v16 = vrot.slane %v5580_v31, 4  ;;  %v11191_v19 = vrot.slane %v5603_v38, 4  ;;  %v11193_v62 = vrot.slane %v5553_v56, 4  ;;  %v5586_v30 = vshll.u32 %v5144_v37, 16  ;;  %5774 = vrot.lane.b32.xlu0 %v5539_v22, %s8540_s26  ;;  %5050 = vst.msk [vmem:[#allocation4 + $0xc] sm:$0xf] %vm1475_vm8, %v4892_v50  ;;  %4969 = vrot.lane.b32.xlu1 %v4819_v39, %s8539_s25 }
 0x2b8   : > { %v4298_v55 = vor.u32 %v4296_v29, %v4295_v13  ;;  %v5610_v3 = vshrl.u32 %v11143_v61, 16  ;;  %v5563_v7 = vor.u32 %v5562_v48, %v11170_v28  ;;  %v5616_v34 = vshll.u32 %v5147_v57, 16  ;;  %v5150_v22 = vld [vmem:[#allocation3 + $0xd0] sm:$0xf]  ;;  %v4816_v6 = vld [vmem:[#allocation3 + $0xa8] sm:$0xf] }
 0x2b9   : > { %v4347_v11 = vshrl.u32 %v4143_v17, 16  ;;  %v5549_v13 = vsel %vm8679_vm3, %v11168_v35, %v11140_v52  ;;  %v5579_v2 = vsel %vm8679_vm3, %v11173_v46, %v11175_v59  ;;  %v5590_v31 = vshrl.u32 %v5144_v37, 16  ;;  %v5148_v50 = vld [vmem:[#allocation3 + $0xc8] sm:$0xf]  ;;  %v4904_v54 = vpop.permute.xlu0 %4903 }
 0x2ba   : > { %v12378_v61 = vrot.slane %v10240_v49, 4  ;;  %v5583_v38 = vor.u32 %v5582_v16, %v11175_v59  ;;  %v5620_v4 = vshrl.u32 %v5147_v57, 16  ;;  %v4350_v56 = vshll.u32 %v4143_v17, 16  ;;  %v4817_v17 = vld [vmem:[#allocation3 + $0xac] sm:$0xf] }
 0x2bb   : > { %v11214_v43 = vrot.slane %v4347_v11, 7  ;;  %v11225_v37 = vrot.slane %v5586_v30, 5  ;;  %v4320_v45 = vshrl.u32 %v4140_v24, 16  ;;  %4963 = vrot.lane.b32.xlu0 %v4816_v6, %s8539_s25  ;;  %v11228_v29 = vrot.slane %v5563_v7, 4  ;;  %4965 = vrot.lane.b32.xlu1 %v4817_v17, %s8539_s25  ;;  %v5149_v49 = vld [vmem:[#allocation3 + $0xcc] sm:$0xf] }
 0x2bc   : > { %v4299_v21 = vsel %vm8821_vm6, %v12378_v61, %v4298_v55  ;;  %v5612_v57 = vrot.slane %v5610_v3, 4  ;;  %v11230_v16 = vrot.slane %v5616_v34, 5  ;;  %v4323_v11 = vshll.u32 %v4140_v24, 16  ;;  %5056 = vst.msk [vmem:[#allocation4 + $0x24] sm:$0xf] %vm1475_vm8, %v4904_v54 }
 0x2bd   : > { %4735 = vst.msk [vmem:[#allocation4 + $0x30] sm:$0xf] %vm226_vm0, %v4299_v21  ;;  %v4352_v55 = vor.u32 %v4350_v56, %v11214_v43  ;;  %v4322_v39 = vrot.slane %v4320_v45, 7  ;;  %v4332_v61 = vshll.u32 %v10720_v41, 16  ;;  %v5646_v30 = vshll.u32 %v5150_v22, 16  ;;  %v4894_v21 = vpop.permute.xlu1 %4893 }
 0x2be   : > { %v12379_v6 = vrot.slane %v10284_v44, 4  ;;  %v5622_v3 = vrot.slane %v5620_v4, 4  ;;  %v5592_v34 = vrot.slane %v5590_v31, 4  ;;  %v5650_v48 = vshrl.u32 %v5150_v22, 16  ;;  %5051 = vst.msk [vmem:[#allocation4 + $0x10] sm:$0xf] %vm1475_vm8, %v4894_v21 }
 0x2bf   : > { %v5630_v24 = vshrl.u32 %v5148_v50, 16  ;;  %v4325_v41 = vor.u32 %v4323_v11, %v4322_v39  ;;  %v4327_v56 = vrot.slane %v4322_v39, 4  ;;  %v4334_v45 = vor.u32 %v4332_v61, %v10770_v63  ;;  %v4146_v17 = vld [vmem:[#allocation3 + $0x60] sm:$0xf]  ;;  %5770 = vrot.lane.b32.xlu0 %v5519_v42, %s8540_s26  ;;  %5772 = vrot.lane.b32.xlu1 %v5529_v53, %s8540_s26 }
 0x2c0   : > { %v4353_v7 = vsel %vm8821_vm6, %v12379_v6, %v4352_v55  ;;  %v11244_v44 = vrot.slane %v5583_v38, 4  ;;  %v5626_v4 = vshll.u32 %v5148_v50, 16  ;;  %v11246_v31 = vrot.slane %v5646_v30, 5  ;;  %v5101_v55 = vld [vmem:[#allocation3 + $0xc] sm:$0xf] }
 0x2c1   : > { %4741 = vst.msk [vmem:[#allocation4 + $0x48] sm:$0xf] %vm226_vm0, %v4353_v7  ;;  %v5652_v22 = vrot.slane %v5650_v48, 4  ;;  %v5613_v39 = vor.u32 %v5612_v57, %v11188_v26  ;;  %v12380_v63 = vrot.slane %v10258_v10, 4  ;;  %v4335_v38 = vsel %vm8821_vm6, %v4327_v56, %v4334_v45  ;;  %v5711_v48 = vpop.permute.xlu0 %5710  ;;  %v4906_v53 = vpop.permute.xlu1 %4905  ;;  %v4822_v57 = vld [vmem:[#allocation3 + $0xc0] sm:$0xf] }
 0x2c2   : > { %v5636_v50 = vshll.u32 %v5149_v49, 16  ;;  %v5569_v11 = vsel %vm8679_vm3, %v11228_v29, %v11132_v51  ;;  %v5623_v40 = vor.u32 %v5622_v3, %v11230_v16  ;;  %v5593_v8 = vor.u32 %v5592_v34, %v11225_v37  ;;  %4739 = vst.msk [vmem:[#allocation4 + $0x40] sm:$0xf] %vm226_vm0, %v4335_v38  ;;  %v5102_v45 = vld [vmem:[#allocation3 + $0x10] sm:$0xf] }
 0x2c3   : > { %v4326_v42 = vsel %vm8821_vm6, %v12380_v63, %v4325_v41  ;;  %v5640_v10 = vshrl.u32 %v5149_v49, 16  ;;  %5867 = vst.msk [vmem:[#allocation4 + $0x14] sm:$0xf] %vm2294_vm9, %v5711_v48  ;;  %v5653_v61 = vor.u32 %v5652_v22, %v11246_v31  ;;  %v5632_v30 = vrot.slane %v5630_v24, 4  ;;  %4975 = vrot.lane.b32.xlu0 %v4822_v57, %s8539_s25  ;;  %5776 = vrot.lane.b32.xlu1 %v5549_v13, %s8540_s26  ;;  %v12381_v49 = vld [vmem:[#allocation42_spill] sm:$0xff] }
 0x2c4   : > { %4738 = vst.msk [vmem:[#allocation4 + $0x3c] sm:$0xf] %vm226_vm0, %v4326_v42  ;;  %v4374_v21 = vshrl.u32 %v4146_v17, 16  ;;  %v5157_v54 = vshrl.u32 %v5101_v55, 16  ;;  %v11273_v6 = vrot.slane %v5626_v4, 5  ;;  %v11275_v7 = vrot.slane %v5636_v50, 5 }
 0x2c5   : > { %5057 = vst.msk [vmem:[#allocation4 + $0x28] sm:$0xf] %vm1475_vm8, %v4906_v53  ;;  %v5642_v3 = vrot.slane %v5640_v10, 4  ;;  %v5160_v34 = vshll.u32 %v5101_v55, 16  ;;  %v4372_v24 = vrot.slane %v12381_v49, 4  ;;  %v4377_v56 = vshll.u32 %v4146_v17, 16  ;;  %v4900_v63 = vpop.permute.xlu0 %4899  ;;  %v5717_v50 = vpop.permute.xlu1 %5716 }
 0x2c6   : > { %v4376_v41 = vrot.slane %v4374_v21, 7  ;;  %v5159_v22 = vrot.slane %v5157_v54, 4  ;;  %v11284_v4 = vrot.slane %v5613_v39, 4  ;;  %v11286_v42 = vrot.slane %v5623_v40, 4  ;;  %5054 = vst.msk [vmem:[#allocation4 + $0x1c] sm:$0xf] %vm1475_vm8, %v4900_v63 }
 0x2c7   : > { %v11288_v38 = vrot.slane %v5593_v8, 4  ;;  %v5162_v55 = vrot.slane %v5160_v34, 5  ;;  %v11291_v48 = vrot.slane %v5653_v61, 4  ;;  %v5633_v52 = vor.u32 %v5632_v30, %v11273_v6  ;;  %5870 = vst.msk [vmem:[#allocation4 + $0x20] sm:$0xf] %vm2294_vm9, %v5717_v50  ;;  %5782 = vrot.lane.b32.xlu0 %v5579_v2, %s8540_s26 }
 0x2c8   : > { %v4379_v35 = vor.u32 %v4377_v56, %v4376_v41  ;;  %v4386_v13 = vshll.u32 %v10793_v9, 16  ;;  %v4823_v17 = vld [vmem:[#allocation3 + $0xc4] sm:$0xf]  ;;  %v5643_v39 = vor.u32 %v5642_v3, %v11275_v7  ;;  %v5166_v40 = vshll.u32 %v5102_v45, 16  ;;  %v4149_v30 = vld [vmem:[#allocation3 + $0x6c] sm:$0xf] }
 0x2c9   : > { %v5170_v8 = vshrl.u32 %v5102_v45, 16  ;;  %v4359_v10 = vshll.u32 %v10775_v33, 16  ;;  %4977 = vrot.lane.b32.xlu1 %v4823_v17, %s8539_s25  ;;  %v5163_v53 = vor.u32 %v5162_v55, %v5159_v22  ;;  %v4381_v57 = vrot.slane %v4376_v41, 4  ;;  %v5707_v21 = vpop.permute.xlu0 %5706  ;;  %v4820_v54 = vld [vmem:[#allocation3 + $0xb8] sm:$0xf] }
 0x2ca   : > { %v4380_v9 = vsel %vm8821_vm6, %v4372_v24, %v4379_v35  ;;  %v4388_v61 = vor.u32 %v4386_v13, %v10838_v0  ;;  %v5589_v46 = vsel %vm8679_vm3, %v11244_v44, %v11225_v37  ;;  %v5619_v33 = vsel %vm8679_vm3, %v11284_v4, %v11230_v16  ;;  %5865 = vst.msk [vmem:[#allocation4 + $0xc] sm:$0xf] %vm2294_vm9, %v5707_v21  ;;  %v5709_v0 = vpop.permute.xlu1 %5708  ;;  %v12382_v24 = vld [vmem:[#allocation9_spill] sm:$0xff]  ;;  %v4152_v13 = vld [vmem:[#allocation3 + $0x78] sm:$0xf] }
 0x2cb   : > { %4744 = vst.msk [vmem:[#allocation4 + $0x54] sm:$0xf] %vm226_vm0, %v4380_v9  ;;  %v4354_v59 = vrot.slane %v11214_v43, 4  ;;  %v4361_v2 = vor.u32 %v4359_v10, %v10820_v20  ;;  %v5629_v3 = vsel %vm8679_vm3, %v11286_v42, %v11273_v6  ;;  %v5599_v34 = vsel %vm8679_vm3, %v11288_v38, %v11145_v23  ;;  %v4155_v20 = vld [vmem:[#allocation3 + $0x84] sm:$0xf]  ;;  %4971 = vrot.lane.b32.xlu0 %v4820_v54, %s8539_s25  ;;  %v12384_v10 = vld [vmem:[#allocation39_spill] sm:$0xff] }
 0x2cc   : > { %v11328_v49 = vrot.slane %v5633_v52, 4  ;;  %v4389_v43 = vsel %vm8821_vm6, %v4381_v57, %v4388_v61  ;;  %5866 = vst.msk [vmem:[#allocation4 + $0x10] sm:$0xf] %vm2294_vm9, %v5709_v0  ;;  %v5659_v41 = vsel %vm8679_vm3, %v11291_v48, %v12382_v24  ;;  %v11338_v56 = vrot.slane %v5166_v40, 5 }
 0x2cd   : > { %4745 = vst.msk [vmem:[#allocation4 + $0x58] sm:$0xf] %vm226_vm0, %v4389_v43  ;;  %v4362_v45 = vsel %vm8821_vm6, %v4354_v59, %v4361_v2  ;;  %v4401_v22 = vshrl.u32 %v4149_v30, 16  ;;  %v12383_v63 = vsel %vm8679_vm3, %v11191_v19, %v11188_v26  ;;  %v11349_v55 = vrot.slane %v5643_v39, 4  ;;  %v4912_v17 = vpop.permute.xlu0 %4911  ;;  %v12385_v19 = vld [vmem:[#allocation55_spill] sm:$0xff] }
 0x2ce   : > { %5788 = vrot.lane.b32.xlu1 %v12383_v63, %s8540_s26  ;;  %v11351_v50 = vrot.slane %v5163_v53, 4  ;;  %v11353_v52 = vrot.slane %v5170_v8, 4  ;;  %4742 = vst.msk [vmem:[#allocation4 + $0x4c] sm:$0xf] %vm226_vm0, %v4362_v45  ;;  %v4413_v35 = vshll.u32 %v10823_v12, 16  ;;  %v4399_v9 = vrot.slane %v12384_v10, 4  ;;  %v5713_v21 = vpop.permute.xlu1 %5712 }
 0x2cf   : > { %v4403_v40 = vrot.slane %v4401_v22, 7  ;;  %v4404_v57 = vshll.u32 %v4149_v30, 16  ;;  %v4455_v61 = vshrl.u32 %v4155_v20, 16  ;;  %5060 = vst.msk [vmem:[#allocation4 + $0x34] sm:$0xf] %vm1475_vm8, %v4912_v17  ;;  %v4453_v39 = vrot.slane %v12385_v19, 4 }
 0x2d0   : > { %v4415_v26 = vor.u32 %v4413_v35, %v10870_v14  ;;  %v4458_v8 = vshll.u32 %v4155_v20, 16  ;;  %v12386_v53 = vld [vmem:[#allocation44_spill] sm:$0xff]  ;;  %v8447_v12 = vld [vmem:[%s12196_s3] sm:$0xff]   ;;  %5868 = vst.msk [vmem:[#allocation4 + $0x18] sm:$0xf] %vm2294_vm9, %v5713_v21  ;;  %v12387_v30 = vsel %vm8679_vm3, %v11193_v62, %v11170_v28  ;;  %v4428_v54 = vshrl.u32 %v4152_v13, 16 }
 0x2d1   : > { %v4426_v59 = vrot.slane %v12386_v53, 4  ;;  %5778 = vrot.lane.b32.xlu0 %v12387_v30, %s8540_s26  ;;  %v4408_v2 = vrot.slane %v4403_v40, 4  ;;  %v4406_v14 = vor.u32 %v4404_v57, %v4403_v40  ;;  %v11372_v0 = vrot.slane %v4455_v61, 7  ;;  %v4158_v43 = vld [vmem:[#allocation3 + $0x90] sm:$0xf]  ;;  %v12388_v22 = vld [vmem:[#allocation12_spill] sm:$0xff]  ;;  %v5719_v17 = vpop.permute.xlu0 %5718 }
 0x2d2   : > { %5780 = vrot.lane.b32.xlu1 %v5569_v11, %s8540_s26  ;;  %v4431_v20 = vshll.u32 %v4152_v13, 16  ;;  %v4440_v45 = vshll.u32 %v10840_v36, 16  ;;  %v6498_v28 = vsel %vm2608_vm7, %v12388_v22, 0  ;;  %v12389_v62 = vld [vmem:[#allocation14_spill] sm:$0xff]  ;;  %v11387_v35 = vld [vmem:[#allocation3 + $0x9c] sm:$0xf]  ;;  %v5721_v13 = vpop.permute.xlu1 %5720 }
 0x2d3   : > { %v11385_v63 = vsel %vm2608_vm7, %v12389_v62, 0  ;;  %v4826_v40 = vld [vmem:[#allocation3 + $0xd0] sm:$0xf]  ;;  %v11389_v10 = vld [vmem:[#allocation4 + $0xc] sm:$0xf]  ;;  %v4416_v51 = vsel %vm8821_vm6, %v4408_v2, %v4415_v26  ;;  %v4407_v29 = vsel %vm8821_vm6, %v4399_v9, %v4406_v14  ;;  %v4460_v36 = vor.u32 %v4458_v8, %v11372_v0  ;;  %8252 = vmatpush3.bf16.msra.mxu0 %v6498_v28  ;;  %v12390_v21 = vld [vmem:[#allocation57_spill] sm:$0xff] }
 0x2d4   : > { %v4430_v11 = vrot.slane %v4428_v54, 7  ;;  %5871 = vst.msk [vmem:[#allocation4 + $0x24] sm:$0xf] %vm2294_vm9, %v5719_v17  ;;  %v11397_v57 = vld [vmem:[#allocation4 + $0x10] sm:$0xf]  ;;  %v4442_v61 = vor.u32 %v4440_v45, %v10894_v47  ;;  %v4480_v26 = vrot.slane %v12390_v21, 4  ;;  %8253 = vmatprep.subr.bf16.mxu0 %v8447_v12 }
 0x2d5   : > { %4748 = vst.msk [vmem:[#allocation4 + $0x64] sm:$0xf] %vm226_vm0, %v4416_v51  ;;  %4747 = vst.msk [vmem:[#allocation4 + $0x60] sm:$0xf] %vm226_vm0, %v4407_v29  ;;  %v4482_v19 = vshrl.u32 %v4158_v43, 16  ;;  %v4485_v53 = vshll.u32 %v4158_v43, 16  ;;  %4983 = vrot.lane.b32.xlu0 %v4826_v40, %s8539_s25  ;;  %v7653_v9 = vcombine.low %v11389_v10, %v11397_v57  ;;  %v4461_v8 = vsel %vm8821_vm6, %v4453_v39, %v4460_v36  ;;  %v5715_v39 = vpop.permute.xlu0 %5714 }
 0x2d6   : > { %5872 = vst.msk [vmem:[#allocation4 + $0x28] sm:$0xf] %vm2294_vm9, %v5721_v13  ;;  %v4433_v30 = vor.u32 %v4431_v20, %v4430_v11  ;;  %v4435_v2 = vrot.slane %v4430_v11, 4  ;;  %5784 = vrot.lane.b32.xlu1 %v5589_v46, %s8540_s26  ;;  %v4778_v47 = vld [vmem:[#allocation3 + $0x10] sm:$0xf]  ;;  %v12391_v54 = vld [vmem:[#allocation13_spill] sm:$0xff] }
 0x2d7   : > { %4753 = vst.msk [vmem:[#allocation4 + $0x78] sm:$0xf] %vm226_vm0, %v4461_v8  ;;  %v4484_v14 = vrot.slane %v4482_v19, 7  ;;  %v4494_v43 = vshll.u32 %v12391_v54, 16  ;;  %v4462_v45 = vrot.slane %v11372_v0, 4  ;;  %v12392_v22 = vld [vmem:[#allocation11_spill] sm:$0xff]  ;;  %8203 = vmatprep.mubr.msk.bf16.mxu1 %vm2535_vm10, %v7653_v9  ;;  %8254 = vmatpush3.bf16.msra.mxu0 %v8447_v12  ;;  %v4910_v0 = vpop.permute.xlu1 %4909 }
 0x2d8   : > { %v4467_v28 = vshll.u32 %v12392_v22, 16  ;;  %v11420_v20 = vld [vmem:[#allocation4 + $0x14] sm:$0xf]  ;;  %v4434_v62 = vsel %vm8821_vm6, %v4426_v59, %v4433_v30  ;;  %v4443_v37 = vsel %vm8821_vm6, %v4435_v2, %v4442_v61  ;;  %v4509_v44 = vshrl.u32 %v11387_v35, 16  ;;  %v4167_v17 = vld [vmem:[#allocation3 + $0xb4] sm:$0xf] }
 0x2d9   : > { %v4521_v46 = vshll.u32 %v10921_v27, 16  ;;  %5869 = vst.msk [vmem:[#allocation4 + $0x1c] sm:$0xf] %vm2294_vm9, %v5715_v39  ;;  %v11429_v40 = vld [vmem:[#allocation4 + $0x18] sm:$0xf]  ;;  %v4487_v51 = vor.u32 %v4485_v53, %v4484_v14  ;;  %v4489_v59 = vrot.slane %v4484_v14, 4  ;;  %v4496_v29 = vor.u32 %v4494_v43, %v10919_v5  ;;  %5790 = vrot.lane.b32.xlu0 %v5619_v33, %s8540_s26  ;;  %v5727_v33 = vpop.permute.xlu0 %5726 }
 0x2da   : > { %4750 = vst.msk [vmem:[#allocation4 + $0x6c] sm:$0xf] %vm226_vm0, %v4434_v62  ;;  %4751 = vst.msk [vmem:[#allocation4 + $0x70] sm:$0xf] %vm226_vm0, %v4443_v37  ;;  %v4469_v36 = vor.u32 %v4467_v28, %v10917_v1  ;;  %v7654_v27 = vcombine.low %v11420_v20, %v11429_v40  ;;  %v4511_v12 = vrot.slane %v4509_v44, 7  ;;  %v12393_v13 = vld [vmem:[#allocation60_spill] sm:$0xff]  ;;  %4887 = vrot.lane.b32.xlu1 %v4778_v47, %s8539_s25 }
 0x2db   : > { %5059 = vst.msk [vmem:[#allocation4 + $0x30] sm:$0xf] %vm1475_vm8, %v4910_v0  ;;  %v4523_v11 = vor.u32 %v4521_v46, %v10960_v18  ;;  %v4507_v61 = vrot.slane %v12393_v13, 4  ;;  %v4164_v5 = vld [vmem:[#allocation3 + $0xa8] sm:$0xf]  ;;  %v4488_v21 = vsel %vm8821_vm6, %v4480_v26, %v4487_v51  ;;  %v4497_v16 = vsel %vm8821_vm6, %v4489_v59, %v4496_v29  ;;  %v12394_v53 = vld [vmem:[#allocation62_spill] sm:$0xff]  ;;  %v4922_v2 = vpop.permute.xlu1 %4921 }
 0x2dc   : > { %v8448_v1 = vld [vmem:[%s12196_s3 + $0x18] sm:$0xff]   ;;  %v4470_v4 = vsel %vm8821_vm6, %v4462_v45, %v4469_v36  ;;  %v4512_v18 = vshll.u32 %v11387_v35, 16  ;;  %8204 = vmatmul.mubr.msk.bf16.vlgmr.msra.gmra.mxu1 %vm2535_vm10, %v7654_v27  ;;  %4756 = vst.msk [vmem:[#allocation4 + $0x84] sm:$0xf] %vm226_vm0, %v4488_v21  ;;  %4757 = vst.msk [vmem:[#allocation4 + $0x88] sm:$0xf] %vm226_vm0, %v4497_v16  ;;  %v5173_v28 = vor.u32 %v11353_v52, %v11338_v56 }
 0x2dd   : > { %4754 = vst.msk [vmem:[#allocation4 + $0x7c] sm:$0xf] %vm226_vm0, %v4470_v4  ;;  %v4516_v19 = vrot.slane %v4511_v12, 4  ;;  %v4561_v26 = vrot.slane %v12394_v53, 4  ;;  %v4563_v9 = vshrl.u32 %v4167_v17, 16  ;;  %v4566_v8 = vshll.u32 %v4167_v17, 16  ;;  %8304 = vmatpush3.bf16.msra.mxu1 %v11385_v63  ;;  %5786 = vrot.lane.b32.xlu0 %v5599_v34, %s8540_s26 }
 0x2de   : > { %v4170_v30 = vld [vmem:[#allocation3 + $0xc0] sm:$0xf]  ;;  %5875 = vst.msk [vmem:[#allocation4 + $0x34] sm:$0xf] %vm2294_vm9, %v5727_v33  ;;  %v11463_v47 = vld [vmem:[#allocation4 + $0x24] sm:$0xf]  ;;  %v4514_v35 = vor.u32 %v4512_v18, %v4511_v12  ;;  %8305 = vmatprep.subr.bf16.mxu1 %v8448_v1  ;;  %5792 = vrot.lane.b32.xlu1 %v5629_v3, %s8540_s26  ;;  %v5639_v4 = vsel %vm8679_vm3, %v11328_v49, %v11275_v7 }
 0x2df   : > { %v12395_v14 = vld [vmem:[#allocation61_spill] sm:$0xff]  ;;  %v4536_v43 = vshrl.u32 %v4164_v5, 16  ;;  %v4539_v45 = vshll.u32 %v4164_v5, 16  ;;  %5065 = vst.msk [vmem:[#allocation4 + $0x48] sm:$0xf] %vm1475_vm8, %v4922_v2  ;;  %v4524_v63 = vsel %vm8821_vm6, %v4516_v19, %v4523_v11  ;;  %v11480_v39 = vrot.slane %v4563_v9, 7  ;;  %v4918_v0 = vpop.permute.xlu1 %4917 }
 0x2e0   : > { %v4534_v54 = vrot.slane %v12395_v14, 4  ;;  %v11474_v22 = vld [vmem:[#allocation4 + $0x20] sm:$0xf]  ;;  %v4548_v62 = vshll.u32 %v10923_v15, 16  ;;  %v11489_v23 = vld [vmem:[#allocation4 + $0x28] sm:$0xf]  ;;  %v4515_v38 = vsel %vm8821_vm6, %v4507_v61, %v4514_v35  ;;  %v4916_v15 = vpop.permute.xlu0 %4915  ;;  %v5649_v7 = vsel %vm8679_vm3, %v11349_v55, %v11246_v31 }
 0x2e1   : > { %4760 = vst.msk [vmem:[#allocation4 + $0x94] sm:$0xf] %vm226_vm0, %v4524_v63  ;;  %v4538_v34 = vrot.slane %v4536_v43, 7  ;;  %v12396_v52 = vld [vmem:[#allocation63_spill] sm:$0xff]  ;;  %v4590_v44 = vshrl.u32 %v4170_v30, 16  ;;  %v4568_v17 = vor.u32 %v4566_v8, %v11480_v39  ;;  %v4593_v42 = vshll.u32 %v4170_v30, 16  ;;  %8306 = vmatpush3.bf16.msra.mxu1 %v8448_v1  ;;  %5798 = vrot.lane.b32.xlu0 %v5659_v41, %s8540_s26 }
 0x2e2   : > { %v4588_v37 = vrot.slane %v12396_v52, 4  ;;  %v11495_v46 = vld [vmem:[#allocation4 + $0x1c] sm:$0xf]  ;;  %4759 = vst.msk [vmem:[#allocation4 + $0x90] sm:$0xf] %vm226_vm0, %v4515_v38  ;;  %v4550_v6 = vor.u32 %v4548_v62, %v10962_v60  ;;  %v4602_v3 = vshll.u32 %v10980_v58, 16  ;;  %v7656_v58 = vcombine.low %v11463_v47, %v11489_v23 }
 0x2e3   : > { %5062 = vst.msk [vmem:[#allocation4 + $0x3c] sm:$0xf] %vm1475_vm8, %v4916_v15  ;;  %v7655_v51 = vcombine.low %v11495_v46, %v11474_v22  ;;  %v4541_v59 = vor.u32 %v4539_v45, %v4538_v34  ;;  %v4543_v29 = vrot.slane %v4538_v34, 4  ;;  %v4592_v36 = vrot.slane %v4590_v44, 7  ;;  %5063 = vst.msk [vmem:[#allocation4 + $0x40] sm:$0xf] %vm1475_vm8, %v4918_v0  ;;  %v5725_v30 = vpop.permute.xlu1 %5724 }
 0x2e4   : > { %v4825_v60 = vld [vmem:[#allocation3 + $0xcc] sm:$0xf]  ;;  %v4569_v27 = vsel %vm8821_vm6, %v4561_v26, %v4568_v17  ;;  %v12397_v12 = vld [vmem:[#allocation27_spill] sm:$0xff]  ;;  %v12398_v13 = vld [vmem:[#allocation36_spill] sm:$0xff]  ;;  %v5723_v16 = vpop.permute.xlu0 %5722  ;;  %v4570_v53 = vrot.slane %v11480_v39, 4  ;;  %v5174_v14 = vrot.slane %v5173_v28, 4  ;;  %v5169_v45 = vsel %vm8679_vm3, %v11351_v50, %v11338_v56 }
 0x2e5   : > { %v4604_v11 = vor.u32 %v4602_v3, %v12397_v12  ;;  %v4575_v61 = vshll.u32 %v12398_v13, 16  ;;  %v4173_v5 = vld [vmem:[#allocation3 + $0xcc] sm:$0xf]  ;;  %4981 = vrot.lane.b32.xlu1 %v4825_v60, %s8539_s25  ;;  %8207 = vmatprep.mubr.msk.bf16.mxu1 %vm2535_vm10, %v7655_v51  ;;  %v5153_v1 = vld [vmem:[#allocation3 + $0xdc] sm:$0xf]  ;;  %v4542_v48 = vsel %vm8821_vm6, %v4534_v54, %v4541_v59  ;;  %v4551_v24 = vsel %vm8821_vm6, %v4543_v29, %v4550_v6  ;;  %v12399_v18 = vld [vmem:[#allocation8_spill] sm:$0xff] }
 0x2e6   : > { %4765 = vst.msk [vmem:[#allocation4 + $0xa8] sm:$0xf] %vm226_vm0, %v4569_v27  ;;  %v4595_v41 = vor.u32 %v4593_v42, %v4592_v36  ;;  %v4597_v21 = vrot.slane %v4592_v36, 4  ;;  %8208 = vmatmul.mubr.msk.bf16.gmra.mxu1 %vm2535_vm10, %v7656_v58  ;;  %v12400_v33 = vshrl.u32 %v12399_v18, 16  ;;  %4762 = vst.msk [vmem:[#allocation4 + $0x9c] sm:$0xf] %vm226_vm0, %v4542_v48  ;;  %5794 = vrot.lane.b32.xlu0 %v5639_v4, %s8540_s26 }
 0x2e7   : > { %4763 = vst.msk [vmem:[#allocation4 + $0xa0] sm:$0xf] %vm226_vm0, %v4551_v24  ;;  %v12401_v26 = vld [vmem:[#allocation37_spill] sm:$0xff]  ;;  %v5154_v8 = vld [vmem:[#allocation3 + $0xe0] sm:$0xf]  ;;  %v4617_v35 = vshrl.u32 %v4173_v5, 16  ;;  %v5729_v42 = vpop.permute.xlu1 %5728  ;;  %v7705_v51 = vcombine.low %v11397_v57, %v11420_v20  ;;  %v7706_v27 = vcombine.low %v11429_v40, %v11495_v46 }
 0x2e8   : > { %v11531_v19 = vrot.slane %v12400_v33, 4  ;;  %v4577_v9 = vor.u32 %v4575_v61, %v12401_v26  ;;  %5873 = vst.msk [vmem:[#allocation4 + $0x2c] sm:$0xf] %vm2294_vm9, %v5723_v16  ;;  %v4596_v49 = vsel %vm8821_vm6, %v4588_v37, %v4595_v41  ;;  %v4605_v2 = vsel %vm8821_vm6, %v4597_v21, %v4604_v11  ;;  %5874 = vst.msk [vmem:[#allocation4 + $0x30] sm:$0xf] %vm2294_vm9, %v5725_v30  ;;  %v12402_v39 = vld [vmem:[#allocation15_spill] sm:$0xff]  ;;  %v4928_v38 = vpop.permute.xlu0 %4927 }
 0x2e9   : > { %v5676_v54 = vshll.u32 %v5153_v1, 16  ;;  %v5680_v43 = vshrl.u32 %v5153_v1, 16  ;;  %4768 = vst.msk [vmem:[#allocation4 + $0xb4] sm:$0xf] %vm226_vm0, %v4596_v49  ;;  %4769 = vst.msk [vmem:[#allocation4 + $0xb8] sm:$0xf] %vm226_vm0, %v4605_v2  ;;  %5796 = vrot.lane.b32.xlu1 %v5649_v7, %s8540_s26 }
 0x2ea   : > { %v4578_v31 = vsel %vm8821_vm6, %v4570_v53, %v4577_v9  ;;  %v4779_v55 = vld [vmem:[#allocation3 + $0x14] sm:$0xf]  ;;  %v5686_v28 = vshll.u32 %v5154_v8, 16  ;;  %v4619_v63 = vrot.slane %v4617_v35, 7  ;;  %v4629_v62 = vshll.u32 %v12402_v39, 16  ;;  %v12404_v17 = vld [vmem:[#allocation64_spill] sm:$0xff] }
 0x2eb   : > { %4766 = vst.msk [vmem:[#allocation4 + $0xac] sm:$0xf] %vm226_vm0, %v4578_v31  ;;  %v5690_v34 = vshrl.u32 %v5154_v8, 16  ;;  %v12403_v52 = vld [vmem:[#allocation50_spill] sm:$0xff]  ;;  %v4615_v6 = vrot.slane %v12404_v17, 4  ;;  %v12405_v0 = vld [vmem:[#allocation31_spill] sm:$0xff]  ;;  %4889 = vrot.lane.b32.xlu0 %v4779_v55, %s8539_s25  ;;  %v4930_v18 = vpop.permute.xlu1 %4929 }
 0x2ec   : > { %v4192_v37 = vrot.slane %v12403_v52, 4  ;;  %v8497_v44 = vld [vmem:[#allocation3 + $0x10] sm:$0xf]  ;;  %5068 = vst.msk [vmem:[#allocation4 + $0x54] sm:$0xf] %vm1475_vm8, %v4928_v38  ;;  %v4624_v3 = vrot.slane %v4619_v63, 4  ;;  %v4631_v56 = vor.u32 %v4629_v62, %v12405_v0  ;;  %v5735_v1 = vpop.permute.xlu0 %5734 }
 0x2ed   : > { %v4197_v15 = vshll.u32 %v8497_v44, 16  ;;  %v4620_v50 = vshll.u32 %v4173_v5, 16  ;;  %5876 = vst.msk [vmem:[#allocation4 + $0x38] sm:$0xf] %vm2294_vm9, %v5729_v42  ;;  %v12406_v59 = vld [vmem:[#allocation51_spill] sm:$0xff]  ;;  %v5678_v36 = vrot.slane %v5676_v54, 5  ;;  %5700 = vrot.lane.b32.xlu1 %v5169_v45, %s8540_s26  ;;  %v7707_v5 = vcombine.low %v11474_v22, %v11463_v47 }
 0x2ee   : > { %v5179_v29 = vsel %vm8679_vm3, %v5174_v14, %v12406_v59  ;;  %v12407_v60 = vld [vmem:[#allocation6_spill] sm:$0xff]  ;;  %v5682_v12 = vrot.slane %v5680_v43, 4  ;;  %v5155_v11 = vld [vmem:[#allocation3 + $0xe4] sm:$0x1]  ;;  %v4632_v13 = vsel %vm8821_vm6, %v4624_v3, %v4631_v56  ;;  %v5688_v21 = vrot.slane %v5686_v28, 5  ;;  %v12409_v9 = vld [vmem:[#allocation65_spill] sm:$0xff] }
 0x2ef   : > { %v4199_v58 = vor.u32 %v4197_v15, %v12407_v60  ;;  %v4622_v61 = vor.u32 %v4620_v50, %v4619_v63  ;;  %v11578_v48 = vld [vmem:[#allocation4 + $0x2c] sm:$0xf]  ;;  %v12408_v24 = vld [vmem:[#allocation10_spill] sm:$0xff]  ;;  %v5692_v16 = vrot.slane %v5690_v34, 4  ;;  %4772 = vst.msk [vmem:[#allocation4 + $0xc4] sm:$0xf] %vm226_vm0, %v4632_v13  ;;  %5702 = vrot.lane.b32.xlu0 %v5179_v29, %s8540_s26  ;;  %v5741_v55 = vpop.permute.xlu1 %5740 }
 0x2f0   : > { %v5673_v41 = vor.u32 %v11531_v19, %v12408_v24  ;;  %5879 = vst.msk [vmem:[#allocation4 + $0x44] sm:$0xf] %vm2294_vm9, %v5735_v1  ;;  %v11586_v33 = vld [vmem:[#allocation4 + $0x30] sm:$0xf]  ;;  %v11588_v53 = vld [vmem:[#allocation4 + $0x34] sm:$0xf]  ;;  %v7708_v19 = vcombine.low %v11489_v23, %v11578_v48  ;;  %v5683_v2 = vor.u32 %v5682_v12, %v5678_v36  ;;  %v4924_v35 = vpop.permute.xlu0 %4923 }
 0x2f1   : > { %v4200_v4 = vsel %vm8821_vm6, %v4192_v37, %v4199_v58  ;;  %v4623_v26 = vsel %vm8821_vm6, %v4615_v6, %v4622_v61  ;;  %5069 = vst.msk [vmem:[#allocation4 + $0x58] sm:$0xf] %vm1475_vm8, %v4930_v18  ;;  %v12410_v8 = vld [vmem:[#allocation58_spill] sm:$0xff]  ;;  %v7657_v7 = vcombine.low %v11578_v48, %v11586_v33  ;;  %v7709_v25 = vcombine.low %v11586_v33, %v11588_v53  ;;  %v4828_v49 = vld [vmem:[#allocation3 + $0xd8] sm:$0xf] }
 0x2f2   : > { %4724 = vst.msk [vmem:[#allocation4 + $0x4] sm:$0xf] %vm226_vm0, %v4200_v4  ;;  %v5189_v30 = vsel %vm8679_vm3, %v12410_v8, %v12409_v9  ;;  %4771 = vst.msk [vmem:[#allocation4 + $0xc0] sm:$0xf] %vm226_vm0, %v4623_v26  ;;  %v4829_v14 = vld [vmem:[#allocation3 + $0xdc] sm:$0xf]  ;;  %v5693_v43 = vor.u32 %v5692_v16, %v5688_v21 }
 0x2f3   : > { %5704 = vrot.lane.b32.xlu1 %v5189_v30, %s8540_s26  ;;  %8211 = vmatprep.mubr.msk.bf16.mxu1 %vm2535_vm10, %v7657_v7  ;;  %v5674_v54 = vrot.slane %v5673_v41, 4  ;;  %v5696_v31 = vshll.u32 %v5155_v11, 16  ;;  %5066 = vst.msk [vmem:[#allocation4 + $0x4c] sm:$0xf] %vm1475_vm8, %v4924_v35  ;;  %v4830_v63 = vld [vmem:[#allocation3 + $0xe0] sm:$0xf]  ;;  %v5733_v37 = vpop.permute.xlu1 %5732 }
 0x2f4   : > { %v11609_v45 = vld [vmem:[#allocation4 + $0x38] sm:$0xf]  ;;  %5882 = vst.msk [vmem:[#allocation4 + $0x50] sm:$0xf] %vm2294_vm9, %v5741_v55  ;;  %4987 = vrot.lane.b32.xlu0 %v4828_v49, %s8539_s25  ;;  %v5684_v39 = vrot.slane %v5683_v2, 4  ;;  %v5731_v62 = vpop.permute.xlu0 %5730  ;;  %v5694_v34 = vrot.slane %v5693_v43, 4 }
 0x2f5   : > { %v7658_v28 = vcombine.low %v11588_v53, %v11609_v45  ;;  %v5679_v38 = vsel %vm8679_vm3, %v5674_v54, %v5678_v36  ;;  %v5698_v52 = vrot.slane %v5696_v31, 5  ;;  %5877 = vst.msk [vmem:[#allocation4 + $0x3c] sm:$0xf] %vm2294_vm9, %v5731_v62  ;;  %5878 = vst.msk [vmem:[#allocation4 + $0x40] sm:$0xf] %vm2294_vm9, %v5733_v37 }
 0x2f6   : > { %v5689_v44 = vsel %vm8679_vm3, %v5684_v39, %v5688_v21 }
 0x2f7   : > { %4989 = vrot.lane.b32.xlu1 %v4829_v14, %s8539_s25  ;;  %8212 = vmatmul.mubr.msk.bf16.gmra.mxu1 %vm2535_vm10, %v7658_v28  ;;  %v5699_v17 = vsel %vm8679_vm3, %v5694_v34, %v5698_v52  ;;  %v5737_v6 = vpop.permute.xlu1 %5736  ;;  %v11636_v50 = vld [vmem:[#allocation4 + $0x44] sm:$0xf] }
 0x2f8   : > { %4991 = vrot.lane.b32.xlu0 %v4830_v63, %s8539_s25  ;;  %v4936_v15 = vpop.permute.xlu0 %4935  ;;  %5880 = vst.msk [vmem:[#allocation4 + $0x48] sm:$0xf] %vm2294_vm9, %v5737_v6 }
 0x2f9   : > { %5072 = vst.msk [vmem:[#allocation4 + $0x64] sm:$0xf] %vm1475_vm8, %v4936_v15 }
 0x2fb   : > { %5802 = vrot.lane.b32.xlu1 %v5679_v38, %s8540_s26  ;;  %v5745_v0 = vpop.permute.xlu1 %5744  ;;  %v11653_v13 = vld [vmem:[#allocation4 + $0x50] sm:$0xf] }
 0x2fc   : > { %5804 = vrot.lane.b32.xlu0 %v5689_v44, %s8540_s26  ;;  %v5743_v42 = vpop.permute.xlu0 %5742  ;;  %v11631_v3 = vld [vmem:[#allocation4 + $0x3c] sm:$0xf]  ;;  %v11634_v56 = vld [vmem:[#allocation4 + $0x40] sm:$0xf]  ;;  %5884 = vst.msk [vmem:[#allocation4 + $0x58] sm:$0xf] %vm2294_vm9, %v5745_v0 }
 0x2fd   : > { %5883 = vst.msk [vmem:[#allocation4 + $0x54] sm:$0xf] %vm2294_vm9, %v5743_v42  ;;  %v7710_v32 = vcombine.low %v11609_v45, %v11631_v3  ;;  %v7659_v59 = vcombine.low %v11631_v3, %v11634_v56  ;;  %v7711_v29 = vcombine.low %v11634_v56, %v11636_v50  ;;  %v8463_v57 = vld [vmem:[#allocation4 + $0x40] sm:$0xff]  }
 0x2ff   : > { %5806 = vrot.lane.b32.xlu1 %v5699_v17, %s8540_s26  ;;  %8215 = vmatprep.mubr.msk.bf16.mxu1 %vm2535_vm10, %v7659_v59  ;;  %v4934_v60 = vpop.permute.xlu1 %4933  ;;  %v11647_v58 = vld [vmem:[#allocation4 + $0x48] sm:$0xf] }
 0x300   : > { %v5739_v36 = vpop.permute.xlu0 %5738  ;;  %5071 = vst.msk [vmem:[#allocation4 + $0x60] sm:$0xf] %vm1475_vm8, %v4934_v60  ;;  %v7660_v12 = vcombine.low %v11636_v50, %v11647_v58 }
 0x301   : > { %5881 = vst.msk [vmem:[#allocation4 + $0x4c] sm:$0xf] %vm2294_vm9, %v5739_v36 }
 0x302   : > { %8216 = vmatmul.mubr.msk.bf16.gmra.mxu1 %vm2535_vm10, %v7660_v12 }
 0x303   : > { %v4946_v1 = vpop.permute.xlu1 %4945  ;;  %v11661_v41 = vld [vmem:[#allocation4 + $0x58] sm:$0xf] }
 0x304   : > { %v5751_v11 = vpop.permute.xlu0 %5750  ;;  %v11655_v61 = vld [vmem:[#allocation4 + $0x54] sm:$0xf]  ;;  %5077 = vst.msk [vmem:[#allocation4 + $0x78] sm:$0xf] %vm1475_vm8, %v4946_v1 }
 0x305   : > { %5887 = vst.msk [vmem:[#allocation4 + $0x64] sm:$0xf] %vm2294_vm9, %v5751_v11  ;;  %v7713_v24 = vcombine.low %v11653_v13, %v11655_v61  ;;  %v7662_v9 = vcombine.low %v11655_v61, %v11661_v41  ;;  %v8465_v40 = vld [vmem:[#allocation4 + $0x50] sm:$0xff]  }
 0x307   : > { %v4942_v4 = vpop.permute.xlu1 %4941 }
 0x308   : > { %v4940_v21 = vpop.permute.xlu0 %4939  ;;  %v11663_v16 = vld [vmem:[#allocation4 + $0x4c] sm:$0xf]  ;;  %5075 = vst.msk [vmem:[#allocation4 + $0x70] sm:$0xf] %vm1475_vm8, %v4942_v4 }
 0x309   : > { %5074 = vst.msk [vmem:[#allocation4 + $0x6c] sm:$0xf] %vm1475_vm8, %v4940_v21  ;;  %v7661_v18 = vcombine.low %v11663_v16, %v11653_v13  ;;  %v7712_v26 = vcombine.low %v11647_v58, %v11663_v16  ;;  %v8464_v20 = vld [vmem:[#allocation4 + $0x48] sm:$0xff]  }
 0x30b   : > { %8219 = vmatprep.mubr.msk.bf16.mxu1 %vm2535_vm10, %v7661_v18  ;;  %v5749_v30 = vpop.permute.xlu1 %5748 }
 0x30c   : > { %8220 = vmatmul.mubr.msk.bf16.gmra.mxu1 %vm2535_vm10, %v7662_v9  ;;  %v5747_v8 = vpop.permute.xlu0 %5746  ;;  %5886 = vst.msk [vmem:[#allocation4 + $0x60] sm:$0xf] %vm2294_vm9, %v5749_v30  ;;  %v11686_v31 = vld [vmem:[#allocation4 + $0x64] sm:$0xf] }
 0x30d   : > { %5885 = vst.msk [vmem:[#allocation4 + $0x5c] sm:$0xf] %vm2294_vm9, %v5747_v8 }
 0x30f   : > { %v5753_v49 = vpop.permute.xlu1 %5752 }
 0x310   : > { %v4952_v7 = vpop.permute.xlu0 %4951  ;;  %5888 = vst.msk [vmem:[#allocation4 + $0x68] sm:$0xf] %vm2294_vm9, %v5753_v49 }
 0x311   : > { %5080 = vst.msk [vmem:[#allocation4 + $0x84] sm:$0xf] %vm1475_vm8, %v4952_v7 }
 0x313   : > { %v4954_v14 = vpop.permute.xlu1 %4953  ;;  %v11682_v54 = vld [vmem:[#allocation4 + $0x60] sm:$0xf] }
 0x314   : > { %v5759_v2 = vpop.permute.xlu0 %5758  ;;  %v11679_v35 = vld [vmem:[#allocation4 + $0x5c] sm:$0xf]  ;;  %5081 = vst.msk [vmem:[#allocation4 + $0x88] sm:$0xf] %vm1475_vm8, %v4954_v14  ;;  %v8467_v22 = vld [vmem:[#allocation4 + $0x60] sm:$0xff]  }
 0x315   : > { %5891 = vst.msk [vmem:[#allocation4 + $0x74] sm:$0xf] %vm2294_vm9, %v5759_v2  ;;  %v7663_v55 = vcombine.low %v11679_v35, %v11682_v54  ;;  %v8466_v47 = vld [vmem:[#allocation4 + $0x58] sm:$0xff]  }
 0x317   : > { %8223 = vmatprep.mubr.msk.bf16.mxu1 %vm2535_vm10, %v7663_v55  ;;  %v5765_v39 = vpop.permute.xlu1 %5764  ;;  %v11695_v62 = vld [vmem:[#allocation4 + $0x68] sm:$0xf] }
 0x318   : > { %v4948_v63 = vpop.permute.xlu0 %4947  ;;  %5894 = vst.msk [vmem:[#allocation4 + $0x80] sm:$0xf] %vm2294_vm9, %v5765_v39  ;;  %v7664_v38 = vcombine.low %v11686_v31, %v11695_v62 }
 0x319   : > { %5078 = vst.msk [vmem:[#allocation4 + $0x7c] sm:$0xf] %vm1475_vm8, %v4948_v63 }
 0x31a   : > { %8224 = vmatmul.mubr.msk.bf16.gmra.mxu1 %vm2535_vm10, %v7664_v38 }
 0x31b   : > { %v5757_v52 = vpop.permute.xlu1 %5756 }
 0x31c   : > { %v5755_v34 = vpop.permute.xlu0 %5754  ;;  %5890 = vst.msk [vmem:[#allocation4 + $0x70] sm:$0xf] %vm2294_vm9, %v5757_v52  ;;  %v11712_v59 = vld [vmem:[#allocation4 + $0x74] sm:$0xf] }
 0x31d   : > { %5889 = vst.msk [vmem:[#allocation4 + $0x6c] sm:$0xf] %vm2294_vm9, %v5755_v34 }
 0x31f   : > { %v5761_v44 = vpop.permute.xlu1 %5760  ;;  %v11727_v18 = vld [vmem:[#allocation4 + $0x80] sm:$0xf] }
 0x320   : > { %v4960_v37 = vpop.permute.xlu0 %4959  ;;  %5892 = vst.msk [vmem:[#allocation4 + $0x78] sm:$0xf] %vm2294_vm9, %v5761_v44 }
 0x321   : > { %5084 = vst.msk [vmem:[#allocation4 + $0x94] sm:$0xf] %vm1475_vm8, %v4960_v37 }
 0x323   : > { %v5769_v6 = vpop.permute.xlu1 %5768  ;;  %v11708_v42 = vld [vmem:[#allocation4 + $0x70] sm:$0xf] }
 0x324   : > { %v5767_v15 = vpop.permute.xlu0 %5766  ;;  %v11705_v17 = vld [vmem:[#allocation4 + $0x6c] sm:$0xf]  ;;  %5896 = vst.msk [vmem:[#allocation4 + $0x88] sm:$0xf] %vm2294_vm9, %v5769_v6  ;;  %v8469_v46 = vld [vmem:[#allocation4 + $0x70] sm:$0xff]  }
 0x325   : > { %5895 = vst.msk [vmem:[#allocation4 + $0x84] sm:$0xf] %vm2294_vm9, %v5767_v15  ;;  %v7665_v36 = vcombine.low %v11705_v17, %v11708_v42  ;;  %v8468_v23 = vld [vmem:[#allocation4 + $0x68] sm:$0xff]   ;;  %v12413_v53 = vcombine.low %v11695_v62, %v11705_v17 }
 0x327   : > { %8227 = vmatprep.mubr.msk.bf16.mxu1 %vm2535_vm10, %v7665_v36  ;;  %v4958_v11 = vpop.permute.xlu1 %4957  ;;  %v11721_v1 = vld [vmem:[#allocation4 + $0x78] sm:$0xf] }
 0x328   : > { %v5763_v12 = vpop.permute.xlu0 %5762  ;;  %5083 = vst.msk [vmem:[#allocation4 + $0x90] sm:$0xf] %vm1475_vm8, %v4958_v11  ;;  %v7666_v21 = vcombine.low %v11712_v59, %v11721_v1 }
 0x329   : > { %5893 = vst.msk [vmem:[#allocation4 + $0x7c] sm:$0xf] %vm2294_vm9, %v5763_v12 }
 0x32a   : > { %8228 = vmatmul.mubr.msk.bf16.gmra.mxu1 %vm2535_vm10, %v7666_v21 }
 0x32b   : > { %v4970_v8 = vpop.permute.xlu1 %4969  ;;  %v11735_v7 = vld [vmem:[#allocation4 + $0x88] sm:$0xf] }
 0x32c   : > { %v5775_v4 = vpop.permute.xlu0 %5774  ;;  %v11729_v9 = vld [vmem:[#allocation4 + $0x84] sm:$0xf]  ;;  %5089 = vst.msk [vmem:[#allocation4 + $0xa8] sm:$0xf] %vm1475_vm8, %v4970_v8 }
 0x32d   : > { %5899 = vst.msk [vmem:[#allocation4 + $0x94] sm:$0xf] %vm2294_vm9, %v5775_v4  ;;  %v7668_v39 = vcombine.low %v11729_v9, %v11735_v7  ;;  %v8471_v48 = vld [vmem:[#allocation4 + $0x80] sm:$0xff]   ;;  %v12416_v13 = vcombine.low %v11727_v18, %v11729_v9 }
 0x32f   : > { %v4966_v14 = vpop.permute.xlu1 %4965 }
 0x330   : > { %v4964_v49 = vpop.permute.xlu0 %4963  ;;  %v11737_v2 = vld [vmem:[#allocation4 + $0x7c] sm:$0xf]  ;;  %5087 = vst.msk [vmem:[#allocation4 + $0xa0] sm:$0xf] %vm1475_vm8, %v4966_v14 }
 0x331   : > { %5086 = vst.msk [vmem:[#allocation4 + $0x9c] sm:$0xf] %vm1475_vm8, %v4964_v49  ;;  %v7667_v55 = vcombine.low %v11737_v2, %v11727_v18 }
 0x333   : > { %8231 = vmatprep.mubr.msk.bf16.mxu1 %vm2535_vm10, %v7667_v55  ;;  %v5773_v34 = vpop.permute.xlu1 %5772 }
 0x334   : > { %8232 = vmatmul.mubr.msk.bf16.gmra.mxu1 %vm2535_vm10, %v7668_v39  ;;  %v5771_v38 = vpop.permute.xlu0 %5770  ;;  %5898 = vst.msk [vmem:[#allocation4 + $0x90] sm:$0xf] %vm2294_vm9, %v5773_v34  ;;  %v11760_v11 = vld [vmem:[#allocation4 + $0x94] sm:$0xf] }
 0x335   : > { %5897 = vst.msk [vmem:[#allocation4 + $0x8c] sm:$0xf] %vm2294_vm9, %v5771_v38 }
 0x337   : > { %v5777_v37 = vpop.permute.xlu1 %5776 }
 0x338   : > { %v4976_v52 = vpop.permute.xlu0 %4975  ;;  %5900 = vst.msk [vmem:[#allocation4 + $0x98] sm:$0xf] %vm2294_vm9, %v5777_v37 }
 0x339   : > { %5092 = vst.msk [vmem:[#allocation4 + $0xb4] sm:$0xf] %vm1475_vm8, %v4976_v52 }
 0x33b   : > { %v4978_v6 = vpop.permute.xlu1 %4977  ;;  %v11756_v36 = vld [vmem:[#allocation4 + $0x90] sm:$0xf] }
 0x33c   : > { %v5783_v44 = vpop.permute.xlu0 %5782  ;;  %v11753_v15 = vld [vmem:[#allocation4 + $0x8c] sm:$0xf]  ;;  %5093 = vst.msk [vmem:[#allocation4 + $0xb8] sm:$0xf] %vm1475_vm8, %v4978_v6  ;;  %v8473_v50 = vld [vmem:[#allocation4 + $0x90] sm:$0xff]  }
 0x33d   : > { %5903 = vst.msk [vmem:[#allocation4 + $0xa4] sm:$0xf] %vm2294_vm9, %v5783_v44  ;;  %v7669_v21 = vcombine.low %v11753_v15, %v11756_v36 }
 0x33f   : > { %8235 = vmatprep.mubr.msk.bf16.mxu1 %vm2535_vm10, %v7669_v21  ;;  %v11769_v14 = vld [vmem:[#allocation4 + $0x98] sm:$0xf] }
 0x340   : > { %v4972_v8 = vpop.permute.xlu0 %4971  ;;  %v5789_v49 = vpop.permute.xlu1 %5788  ;;  %v7670_v55 = vcombine.low %v11760_v11, %v11769_v14 }
 0x341   : > { %5090 = vst.msk [vmem:[#allocation4 + $0xac] sm:$0xf] %vm1475_vm8, %v4972_v8 }
 0x342   : > { %5906 = vst.msk [vmem:[#allocation4 + $0xb0] sm:$0xf] %vm2294_vm9, %v5789_v49  ;;  %8236 = vmatmul.mubr.msk.bf16.gmra.mxu1 %vm2535_vm10, %v7670_v55 }
 0x344   : > { %v5779_v39 = vpop.permute.xlu0 %5778  ;;  %v5781_v38 = vpop.permute.xlu1 %5780  ;;  %v11786_v49 = vld [vmem:[#allocation4 + $0xa4] sm:$0xf] }
 0x345   : > { %5901 = vst.msk [vmem:[#allocation4 + $0x9c] sm:$0xf] %vm2294_vm9, %v5779_v39  ;;  %5902 = vst.msk [vmem:[#allocation4 + $0xa0] sm:$0xf] %vm2294_vm9, %v5781_v38 }
 0x348   : > { %v4984_v34 = vpop.permute.xlu0 %4983  ;;  %v5785_v52 = vpop.permute.xlu1 %5784 }
 0x349   : > { %5096 = vst.msk [vmem:[#allocation4 + $0xc4] sm:$0xf] %vm1475_vm8, %v4984_v34  ;;  %v11801_v8 = vld [vmem:[#allocation4 + $0xb0] sm:$0xf] }
 0x34a   : > { %5904 = vst.msk [vmem:[#allocation4 + $0xa8] sm:$0xf] %vm2294_vm9, %v5785_v52 }
 0x34c   : > { %v5791_v37 = vpop.permute.xlu0 %5790  ;;  %v11779_v44 = vld [vmem:[#allocation4 + $0x9c] sm:$0xf]  ;;  %v4888_v6 = vpop.permute.xlu1 %4887  ;;  %v11782_v21 = vld [vmem:[#allocation4 + $0xa0] sm:$0xf] }
 0x34d   : > { %5907 = vst.msk [vmem:[#allocation4 + $0xb4] sm:$0xf] %vm2294_vm9, %v5791_v37  ;;  %v7671_v55 = vcombine.low %v11779_v44, %v11782_v21  ;;  %v8474_v58 = vld [vmem:[#allocation4 + $0x98] sm:$0xff]   ;;  %v8475_v16 = vld [vmem:[#allocation4 + $0xa0] sm:$0xff]   ;;  %v12419_v17 = vcombine.low %v11769_v14, %v11779_v44 }
 0x34e   : > { %5048 = vst.msk [vmem:[#allocation4 + $0x4] sm:$0xf] %vm1475_vm8, %v4888_v6 }
 0x34f   : > { %8239 = vmatprep.mubr.msk.bf16.mxu1 %vm2535_vm10, %v7671_v55 }
 0x350   : > { %v5787_v38 = vpop.permute.xlu0 %5786  ;;  %v5793_v34 = vpop.permute.xlu1 %5792 }
 0x351   : > { %5905 = vst.msk [vmem:[#allocation4 + $0xac] sm:$0xf] %vm2294_vm9, %v5787_v38  ;;  %v11795_v52 = vld [vmem:[#allocation4 + $0xa8] sm:$0xf]  ;;  %5908 = vst.msk [vmem:[#allocation4 + $0xb8] sm:$0xf] %vm2294_vm9, %v5793_v34 }
 0x352   : > { %v7672_v37 = vcombine.low %v11786_v49, %v11795_v52 }
 0x354   : > { %8240 = vmatmul.mubr.msk.bf16.gmra.mxu1 %vm2535_vm10, %v7672_v37  ;;  %v5799_v6 = vpop.permute.xlu0 %5798  ;;  %v11803_v4 = vld [vmem:[#allocation4 + $0xb4] sm:$0xf] }
 0x355   : > { %5911 = vst.msk [vmem:[#allocation4 + $0xc4] sm:$0xf] %vm2294_vm9, %v5799_v6 }
 0x357   : > { %v4982_v55 = vpop.permute.xlu1 %4981 }
 0x358   : > { %5095 = vst.msk [vmem:[#allocation4 + $0xc0] sm:$0xf] %vm1475_vm8, %v4982_v55  ;;  %v5795_v39 = vpop.permute.xlu0 %5794  ;;  %v11809_v34 = vld [vmem:[#allocation4 + $0xac] sm:$0xf]  ;;  %v11816_v63 = vld [vmem:[#allocation4 + $0xb8] sm:$0xf] }
 0x359   : > { %5909 = vst.msk [vmem:[#allocation4 + $0xbc] sm:$0xf] %vm2294_vm9, %v5795_v39  ;;  %v7673_v37 = vcombine.low %v11809_v34, %v11801_v8  ;;  %v7674_v6 = vcombine.low %v11803_v4, %v11816_v63 }
 0x35b   : > { %v5797_v12 = vpop.permute.xlu1 %5796  ;;  %8243 = vmatprep.mubr.msk.bf16.mxu1 %vm2535_vm10, %v7673_v37 }
 0x35c   : > { %5910 = vst.msk [vmem:[#allocation4 + $0xc0] sm:$0xf] %vm2294_vm9, %v5797_v12  ;;  %8244 = vmatmul.mubr.msk.bf16.gmra.mxu1 %vm2535_vm10, %v7674_v6  ;;  %v8456_v6 = vld [vmem:[#allocation4 + $0xc4] sm:$0xff]  }
 0x35d   : > { %v4890_v55 = vpop.permute.xlu0 %4889 }
 0x35e   : > { %5049 = vst.msk [vmem:[#allocation4 + $0x8] sm:$0xf] %vm1475_vm8, %v4890_v55  ;;  %v8457_v55 = vld [vmem:[#allocation4 + $0x18] sm:$0xff]  }
 0x35f   : > { %v5701_v39 = vpop.permute.xlu1 %5700 }
 0x360   : > { %5862 = vst.msk [vmem:[#allocation4] sm:$0xf] %vm2294_vm9, %v5701_v39  ;;  %v11825_v60 = vld [vmem:[#allocation4 + $0xbc] sm:$0xf] }
 0x361   : > { %v5703_v38 = vpop.permute.xlu0 %5702  ;;  %v12423_v44 = vcombine.low %v11816_v63, %v11825_v60 }
 0x362   : > { %5863 = vst.msk [vmem:[#allocation4 + $0x4] sm:$0xf] %vm2294_vm9, %v5703_v38 }
 0x363   : > { %v5967_v12 = vld [vmem:[#allocation4 + $0xc0] sm:$0xf] }
 0x364   : > { %v7675_v37 = vcombine.low %v11825_v60, %v5967_v12  ;;  %v8479_v9 = vld [vmem:[#allocation4 + $0xc0] sm:$0xff]  }
 0x365   : > { %v5705_v30 = vpop.permute.xlu1 %5704 }
 0x366   : > { %5864 = vst.msk [vmem:[#allocation4 + $0x8] sm:$0xf] %vm2294_vm9, %v5705_v30  ;;  %8247 = vmatprep.mubr.msk.bf16.mxu1 %vm2535_vm10, %v7675_v37  ;;  %v4988_v28 = vpop.permute.xlu0 %4987  ;;  %v8459_v37 = vld [vmem:[#allocation4 + $0x20] sm:$0xff]  }
 0x367   : > { %8248 = vmatmul.mubr.msk.bf16.gmra.mxu1 %vm2535_vm10, %v8456_v6  ;;  %5098 = vst.msk [vmem:[#allocation4 + $0xcc] sm:$0xf] %vm1475_vm8, %v4988_v28  ;;  %v8460_v28 = vld [vmem:[#allocation4 + $0x28] sm:$0xff]  }
 0x368   : > { %8307 = vmatprep.mubr.msk.bf16.mxu1 %vm2535_vm10, %v8457_v55 }
 0x369   : > { %v4990_v39 = vpop.permute.xlu1 %4989  ;;  %v8458_v38 = vld [vmem:[#allocation4] sm:$0xff]  }
 0x36a   : > { %5099 = vst.msk [vmem:[#allocation4 + $0xd0] sm:$0xf] %vm1475_vm8, %v4990_v39  ;;  %v4992_v0 = vpop.permute.xlu0 %4991  ;;  %8255 = vmatprep.mubr.msk.bf16.mxu0 %vm2535_vm10, %v8458_v38 }
 0x36b   : > { %5100 = vst.msk [vmem:[#allocation4 + $0xd4] sm:$0xf] %vm1475_vm8, %v4992_v0 }
 0x36d   : > { %v5803_v43 = vpop.permute.xlu1 %5802  ;;  %v5918_v30 = vld [vmem:[#allocation4 + $0x8] sm:$0xf] }
 0x36e   : > { %5913 = vst.msk [vmem:[#allocation4 + $0xcc] sm:$0xf] %vm2294_vm9, %v5803_v43  ;;  %v7704_v12 = vcombine.low %v5918_v30, %v11389_v10  ;;  %v5805_v6 = vpop.permute.xlu0 %5804  ;;  %v8461_v10 = vld [vmem:[#allocation4 + $0x30] sm:$0xff]   ;;  %v8462_v43 = vld [vmem:[#allocation4 + $0x38] sm:$0xff]  }
 0x36f   : > { %8308 = vmatmul.mubr.msk.bf16.vlgmr.msra.gmra.mxu1 %vm2535_vm10, %v8459_v37  ;;  %5914 = vst.msk [vmem:[#allocation4 + $0xd0] sm:$0xf] %vm2294_vm9, %v5805_v6 }
 0x370   : > { %8256 = vmatmul.mubr.msk.bf16.vlgmr.msra.gmra.mxu0 %vm2535_vm10, %v7704_v12  ;;  %8311 = vmatprep.mubr.msk.bf16.mxu1 %vm2535_vm10, %v8460_v28 }
 0x371   : > { %8259 = vmatprep.mubr.msk.bf16.mxu0 %vm2535_vm10, %v7705_v51  ;;  %v5807_v0 = vpop.permute.xlu1 %5806  ;;  %v12411_v51 = vcombine.low %v11661_v41, %v11679_v35  ;;  %v8476_v35 = vld [vmem:[#allocation4 + $0xa8] sm:$0xff]  }
 0x372   : > { %5915 = vst.msk [vmem:[#allocation4 + $0xd4] sm:$0xf] %vm2294_vm9, %v5807_v0 }
 0x377   : > { %8312 = vmatmul.mubr.msk.bf16.gmra.mxu1 %vm2535_vm10, %v8461_v10 }
 0x378   : > { %8260 = vmatmul.mubr.msk.bf16.gmra.mxu0 %vm2535_vm10, %v7706_v27  ;;  %8315 = vmatprep.mubr.msk.bf16.mxu1 %vm2535_vm10, %v8462_v43  ;;  %v8470_v27 = vld [vmem:[#allocation4 + $0x78] sm:$0xff]  }
 0x379   : > { %8263 = vmatprep.mubr.msk.bf16.mxu0 %vm2535_vm10, %v7707_v5  ;;  %v12412_v5 = vcombine.low %v11682_v54, %v11686_v31  ;;  %v12418_v54 = vcombine.low %v11756_v36, %v11760_v11  ;;  %v8477_v31 = vld [vmem:[#allocation4 + $0xb0] sm:$0xff]  }
 0x37a   : > { %v8481_v36 = vld [vmem:[#allocation4 + $0xd0] sm:$0xff]  }
 0x37f   : > { %8316 = vmatmul.mubr.msk.bf16.gmra.mxu1 %vm2535_vm10, %v8463_v57 }
 0x380   : > { %8264 = vmatmul.mubr.msk.bf16.gmra.mxu0 %vm2535_vm10, %v7708_v19  ;;  %8319 = vmatprep.mubr.msk.bf16.mxu1 %vm2535_vm10, %v8464_v20  ;;  %v8472_v19 = vld [vmem:[#allocation4 + $0x88] sm:$0xff]  }
 0x381   : > { %8267 = vmatprep.mubr.msk.bf16.mxu0 %vm2535_vm10, %v7709_v25  ;;  %v12414_v25 = vcombine.low %v11708_v42, %v11712_v59  ;;  %v8478_v42 = vld [vmem:[#allocation4 + $0xb8] sm:$0xff]   ;;  %v12420_v59 = vcombine.low %v11782_v21, %v11786_v49 }
 0x387   : > { %8320 = vmatmul.mubr.msk.bf16.gmra.mxu1 %vm2535_vm10, %v8465_v40 }
 0x388   : > { %8268 = vmatmul.mubr.msk.bf16.gmra.mxu0 %vm2535_vm10, %v7710_v32  ;;  %8323 = vmatprep.mubr.msk.bf16.mxu1 %vm2535_vm10, %v8466_v47 }
 0x389   : > { %8271 = vmatprep.mubr.msk.bf16.mxu0 %vm2535_vm10, %v7711_v29  ;;  %v12415_v29 = vcombine.low %v11721_v1, %v11737_v2  ;;  %v8480_v2 = vld [vmem:[#allocation4 + $0xc8] sm:$0xff]  }
 0x38f   : > { %8324 = vmatmul.mubr.msk.bf16.gmra.mxu1 %vm2535_vm10, %v8467_v22 }
 0x390   : > { %8272 = vmatmul.mubr.msk.bf16.gmra.mxu0 %vm2535_vm10, %v7712_v26  ;;  %8327 = vmatprep.mubr.msk.bf16.mxu1 %vm2535_vm10, %v8468_v23  ;;  %v12417_v26 = vcombine.low %v11735_v7, %v11753_v15  ;;  %v12421_v7 = vcombine.low %v11795_v52, %v11809_v34  ;;  %v12422_v15 = vcombine.low %v11801_v8, %v11803_v4 }
 0x391   : > { %8275 = vmatprep.mubr.msk.bf16.mxu0 %vm2535_vm10, %v7713_v24 }
 0x397   : > { %8328 = vmatmul.mubr.msk.bf16.gmra.mxu1 %vm2535_vm10, %v8469_v46 }
 0x398   : > { %8276 = vmatmul.mubr.msk.bf16.gmra.mxu0 %vm2535_vm10, %v12411_v51  ;;  %8331 = vmatprep.mubr.msk.bf16.mxu1 %vm2535_vm10, %v8470_v27 }
 0x399   : > { %8279 = vmatprep.mubr.msk.bf16.mxu0 %vm2535_vm10, %v12412_v5 }
 0x39c   : > { %v8205_v33 = vpop.f32.mrf.mxu1 }
 0x39e   : > { %v11909_v45 = vpop.f32.mrf.mxu1 }
 0x39f   : > { %8332 = vmatmul.mubr.msk.bf16.gmra.mxu1 %vm2535_vm10, %v8471_v48 }
 0x3a0   : > { %8280 = vmatmul.mubr.msk.bf16.gmra.mxu0 %vm2535_vm10, %v12413_v53  ;;  %8335 = vmatprep.mubr.msk.bf16.mxu1 %vm2535_vm10, %v8472_v19  ;;  %v11912_v3 = vpop.f32.mrf.mxu1 }
 0x3a1   : > { %8283 = vmatprep.mubr.msk.bf16.mxu0 %vm2535_vm10, %v12414_v25 }
 0x3a2   : > { %v11914_v56 = vpop.f32.mrf.mxu1 }
 0x3a6   : > { %v11916_v32 = vpop.f32.mrf.mxu1 }
 0x3a7   : > { %8336 = vmatmul.mubr.msk.bf16.gmra.mxu1 %vm2535_vm10, %v8473_v50 }
 0x3a8   : > { %8284 = vmatmul.mubr.msk.bf16.gmra.mxu0 %vm2535_vm10, %v12415_v29  ;;  %8339 = vmatprep.mubr.msk.bf16.mxu1 %vm2535_vm10, %v8474_v58  ;;  %v11928_v61 = vpop.f32.mrf.mxu1 }
 0x3a9   : > { %8287 = vmatprep.mubr.msk.bf16.mxu0 %vm2535_vm10, %v12416_v13 }
 0x3aa   : > { %v11930_v24 = vpop.f32.mrf.mxu1 }
 0x3ac   : > { %v6229_v41 = vpop.f32.mrf.mxu1 }
 0x3af   : > { %8340 = vmatmul.mubr.msk.bf16.gmra.mxu1 %vm2535_vm10, %v8475_v16 }
 0x3b0   : > { %8288 = vmatmul.mubr.msk.bf16.gmra.mxu0 %vm2535_vm10, %v12417_v26  ;;  %8343 = vmatprep.mubr.msk.bf16.mxu1 %vm2535_vm10, %v8476_v35  ;;  %v12023_v26 = vld [vmem:[%s12197_s4] ss:$0 sm:$0xff] }
 0x3b1   : > { %8291 = vmatprep.mubr.msk.bf16.mxu0 %vm2535_vm10, %v12418_v54 }
 0x3b7   : > { %v11942_v62 = vpop.f32.mrf.mxu1  ;;  %8344 = vmatmul.mubr.msk.bf16.gmra.mxu1 %vm2535_vm10, %v8477_v31 }
 0x3b8   : > { %8292 = vmatmul.mubr.msk.bf16.gmra.mxu0 %vm2535_vm10, %v12419_v17  ;;  %8347 = vmatprep.mubr.msk.bf16.mxu1 %vm2535_vm10, %v8478_v42 }
 0x3b9   : > { %8295 = vmatprep.mubr.msk.bf16.mxu0 %vm2535_vm10, %v12420_v59  ;;  %v6241_v1 = vpop.f32.mrf.mxu1 }
 0x3bb   : > { %v8214_v18 = vpop.f32.mrf.mxu1 }
 0x3bd   : > { %v11964_v11 = vpop.f32.mrf.mxu1 }
 0x3bf   : > { %8348 = vmatmul.mubr.msk.bf16.gmra.mxu1 %vm2535_vm10, %v8479_v9 }
 0x3c0   : > { %8296 = vmatmul.mubr.msk.bf16.gmra.mxu0 %vm2535_vm10, %v12421_v7  ;;  %8351 = vmatprep.mubr.msk.bf16.mxu1 %vm2535_vm10, %v8480_v2  ;;  %v8498_v7 = vld [vmem:[%s8606_s24] sm:$0xff] }
 0x3c1   : > { %8299 = vmatprep.mubr.msk.bf16.mxu0 %vm2535_vm10, %v12422_v15 }
 0x3c2   : > { %v8217_v14 = vpop.f32.mrf.mxu1 }
 0x3c4   : > { %v11971_v21 = vpop.f32.mrf.mxu1 }
 0x3c6   : > { %v11973_v49 = vpop.f32.mrf.mxu1 }
 0x3c7   : > { %8352 = vmatmul.mubr.msk.bf16.gmra.mxu1 %vm2535_vm10, %v8481_v36 }
 0x3c8   : > { %8300 = vmatmul.mubr.msk.bf16.gmra.mxu0 %vm2535_vm10, %v12423_v44  ;;  %v11975_v4 = vpop.f32.mrf.mxu1 }
 0x3cc   : > { %v11977_v8 = vpop.f32.mrf.mxu1 }
 0x3ce   : > { %v11979_v52 = vpop.f32.mrf.mxu1 }
 0x3d0   : > { %v11981_v34 = vpop.f32.mrf.mxu1 }
 0x3d2   : > { %v6273_v55 = vpop.f32.mrf.mxu1 }
 0x3d3   : > { %v8499_v55 = vld [vmem:[%s8606_s24 + $0x18] sm:$0xff] }
 0x3da   : > { %v11983_v39 = vpop.f32.mrf.mxu1 }
 0x3dc   : > { %v6285_v60 = vpop.f32.mrf.mxu1 }
 0x3de   : > { %v8226_v63 = vpop.f32.mrf.mxu1 }
 0x3e0   : > { %v11985_v38 = vpop.f32.mrf.mxu1 }
 0x3ea   : > { %v8229_v30 = vpop.f32.mrf.mxu1 }
 0x3ec   : > { %v11987_v12 = vpop.f32.mrf.mxu1 }
 0x3ee   : > { %v11989_v37 = vpop.f32.mrf.mxu1 }
 0x3f0   : > { %v11991_v28 = vpop.f32.mrf.mxu1 }
 0x3f4   : > { %v11993_v6 = vpop.f32.mrf.mxu1 }
 0x3f6   : > { %v11995_v0 = vpop.f32.mrf.mxu1 }
 0x3f8   : > { %v11997_v10 = vpop.f32.mrf.mxu1 }
 0x3fa   : > { %v6317_v43 = vpop.f32.mrf.mxu1 }
 0x402   : > { %v11999_v57 = vpop.f32.mrf.mxu1 }
 0x404   : > { %v6329_v20 = vpop.f32.mrf.mxu1 }
 0x406   : > { %v8238_v40 = vpop.f32.mrf.mxu1 }
 0x408   : > { %v12001_v47 = vpop.f32.mrf.mxu1 }
 0x414   : > { %v8241_v22 = vpop.f32.mrf.mxu1 }
 0x415   : > { %v8500_v22 = vld [vmem:[%s8606_s24 + $0x8] sm:$0xff] }
 0x416   : > { %v12003_v23 = vpop.f32.mrf.mxu1 }
 0x418   : > { %v12005_v46 = vpop.f32.mrf.mxu1 }
 0x41a   : > { %v12007_v51 = vpop.f32.mrf.mxu1 }
 0x41c   : > { %v12009_v27 = vpop.f32.mrf.mxu1 }
 0x41e   : > { %v12011_v5 = vpop.f32.mrf.mxu1 }
 0x420   : > { %v12013_v48 = vpop.f32.mrf.mxu1 }
 0x422   : > { %v6361_v33 = vpop.f32.mrf.mxu1 }
 0x427   : > { %v12015_v53 = vpop.f32.mrf.mxu1 }
 0x429   : > { %v6373_v19 = vpop.f32.mrf.mxu1 }
 0x42b   : > { %v8250_v25 = vpop.f32.mrf.mxu1 }
 0x42d   : > { %v12017_v50 = vpop.f32.mrf.mxu1 }
 0x42f   : > { %v8309_v58 = vpop.f32.mrf.mxu1 }
 0x430   : > { %v8257_v29 = vpop.f32.mrf.mxu0 }
 0x431   : > { %v6998_v16 = vpop.f32.mrf.mxu1 }
 0x432   : > { %v6534_v13 = vpop.f32.mrf.mxu0 }
 0x433   : > { %v6535_v41 = vadd.f32 %v6534_v13, %v11909_v45  ;;  %v8310_v17 = vpop.f32.mrf.mxu1 }
 0x434   : > { %v8258_v35 = vpop.f32.mrf.mxu0 }
 0x435   : > { %v7173_v54 = vadd.f32 %v6998_v16, %v6535_v41  ;;  %v6545_v31 = vadd.f32 %v8258_v35, %v11912_v3  ;;  %v7001_v45 = vpop.f32.mrf.mxu1 }
 0x436   : > { %v6537_v42 = vpop.f32.mrf.mxu0 }
 0x437   : > { %v7212_v59 = vadd.f32 %v12023_v26, %v7173_v54  ;;  %v7175_v1 = vadd.f32 %v8310_v17, %v6545_v31  ;;  %v6538_v18 = vadd.f32 %v6537_v42, %v11914_v56  ;;  %v8313_v3 = vpop.f32.mrf.mxu1 }
 0x438   : > { %v8261_v9 = vpop.f32.mrf.mxu0 }
 0x439   : > { %v7244_v2 = vadd.f32 %v8498_v7, %v7212_v59  ;;  %v7214_v15 = vadd.f32 %v12023_v26, %v7175_v1  ;;  %v7174_v36 = vadd.f32 %v7001_v45, %v6538_v18  ;;  %v6557_v14 = vadd.f32 %v8261_v9, %v11916_v32  ;;  %v7013_v43 = vpop.f32.mrf.mxu1  ;;  %v8502_v18 = vld [vmem:[%s8606_s24 + $0x20] sm:$0xff]  ;;  %v8503_v7 = vld [vmem:[%s8606_s24 + $0x38] sm:$0xff] }
 0x43a   : > { %v6549_v44 = vpop.f32.mrf.mxu0 }
 0x43b   : > { %v7276_v56 = vmax.f32 %v7244_v2, 0.0  ;;  %v7246_v60 = vadd.f32 %v8499_v55, %v7214_v15  ;;  %v7213_v63 = vadd.f32 %v12023_v26, %v7174_v36  ;;  %v7177_v30 = vadd.f32 %v8313_v3, %v6557_v14  ;;  %v8314_v29 = vpop.f32.mrf.mxu1 }
 0x43c   : > { %v6550_v32 = vadd.f32 %v6549_v44, %v11928_v61  ;;  %v8262_v20 = vpop.f32.mrf.mxu0  ;;  %v8501_v61 = vld [vmem:[%s8606_s24 + $0x30] sm:$0xff] }
 0x43d   : > { %7309 = vst.msk [vmem:[%s12035_s19] sm:$0xff] %vm7308_vm11, %v7276_v56  ;;  %v7278_v40 = vmax.f32 %v7246_v60, 0.0  ;;  %v7245_v33 = vadd.f32 %v8500_v22, %v7213_v63  ;;  %v7216_v19 = vadd.f32 %v12023_v26, %v7177_v30  ;;  %v6560_v25 = vadd.f32 %v8262_v20, %v11930_v24  ;;  %v7016_v54 = vpop.f32.mrf.mxu1  ;;  %v8504_v60 = vld [vmem:[%s8606_s24 + $0x50] sm:$0xff] }
 0x43e   : > { %v7176_v58 = vadd.f32 %v7013_v43, %v6550_v32  ;;  %v6552_v13 = vpop.f32.mrf.mxu0 }
 0x43f   : > { %7311 = vst.msk [vmem:[%s12035_s19 + $0x10] sm:$0xff] %vm7308_vm11, %v7278_v40  ;;  %v7277_v41 = vmax.f32 %v7245_v33, 0.0  ;;  %v7248_v16 = vadd.f32 %v8501_v61, %v7216_v19  ;;  %v7178_v35 = vadd.f32 %v8314_v29, %v6560_v25  ;;  %v8317_v1 = vpop.f32.mrf.mxu1  ;;  %v8505_v13 = vld [vmem:[%s8606_s24 + $0x48] sm:$0xff] }
 0x440   : > { %v7215_v31 = vadd.f32 %v12023_v26, %v7176_v58  ;;  %v8265_v17 = vpop.f32.mrf.mxu0 }
 0x441   : > { %7310 = vst.msk [vmem:[%s12035_s19 + $0x8] sm:$0xff] %vm7308_vm11, %v7277_v41  ;;  %v7280_v42 = vmax.f32 %v7248_v16, 0.0  ;;  %v7217_v24 = vadd.f32 %v12023_v26, %v7178_v35  ;;  %v6572_v59 = vadd.f32 %v8265_v17, %v11942_v62  ;;  %v7028_v36 = vpop.f32.mrf.mxu1 }
 0x442   : > { %v7247_v45 = vadd.f32 %v8502_v18, %v7215_v31  ;;  %v6564_v9 = vpop.f32.mrf.mxu0 }
 0x443   : > { %7313 = vst.msk [vmem:[%s12035_s19 + $0x20] sm:$0xff] %vm7308_vm11, %v7280_v42  ;;  %v7249_v2 = vadd.f32 %v8503_v7, %v7217_v24  ;;  %v7180_v15 = vadd.f32 %v8317_v1, %v6572_v59  ;;  %v8318_v55 = vpop.f32.mrf.mxu1 }
 0x444   : > { %v7279_v14 = vmax.f32 %v7247_v45, 0.0  ;;  %v8266_v3 = vpop.f32.mrf.mxu0 }
 0x445   : > { %v7281_v44 = vmax.f32 %v7249_v2, 0.0  ;;  %v7219_v56 = vadd.f32 %v12023_v26, %v7180_v15  ;;  %v7030_v43 = vpop.f32.mrf.mxu1  ;;  %v8507_v15 = vld [vmem:[%s8606_s24 + $0x78] sm:$0xff] }
 0x446   : > { %7312 = vst.msk [vmem:[%s12035_s19 + $0x18] sm:$0xff] %vm7308_vm11, %v7279_v14  ;;  %v6566_v62 = vpop.f32.mrf.mxu0 }
 0x447   : > { %7314 = vst.msk [vmem:[%s12035_s19 + $0x28] sm:$0xff] %vm7308_vm11, %v7281_v44  ;;  %v7251_v63 = vadd.f32 %v8504_v60, %v7219_v56  ;;  %v6567_v30 = vadd.f32 %v6566_v62, %v11964_v11  ;;  %v8321_v22 = vpop.f32.mrf.mxu1  ;;  %v8508_v62 = vld [vmem:[%s8606_s24 + $0x68] sm:$0xff] }
 0x448   : > { %v8269_v32 = vpop.f32.mrf.mxu0 }
 0x449   : > { %v7283_v20 = vmax.f32 %v7251_v63, 0.0  ;;  %v7179_v40 = vadd.f32 %v7030_v43, %v6567_v30  ;;  %v7042_v29 = vpop.f32.mrf.mxu1 }
 0x44a   : > { %v6578_v33 = vpop.f32.mrf.mxu0 }
 0x44b   : > { %7316 = vst.msk [vmem:[%s12035_s19 + $0x38] sm:$0xff] %vm7308_vm11, %v7283_v20  ;;  %v7218_v19 = vadd.f32 %v12023_v26, %v7179_v40  ;;  %v6579_v25 = vadd.f32 %v6578_v33, %v11971_v21  ;;  %v8322_v16 = vpop.f32.mrf.mxu1  ;;  %v8506_v21 = vld [vmem:[%s8606_s24 + $0x60] sm:$0xff] }
 0x44c   : > { %v8270_v58 = vpop.f32.mrf.mxu0 }
 0x44d   : > { %v7250_v41 = vadd.f32 %v8505_v13, %v7218_v19  ;;  %v7181_v61 = vadd.f32 %v7042_v29, %v6579_v25  ;;  %v6589_v11 = vadd.f32 %v8270_v58, %v11973_v49  ;;  %v7045_v24 = vpop.f32.mrf.mxu1 }
 0x44e   : > { %v6581_v35 = vpop.f32.mrf.mxu0 }
 0x44f   : > { %v7282_v54 = vmax.f32 %v7250_v41, 0.0  ;;  %v7220_v31 = vadd.f32 %v12023_v26, %v7181_v61  ;;  %v7183_v17 = vadd.f32 %v8322_v16, %v6589_v11  ;;  %v6582_v42 = vadd.f32 %v6581_v35, %v11975_v4  ;;  %v8325_v9 = vpop.f32.mrf.mxu1  ;;  %v8510_v41 = vld [vmem:[%s8606_s24 + $0x80] sm:$0xff]  ;;  %v8511_v16 = vld [vmem:[%s8606_s24 + $0x98] sm:$0xff] }
 0x450   : > { %v8273_v59 = vpop.f32.mrf.mxu0 }
 0x451   : > { %7315 = vst.msk [vmem:[%s12035_s19 + $0x30] sm:$0xff] %vm7308_vm11, %v7282_v54  ;;  %v7252_v1 = vadd.f32 %v8506_v21, %v7220_v31  ;;  %v7222_v18 = vadd.f32 %v12023_v26, %v7183_v17  ;;  %v7182_v49 = vadd.f32 %v7045_v24, %v6582_v42  ;;  %v6601_v45 = vadd.f32 %v8273_v59, %v11977_v8  ;;  %v7057_v3 = vpop.f32.mrf.mxu1 }
 0x452   : > { %v6593_v7 = vpop.f32.mrf.mxu0 }
 0x453   : > { %v7284_v2 = vmax.f32 %v7252_v1, 0.0  ;;  %v7254_v36 = vadd.f32 %v8507_v15, %v7222_v18  ;;  %v7221_v4 = vadd.f32 %v12023_v26, %v7182_v49  ;;  %v7185_v14 = vadd.f32 %v8325_v9, %v6601_v45  ;;  %v8326_v30 = vpop.f32.mrf.mxu1  ;;  %v8512_v1 = vld [vmem:[%s8606_s24 + $0xb0] sm:$0xff] }
 0x454   : > { %v6594_v44 = vadd.f32 %v6593_v7, %v11979_v52  ;;  %v8274_v56 = vpop.f32.mrf.mxu0  ;;  %v8509_v52 = vld [vmem:[%s8606_s24 + $0x90] sm:$0xff] }
 0x455   : > { %7317 = vst.msk [vmem:[%s12035_s19 + $0x40] sm:$0xff] %vm7308_vm11, %v7284_v2  ;;  %v7286_v55 = vmax.f32 %v7254_v36, 0.0  ;;  %v7253_v8 = vadd.f32 %v8508_v62, %v7221_v4  ;;  %v7224_v60 = vadd.f32 %v12023_v26, %v7185_v14  ;;  %v6604_v63 = vadd.f32 %v8274_v56, %v11981_v34  ;;  %v7060_v33 = vpop.f32.mrf.mxu1  ;;  %v8513_v56 = vld [vmem:[%s8606_s24 + $0xa8] sm:$0xff] }
 0x456   : > { %v7184_v43 = vadd.f32 %v7057_v3, %v6594_v44  ;;  %v6596_v32 = vpop.f32.mrf.mxu0 }
 0x457   : > { %7319 = vst.msk [vmem:[%s12035_s19 + $0x50] sm:$0xff] %vm7308_vm11, %v7286_v55  ;;  %v7285_v20 = vmax.f32 %v7253_v8, 0.0  ;;  %v7256_v40 = vadd.f32 %v8509_v52, %v7224_v60  ;;  %v7186_v22 = vadd.f32 %v8326_v30, %v6604_v63  ;;  %v8329_v13 = vpop.f32.mrf.mxu1 }
 0x458   : > { %v7223_v19 = vadd.f32 %v12023_v26, %v7184_v43  ;;  %v8277_v25 = vpop.f32.mrf.mxu0 }
 0x459   : > { %7318 = vst.msk [vmem:[%s12035_s19 + $0x48] sm:$0xff] %vm7308_vm11, %v7285_v20  ;;  %v7288_v29 = vmax.f32 %v7256_v40, 0.0  ;;  %v7225_v34 = vadd.f32 %v12023_v26, %v7186_v22  ;;  %v6616_v58 = vadd.f32 %v8277_v25, %v11983_v39  ;;  %v7072_v31 = vpop.f32.mrf.mxu1 }
 0x45a   : > { %v7255_v61 = vadd.f32 %v8510_v41, %v7223_v19  ;;  %v6608_v11 = vpop.f32.mrf.mxu0 }
 0x45b   : > { %7321 = vst.msk [vmem:[%s12035_s19 + $0x60] sm:$0xff] %vm7308_vm11, %v7288_v29  ;;  %v7257_v35 = vadd.f32 %v8511_v16, %v7225_v34  ;;  %v7188_v54 = vadd.f32 %v8329_v13, %v6616_v58  ;;  %v8330_v21 = vpop.f32.mrf.mxu1  ;;  %v8515_v34 = vld [vmem:[%s8606_s24 + $0xd8] sm:$0xff] }
 0x45c   : > { %v7287_v17 = vmax.f32 %v7255_v61, 0.0  ;;  %v8278_v42 = vpop.f32.mrf.mxu0 }
 0x45d   : > { %v7289_v24 = vmax.f32 %v7257_v35, 0.0  ;;  %v7227_v59 = vadd.f32 %v12023_v26, %v7188_v54  ;;  %v7074_v45 = vpop.f32.mrf.mxu1  ;;  %v8516_v35 = vld [vmem:[%s8606_s24 + $0xc8] sm:$0xff] }
 0x45e   : > { %7320 = vst.msk [vmem:[%s12035_s19 + $0x58] sm:$0xff] %vm7308_vm11, %v7287_v17  ;;  %v6610_v39 = vpop.f32.mrf.mxu0 }
 0x45f   : > { %7322 = vst.msk [vmem:[%s12035_s19 + $0x68] sm:$0xff] %vm7308_vm11, %v7289_v24  ;;  %v7259_v18 = vadd.f32 %v8512_v1, %v7227_v59  ;;  %v6611_v49 = vadd.f32 %v6610_v39, %v11985_v38  ;;  %v8333_v15 = vpop.f32.mrf.mxu1 }
 0x460   : > { %v8281_v9 = vpop.f32.mrf.mxu0 }
 0x461   : > { %v7291_v7 = vmax.f32 %v7259_v18, 0.0  ;;  %v7187_v2 = vadd.f32 %v7074_v45, %v6611_v49  ;;  %v7086_v3 = vpop.f32.mrf.mxu1 }
 0x462   : > { %v6622_v36 = vpop.f32.mrf.mxu0 }
 0x463   : > { %7324 = vst.msk [vmem:[%s12035_s19 + $0x78] sm:$0xff] %vm7308_vm11, %v7291_v7  ;;  %v7226_v4 = vadd.f32 %v12023_v26, %v7187_v2  ;;  %v6623_v14 = vadd.f32 %v6622_v36, %v11987_v12  ;;  %v8334_v8 = vpop.f32.mrf.mxu1  ;;  %v8514_v12 = vld [vmem:[%s8606_s24 + $0xc0] sm:$0xff] }
 0x464   : > { %v8282_v44 = vpop.f32.mrf.mxu0  ;;  %v8518_v2 = vld [vmem:[%s8606_s24 + $0xe0] sm:$0xff] }
 0x465   : > { %v7258_v55 = vadd.f32 %v8513_v56, %v7226_v4  ;;  %v7189_v62 = vadd.f32 %v7086_v3, %v6623_v14  ;;  %v6633_v38 = vadd.f32 %v8282_v44, %v11989_v37  ;;  %v7089_v20 = vpop.f32.mrf.mxu1  ;;  %v8519_v4 = vld [vmem:[%s8606_s24 + $0xf8] sm:$0xff] }
 0x466   : > { %v6625_v60 = vpop.f32.mrf.mxu0 }
 0x467   : > { %v7290_v63 = vmax.f32 %v7258_v55, 0.0  ;;  %v7228_v30 = vadd.f32 %v12023_v26, %v7189_v62  ;;  %v7191_v43 = vadd.f32 %v8334_v8, %v6633_v38  ;;  %v6626_v32 = vadd.f32 %v6625_v60, %v11991_v28  ;;  %v8337_v19 = vpop.f32.mrf.mxu1  ;;  %v8520_v60 = vld [vmem:[%s8606_s24 + $0x110] sm:$0xff] }
 0x468   : > { %v8285_v52 = vpop.f32.mrf.mxu0 }
 0x469   : > { %7323 = vst.msk [vmem:[%s12035_s19 + $0x70] sm:$0xff] %vm7308_vm11, %v7290_v63  ;;  %v7260_v40 = vadd.f32 %v8514_v12, %v7228_v30  ;;  %v7230_v22 = vadd.f32 %v12023_v26, %v7191_v43  ;;  %v7190_v37 = vadd.f32 %v7089_v20, %v6626_v32  ;;  %v6645_v33 = vadd.f32 %v8285_v52, %v11993_v6  ;;  %v7101_v41 = vpop.f32.mrf.mxu1 }
 0x46a   : > { %v6637_v25 = vpop.f32.mrf.mxu0 }
 0x46b   : > { %v7292_v29 = vmax.f32 %v7260_v40, 0.0  ;;  %v7262_v58 = vadd.f32 %v8515_v34, %v7230_v22  ;;  %v7229_v28 = vadd.f32 %v12023_v26, %v7190_v37  ;;  %v7193_v13 = vadd.f32 %v8337_v19, %v6645_v33  ;;  %v8338_v17 = vpop.f32.mrf.mxu1 }
 0x46c   : > { %v6638_v61 = vadd.f32 %v6637_v25, %v11995_v0  ;;  %v8286_v11 = vpop.f32.mrf.mxu0  ;;  %v8517_v0 = vld [vmem:[%s8606_s24 + $0xf0] sm:$0xff]  ;;  %v8521_v25 = vld [vmem:[%s8606_s24 + $0x108] sm:$0xff] }
 0x46d   : > { %7325 = vst.msk [vmem:[%s12035_s19 + $0x80] sm:$0xff] %vm7308_vm11, %v7292_v29  ;;  %v7294_v16 = vmax.f32 %v7262_v58, 0.0  ;;  %v7261_v6 = vadd.f32 %v8516_v35, %v7229_v28  ;;  %v7232_v54 = vadd.f32 %v12023_v26, %v7193_v13  ;;  %v6648_v31 = vadd.f32 %v8286_v11, %v11997_v10  ;;  %v7104_v1 = vpop.f32.mrf.mxu1 }
 0x46e   : > { %v7192_v42 = vadd.f32 %v7101_v41, %v6638_v61  ;;  %v6640_v24 = vpop.f32.mrf.mxu0 }
 0x46f   : > { %7327 = vst.msk [vmem:[%s12035_s19 + $0x90] sm:$0xff] %vm7308_vm11, %v7294_v16  ;;  %v7293_v59 = vmax.f32 %v7261_v6, 0.0  ;;  %v7264_v21 = vadd.f32 %v8517_v0, %v7232_v54  ;;  %v7194_v39 = vadd.f32 %v8338_v17, %v6648_v31  ;;  %v8341_v7 = vpop.f32.mrf.mxu1 }
 0x470   : > { %v7231_v18 = vadd.f32 %v12023_v26, %v7192_v42  ;;  %v8289_v49 = vpop.f32.mrf.mxu0 }
 0x471   : > { %7326 = vst.msk [vmem:[%s12035_s19 + $0x88] sm:$0xff] %vm7308_vm11, %v7293_v59  ;;  %v7296_v45 = vmax.f32 %v7264_v21, 0.0  ;;  %v7233_v10 = vadd.f32 %v12023_v26, %v7194_v39  ;;  %v6660_v9 = vadd.f32 %v8289_v49, %v11999_v57  ;;  %v7116_v44 = vpop.f32.mrf.mxu1  ;;  %v8523_v59 = vld [vmem:[%s8606_s24 + $0x138] sm:$0xff] }
 0x472   : > { %v7263_v15 = vadd.f32 %v8518_v2, %v7231_v18  ;;  %v6652_v36 = vpop.f32.mrf.mxu0 }
 0x473   : > { %7329 = vst.msk [vmem:[%s12035_s19 + $0xa0] sm:$0xff] %vm7308_vm11, %v7296_v45  ;;  %v7265_v14 = vadd.f32 %v8519_v4, %v7233_v10  ;;  %v7196_v3 = vadd.f32 %v8341_v7, %v6660_v9  ;;  %v8342_v8 = vpop.f32.mrf.mxu1  ;;  %v8524_v45 = vld [vmem:[%s8606_s24 + $0x128] sm:$0xff] }
 0x474   : > { %v7295_v56 = vmax.f32 %v7263_v15, 0.0  ;;  %v8290_v55 = vpop.f32.mrf.mxu0  ;;  %v8526_v8 = vld [vmem:[%s8606_s24 + $0x140] sm:$0xff] }
 0x475   : > { %v7297_v62 = vmax.f32 %v7265_v14, 0.0  ;;  %v7235_v38 = vadd.f32 %v12023_v26, %v7196_v3  ;;  %v7118_v43 = vpop.f32.mrf.mxu1 }
 0x476   : > { %7328 = vst.msk [vmem:[%s12035_s19 + $0x98] sm:$0xff] %vm7308_vm11, %v7295_v56  ;;  %v6654_v57 = vpop.f32.mrf.mxu0 }
 0x477   : > { %7330 = vst.msk [vmem:[%s12035_s19 + $0xa8] sm:$0xff] %vm7308_vm11, %v7297_v62  ;;  %v7267_v63 = vadd.f32 %v8520_v60, %v7235_v38  ;;  %v6655_v30 = vadd.f32 %v6654_v57, %v12001_v47  ;;  %v8345_v12 = vpop.f32.mrf.mxu1 }
 0x478   : > { %v8293_v32 = vpop.f32.mrf.mxu0 }
 0x479   : > { %v7299_v20 = vmax.f32 %v7267_v63, 0.0  ;;  %v7195_v52 = vadd.f32 %v7118_v43, %v6655_v30  ;;  %v7130_v33 = vpop.f32.mrf.mxu1  ;;  %v8527_v63 = vld [vmem:[%s8606_s24 + $0x158] sm:$0xff] }
 0x47a   : > { %v6666_v40 = vpop.f32.mrf.mxu0 }
 0x47b   : > { %7332 = vst.msk [vmem:[%s12035_s19 + $0xb8] sm:$0xff] %vm7308_vm11, %v7299_v20  ;;  %v7234_v22 = vadd.f32 %v12023_v26, %v7195_v52  ;;  %v6667_v37 = vadd.f32 %v6666_v40, %v12003_v23  ;;  %v8346_v58 = vpop.f32.mrf.mxu1  ;;  %v8522_v23 = vld [vmem:[%s8606_s24 + $0x120] sm:$0xff] }
 0x47c   : > { %v8294_v19 = vpop.f32.mrf.mxu0 }
 0x47d   : > { %v7266_v29 = vadd.f32 %v8521_v25, %v7234_v22  ;;  %v7197_v34 = vadd.f32 %v7130_v33, %v6667_v37  ;;  %v6677_v47 = vadd.f32 %v8294_v19, %v12005_v46  ;;  %v7133_v16 = vpop.f32.mrf.mxu1  ;;  %v8528_v37 = vld [vmem:[%s8606_s24 + $0x170] sm:$0xff] }
 0x47e   : > { %v6669_v28 = vpop.f32.mrf.mxu0 }
 0x47f   : > { %v7298_v13 = vmax.f32 %v7266_v29, 0.0  ;;  %v7236_v41 = vadd.f32 %v12023_v26, %v7197_v34  ;;  %v7199_v61 = vadd.f32 %v8346_v58, %v6677_v47  ;;  %v6670_v11 = vadd.f32 %v6669_v28, %v12007_v51  ;;  %v8349_v17 = vpop.f32.mrf.mxu1  ;;  %v8529_v58 = vld [vmem:[%s8606_s24 + $0x168] sm:$0xff] }
 0x480   : > { %v8297_v35 = vpop.f32.mrf.mxu0 }
 0x481   : > { %7331 = vst.msk [vmem:[%s12035_s19 + $0xb0] sm:$0xff] %vm7308_vm11, %v7298_v13  ;;  %v7268_v6 = vadd.f32 %v8522_v23, %v7236_v41  ;;  %v7238_v54 = vadd.f32 %v12023_v26, %v7199_v61  ;;  %v7198_v46 = vadd.f32 %v7133_v16, %v6670_v11  ;;  %v6689_v31 = vadd.f32 %v8297_v35, %v12009_v27  ;;  %v7145_v39 = vpop.f32.mrf.mxu1 }
 0x482   : > { %v6681_v42 = vpop.f32.mrf.mxu0 }
 0x483   : > { %v7300_v24 = vmax.f32 %v7268_v6, 0.0  ;;  %v7270_v0 = vadd.f32 %v8523_v59, %v7238_v54  ;;  %v7237_v51 = vadd.f32 %v12023_v26, %v7198_v46  ;;  %v7201_v21 = vadd.f32 %v8349_v17, %v6689_v31  ;;  %v8350_v7 = vpop.f32.mrf.mxu1 }
 0x484   : > { %v6682_v1 = vadd.f32 %v6681_v42, %v12011_v5  ;;  %v8298_v18 = vpop.f32.mrf.mxu0  ;;  %v8525_v5 = vld [vmem:[%s8606_s24 + $0x150] sm:$0xff] }
 0x485   : > { %7333 = vst.msk [vmem:[%s12035_s19 + $0xc0] sm:$0xff] %vm7308_vm11, %v7300_v24  ;;  %v7302_v49 = vmax.f32 %v7270_v0, 0.0  ;;  %v7269_v27 = vadd.f32 %v8524_v45, %v7237_v51  ;;  %v7240_v10 = vadd.f32 %v12023_v26, %v7201_v21  ;;  %v6692_v9 = vadd.f32 %v8298_v18, %v12013_v48  ;;  %v7148_v3 = vpop.f32.mrf.mxu1 }
 0x486   : > { %v7200_v2 = vadd.f32 %v7145_v39, %v6682_v1  ;;  %v6684_v15 = vpop.f32.mrf.mxu0 }
 0x487   : > { %7335 = vst.msk [vmem:[%s12035_s19 + $0xd0] sm:$0xff] %vm7308_vm11, %v7302_v49  ;;  %v7301_v36 = vmax.f32 %v7269_v27, 0.0  ;;  %v7272_v4 = vadd.f32 %v8525_v5, %v7240_v10  ;;  %v7202_v14 = vadd.f32 %v8350_v7, %v6692_v9  ;;  %v8353_v38 = vpop.f32.mrf.mxu1 }
 0x488   : > { %v7239_v44 = vadd.f32 %v12023_v26, %v7200_v2  ;;  %v8301_v56 = vpop.f32.mrf.mxu0 }
 0x489   : > { %7334 = vst.msk [vmem:[%s12035_s19 + $0xc8] sm:$0xff] %vm7308_vm11, %v7301_v36  ;;  %v7304_v55 = vmax.f32 %v7272_v4, 0.0  ;;  %v7241_v48 = vadd.f32 %v12023_v26, %v7202_v14  ;;  %v6704_v62 = vadd.f32 %v8301_v56, %v12015_v53  ;;  %v7160_v32 = vpop.f32.mrf.mxu1 }
 0x48a   : > { %v7271_v57 = vadd.f32 %v8526_v8, %v7239_v44  ;;  %v6696_v60 = vpop.f32.mrf.mxu0 }
 0x48b   : > { %7337 = vst.msk [vmem:[%s12035_s19 + $0xe0] sm:$0xff] %vm7308_vm11, %v7304_v55  ;;  %v7273_v30 = vadd.f32 %v8527_v63, %v7241_v48  ;;  %v7204_v43 = vadd.f32 %v8353_v38, %v6704_v62  ;;  %v8354_v53 = vpop.f32.mrf.mxu1 }
 0x48c   : > { %v7303_v20 = vmax.f32 %v7271_v57, 0.0  ;;  %v8302_v52 = vpop.f32.mrf.mxu0 }
 0x48d   : > { %v7305_v12 = vmax.f32 %v7273_v30, 0.0  ;;  %v7243_v40 = vadd.f32 %v12023_v26, %v7204_v43  ;;  %v7162_v25 = vpop.f32.mrf.mxu1 }
 0x48e   : > { %7336 = vst.msk [vmem:[%s12035_s19 + $0xd8] sm:$0xff] %vm7308_vm11, %v7303_v20  ;;  %v6698_v22 = vpop.f32.mrf.mxu0 }
 0x48f   : > { %7338 = vst.msk [vmem:[%s12035_s19 + $0xe8] sm:$0xff] %vm7308_vm11, %v7305_v12  ;;  %v7275_v33 = vadd.f32 %v8528_v37, %v7243_v40  ;;  %v6699_v19 = vadd.f32 %v6698_v22, %v12017_v50 }
 0x491   : > { %v7307_v29 = vmax.f32 %v7275_v33, 0.0  ;;  %v7203_v34 = vadd.f32 %v7162_v25, %v6699_v19 }
 0x493   : > { %7340 = vst.msk [vmem:[%s12035_s19 + $0xf8] sm:$0xff] %vm7308_vm11, %v7307_v29  ;;  %v7242_v47 = vadd.f32 %v12023_v26, %v7203_v34 }
 0x495   : > { %v7274_v28 = vadd.f32 %v8529_v58, %v7242_v47 }
 0x497   : > { %v7306_v13 = vmax.f32 %v7274_v28, 0.0 }
 0x499   : > { %7339 = vst.msk [vmem:[%s12035_s19 + $0xf0] sm:$0xff] %vm7308_vm11, %v7306_v13 }
 0x49a PF: > { %s15_s18 = sadd.s32 1, %s8536_s18  }
 0x49b   : > { %p12_p4 = scmp.ge.s32.totalorder %s15_s18, 4  }
 0x49d   :  { %14 = sbr.rel (!%p12_p4) target bundleno = 1 (0x1), region = 70 }

</bundles_post_ra>
